<compile_context>
chip_gen: v5e
topology: v5e:2x2
jax: 0.10.0
libtpu: 0.0.40
codegen_flags: <defaults>
</compile_context>

<pallas_src>
import functools

import jax
import jax.numpy as jnp
from jax.experimental import pallas as pl
from jax.experimental.pallas import tpu as pltpu


def _round_up(v, m):
    return -(-v // m) * m


@functools.lru_cache(maxsize=1)
def _tpu_tuning():
    """Return (cout_tile, vmem_limit_bytes_or_None) tuned per TPU generation."""
    try:
        kind = jax.devices()[0].device_kind.lower()
    except Exception:  # pragma: no cover - defensive
        kind = ""
    is_v5e = ("v5 lite" in kind) or ("v5e" in kind) or ("v5litepod" in kind)
    is_v6e = ("v6 lite" in kind) or ("v6e" in kind) or ("trillium" in kind)
    is_v7 = "v7" in kind
    nt = 128 if is_v5e else 256                 # native MXU N-tile width
    if is_v5e or is_v6e:
        vmem = 100 * 1024 * 1024                # 128 MiB physical VMEM
    elif is_v7:
        vmem = 48 * 1024 * 1024                 # 64 MiB physical VMEM
    else:
        vmem = None                             # unknown chip -> compiler default
    return nt, vmem


def _compiler_params(sem):
    _, vmem = _tpu_tuning()
    if vmem is None:
        return pltpu.CompilerParams(dimension_semantics=sem)
    return pltpu.CompilerParams(dimension_semantics=sem, vmem_limit_bytes=vmem)


# ---------------------------------------------------------------------------
# Fused conv kernel: grouped-K matmul + folded-BN bias + optional fused 1x1
# downsample branch + optional residual + ReLU + optional global avg pool.
# grid = (batch, cout_blocks, tap_groups); tap-group axis is the reduction.
# ---------------------------------------------------------------------------
def _conv_kernel(*refs, has_res, has_ds, relu, do_avg, ds_group, m_valid):
    it = iter(refs)
    x_ref = next(it)                      # (1, 1, Mpad, Kp) bf16
    w_ref = next(it)                      # (1, Kp, ct)      bf16
    b_ref = next(it)                      # (1, ct)          f32
    res_ref = next(it) if has_res else None
    dsw_ref = next(it) if has_ds else None
    dsb_ref = next(it) if has_ds else None
    out_ref = next(it)                    # (1, Mpad, ct)    bf16
    ds_out_ref = next(it) if has_ds else None
    avg_ref = next(it) if do_avg else None
    acc_ref = next(it)                    # (Mpad, ct)       f32 scratch

    g = pl.program_id(2)
    ng = pl.num_programs(2)

    @pl.when(g == 0)
    def _init():
        acc_ref[...] = jnp.zeros_like(acc_ref)

    x = x_ref[0, 0]                       # (Mpad, Kp) bf16, K lane-dense
    acc_ref[...] += jnp.dot(x, w_ref[0], preferred_element_type=jnp.float32)

    if has_ds:
        # 1x1/stride-s downsample branch shares the x slab of tap group
        # `ds_group` (its single tap is zero-embedded inside the Kp weights).
        @pl.when(g == ds_group)
        def _downsample():
            ds = jnp.dot(x, dsw_ref[...], preferred_element_type=jnp.float32)
            ds_out_ref[0] = (ds + dsb_ref[...]).astype(ds_out_ref.dtype)

    @pl.when(g == ng - 1)
    def _finalize():
        out = acc_ref[...] + b_ref[...]
        if has_res:
            out = out + res_ref[0].astype(jnp.float32)
        if relu:
            out = jnp.maximum(out, 0.0)
        out_ref[0] = out.astype(out_ref.dtype)
        if do_avg:
            rows = jax.lax.broadcasted_iota(jnp.int32, out.shape, 0)
            pooled = jnp.sum(jnp.where(rows < m_valid, out, 0.0),
                             axis=0, keepdims=True)
            avg_ref[0] = pooled * (1.0 / m_valid)


def conv_bn(x_nhwc, w_hwio, bn_scale, bn_bias, *, stride, pad, relu,
            residual=None, downsample=None, do_avg=False):
    """Conv2d(bias=False) + folded inference-BN, fused epilogue.

    Returns (out, ds_out, avg, Ho, Wo).  out / ds_out are (N, Mpad, Cout)
    bf16 output-position slabs (Mpad = Ho*Wo rounded up to 8); avg is
    (N, 1, Cout) f32 (global average over the Ho*Wo valid positions).
    """
    N, H, W, Cin = x_nhwc.shape
    kh, kw, _, Cout = w_hwio.shape
    s = stride
    Ho = (H + 2 * pad - kh) // s + 1
    Wo = (W + 2 * pad - kw) // s + 1
    M = Ho * Wo
    Mpad = _round_up(M, 8)

    # --- wrapper-side tap gather (partial im2col) --------------------------
    # Tiny Cin (stem): fold ALL taps into K -> one K = kh*kw*Cin dense dot.
    # Otherwise: group taps by kernel row ki -> G = kh dots of K = kw*Cin,
    # which keeps the MXU reduction depth >= 192 while only duplicating the
    # activations kw-fold.
    if Cin * kw < 128:
        groups = [tuple((ki, kj) for ki in range(kh) for kj in range(kw))]
    else:
        groups = [tuple((ki, kj) for kj in range(kw)) for ki in range(kh)]
    G = len(groups)
    Kg = len(groups[0]) * Cin

    xb = x_nhwc.astype(jnp.bfloat16)
    xpad = jnp.pad(xb, ((0, 0), (pad, pad), (pad, pad), (0, 0)))
    planes = []
    for grp in groups:
        taps = [xpad[:, ki:ki + s * (Ho - 1) + 1:s,
                     kj:kj + s * (Wo - 1) + 1:s, :]
                for (ki, kj) in grp]
        planes.append(jnp.concatenate(taps, axis=-1).reshape(N, M, Kg))
    xg = jnp.stack(planes, axis=1)                          # (N, G, M, Kg)

    # Fold inference-mode BN scale into the weights; only the bias stays.
    wf = w_hwio.astype(jnp.float32) * bn_scale[None, None, None, :]
    wg = jnp.stack([jnp.concatenate([wf[ki, kj] for (ki, kj) in grp], axis=0)
                    for grp in groups], axis=0)             # (G, Kg, Cout)
    bias = bn_bias.reshape(1, Cout).astype(jnp.float32)

    has_ds = downsample is not None
    ds_group = -1
    dsw = dsb = None
    if has_ds:
        ds_w, ds_scale, ds_bias_v = downsample  # 1x1 conv (stride s, pad 0) + BN
        # Its single tap is padded-input pixel (s*ho+pad, s*wo+pad) == tap
        # (pad, pad) of this conv's gather -> reuse the same x slab.
        loc = [(gi, pi) for gi, grp in enumerate(groups)
               for pi, t in enumerate(grp) if t == (pad, pad)]
        assert loc, "downsample fusion needs tap (pad, pad) inside the window"
        ds_group, ds_pos = loc[0]
        dsw_small = ds_w[0, 0].astype(jnp.float32) * ds_scale[None, :]
        dsw = jnp.zeros((Kg, Cout), jnp.float32).at[
            ds_pos * Cin:(ds_pos + 1) * Cin].set(dsw_small)
        dsb = ds_bias_v.reshape(1, Cout).astype(jnp.float32)

    # --- alignment padding (sublane-aligned M, 8-aligned K) -----------------
    if Mpad != M:
        xg = jnp.pad(xg, ((0, 0), (0, 0), (0, Mpad - M), (0, 0)))
    Kp = _round_up(Kg, 8)
    if Kp != Kg:
        xg = jnp.pad(xg, ((0, 0), (0, 0), (0, 0), (0, Kp - Kg)))
        wg = jnp.pad(wg, ((0, 0), (0, Kp - Kg), (0, 0)))
        if has_ds:
            dsw = jnp.pad(dsw, ((0, Kp - Kg), (0, 0)))
    wg = wg.astype(jnp.bfloat16)
    if has_ds:
        dsw = dsw.astype(jnp.bfloat16)

    has_res = residual is not None
    if has_res:
        assert residual.shape == (N, Mpad, Cout), (residual.shape,
                                                   (N, Mpad, Cout))
        residual = residual.astype(jnp.bfloat16)

    nt, _ = _tpu_tuning()
    ct = Cout if Cout <= nt else nt
    cb = Cout // ct

    in_specs = [
        pl.BlockSpec((1, 1, Mpad, Kp), lambda n, c, g: (n, g, 0, 0)),
        pl.BlockSpec((1, Kp, ct), lambda n, c, g: (g, 0, c)),
        pl.BlockSpec((1, ct), lambda n, c, g: (0, c)),
    ]
    args = [xg, wg, bias]
    if has_res:
        in_specs.append(pl.BlockSpec((1, Mpad, ct), lambda n, c, g: (n, 0, c)))
        args.append(residual)
    if has_ds:
        in_specs.append(pl.BlockSpec((Kp, ct), lambda n, c, g: (0, c)))
        in_specs.append(pl.BlockSpec((1, ct), lambda n, c, g: (0, c)))
        args += [dsw, dsb]

    out_shapes = [jax.ShapeDtypeStruct((N, Mpad, Cout), jnp.bfloat16)]
    out_specs = [pl.BlockSpec((1, Mpad, ct), lambda n, c, g: (n, 0, c))]
    if has_ds:
        out_shapes.append(jax.ShapeDtypeStruct((N, Mpad, Cout), jnp.bfloat16))
        out_specs.append(pl.BlockSpec((1, Mpad, ct), lambda n, c, g: (n, 0, c)))
    if do_avg:
        out_shapes.append(jax.ShapeDtypeStruct((N, 1, Cout), jnp.float32))
        out_specs.append(pl.BlockSpec((1, 1, ct), lambda n, c, g: (n, 0, c)))

    res = pl.pallas_call(
        functools.partial(_conv_kernel, has_res=has_res, has_ds=has_ds,
                          relu=relu, do_avg=do_avg, ds_group=ds_group,
                          m_valid=M),
        out_shape=tuple(out_shapes),
        grid_spec=pltpu.PrefetchScalarGridSpec(
            num_scalar_prefetch=0,
            grid=(N, cb, G),                       # reduction (tap-group) last
            in_specs=in_specs,
            out_specs=tuple(out_specs),
            scratch_shapes=[pltpu.VMEM((Mpad, ct), jnp.float32)],
        ),
        compiler_params=_compiler_params(("parallel", "parallel", "arbitrary")),
    )(*args)
    if not isinstance(res, (tuple, list)):
        res = (res,)
    out = res[0]
    ds_out = res[1] if has_ds else None
    avg = res[-1] if do_avg else None
    return out, ds_out, avg, Ho, Wo


# ---------------------------------------------------------------------------
# MaxPool2d(kernel=3, stride=2, padding=1) — tap-stacked bf16 max reduce
# ---------------------------------------------------------------------------
def _maxpool_kernel(x_ref, o_ref):
    o_ref[0] = jnp.max(x_ref[0], axis=0)     # bf16 max over taps (exact)


def maxpool2d(x_nhwc, k=3, stride=2, pad=1):
    N, H, W, C = x_nhwc.shape
    s = stride
    Ho = (H + 2 * pad - k) // s + 1
    Wo = (W + 2 * pad - k) // s + 1
    M = Ho * Wo
    Mpad = _round_up(M, 8)
    xb = x_nhwc.astype(jnp.bfloat16)
    xpad = jnp.pad(xb, ((0, 0), (pad, pad), (pad, pad), (0, 0)),
                   constant_values=-jnp.inf)
    taps = [xpad[:, ki:ki + s * (Ho - 1) + 1:s,
                 kj:kj + s * (Wo - 1) + 1:s, :].reshape(N, 1, M, C)
            for ki in range(k) for kj in range(k)]
    xt = jnp.concatenate(taps, axis=1)                       # (N, k*k, M, C)
    if Mpad != M:
        xt = jnp.pad(xt, ((0, 0), (0, 0), (0, Mpad - M), (0, 0)))
    out = pl.pallas_call(
        _maxpool_kernel,
        out_shape=jax.ShapeDtypeStruct((N, Mpad, C), jnp.bfloat16),
        grid_spec=pltpu.PrefetchScalarGridSpec(
            num_scalar_prefetch=0,
            grid=(N,),
            in_specs=[pl.BlockSpec((1, k * k, Mpad, C),
                                   lambda n: (n, 0, 0, 0))],
            out_specs=pl.BlockSpec((1, Mpad, C), lambda n: (n, 0, 0)),
        ),
        compiler_params=_compiler_params(("parallel",)),
    )(xt)
    return out, Ho, Wo


def _to_nhwc(act, Ho, Wo):
    N, _, C = act.shape
    return act[:, :Ho * Wo, :].reshape(N, Ho, Wo, C)


# ---------------------------------------------------------------------------
# Parameter construction (kaiming-normal fan_out convs, BN gamma=1/beta=0,
# running_mean=0 / running_var=1, folded into scale/bias).
# ---------------------------------------------------------------------------
def _conv_w(key, kh, kw, cin, cout):
    fan_out = kh * kw * cout
    std = (2.0 / fan_out) ** 0.5
    return std * jax.random.normal(key, (kh, kw, cin, cout), jnp.float32)


def _bn_params(c, eps=1e-5):
    gamma = jnp.ones((c,), jnp.float32)
    beta = jnp.zeros((c,), jnp.float32)
    mean = jnp.zeros((c,), jnp.float32)
    var = jnp.ones((c,), jnp.float32)
    scale = gamma / jnp.sqrt(var + eps)
    bias = beta - mean * scale
    return scale, bias


def init_resnet_params(key, layers=(1, 1, 1, 1)):
    params = {}
    key, k = jax.random.split(key)
    params["conv1_w"] = _conv_w(k, 7, 7, 3, 64)
    params["bn1"] = _bn_params(64)
    inplanes = 64
    stages = []
    for planes, blocks, stride in zip((64, 128, 256, 512), layers,
                                      (1, 2, 2, 2)):
        stage = []
        for bi in range(blocks):
            s = stride if bi == 0 else 1
            key, k1, k2, k3 = jax.random.split(key, 4)
            blk = {
                "conv1_w": _conv_w(k1, 3, 3, inplanes, planes),
                "bn1": _bn_params(planes),
                "conv2_w": _conv_w(k2, 3, 3, planes, planes),
                "bn2": _bn_params(planes),
                "stride": s,
            }
            if s != 1 or inplanes != planes:       # BasicBlock expansion == 1
                blk["ds_w"] = _conv_w(k3, 1, 1, inplanes, planes)
                blk["ds_bn"] = _bn_params(planes)
            inplanes = planes
            stage.append(blk)
        stages.append(stage)
    params["stages"] = stages
    return params


# ---------------------------------------------------------------------------
# Forward pass (matches ResNet._forward_impl with BasicBlock, no fc head)
# ---------------------------------------------------------------------------
def basic_block_forward(act, Ho, Wo, blk, do_avg=False):
    s = blk["stride"]
    x_nhwc = _to_nhwc(act, Ho, Wo)
    has_ds = "ds_w" in blk
    ds = (blk["ds_w"], *blk["ds_bn"]) if has_ds else None
    # conv1 (+ fused 1x1 downsample branch sharing the same x slab)
    out1, ds_out, _, Ho, Wo = conv_bn(x_nhwc, blk["conv1_w"], *blk["bn1"],
                                      stride=s, pad=1, relu=True,
                                      downsample=ds)
    identity = ds_out if has_ds else act           # packed (N, Mpad, planes)
    # conv2 + bn2 + residual add + ReLU (+ global avgpool for the last block)
    out2, _, avg, Ho, Wo = conv_bn(_to_nhwc(out1, Ho, Wo),
                                   blk["conv2_w"], *blk["bn2"],
                                   stride=1, pad=1, relu=True,
                                   residual=identity, do_avg=do_avg)
    return out2, Ho, Wo, avg


def resnet_forward(params, x_nchw):
    x = jnp.transpose(x_nchw, (0, 2, 3, 1))        # NCHW -> NHWC (lane-dense C)
    out, _, _, Ho, Wo = conv_bn(x, params["conv1_w"], *params["bn1"],
                                stride=2, pad=3, relu=True)
    act, Ho, Wo = maxpool2d(_to_nhwc(out, Ho, Wo), k=3, stride=2, pad=1)
    stages = params["stages"]
    n_blocks = sum(len(st) for st in stages)
    bi = 0
    avg = None
    for stage in stages:
        for blk in stage:
            bi += 1
            act, Ho, Wo, avg = basic_block_forward(act, Ho, Wo, blk,
                                                   do_avg=(bi == n_blocks))
    return avg.reshape(act.shape[0], -1)           # (N, 512) == flatten(avgpool)


if __name__ == "__main__":
    key = jax.random.PRNGKey(0)
    pkey, xkey = jax.random.split(key)
    params = init_resnet_params(pkey, layers=(1, 1, 1, 1))

    # Small NCHW input, 3 channels as required by the stem conv.
    x = jax.random.normal(xkey, (2, 3, 32, 32), jnp.float32)

    fwd = jax.jit(lambda inp: resnet_forward(params, inp))
    out = fwd(x)
    jax.block_until_ready(out)

    assert out.shape == (2, 512), out.shape
    assert bool(jnp.all(jnp.isfinite(out)))
    print("KERNEL_OK")
</pallas_src>

<mosaic_0001>
module attributes {stable_mosaic.version = 11 : i64} {
  func.func @_conv_kernel(%arg0: i32, %arg1: i32, %arg2: i32, %arg3: memref<1x1x256x152xbf16, #tpu.memory_space<vmem>>, %arg4: memref<1x152x64xbf16, #tpu.memory_space<vmem>>, %arg5: memref<1x64xf32, #tpu.memory_space<vmem>>, %arg6: memref<1x256x64xbf16, #tpu.memory_space<vmem>>, %arg7: memref<256x64xf32, #tpu.memory_space<vmem>>) attributes {dimension_semantics = [#tpu.dimension_semantics<parallel>, #tpu.dimension_semantics<parallel>, #tpu.dimension_semantics<arbitrary>], iteration_bounds = array<i64: 2, 1, 1>, scalar_prefetch = 0 : i64, scratch_operands = 1 : i64, tpu.core_type = #tpu.core_type<tc>, window_params = [{transform_indices = @transform_0, window_bounds = array<i64: 1, 1, 256, 152>}, {transform_indices = @transform_1, window_bounds = array<i64: 1, 152, 64>}, {transform_indices = @transform_2, window_bounds = array<i64: 1, 64>}, {transform_indices = @transform_3, window_bounds = array<i64: 1, 256, 64>}]} {
    %c0_i32 = arith.constant 0 : i32
    %0 = arith.cmpi eq, %arg2, %c0_i32 : i32
    %1 = arith.extui %0 : i1 to i32
    %c0_i32_0 = arith.constant 0 : i32
    %2 = arith.cmpi ne, %1, %c0_i32_0 : i32
    scf.if %2 {
      %cst_13 = arith.constant 0.000000e+00 : f32
      %14 = vector.broadcast %cst_13 : f32 to vector<256x64xf32>
      %c0_14 = arith.constant 0 : index
      %c0_15 = arith.constant 0 : index
      %15 = vector.load %arg7[%c0_14, %c0_15] : memref<256x64xf32, #tpu.memory_space<vmem>>, vector<256x64xf32>
      tpu.vector_store %arg7[%c0_14, %c0_15], %14 {strides = array<i32>} : memref<256x64xf32, #tpu.memory_space<vmem>>, vector<256x64xf32>,
    } else {
    }
    %c0 = arith.constant 0 : index
    %c0_1 = arith.constant 0 : index
    %c0_2 = arith.constant 0 : index
    %c0_3 = arith.constant 0 : index
    %3 = vector.load %arg3[%c0, %c0_1, %c0_2, %c0_3] : memref<1x1x256x152xbf16, #tpu.memory_space<vmem>>, vector<1x1x256x152xbf16>
    %4 = vector.shape_cast %3 : vector<1x1x256x152xbf16> to vector<256x152xbf16>
    %c0_4 = arith.constant 0 : index
    %c0_5 = arith.constant 0 : index
    %5 = vector.load %arg7[%c0_4, %c0_5] : memref<256x64xf32, #tpu.memory_space<vmem>>, vector<256x64xf32>
    %c0_6 = arith.constant 0 : index
    %c0_7 = arith.constant 0 : index
    %c0_8 = arith.constant 0 : index
    %6 = vector.load %arg4[%c0_6, %c0_7, %c0_8] : memref<1x152x64xbf16, #tpu.memory_space<vmem>>, vector<1x152x64xbf16>
    %7 = vector.shape_cast %6 : vector<1x152x64xbf16> to vector<152x64xbf16>
    %cst = arith.constant dense<0.000000e+00> : vector<256x64xf32>
    %8 = tpu.matmul %4, %7, %cst {dimension_numbers = #tpu.dot_dimension_numbers<[1], [0], [0], [1], [0, 0, 1, 1], [], []>} : vector<256x152xbf16>, vector<152x64xbf16>, vector<256x64xf32> -> vector<256x64xf32>
    %9 = arith.addf %5, %8 : vector<256x64xf32>
    %c0_9 = arith.constant 0 : index
    %c0_10 = arith.constant 0 : index
    %10 = vector.load %arg7[%c0_9, %c0_10] : memref<256x64xf32, #tpu.memory_space<vmem>>, vector<256x64xf32>
    tpu.vector_store %arg7[%c0_9, %c0_10], %9 {strides = array<i32>} : memref<256x64xf32, #tpu.memory_space<vmem>>, vector<256x64xf32>,
    %c0_i32_11 = arith.constant 0 : i32
    %11 = arith.cmpi eq, %arg2, %c0_i32_11 : i32
    %12 = arith.extui %11 : i1 to i32
    %c0_i32_12 = arith.constant 0 : i32
    %13 = arith.cmpi ne, %12, %c0_i32_12 : i32
    scf.if %13 {
      %c0_13 = arith.constant 0 : index
      %c0_14 = arith.constant 0 : index
      %14 = vector.load %arg7[%c0_13, %c0_14] : memref<256x64xf32, #tpu.memory_space<vmem>>, vector<256x64xf32>
      %c0_15 = arith.constant 0 : index
      %c0_16 = arith.constant 0 : index
      %15 = vector.load %arg5[%c0_15, %c0_16] : memref<1x64xf32, #tpu.memory_space<vmem>>, vector<1x64xf32>
      %16 = vector.broadcast %15 : vector<1x64xf32> to vector<256x64xf32>
      %17 = arith.addf %14, %16 : vector<256x64xf32>
      %cst_17 = arith.constant 0.000000e+00 : f32
      %18 = vector.broadcast %cst_17 : f32 to vector<256x64xf32>
      %19 = arith.maximumf %17, %18 : vector<256x64xf32>
      %20 = arith.truncf %19 : vector<256x64xf32> to vector<256x64xbf16>
      %c0_18 = arith.constant 0 : index
      %c0_19 = arith.constant 0 : index
      %c0_20 = arith.constant 0 : index
      %21 = vector.load %arg6[%c0_18, %c0_19, %c0_20] : memref<1x256x64xbf16, #tpu.memory_space<vmem>>, vector<1x256x64xbf16>
      %22 = vector.shape_cast %21 : vector<1x256x64xbf16> to vector<256x64xbf16>
      %23 = vector.shape_cast %20 : vector<256x64xbf16> to vector<1x256x64xbf16>
      tpu.vector_store %arg6[%c0_18, %c0_19, %c0_20], %23 {strides = array<i32>} : memref<1x256x64xbf16, #tpu.memory_space<vmem>>, vector<1x256x64xbf16>,
    } else {
    }
    return
  }
  func.func @transform_0(%arg0: i32, %arg1: i32, %arg2: i32) -> (i32, i32, i32, i32) {
    %c0_i32 = arith.constant 0 : i32
    %c0_i32_0 = arith.constant 0 : i32
    %c0_i32_1 = arith.constant 0 : i32
    return %arg0, %arg2, %c0_i32, %c0_i32_0 : i32, i32, i32, i32
  }
  func.func @transform_1(%arg0: i32, %arg1: i32, %arg2: i32) -> (i32, i32, i32) {
    %c0_i32 = arith.constant 0 : i32
    %c0_i32_0 = arith.constant 0 : i32
    return %arg2, %c0_i32, %arg1 : i32, i32, i32
  }
  func.func @transform_2(%arg0: i32, %arg1: i32, %arg2: i32) -> (i32, i32) {
    %c0_i32 = arith.constant 0 : i32
    %c0_i32_0 = arith.constant 0 : i32
    return %c0_i32, %arg1 : i32, i32
  }
  func.func @transform_3(%arg0: i32, %arg1: i32, %arg2: i32) -> (i32, i32, i32) {
    %c0_i32 = arith.constant 0 : i32
    %c0_i32_0 = arith.constant 0 : i32
    return %arg0, %c0_i32, %arg1 : i32, i32, i32
  }
}

module attributes {stable_mosaic.version = 11 : i64} {
  func.func @_maxpool_kernel(%arg0: i32, %arg1: memref<1x9x64x64xbf16, #tpu.memory_space<vmem>>, %arg2: memref<1x64x64xbf16, #tpu.memory_space<vmem>>) attributes {dimension_semantics = [#tpu.dimension_semantics<parallel>], iteration_bounds = array<i64: 2>, scalar_prefetch = 0 : i64, scratch_operands = 0 : i64, tpu.core_type = #tpu.core_type<tc>, window_params = [{transform_indices = @transform_0, window_bounds = array<i64: 1, 9, 64, 64>}, {transform_indices = @transform_1, window_bounds = array<i64: 1, 64, 64>}]} {
    %c0 = arith.constant 0 : index
    %c0_0 = arith.constant 0 : index
    %c0_1 = arith.constant 0 : index
    %c0_2 = arith.constant 0 : index
    %0 = vector.load %arg1[%c0, %c0_0, %c0_1, %c0_2] : memref<1x9x64x64xbf16, #tpu.memory_space<vmem>>, vector<1x9x64x64xbf16>
    %1 = vector.shape_cast %0 : vector<1x9x64x64xbf16> to vector<9x64x64xbf16>
    %cst = arith.constant dense<0xFF80> : vector<64x64xbf16>
    %2 = vector.multi_reduction <maximumf>, %1, %cst [0] : vector<9x64x64xbf16> to vector<64x64xbf16>
    %c0_3 = arith.constant 0 : index
    %c0_4 = arith.constant 0 : index
    %c0_5 = arith.constant 0 : index
    %3 = vector.load %arg2[%c0_3, %c0_4, %c0_5] : memref<1x64x64xbf16, #tpu.memory_space<vmem>>, vector<1x64x64xbf16>
    %4 = vector.shape_cast %3 : vector<1x64x64xbf16> to vector<64x64xbf16>
    %5 = vector.shape_cast %2 : vector<64x64xbf16> to vector<1x64x64xbf16>
    tpu.vector_store %arg2[%c0_3, %c0_4, %c0_5], %5 {strides = array<i32>} : memref<1x64x64xbf16, #tpu.memory_space<vmem>>, vector<1x64x64xbf16>,
    return
  }
  func.func @transform_0(%arg0: i32) -> (i32, i32, i32, i32) {
    %c0_i32 = arith.constant 0 : i32
    %c0_i32_0 = arith.constant 0 : i32
    %c0_i32_1 = arith.constant 0 : i32
    %c0_i32_2 = arith.constant 0 : i32
    return %arg0, %c0_i32, %c0_i32_0, %c0_i32_1 : i32, i32, i32, i32
  }
  func.func @transform_1(%arg0: i32) -> (i32, i32, i32) {
    %c0_i32 = arith.constant 0 : i32
    %c0_i32_0 = arith.constant 0 : i32
    %c0_i32_1 = arith.constant 0 : i32
    return %arg0, %c0_i32, %c0_i32_0 : i32, i32, i32
  }
}

module attributes {stable_mosaic.version = 11 : i64} {
  func.func @_conv_kernel(%arg0: i32, %arg1: i32, %arg2: i32, %arg3: memref<1x1x64x192xbf16, #tpu.memory_space<vmem>>, %arg4: memref<1x192x64xbf16, #tpu.memory_space<vmem>>, %arg5: memref<1x64xf32, #tpu.memory_space<vmem>>, %arg6: memref<1x64x64xbf16, #tpu.memory_space<vmem>>, %arg7: memref<64x64xf32, #tpu.memory_space<vmem>>) attributes {dimension_semantics = [#tpu.dimension_semantics<parallel>, #tpu.dimension_semantics<parallel>, #tpu.dimension_semantics<arbitrary>], iteration_bounds = array<i64: 2, 1, 3>, scalar_prefetch = 0 : i64, scratch_operands = 1 : i64, tpu.core_type = #tpu.core_type<tc>, window_params = [{transform_indices = @transform_0, window_bounds = array<i64: 1, 1, 64, 192>}, {transform_indices = @transform_1, window_bounds = array<i64: 1, 192, 64>}, {transform_indices = @transform_2, window_bounds = array<i64: 1, 64>}, {transform_indices = @transform_3, window_bounds = array<i64: 1, 64, 64>}]} {
    %c0_i32 = arith.constant 0 : i32
    %0 = arith.cmpi eq, %arg2, %c0_i32 : i32
    %1 = arith.extui %0 : i1 to i32
    %c0_i32_0 = arith.constant 0 : i32
    %2 = arith.cmpi ne, %1, %c0_i32_0 : i32
    scf.if %2 {
      %cst_12 = arith.constant 0.000000e+00 : f32
      %14 = vector.broadcast %cst_12 : f32 to vector<64x64xf32>
      %c0_13 = arith.constant 0 : index
      %c0_14 = arith.constant 0 : index
      %15 = vector.load %arg7[%c0_13, %c0_14] : memref<64x64xf32, #tpu.memory_space<vmem>>, vector<64x64xf32>
      tpu.vector_store %arg7[%c0_13, %c0_14], %14 {strides = array<i32>} : memref<64x64xf32, #tpu.memory_space<vmem>>, vector<64x64xf32>,
    } else {
    }
    %c0 = arith.constant 0 : index
    %c0_1 = arith.constant 0 : index
    %c0_2 = arith.constant 0 : index
    %c0_3 = arith.constant 0 : index
    %3 = vector.load %arg3[%c0, %c0_1, %c0_2, %c0_3] : memref<1x1x64x192xbf16, #tpu.memory_space<vmem>>, vector<1x1x64x192xbf16>
    %4 = vector.shape_cast %3 : vector<1x1x64x192xbf16> to vector<64x192xbf16>
    %c0_4 = arith.constant 0 : index
    %c0_5 = arith.constant 0 : index
    %5 = vector.load %arg7[%c0_4, %c0_5] : memref<64x64xf32, #tpu.memory_space<vmem>>, vector<64x64xf32>
    %c0_6 = arith.constant 0 : index
    %c0_7 = arith.constant 0 : index
    %c0_8 = arith.constant 0 : index
    %6 = vector.load %arg4[%c0_6, %c0_7, %c0_8] : memref<1x192x64xbf16, #tpu.memory_space<vmem>>, vector<1x192x64xbf16>
    %7 = vector.shape_cast %6 : vector<1x192x64xbf16> to vector<192x64xbf16>
    %cst = arith.constant dense<0.000000e+00> : vector<64x64xf32>
    %8 = tpu.matmul %4, %7, %cst {dimension_numbers = #tpu.dot_dimension_numbers<[1], [0], [0], [1], [0, 0, 1, 1], [], []>} : vector<64x192xbf16>, vector<192x64xbf16>, vector<64x64xf32> -> vector<64x64xf32>
    %9 = arith.addf %5, %8 : vector<64x64xf32>
    %c0_9 = arith.constant 0 : index
    %c0_10 = arith.constant 0 : index
    %10 = vector.load %arg7[%c0_9, %c0_10] : memref<64x64xf32, #tpu.memory_space<vmem>>, vector<64x64xf32>
    tpu.vector_store %arg7[%c0_9, %c0_10], %9 {strides = array<i32>} : memref<64x64xf32, #tpu.memory_space<vmem>>, vector<64x64xf32>,
    %c2_i32 = arith.constant 2 : i32
    %11 = arith.cmpi eq, %arg2, %c2_i32 : i32
    %12 = arith.extui %11 : i1 to i32
    %c0_i32_11 = arith.constant 0 : i32
    %13 = arith.cmpi ne, %12, %c0_i32_11 : i32
    scf.if %13 {
      %c0_12 = arith.constant 0 : index
      %c0_13 = arith.constant 0 : index
      %14 = vector.load %arg7[%c0_12, %c0_13] : memref<64x64xf32, #tpu.memory_space<vmem>>, vector<64x64xf32>
      %c0_14 = arith.constant 0 : index
      %c0_15 = arith.constant 0 : index
      %15 = vector.load %arg5[%c0_14, %c0_15] : memref<1x64xf32, #tpu.memory_space<vmem>>, vector<1x64xf32>
      %16 = vector.broadcast %15 : vector<1x64xf32> to vector<64x64xf32>
      %17 = arith.addf %14, %16 : vector<64x64xf32>
      %cst_16 = arith.constant 0.000000e+00 : f32
      %18 = vector.broadcast %cst_16 : f32 to vector<64x64xf32>
      %19 = arith.maximumf %17, %18 : vector<64x64xf32>
      %20 = arith.truncf %19 : vector<64x64xf32> to vector<64x64xbf16>
      %c0_17 = arith.constant 0 : index
      %c0_18 = arith.constant 0 : index
      %c0_19 = arith.constant 0 : index
      %21 = vector.load %arg6[%c0_17, %c0_18, %c0_19] : memref<1x64x64xbf16, #tpu.memory_space<vmem>>, vector<1x64x64xbf16>
      %22 = vector.shape_cast %21 : vector<1x64x64xbf16> to vector<64x64xbf16>
      %23 = vector.shape_cast %20 : vector<64x64xbf16> to vector<1x64x64xbf16>
      tpu.vector_store %arg6[%c0_17, %c0_18, %c0_19], %23 {strides = array<i32>} : memref<1x64x64xbf16, #tpu.memory_space<vmem>>, vector<1x64x64xbf16>,
    } else {
    }
    return
  }
  func.func @transform_0(%arg0: i32, %arg1: i32, %arg2: i32) -> (i32, i32, i32, i32) {
    %c0_i32 = arith.constant 0 : i32
    %c0_i32_0 = arith.constant 0 : i32
    %c0_i32_1 = arith.constant 0 : i32
    return %arg0, %arg2, %c0_i32, %c0_i32_0 : i32, i32, i32, i32
  }
  func.func @transform_1(%arg0: i32, %arg1: i32, %arg2: i32) -> (i32, i32, i32) {
    %c0_i32 = arith.constant 0 : i32
    %c0_i32_0 = arith.constant 0 : i32
    return %arg2, %c0_i32, %arg1 : i32, i32, i32
  }
  func.func @transform_2(%arg0: i32, %arg1: i32, %arg2: i32) -> (i32, i32) {
    %c0_i32 = arith.constant 0 : i32
    %c0_i32_0 = arith.constant 0 : i32
    return %c0_i32, %arg1 : i32, i32
  }
  func.func @transform_3(%arg0: i32, %arg1: i32, %arg2: i32) -> (i32, i32, i32) {
    %c0_i32 = arith.constant 0 : i32
    %c0_i32_0 = arith.constant 0 : i32
    return %arg0, %c0_i32, %arg1 : i32, i32, i32
  }
}

module attributes {stable_mosaic.version = 11 : i64} {
  func.func @_conv_kernel(%arg0: i32, %arg1: i32, %arg2: i32, %arg3: memref<1x1x64x192xbf16, #tpu.memory_space<vmem>>, %arg4: memref<1x192x64xbf16, #tpu.memory_space<vmem>>, %arg5: memref<1x64xf32, #tpu.memory_space<vmem>>, %arg6: memref<1x64x64xbf16, #tpu.memory_space<vmem>>, %arg7: memref<1x64x64xbf16, #tpu.memory_space<vmem>>, %arg8: memref<64x64xf32, #tpu.memory_space<vmem>>) attributes {dimension_semantics = [#tpu.dimension_semantics<parallel>, #tpu.dimension_semantics<parallel>, #tpu.dimension_semantics<arbitrary>], iteration_bounds = array<i64: 2, 1, 3>, scalar_prefetch = 0 : i64, scratch_operands = 1 : i64, tpu.core_type = #tpu.core_type<tc>, window_params = [{transform_indices = @transform_0, window_bounds = array<i64: 1, 1, 64, 192>}, {transform_indices = @transform_1, window_bounds = array<i64: 1, 192, 64>}, {transform_indices = @transform_2, window_bounds = array<i64: 1, 64>}, {transform_indices = @transform_3, window_bounds = array<i64: 1, 64, 64>}, {transform_indices = @transform_4, window_bounds = array<i64: 1, 64, 64>}]} {
    %c0_i32 = arith.constant 0 : i32
    %0 = arith.cmpi eq, %arg2, %c0_i32 : i32
    %1 = arith.extui %0 : i1 to i32
    %c0_i32_0 = arith.constant 0 : i32
    %2 = arith.cmpi ne, %1, %c0_i32_0 : i32
    scf.if %2 {
      %cst_12 = arith.constant 0.000000e+00 : f32
      %14 = vector.broadcast %cst_12 : f32 to vector<64x64xf32>
      %c0_13 = arith.constant 0 : index
      %c0_14 = arith.constant 0 : index
      %15 = vector.load %arg8[%c0_13, %c0_14] : memref<64x64xf32, #tpu.memory_space<vmem>>, vector<64x64xf32>
      tpu.vector_store %arg8[%c0_13, %c0_14], %14 {strides = array<i32>} : memref<64x64xf32, #tpu.memory_space<vmem>>, vector<64x64xf32>,
    } else {
    }
    %c0 = arith.constant 0 : index
    %c0_1 = arith.constant 0 : index
    %c0_2 = arith.constant 0 : index
    %c0_3 = arith.constant 0 : index
    %3 = vector.load %arg3[%c0, %c0_1, %c0_2, %c0_3] : memref<1x1x64x192xbf16, #tpu.memory_space<vmem>>, vector<1x1x64x192xbf16>
    %4 = vector.shape_cast %3 : vector<1x1x64x192xbf16> to vector<64x192xbf16>
    %c0_4 = arith.constant 0 : index
    %c0_5 = arith.constant 0 : index
    %5 = vector.load %arg8[%c0_4, %c0_5] : memref<64x64xf32, #tpu.memory_space<vmem>>, vector<64x64xf32>
    %c0_6 = arith.constant 0 : index
    %c0_7 = arith.constant 0 : index
    %c0_8 = arith.constant 0 : index
    %6 = vector.load %arg4[%c0_6, %c0_7, %c0_8] : memref<1x192x64xbf16, #tpu.memory_space<vmem>>, vector<1x192x64xbf16>
    %7 = vector.shape_cast %6 : vector<1x192x64xbf16> to vector<192x64xbf16>
    %cst = arith.constant dense<0.000000e+00> : vector<64x64xf32>
    %8 = tpu.matmul %4, %7, %cst {dimension_numbers = #tpu.dot_dimension_numbers<[1], [0], [0], [1], [0, 0, 1, 1], [], []>} : vector<64x192xbf16>, vector<192x64xbf16>, vector<64x64xf32> -> vector<64x64xf32>
    %9 = arith.addf %5, %8 : vector<64x64xf32>
    %c0_9 = arith.constant 0 : index
    %c0_10 = arith.constant 0 : index
    %10 = vector.load %arg8[%c0_9, %c0_10] : memref<64x64xf32, #tpu.memory_space<vmem>>, vector<64x64xf32>
    tpu.vector_store %arg8[%c0_9, %c0_10], %9 {strides = array<i32>} : memref<64x64xf32, #tpu.memory_space<vmem>>, vector<64x64xf32>,
    %c2_i32 = arith.constant 2 : i32
    %11 = arith.cmpi eq, %arg2, %c2_i32 : i32
    %12 = arith.extui %11 : i1 to i32
    %c0_i32_11 = arith.constant 0 : i32
    %13 = arith.cmpi ne, %12, %c0_i32_11 : i32
    scf.if %13 {
      %c0_12 = arith.constant 0 : index
      %c0_13 = arith.constant 0 : index
      %14 = vector.load %arg8[%c0_12, %c0_13] : memref<64x64xf32, #tpu.memory_space<vmem>>, vector<64x64xf32>
      %c0_14 = arith.constant 0 : index
      %c0_15 = arith.constant 0 : index
      %15 = vector.load %arg5[%c0_14, %c0_15] : memref<1x64xf32, #tpu.memory_space<vmem>>, vector<1x64xf32>
      %16 = vector.broadcast %15 : vector<1x64xf32> to vector<64x64xf32>
      %17 = arith.addf %14, %16 : vector<64x64xf32>
      %c0_16 = arith.constant 0 : index
      %c0_17 = arith.constant 0 : index
      %c0_18 = arith.constant 0 : index
      %18 = vector.load %arg6[%c0_16, %c0_17, %c0_18] : memref<1x64x64xbf16, #tpu.memory_space<vmem>>, vector<1x64x64xbf16>
      %19 = vector.shape_cast %18 : vector<1x64x64xbf16> to vector<64x64xbf16>
      %20 = arith.extf %19 : vector<64x64xbf16> to vector<64x64xf32>
      %21 = arith.addf %17, %20 : vector<64x64xf32>
      %cst_19 = arith.constant 0.000000e+00 : f32
      %22 = vector.broadcast %cst_19 : f32 to vector<64x64xf32>
      %23 = arith.maximumf %21, %22 : vector<64x64xf32>
      %24 = arith.truncf %23 : vector<64x64xf32> to vector<64x64xbf16>
      %c0_20 = arith.constant 0 : index
      %c0_21 = arith.constant 0 : index
      %c0_22 = arith.constant 0 : index
      %25 = vector.load %arg7[%c0_20, %c0_21, %c0_22] : memref<1x64x64xbf16, #tpu.memory_space<vmem>>, vector<1x64x64xbf16>
      %26 = vector.shape_cast %25 : vector<1x64x64xbf16> to vector<64x64xbf16>
      %27 = vector.shape_cast %24 : vector<64x64xbf16> to vector<1x64x64xbf16>
      tpu.vector_store %arg7[%c0_20, %c0_21, %c0_22], %27 {strides = array<i32>} : memref<1x64x64xbf16, #tpu.memory_space<vmem>>, vector<1x64x64xbf16>,
    } else {
    }
    return
  }
  func.func @transform_0(%arg0: i32, %arg1: i32, %arg2: i32) -> (i32, i32, i32, i32) {
    %c0_i32 = arith.constant 0 : i32
    %c0_i32_0 = arith.constant 0 : i32
    %c0_i32_1 = arith.constant 0 : i32
    return %arg0, %arg2, %c0_i32, %c0_i32_0 : i32, i32, i32, i32
  }
  func.func @transform_1(%arg0: i32, %arg1: i32, %arg2: i32) -> (i32, i32, i32) {
    %c0_i32 = arith.constant 0 : i32
    %c0_i32_0 = arith.constant 0 : i32
    return %arg2, %c0_i32, %arg1 : i32, i32, i32
  }
  func.func @transform_2(%arg0: i32, %arg1: i32, %arg2: i32) -> (i32, i32) {
    %c0_i32 = arith.constant 0 : i32
    %c0_i32_0 = arith.constant 0 : i32
    return %c0_i32, %arg1 : i32, i32
  }
  func.func @transform_3(%arg0: i32, %arg1: i32, %arg2: i32) -> (i32, i32, i32) {
    %c0_i32 = arith.constant 0 : i32
    %c0_i32_0 = arith.constant 0 : i32
    return %arg0, %c0_i32, %arg1 : i32, i32, i32
  }
  func.func @transform_4(%arg0: i32, %arg1: i32, %arg2: i32) -> (i32, i32, i32) {
    %c0_i32 = arith.constant 0 : i32
    %c0_i32_0 = arith.constant 0 : i32
    return %arg0, %c0_i32, %arg1 : i32, i32, i32
  }
}

module attributes {stable_mosaic.version = 11 : i64} {
  func.func @_conv_kernel(%arg0: i32, %arg1: i32, %arg2: i32, %arg3: memref<1x1x16x192xbf16, #tpu.memory_space<vmem>>, %arg4: memref<1x192x128xbf16, #tpu.memory_space<vmem>>, %arg5: memref<1x128xf32, #tpu.memory_space<vmem>>, %arg6: memref<192x128xbf16, #tpu.memory_space<vmem>>, %arg7: memref<1x128xf32, #tpu.memory_space<vmem>>, %arg8: memref<1x16x128xbf16, #tpu.memory_space<vmem>>, %arg9: memref<1x16x128xbf16, #tpu.memory_space<vmem>>, %arg10: memref<16x128xf32, #tpu.memory_space<vmem>>) attributes {dimension_semantics = [#tpu.dimension_semantics<parallel>, #tpu.dimension_semantics<parallel>, #tpu.dimension_semantics<arbitrary>], iteration_bounds = array<i64: 2, 1, 3>, scalar_prefetch = 0 : i64, scratch_operands = 1 : i64, tpu.core_type = #tpu.core_type<tc>, window_params = [{transform_indices = @transform_0, window_bounds = array<i64: 1, 1, 16, 192>}, {transform_indices = @transform_1, window_bounds = array<i64: 1, 192, 128>}, {transform_indices = @transform_2, window_bounds = array<i64: 1, 128>}, {transform_indices = @transform_3, window_bounds = array<i64: 192, 128>}, {transform_indices = @transform_4, window_bounds = array<i64: 1, 128>}, {transform_indices = @transform_5, window_bounds = array<i64: 1, 16, 128>}, {transform_indices = @transform_6, window_bounds = array<i64: 1, 16, 128>}]} {
    %c0_i32 = arith.constant 0 : i32
    %0 = arith.cmpi eq, %arg2, %c0_i32 : i32
    %1 = arith.extui %0 : i1 to i32
    %c0_i32_0 = arith.constant 0 : i32
    %2 = arith.cmpi ne, %1, %c0_i32_0 : i32
    scf.if %2 {
      %cst_13 = arith.constant 0.000000e+00 : f32
      %17 = vector.broadcast %cst_13 : f32 to vector<16x128xf32>
      %c0_14 = arith.constant 0 : index
      %c0_15 = arith.constant 0 : index
      %18 = vector.load %arg10[%c0_14, %c0_15] : memref<16x128xf32, #tpu.memory_space<vmem>>, vector<16x128xf32>
      tpu.vector_store %arg10[%c0_14, %c0_15], %17 {strides = array<i32>} : memref<16x128xf32, #tpu.memory_space<vmem>>, vector<16x128xf32>,
    } else {
    }
    %c0 = arith.constant 0 : index
    %c0_1 = arith.constant 0 : index
    %c0_2 = arith.constant 0 : index
    %c0_3 = arith.constant 0 : index
    %3 = vector.load %arg3[%c0, %c0_1, %c0_2, %c0_3] : memref<1x1x16x192xbf16, #tpu.memory_space<vmem>>, vector<1x1x16x192xbf16>
    %4 = vector.shape_cast %3 : vector<1x1x16x192xbf16> to vector<16x192xbf16>
    %c0_4 = arith.constant 0 : index
    %c0_5 = arith.constant 0 : index
    %5 = vector.load %arg10[%c0_4, %c0_5] : memref<16x128xf32, #tpu.memory_space<vmem>>, vector<16x128xf32>
    %c0_6 = arith.constant 0 : index
    %c0_7 = arith.constant 0 : index
    %c0_8 = arith.constant 0 : index
    %6 = vector.load %arg4[%c0_6, %c0_7, %c0_8] : memref<1x192x128xbf16, #tpu.memory_space<vmem>>, vector<1x192x128xbf16>
    %7 = vector.shape_cast %6 : vector<1x192x128xbf16> to vector<192x128xbf16>
    %cst = arith.constant dense<0.000000e+00> : vector<16x128xf32>
    %8 = tpu.matmul %4, %7, %cst {dimension_numbers = #tpu.dot_dimension_numbers<[1], [0], [0], [1], [0, 0, 1, 1], [], []>} : vector<16x192xbf16>, vector<192x128xbf16>, vector<16x128xf32> -> vector<16x128xf32>
    %9 = arith.addf %5, %8 : vector<16x128xf32>
    %c0_9 = arith.constant 0 : index
    %c0_10 = arith.constant 0 : index
    %10 = vector.load %arg10[%c0_9, %c0_10] : memref<16x128xf32, #tpu.memory_space<vmem>>, vector<16x128xf32>
    tpu.vector_store %arg10[%c0_9, %c0_10], %9 {strides = array<i32>} : memref<16x128xf32, #tpu.memory_space<vmem>>, vector<16x128xf32>,
    %c1_i32 = arith.constant 1 : i32
    %11 = arith.cmpi eq, %arg2, %c1_i32 : i32
    %12 = arith.extui %11 : i1 to i32
    %c0_i32_11 = arith.constant 0 : i32
    %13 = arith.cmpi ne, %12, %c0_i32_11 : i32
    scf.if %13 {
      %c0_13 = arith.constant 0 : index
      %c0_14 = arith.constant 0 : index
      %17 = vector.load %arg6[%c0_13, %c0_14] : memref<192x128xbf16, #tpu.memory_space<vmem>>, vector<192x128xbf16>
      %cst_15 = arith.constant dense<0.000000e+00> : vector<16x128xf32>
      %18 = tpu.matmul %4, %17, %cst_15 {dimension_numbers = #tpu.dot_dimension_numbers<[1], [0], [0], [1], [0, 0, 1, 1], [], []>} : vector<16x192xbf16>, vector<192x128xbf16>, vector<16x128xf32> -> vector<16x128xf32>
      %c0_16 = arith.constant 0 : index
      %c0_17 = arith.constant 0 : index
      %19 = vector.load %arg7[%c0_16, %c0_17] : memref<1x128xf32, #tpu.memory_space<vmem>>, vector<1x128xf32>
      %20 = vector.broadcast %19 : vector<1x128xf32> to vector<16x128xf32>
      %21 = arith.addf %18, %20 : vector<16x128xf32>
      %22 = arith.truncf %21 : vector<16x128xf32> to vector<16x128xbf16>
      %c0_18 = arith.constant 0 : index
      %c0_19 = arith.constant 0 : index
      %c0_20 = arith.constant 0 : index
      %23 = vector.load %arg9[%c0_18, %c0_19, %c0_20] : memref<1x16x128xbf16, #tpu.memory_space<vmem>>, vector<1x16x128xbf16>
      %24 = vector.shape_cast %23 : vector<1x16x128xbf16> to vector<16x128xbf16>
      %25 = vector.shape_cast %22 : vector<16x128xbf16> to vector<1x16x128xbf16>
      tpu.vector_store %arg9[%c0_18, %c0_19, %c0_20], %25 {strides = array<i32>} : memref<1x16x128xbf16, #tpu.memory_space<vmem>>, vector<1x16x128xbf16>,
    } else {
    }
    %c2_i32 = arith.constant 2 : i32
    %14 = arith.cmpi eq, %arg2, %c2_i32 : i32
    %15 = arith.extui %14 : i1 to i32
    %c0_i32_12 = arith.constant 0 : i32
    %16 = arith.cmpi ne, %15, %c0_i32_12 : i32
    scf.if %16 {
      %c0_13 = arith.constant 0 : index
      %c0_14 = arith.constant 0 : index
      %17 = vector.load %arg10[%c0_13, %c0_14] : memref<16x128xf32, #tpu.memory_space<vmem>>, vector<16x128xf32>
      %c0_15 = arith.constant 0 : index
      %c0_16 = arith.constant 0 : index
      %18 = vector.load %arg5[%c0_15, %c0_16] : memref<1x128xf32, #tpu.memory_space<vmem>>, vector<1x128xf32>
      %19 = vector.broadcast %18 : vector<1x128xf32> to vector<16x128xf32>
      %20 = arith.addf %17, %19 : vector<16x128xf32>
      %cst_17 = arith.constant 0.000000e+00 : f32
      %21 = vector.broadcast %cst_17 : f32 to vector<16x128xf32>
      %22 = arith.maximumf %20, %21 : vector<16x128xf32>
      %23 = arith.truncf %22 : vector<16x128xf32> to vector<16x128xbf16>
      %c0_18 = arith.constant 0 : index
      %c0_19 = arith.constant 0 : index
      %c0_20 = arith.constant 0 : index
      %24 = vector.load %arg8[%c0_18, %c0_19, %c0_20] : memref<1x16x128xbf16, #tpu.memory_space<vmem>>, vector<1x16x128xbf16>
      %25 = vector.shape_cast %24 : vector<1x16x128xbf16> to vector<16x128xbf16>
      %26 = vector.shape_cast %23 : vector<16x128xbf16> to vector<1x16x128xbf16>
      tpu.vector_store %arg8[%c0_18, %c0_19, %c0_20], %26 {strides = array<i32>} : memref<1x16x128xbf16, #tpu.memory_space<vmem>>, vector<1x16x128xbf16>,
    } else {
    }
    return
  }
  func.func @transform_0(%arg0: i32, %arg1: i32, %arg2: i32) -> (i32, i32, i32, i32) {
    %c0_i32 = arith.constant 0 : i32
    %c0_i32_0 = arith.constant 0 : i32
    %c0_i32_1 = arith.constant 0 : i32
    return %arg0, %arg2, %c0_i32, %c0_i32_0 : i32, i32, i32, i32
  }
  func.func @transform_1(%arg0: i32, %arg1: i32, %arg2: i32) -> (i32, i32, i32) {
    %c0_i32 = arith.constant 0 : i32
    %c0_i32_0 = arith.constant 0 : i32
    return %arg2, %c0_i32, %arg1 : i32, i32, i32
  }
  func.func @transform_2(%arg0: i32, %arg1: i32, %arg2: i32) -> (i32, i32) {
    %c0_i32 = arith.constant 0 : i32
    %c0_i32_0 = arith.constant 0 : i32
    return %c0_i32, %arg1 : i32, i32
  }
  func.func @transform_3(%arg0: i32, %arg1: i32, %arg2: i32) -> (i32, i32) {
    %c0_i32 = arith.constant 0 : i32
    %c0_i32_0 = arith.constant 0 : i32
    return %c0_i32, %arg1 : i32, i32
  }
  func.func @transform_4(%arg0: i32, %arg1: i32, %arg2: i32) -> (i32, i32) {
    %c0_i32 = arith.constant 0 : i32
    %c0_i32_0 = arith.constant 0 : i32
    return %c0_i32, %arg1 : i32, i32
  }
  func.func @transform_5(%arg0: i32, %arg1: i32, %arg2: i32) -> (i32, i32, i32) {
    %c0_i32 = arith.constant 0 : i32
    %c0_i32_0 = arith.constant 0 : i32
    return %arg0, %c0_i32, %arg1 : i32, i32, i32
  }
  func.func @transform_6(%arg0: i32, %arg1: i32, %arg2: i32) -> (i32, i32, i32) {
    %c0_i32 = arith.constant 0 : i32
    %c0_i32_0 = arith.constant 0 : i32
    return %arg0, %c0_i32, %arg1 : i32, i32, i32
  }
}

module attributes {stable_mosaic.version = 11 : i64} {
  func.func @_conv_kernel(%arg0: i32, %arg1: i32, %arg2: i32, %arg3: memref<1x1x16x384xbf16, #tpu.memory_space<vmem>>, %arg4: memref<1x384x128xbf16, #tpu.memory_space<vmem>>, %arg5: memref<1x128xf32, #tpu.memory_space<vmem>>, %arg6: memref<1x16x128xbf16, #tpu.memory_space<vmem>>, %arg7: memref<1x16x128xbf16, #tpu.memory_space<vmem>>, %arg8: memref<16x128xf32, #tpu.memory_space<vmem>>) attributes {dimension_semantics = [#tpu.dimension_semantics<parallel>, #tpu.dimension_semantics<parallel>, #tpu.dimension_semantics<arbitrary>], iteration_bounds = array<i64: 2, 1, 3>, scalar_prefetch = 0 : i64, scratch_operands = 1 : i64, tpu.core_type = #tpu.core_type<tc>, window_params = [{transform_indices = @transform_0, window_bounds = array<i64: 1, 1, 16, 384>}, {transform_indices = @transform_1, window_bounds = array<i64: 1, 384, 128>}, {transform_indices = @transform_2, window_bounds = array<i64: 1, 128>}, {transform_indices = @transform_3, window_bounds = array<i64: 1, 16, 128>}, {transform_indices = @transform_4, window_bounds = array<i64: 1, 16, 128>}]} {
    %c0_i32 = arith.constant 0 : i32
    %0 = arith.cmpi eq, %arg2, %c0_i32 : i32
    %1 = arith.extui %0 : i1 to i32
    %c0_i32_0 = arith.constant 0 : i32
    %2 = arith.cmpi ne, %1, %c0_i32_0 : i32
    scf.if %2 {
      %cst_12 = arith.constant 0.000000e+00 : f32
      %14 = vector.broadcast %cst_12 : f32 to vector<16x128xf32>
      %c0_13 = arith.constant 0 : index
      %c0_14 = arith.constant 0 : index
      %15 = vector.load %arg8[%c0_13, %c0_14] : memref<16x128xf32, #tpu.memory_space<vmem>>, vector<16x128xf32>
      tpu.vector_store %arg8[%c0_13, %c0_14], %14 {strides = array<i32>} : memref<16x128xf32, #tpu.memory_space<vmem>>, vector<16x128xf32>,
    } else {
    }
    %c0 = arith.constant 0 : index
    %c0_1 = arith.constant 0 : index
    %c0_2 = arith.constant 0 : index
    %c0_3 = arith.constant 0 : index
    %3 = vector.load %arg3[%c0, %c0_1, %c0_2, %c0_3] : memref<1x1x16x384xbf16, #tpu.memory_space<vmem>>, vector<1x1x16x384xbf16>
    %4 = vector.shape_cast %3 : vector<1x1x16x384xbf16> to vector<16x384xbf16>
    %c0_4 = arith.constant 0 : index
    %c0_5 = arith.constant 0 : index
    %5 = vector.load %arg8[%c0_4, %c0_5] : memref<16x128xf32, #tpu.memory_space<vmem>>, vector<16x128xf32>
    %c0_6 = arith.constant 0 : index
    %c0_7 = arith.constant 0 : index
    %c0_8 = arith.constant 0 : index
    %6 = vector.load %arg4[%c0_6, %c0_7, %c0_8] : memref<1x384x128xbf16, #tpu.memory_space<vmem>>, vector<1x384x128xbf16>
    %7 = vector.shape_cast %6 : vector<1x384x128xbf16> to vector<384x128xbf16>
    %cst = arith.constant dense<0.000000e+00> : vector<16x128xf32>
    %8 = tpu.matmul %4, %7, %cst {dimension_numbers = #tpu.dot_dimension_numbers<[1], [0], [0], [1], [0, 0, 1, 1], [], []>} : vector<16x384xbf16>, vector<384x128xbf16>, vector<16x128xf32> -> vector<16x128xf32>
    %9 = arith.addf %5, %8 : vector<16x128xf32>
    %c0_9 = arith.constant 0 : index
    %c0_10 = arith.constant 0 : index
    %10 = vector.load %arg8[%c0_9, %c0_10] : memref<16x128xf32, #tpu.memory_space<vmem>>, vector<16x128xf32>
    tpu.vector_store %arg8[%c0_9, %c0_10], %9 {strides = array<i32>} : memref<16x128xf32, #tpu.memory_space<vmem>>, vector<16x128xf32>,
    %c2_i32 = arith.constant 2 : i32
    %11 = arith.cmpi eq, %arg2, %c2_i32 : i32
    %12 = arith.extui %11 : i1 to i32
    %c0_i32_11 = arith.constant 0 : i32
    %13 = arith.cmpi ne, %12, %c0_i32_11 : i32
    scf.if %13 {
      %c0_12 = arith.constant 0 : index
      %c0_13 = arith.constant 0 : index
      %14 = vector.load %arg8[%c0_12, %c0_13] : memref<16x128xf32, #tpu.memory_space<vmem>>, vector<16x128xf32>
      %c0_14 = arith.constant 0 : index
      %c0_15 = arith.constant 0 : index
      %15 = vector.load %arg5[%c0_14, %c0_15] : memref<1x128xf32, #tpu.memory_space<vmem>>, vector<1x128xf32>
      %16 = vector.broadcast %15 : vector<1x128xf32> to vector<16x128xf32>
      %17 = arith.addf %14, %16 : vector<16x128xf32>
      %c0_16 = arith.constant 0 : index
      %c0_17 = arith.constant 0 : index
      %c0_18 = arith.constant 0 : index
      %18 = vector.load %arg6[%c0_16, %c0_17, %c0_18] : memref<1x16x128xbf16, #tpu.memory_space<vmem>>, vector<1x16x128xbf16>
      %19 = vector.shape_cast %18 : vector<1x16x128xbf16> to vector<16x128xbf16>
      %20 = arith.extf %19 : vector<16x128xbf16> to vector<16x128xf32>
      %21 = arith.addf %17, %20 : vector<16x128xf32>
      %cst_19 = arith.constant 0.000000e+00 : f32
      %22 = vector.broadcast %cst_19 : f32 to vector<16x128xf32>
      %23 = arith.maximumf %21, %22 : vector<16x128xf32>
      %24 = arith.truncf %23 : vector<16x128xf32> to vector<16x128xbf16>
      %c0_20 = arith.constant 0 : index
      %c0_21 = arith.constant 0 : index
      %c0_22 = arith.constant 0 : index
      %25 = vector.load %arg7[%c0_20, %c0_21, %c0_22] : memref<1x16x128xbf16, #tpu.memory_space<vmem>>, vector<1x16x128xbf16>
      %26 = vector.shape_cast %25 : vector<1x16x128xbf16> to vector<16x128xbf16>
      %27 = vector.shape_cast %24 : vector<16x128xbf16> to vector<1x16x128xbf16>
      tpu.vector_store %arg7[%c0_20, %c0_21, %c0_22], %27 {strides = array<i32>} : memref<1x16x128xbf16, #tpu.memory_space<vmem>>, vector<1x16x128xbf16>,
    } else {
    }
    return
  }
  func.func @transform_0(%arg0: i32, %arg1: i32, %arg2: i32) -> (i32, i32, i32, i32) {
    %c0_i32 = arith.constant 0 : i32
    %c0_i32_0 = arith.constant 0 : i32
    %c0_i32_1 = arith.constant 0 : i32
    return %arg0, %arg2, %c0_i32, %c0_i32_0 : i32, i32, i32, i32
  }
  func.func @transform_1(%arg0: i32, %arg1: i32, %arg2: i32) -> (i32, i32, i32) {
    %c0_i32 = arith.constant 0 : i32
    %c0_i32_0 = arith.constant 0 : i32
    return %arg2, %c0_i32, %arg1 : i32, i32, i32
  }
  func.func @transform_2(%arg0: i32, %arg1: i32, %arg2: i32) -> (i32, i32) {
    %c0_i32 = arith.constant 0 : i32
    %c0_i32_0 = arith.constant 0 : i32
    return %c0_i32, %arg1 : i32, i32
  }
  func.func @transform_3(%arg0: i32, %arg1: i32, %arg2: i32) -> (i32, i32, i32) {
    %c0_i32 = arith.constant 0 : i32
    %c0_i32_0 = arith.constant 0 : i32
    return %arg0, %c0_i32, %arg1 : i32, i32, i32
  }
  func.func @transform_4(%arg0: i32, %arg1: i32, %arg2: i32) -> (i32, i32, i32) {
    %c0_i32 = arith.constant 0 : i32
    %c0_i32_0 = arith.constant 0 : i32
    return %arg0, %c0_i32, %arg1 : i32, i32, i32
  }
}

module attributes {stable_mosaic.version = 11 : i64} {
  func.func @_conv_kernel(%arg0: i32, %arg1: i32, %arg2: i32, %arg3: memref<1x1x8x384xbf16, #tpu.memory_space<vmem>>, %arg4: memref<1x384x256xbf16, #tpu.memory_space<vmem>>, %arg5: memref<1x256xf32, #tpu.memory_space<vmem>>, %arg6: memref<384x256xbf16, #tpu.memory_space<vmem>>, %arg7: memref<1x256xf32, #tpu.memory_space<vmem>>, %arg8: memref<1x8x256xbf16, #tpu.memory_space<vmem>>, %arg9: memref<1x8x256xbf16, #tpu.memory_space<vmem>>, %arg10: memref<8x256xf32, #tpu.memory_space<vmem>>) attributes {dimension_semantics = [#tpu.dimension_semantics<parallel>, #tpu.dimension_semantics<parallel>, #tpu.dimension_semantics<arbitrary>], iteration_bounds = array<i64: 2, 1, 3>, scalar_prefetch = 0 : i64, scratch_operands = 1 : i64, tpu.core_type = #tpu.core_type<tc>, window_params = [{transform_indices = @transform_0, window_bounds = array<i64: 1, 1, 8, 384>}, {transform_indices = @transform_1, window_bounds = array<i64: 1, 384, 256>}, {transform_indices = @transform_2, window_bounds = array<i64: 1, 256>}, {transform_indices = @transform_3, window_bounds = array<i64: 384, 256>}, {transform_indices = @transform_4, window_bounds = array<i64: 1, 256>}, {transform_indices = @transform_5, window_bounds = array<i64: 1, 8, 256>}, {transform_indices = @transform_6, window_bounds = array<i64: 1, 8, 256>}]} {
    %c0_i32 = arith.constant 0 : i32
    %0 = arith.cmpi eq, %arg2, %c0_i32 : i32
    %1 = arith.extui %0 : i1 to i32
    %c0_i32_0 = arith.constant 0 : i32
    %2 = arith.cmpi ne, %1, %c0_i32_0 : i32
    scf.if %2 {
      %cst_13 = arith.constant 0.000000e+00 : f32
      %17 = vector.broadcast %cst_13 : f32 to vector<8x256xf32>
      %c0_14 = arith.constant 0 : index
      %c0_15 = arith.constant 0 : index
      %18 = vector.load %arg10[%c0_14, %c0_15] : memref<8x256xf32, #tpu.memory_space<vmem>>, vector<8x256xf32>
      tpu.vector_store %arg10[%c0_14, %c0_15], %17 {strides = array<i32>} : memref<8x256xf32, #tpu.memory_space<vmem>>, vector<8x256xf32>,
    } else {
    }
    %c0 = arith.constant 0 : index
    %c0_1 = arith.constant 0 : index
    %c0_2 = arith.constant 0 : index
    %c0_3 = arith.constant 0 : index
    %3 = vector.load %arg3[%c0, %c0_1, %c0_2, %c0_3] : memref<1x1x8x384xbf16, #tpu.memory_space<vmem>>, vector<1x1x8x384xbf16>
    %4 = vector.shape_cast %3 : vector<1x1x8x384xbf16> to vector<8x384xbf16>
    %c0_4 = arith.constant 0 : index
    %c0_5 = arith.constant 0 : index
    %5 = vector.load %arg10[%c0_4, %c0_5] : memref<8x256xf32, #tpu.memory_space<vmem>>, vector<8x256xf32>
    %c0_6 = arith.constant 0 : index
    %c0_7 = arith.constant 0 : index
    %c0_8 = arith.constant 0 : index
    %6 = vector.load %arg4[%c0_6, %c0_7, %c0_8] : memref<1x384x256xbf16, #tpu.memory_space<vmem>>, vector<1x384x256xbf16>
    %7 = vector.shape_cast %6 : vector<1x384x256xbf16> to vector<384x256xbf16>
    %cst = arith.constant dense<0.000000e+00> : vector<8x256xf32>
    %8 = tpu.matmul %4, %7, %cst {dimension_numbers = #tpu.dot_dimension_numbers<[1], [0], [0], [1], [0, 0, 1, 1], [], []>} : vector<8x384xbf16>, vector<384x256xbf16>, vector<8x256xf32> -> vector<8x256xf32>
    %9 = arith.addf %5, %8 : vector<8x256xf32>
    %c0_9 = arith.constant 0 : index
    %c0_10 = arith.constant 0 : index
    %10 = vector.load %arg10[%c0_9, %c0_10] : memref<8x256xf32, #tpu.memory_space<vmem>>, vector<8x256xf32>
    tpu.vector_store %arg10[%c0_9, %c0_10], %9 {strides = array<i32>} : memref<8x256xf32, #tpu.memory_space<vmem>>, vector<8x256xf32>,
    %c1_i32 = arith.constant 1 : i32
    %11 = arith.cmpi eq, %arg2, %c1_i32 : i32
    %12 = arith.extui %11 : i1 to i32
    %c0_i32_11 = arith.constant 0 : i32
    %13 = arith.cmpi ne, %12, %c0_i32_11 : i32
    scf.if %13 {
      %c0_13 = arith.constant 0 : index
      %c0_14 = arith.constant 0 : index
      %17 = vector.load %arg6[%c0_13, %c0_14] : memref<384x256xbf16, #tpu.memory_space<vmem>>, vector<384x256xbf16>
      %cst_15 = arith.constant dense<0.000000e+00> : vector<8x256xf32>
      %18 = tpu.matmul %4, %17, %cst_15 {dimension_numbers = #tpu.dot_dimension_numbers<[1], [0], [0], [1], [0, 0, 1, 1], [], []>} : vector<8x384xbf16>, vector<384x256xbf16>, vector<8x256xf32> -> vector<8x256xf32>
      %c0_16 = arith.constant 0 : index
      %c0_17 = arith.constant 0 : index
      %19 = vector.load %arg7[%c0_16, %c0_17] : memref<1x256xf32, #tpu.memory_space<vmem>>, vector<1x256xf32>
      %20 = vector.broadcast %19 : vector<1x256xf32> to vector<8x256xf32>
      %21 = arith.addf %18, %20 : vector<8x256xf32>
      %22 = arith.truncf %21 : vector<8x256xf32> to vector<8x256xbf16>
      %c0_18 = arith.constant 0 : index
      %c0_19 = arith.constant 0 : index
      %c0_20 = arith.constant 0 : index
      %23 = vector.load %arg9[%c0_18, %c0_19, %c0_20] : memref<1x8x256xbf16, #tpu.memory_space<vmem>>, vector<1x8x256xbf16>
      %24 = vector.shape_cast %23 : vector<1x8x256xbf16> to vector<8x256xbf16>
      %25 = vector.shape_cast %22 : vector<8x256xbf16> to vector<1x8x256xbf16>
      tpu.vector_store %arg9[%c0_18, %c0_19, %c0_20], %25 {strides = array<i32>} : memref<1x8x256xbf16, #tpu.memory_space<vmem>>, vector<1x8x256xbf16>,
    } else {
    }
    %c2_i32 = arith.constant 2 : i32
    %14 = arith.cmpi eq, %arg2, %c2_i32 : i32
    %15 = arith.extui %14 : i1 to i32
    %c0_i32_12 = arith.constant 0 : i32
    %16 = arith.cmpi ne, %15, %c0_i32_12 : i32
    scf.if %16 {
      %c0_13 = arith.constant 0 : index
      %c0_14 = arith.constant 0 : index
      %17 = vector.load %arg10[%c0_13, %c0_14] : memref<8x256xf32, #tpu.memory_space<vmem>>, vector<8x256xf32>
      %c0_15 = arith.constant 0 : index
      %c0_16 = arith.constant 0 : index
      %18 = vector.load %arg5[%c0_15, %c0_16] : memref<1x256xf32, #tpu.memory_space<vmem>>, vector<1x256xf32>
      %19 = vector.broadcast %18 : vector<1x256xf32> to vector<8x256xf32>
      %20 = arith.addf %17, %19 : vector<8x256xf32>
      %cst_17 = arith.constant 0.000000e+00 : f32
      %21 = vector.broadcast %cst_17 : f32 to vector<8x256xf32>
      %22 = arith.maximumf %20, %21 : vector<8x256xf32>
      %23 = arith.truncf %22 : vector<8x256xf32> to vector<8x256xbf16>
      %c0_18 = arith.constant 0 : index
      %c0_19 = arith.constant 0 : index
      %c0_20 = arith.constant 0 : index
      %24 = vector.load %arg8[%c0_18, %c0_19, %c0_20] : memref<1x8x256xbf16, #tpu.memory_space<vmem>>, vector<1x8x256xbf16>
      %25 = vector.shape_cast %24 : vector<1x8x256xbf16> to vector<8x256xbf16>
      %26 = vector.shape_cast %23 : vector<8x256xbf16> to vector<1x8x256xbf16>
      tpu.vector_store %arg8[%c0_18, %c0_19, %c0_20], %26 {strides = array<i32>} : memref<1x8x256xbf16, #tpu.memory_space<vmem>>, vector<1x8x256xbf16>,
    } else {
    }
    return
  }
  func.func @transform_0(%arg0: i32, %arg1: i32, %arg2: i32) -> (i32, i32, i32, i32) {
    %c0_i32 = arith.constant 0 : i32
    %c0_i32_0 = arith.constant 0 : i32
    %c0_i32_1 = arith.constant 0 : i32
    return %arg0, %arg2, %c0_i32, %c0_i32_0 : i32, i32, i32, i32
  }
  func.func @transform_1(%arg0: i32, %arg1: i32, %arg2: i32) -> (i32, i32, i32) {
    %c0_i32 = arith.constant 0 : i32
    %c0_i32_0 = arith.constant 0 : i32
    return %arg2, %c0_i32, %arg1 : i32, i32, i32
  }
  func.func @transform_2(%arg0: i32, %arg1: i32, %arg2: i32) -> (i32, i32) {
    %c0_i32 = arith.constant 0 : i32
    %c0_i32_0 = arith.constant 0 : i32
    return %c0_i32, %arg1 : i32, i32
  }
  func.func @transform_3(%arg0: i32, %arg1: i32, %arg2: i32) -> (i32, i32) {
    %c0_i32 = arith.constant 0 : i32
    %c0_i32_0 = arith.constant 0 : i32
    return %c0_i32, %arg1 : i32, i32
  }
  func.func @transform_4(%arg0: i32, %arg1: i32, %arg2: i32) -> (i32, i32) {
    %c0_i32 = arith.constant 0 : i32
    %c0_i32_0 = arith.constant 0 : i32
    return %c0_i32, %arg1 : i32, i32
  }
  func.func @transform_5(%arg0: i32, %arg1: i32, %arg2: i32) -> (i32, i32, i32) {
    %c0_i32 = arith.constant 0 : i32
    %c0_i32_0 = arith.constant 0 : i32
    return %arg0, %c0_i32, %arg1 : i32, i32, i32
  }
  func.func @transform_6(%arg0: i32, %arg1: i32, %arg2: i32) -> (i32, i32, i32) {
    %c0_i32 = arith.constant 0 : i32
    %c0_i32_0 = arith.constant 0 : i32
    return %arg0, %c0_i32, %arg1 : i32, i32, i32
  }
}

module attributes {stable_mosaic.version = 11 : i64} {
  func.func @_conv_kernel(%arg0: i32, %arg1: i32, %arg2: i32, %arg3: memref<1x1x8x768xbf16, #tpu.memory_space<vmem>>, %arg4: memref<1x768x256xbf16, #tpu.memory_space<vmem>>, %arg5: memref<1x256xf32, #tpu.memory_space<vmem>>, %arg6: memref<1x8x256xbf16, #tpu.memory_space<vmem>>, %arg7: memref<1x8x256xbf16, #tpu.memory_space<vmem>>, %arg8: memref<8x256xf32, #tpu.memory_space<vmem>>) attributes {dimension_semantics = [#tpu.dimension_semantics<parallel>, #tpu.dimension_semantics<parallel>, #tpu.dimension_semantics<arbitrary>], iteration_bounds = array<i64: 2, 1, 3>, scalar_prefetch = 0 : i64, scratch_operands = 1 : i64, tpu.core_type = #tpu.core_type<tc>, window_params = [{transform_indices = @transform_0, window_bounds = array<i64: 1, 1, 8, 768>}, {transform_indices = @transform_1, window_bounds = array<i64: 1, 768, 256>}, {transform_indices = @transform_2, window_bounds = array<i64: 1, 256>}, {transform_indices = @transform_3, window_bounds = array<i64: 1, 8, 256>}, {transform_indices = @transform_4, window_bounds = array<i64: 1, 8, 256>}]} {
    %c0_i32 = arith.constant 0 : i32
    %0 = arith.cmpi eq, %arg2, %c0_i32 : i32
    %1 = arith.extui %0 : i1 to i32
    %c0_i32_0 = arith.constant 0 : i32
    %2 = arith.cmpi ne, %1, %c0_i32_0 : i32
    scf.if %2 {
      %cst_12 = arith.constant 0.000000e+00 : f32
      %14 = vector.broadcast %cst_12 : f32 to vector<8x256xf32>
      %c0_13 = arith.constant 0 : index
      %c0_14 = arith.constant 0 : index
      %15 = vector.load %arg8[%c0_13, %c0_14] : memref<8x256xf32, #tpu.memory_space<vmem>>, vector<8x256xf32>
      tpu.vector_store %arg8[%c0_13, %c0_14], %14 {strides = array<i32>} : memref<8x256xf32, #tpu.memory_space<vmem>>, vector<8x256xf32>,
    } else {
    }
    %c0 = arith.constant 0 : index
    %c0_1 = arith.constant 0 : index
    %c0_2 = arith.constant 0 : index
    %c0_3 = arith.constant 0 : index
    %3 = vector.load %arg3[%c0, %c0_1, %c0_2, %c0_3] : memref<1x1x8x768xbf16, #tpu.memory_space<vmem>>, vector<1x1x8x768xbf16>
    %4 = vector.shape_cast %3 : vector<1x1x8x768xbf16> to vector<8x768xbf16>
    %c0_4 = arith.constant 0 : index
    %c0_5 = arith.constant 0 : index
    %5 = vector.load %arg8[%c0_4, %c0_5] : memref<8x256xf32, #tpu.memory_space<vmem>>, vector<8x256xf32>
    %c0_6 = arith.constant 0 : index
    %c0_7 = arith.constant 0 : index
    %c0_8 = arith.constant 0 : index
    %6 = vector.load %arg4[%c0_6, %c0_7, %c0_8] : memref<1x768x256xbf16, #tpu.memory_space<vmem>>, vector<1x768x256xbf16>
    %7 = vector.shape_cast %6 : vector<1x768x256xbf16> to vector<768x256xbf16>
    %cst = arith.constant dense<0.000000e+00> : vector<8x256xf32>
    %8 = tpu.matmul %4, %7, %cst {dimension_numbers = #tpu.dot_dimension_numbers<[1], [0], [0], [1], [0, 0, 1, 1], [], []>} : vector<8x768xbf16>, vector<768x256xbf16>, vector<8x256xf32> -> vector<8x256xf32>
    %9 = arith.addf %5, %8 : vector<8x256xf32>
    %c0_9 = arith.constant 0 : index
    %c0_10 = arith.constant 0 : index
    %10 = vector.load %arg8[%c0_9, %c0_10] : memref<8x256xf32, #tpu.memory_space<vmem>>, vector<8x256xf32>
    tpu.vector_store %arg8[%c0_9, %c0_10], %9 {strides = array<i32>} : memref<8x256xf32, #tpu.memory_space<vmem>>, vector<8x256xf32>,
    %c2_i32 = arith.constant 2 : i32
    %11 = arith.cmpi eq, %arg2, %c2_i32 : i32
    %12 = arith.extui %11 : i1 to i32
    %c0_i32_11 = arith.constant 0 : i32
    %13 = arith.cmpi ne, %12, %c0_i32_11 : i32
    scf.if %13 {
      %c0_12 = arith.constant 0 : index
      %c0_13 = arith.constant 0 : index
      %14 = vector.load %arg8[%c0_12, %c0_13] : memref<8x256xf32, #tpu.memory_space<vmem>>, vector<8x256xf32>
      %c0_14 = arith.constant 0 : index
      %c0_15 = arith.constant 0 : index
      %15 = vector.load %arg5[%c0_14, %c0_15] : memref<1x256xf32, #tpu.memory_space<vmem>>, vector<1x256xf32>
      %16 = vector.broadcast %15 : vector<1x256xf32> to vector<8x256xf32>
      %17 = arith.addf %14, %16 : vector<8x256xf32>
      %c0_16 = arith.constant 0 : index
      %c0_17 = arith.constant 0 : index
      %c0_18 = arith.constant 0 : index
      %18 = vector.load %arg6[%c0_16, %c0_17, %c0_18] : memref<1x8x256xbf16, #tpu.memory_space<vmem>>, vector<1x8x256xbf16>
      %19 = vector.shape_cast %18 : vector<1x8x256xbf16> to vector<8x256xbf16>
      %20 = arith.extf %19 : vector<8x256xbf16> to vector<8x256xf32>
      %21 = arith.addf %17, %20 : vector<8x256xf32>
      %cst_19 = arith.constant 0.000000e+00 : f32
      %22 = vector.broadcast %cst_19 : f32 to vector<8x256xf32>
      %23 = arith.maximumf %21, %22 : vector<8x256xf32>
      %24 = arith.truncf %23 : vector<8x256xf32> to vector<8x256xbf16>
      %c0_20 = arith.constant 0 : index
      %c0_21 = arith.constant 0 : index
      %c0_22 = arith.constant 0 : index
      %25 = vector.load %arg7[%c0_20, %c0_21, %c0_22] : memref<1x8x256xbf16, #tpu.memory_space<vmem>>, vector<1x8x256xbf16>
      %26 = vector.shape_cast %25 : vector<1x8x256xbf16> to vector<8x256xbf16>
      %27 = vector.shape_cast %24 : vector<8x256xbf16> to vector<1x8x256xbf16>
      tpu.vector_store %arg7[%c0_20, %c0_21, %c0_22], %27 {strides = array<i32>} : memref<1x8x256xbf16, #tpu.memory_space<vmem>>, vector<1x8x256xbf16>,
    } else {
    }
    return
  }
  func.func @transform_0(%arg0: i32, %arg1: i32, %arg2: i32) -> (i32, i32, i32, i32) {
    %c0_i32 = arith.constant 0 : i32
    %c0_i32_0 = arith.constant 0 : i32
    %c0_i32_1 = arith.constant 0 : i32
    return %arg0, %arg2, %c0_i32, %c0_i32_0 : i32, i32, i32, i32
  }
  func.func @transform_1(%arg0: i32, %arg1: i32, %arg2: i32) -> (i32, i32, i32) {
    %c0_i32 = arith.constant 0 : i32
    %c0_i32_0 = arith.constant 0 : i32
    return %arg2, %c0_i32, %arg1 : i32, i32, i32
  }
  func.func @transform_2(%arg0: i32, %arg1: i32, %arg2: i32) -> (i32, i32) {
    %c0_i32 = arith.constant 0 : i32
    %c0_i32_0 = arith.constant 0 : i32
    return %c0_i32, %arg1 : i32, i32
  }
  func.func @transform_3(%arg0: i32, %arg1: i32, %arg2: i32) -> (i32, i32, i32) {
    %c0_i32 = arith.constant 0 : i32
    %c0_i32_0 = arith.constant 0 : i32
    return %arg0, %c0_i32, %arg1 : i32, i32, i32
  }
  func.func @transform_4(%arg0: i32, %arg1: i32, %arg2: i32) -> (i32, i32, i32) {
    %c0_i32 = arith.constant 0 : i32
    %c0_i32_0 = arith.constant 0 : i32
    return %arg0, %c0_i32, %arg1 : i32, i32, i32
  }
}

module attributes {stable_mosaic.version = 11 : i64} {
  func.func @_conv_kernel(%arg0: i32, %arg1: i32, %arg2: i32, %arg3: memref<1x1x8x768xbf16, #tpu.memory_space<vmem>>, %arg4: memref<1x768x256xbf16, #tpu.memory_space<vmem>>, %arg5: memref<1x256xf32, #tpu.memory_space<vmem>>, %arg6: memref<768x256xbf16, #tpu.memory_space<vmem>>, %arg7: memref<1x256xf32, #tpu.memory_space<vmem>>, %arg8: memref<1x8x256xbf16, #tpu.memory_space<vmem>>, %arg9: memref<1x8x256xbf16, #tpu.memory_space<vmem>>, %arg10: memref<8x256xf32, #tpu.memory_space<vmem>>) attributes {dimension_semantics = [#tpu.dimension_semantics<parallel>, #tpu.dimension_semantics<parallel>, #tpu.dimension_semantics<arbitrary>], iteration_bounds = array<i64: 2, 2, 3>, scalar_prefetch = 0 : i64, scratch_operands = 1 : i64, tpu.core_type = #tpu.core_type<tc>, window_params = [{transform_indices = @transform_0, window_bounds = array<i64: 1, 1, 8, 768>}, {transform_indices = @transform_1, window_bounds = array<i64: 1, 768, 256>}, {transform_indices = @transform_2, window_bounds = array<i64: 1, 256>}, {transform_indices = @transform_3, window_bounds = array<i64: 768, 256>}, {transform_indices = @transform_4, window_bounds = array<i64: 1, 256>}, {transform_indices = @transform_5, window_bounds = array<i64: 1, 8, 256>}, {transform_indices = @transform_6, window_bounds = array<i64: 1, 8, 256>}]} {
    %c0_i32 = arith.constant 0 : i32
    %0 = arith.cmpi eq, %arg2, %c0_i32 : i32
    %1 = arith.extui %0 : i1 to i32
    %c0_i32_0 = arith.constant 0 : i32
    %2 = arith.cmpi ne, %1, %c0_i32_0 : i32
    scf.if %2 {
      %cst_13 = arith.constant 0.000000e+00 : f32
      %17 = vector.broadcast %cst_13 : f32 to vector<8x256xf32>
      %c0_14 = arith.constant 0 : index
      %c0_15 = arith.constant 0 : index
      %18 = vector.load %arg10[%c0_14, %c0_15] : memref<8x256xf32, #tpu.memory_space<vmem>>, vector<8x256xf32>
      tpu.vector_store %arg10[%c0_14, %c0_15], %17 {strides = array<i32>} : memref<8x256xf32, #tpu.memory_space<vmem>>, vector<8x256xf32>,
    } else {
    }
    %c0 = arith.constant 0 : index
    %c0_1 = arith.constant 0 : index
    %c0_2 = arith.constant 0 : index
    %c0_3 = arith.constant 0 : index
    %3 = vector.load %arg3[%c0, %c0_1, %c0_2, %c0_3] : memref<1x1x8x768xbf16, #tpu.memory_space<vmem>>, vector<1x1x8x768xbf16>
    %4 = vector.shape_cast %3 : vector<1x1x8x768xbf16> to vector<8x768xbf16>
    %c0_4 = arith.constant 0 : index
    %c0_5 = arith.constant 0 : index
    %5 = vector.load %arg10[%c0_4, %c0_5] : memref<8x256xf32, #tpu.memory_space<vmem>>, vector<8x256xf32>
    %c0_6 = arith.constant 0 : index
    %c0_7 = arith.constant 0 : index
    %c0_8 = arith.constant 0 : index
    %6 = vector.load %arg4[%c0_6, %c0_7, %c0_8] : memref<1x768x256xbf16, #tpu.memory_space<vmem>>, vector<1x768x256xbf16>
    %7 = vector.shape_cast %6 : vector<1x768x256xbf16> to vector<768x256xbf16>
    %cst = arith.constant dense<0.000000e+00> : vector<8x256xf32>
    %8 = tpu.matmul %4, %7, %cst {dimension_numbers = #tpu.dot_dimension_numbers<[1], [0], [0], [1], [0, 0, 1, 1], [], []>} : vector<8x768xbf16>, vector<768x256xbf16>, vector<8x256xf32> -> vector<8x256xf32>
    %9 = arith.addf %5, %8 : vector<8x256xf32>
    %c0_9 = arith.constant 0 : index
    %c0_10 = arith.constant 0 : index
    %10 = vector.load %arg10[%c0_9, %c0_10] : memref<8x256xf32, #tpu.memory_space<vmem>>, vector<8x256xf32>
    tpu.vector_store %arg10[%c0_9, %c0_10], %9 {strides = array<i32>} : memref<8x256xf32, #tpu.memory_space<vmem>>, vector<8x256xf32>,
    %c1_i32 = arith.constant 1 : i32
    %11 = arith.cmpi eq, %arg2, %c1_i32 : i32
    %12 = arith.extui %11 : i1 to i32
    %c0_i32_11 = arith.constant 0 : i32
    %13 = arith.cmpi ne, %12, %c0_i32_11 : i32
    scf.if %13 {
      %c0_13 = arith.constant 0 : index
      %c0_14 = arith.constant 0 : index
      %17 = vector.load %arg6[%c0_13, %c0_14] : memref<768x256xbf16, #tpu.memory_space<vmem>>, vector<768x256xbf16>
      %cst_15 = arith.constant dense<0.000000e+00> : vector<8x256xf32>
      %18 = tpu.matmul %4, %17, %cst_15 {dimension_numbers = #tpu.dot_dimension_numbers<[1], [0], [0], [1], [0, 0, 1, 1], [], []>} : vector<8x768xbf16>, vector<768x256xbf16>, vector<8x256xf32> -> vector<8x256xf32>
      %c0_16 = arith.constant 0 : index
      %c0_17 = arith.constant 0 : index
      %19 = vector.load %arg7[%c0_16, %c0_17] : memref<1x256xf32, #tpu.memory_space<vmem>>, vector<1x256xf32>
      %20 = vector.broadcast %19 : vector<1x256xf32> to vector<8x256xf32>
      %21 = arith.addf %18, %20 : vector<8x256xf32>
      %22 = arith.truncf %21 : vector<8x256xf32> to vector<8x256xbf16>
      %c0_18 = arith.constant 0 : index
      %c0_19 = arith.constant 0 : index
      %c0_20 = arith.constant 0 : index
      %23 = vector.load %arg9[%c0_18, %c0_19, %c0_20] : memref<1x8x256xbf16, #tpu.memory_space<vmem>>, vector<1x8x256xbf16>
      %24 = vector.shape_cast %23 : vector<1x8x256xbf16> to vector<8x256xbf16>
      %25 = vector.shape_cast %22 : vector<8x256xbf16> to vector<1x8x256xbf16>
      tpu.vector_store %arg9[%c0_18, %c0_19, %c0_20], %25 {strides = array<i32>} : memref<1x8x256xbf16, #tpu.memory_space<vmem>>, vector<1x8x256xbf16>,
    } else {
    }
    %c2_i32 = arith.constant 2 : i32
    %14 = arith.cmpi eq, %arg2, %c2_i32 : i32
    %15 = arith.extui %14 : i1 to i32
    %c0_i32_12 = arith.constant 0 : i32
    %16 = arith.cmpi ne, %15, %c0_i32_12 : i32
    scf.if %16 {
      %c0_13 = arith.constant 0 : index
      %c0_14 = arith.constant 0 : index
      %17 = vector.load %arg10[%c0_13, %c0_14] : memref<8x256xf32, #tpu.memory_space<vmem>>, vector<8x256xf32>
      %c0_15 = arith.constant 0 : index
      %c0_16 = arith.constant 0 : index
      %18 = vector.load %arg5[%c0_15, %c0_16] : memref<1x256xf32, #tpu.memory_space<vmem>>, vector<1x256xf32>
      %19 = vector.broadcast %18 : vector<1x256xf32> to vector<8x256xf32>
      %20 = arith.addf %17, %19 : vector<8x256xf32>
      %cst_17 = arith.constant 0.000000e+00 : f32
      %21 = vector.broadcast %cst_17 : f32 to vector<8x256xf32>
      %22 = arith.maximumf %20, %21 : vector<8x256xf32>
      %23 = arith.truncf %22 : vector<8x256xf32> to vector<8x256xbf16>
      %c0_18 = arith.constant 0 : index
      %c0_19 = arith.constant 0 : index
      %c0_20 = arith.constant 0 : index
      %24 = vector.load %arg8[%c0_18, %c0_19, %c0_20] : memref<1x8x256xbf16, #tpu.memory_space<vmem>>, vector<1x8x256xbf16>
      %25 = vector.shape_cast %24 : vector<1x8x256xbf16> to vector<8x256xbf16>
      %26 = vector.shape_cast %23 : vector<8x256xbf16> to vector<1x8x256xbf16>
      tpu.vector_store %arg8[%c0_18, %c0_19, %c0_20], %26 {strides = array<i32>} : memref<1x8x256xbf16, #tpu.memory_space<vmem>>, vector<1x8x256xbf16>,
    } else {
    }
    return
  }
  func.func @transform_0(%arg0: i32, %arg1: i32, %arg2: i32) -> (i32, i32, i32, i32) {
    %c0_i32 = arith.constant 0 : i32
    %c0_i32_0 = arith.constant 0 : i32
    %c0_i32_1 = arith.constant 0 : i32
    return %arg0, %arg2, %c0_i32, %c0_i32_0 : i32, i32, i32, i32
  }
  func.func @transform_1(%arg0: i32, %arg1: i32, %arg2: i32) -> (i32, i32, i32) {
    %c0_i32 = arith.constant 0 : i32
    %c0_i32_0 = arith.constant 0 : i32
    return %arg2, %c0_i32, %arg1 : i32, i32, i32
  }
  func.func @transform_2(%arg0: i32, %arg1: i32, %arg2: i32) -> (i32, i32) {
    %c0_i32 = arith.constant 0 : i32
    %c0_i32_0 = arith.constant 0 : i32
    return %c0_i32, %arg1 : i32, i32
  }
  func.func @transform_3(%arg0: i32, %arg1: i32, %arg2: i32) -> (i32, i32) {
    %c0_i32 = arith.constant 0 : i32
    %c0_i32_0 = arith.constant 0 : i32
    return %c0_i32, %arg1 : i32, i32
  }
  func.func @transform_4(%arg0: i32, %arg1: i32, %arg2: i32) -> (i32, i32) {
    %c0_i32 = arith.constant 0 : i32
    %c0_i32_0 = arith.constant 0 : i32
    return %c0_i32, %arg1 : i32, i32
  }
  func.func @transform_5(%arg0: i32, %arg1: i32, %arg2: i32) -> (i32, i32, i32) {
    %c0_i32 = arith.constant 0 : i32
    %c0_i32_0 = arith.constant 0 : i32
    return %arg0, %c0_i32, %arg1 : i32, i32, i32
  }
  func.func @transform_6(%arg0: i32, %arg1: i32, %arg2: i32) -> (i32, i32, i32) {
    %c0_i32 = arith.constant 0 : i32
    %c0_i32_0 = arith.constant 0 : i32
    return %arg0, %c0_i32, %arg1 : i32, i32, i32
  }
}

module attributes {stable_mosaic.version = 11 : i64} {
  func.func @_conv_kernel(%arg0: i32, %arg1: i32, %arg2: i32, %arg3: memref<1x1x8x1536xbf16, #tpu.memory_space<vmem>>, %arg4: memref<1x1536x256xbf16, #tpu.memory_space<vmem>>, %arg5: memref<1x256xf32, #tpu.memory_space<vmem>>, %arg6: memref<1x8x256xbf16, #tpu.memory_space<vmem>>, %arg7: memref<1x8x256xbf16, #tpu.memory_space<vmem>>, %arg8: memref<1x1x256xf32, #tpu.memory_space<vmem>>, %arg9: memref<8x256xf32, #tpu.memory_space<vmem>>) attributes {dimension_semantics = [#tpu.dimension_semantics<parallel>, #tpu.dimension_semantics<parallel>, #tpu.dimension_semantics<arbitrary>], iteration_bounds = array<i64: 2, 2, 3>, scalar_prefetch = 0 : i64, scratch_operands = 1 : i64, tpu.core_type = #tpu.core_type<tc>, window_params = [{transform_indices = @transform_0, window_bounds = array<i64: 1, 1, 8, 1536>}, {transform_indices = @transform_1, window_bounds = array<i64: 1, 1536, 256>}, {transform_indices = @transform_2, window_bounds = array<i64: 1, 256>}, {transform_indices = @transform_3, window_bounds = array<i64: 1, 8, 256>}, {transform_indices = @transform_4, window_bounds = array<i64: 1, 8, 256>}, {transform_indices = @transform_5, window_bounds = array<i64: 1, 1, 256>}]} {
    %c0_i32 = arith.constant 0 : i32
    %0 = arith.cmpi eq, %arg2, %c0_i32 : i32
    %1 = arith.extui %0 : i1 to i32
    %c0_i32_0 = arith.constant 0 : i32
    %2 = arith.cmpi ne, %1, %c0_i32_0 : i32
    scf.if %2 {
      %cst_12 = arith.constant 0.000000e+00 : f32
      %14 = vector.broadcast %cst_12 : f32 to vector<8x256xf32>
      %c0_13 = arith.constant 0 : index
      %c0_14 = arith.constant 0 : index
      %15 = vector.load %arg9[%c0_13, %c0_14] : memref<8x256xf32, #tpu.memory_space<vmem>>, vector<8x256xf32>
      tpu.vector_store %arg9[%c0_13, %c0_14], %14 {strides = array<i32>} : memref<8x256xf32, #tpu.memory_space<vmem>>, vector<8x256xf32>,
    } else {
    }
    %c0 = arith.constant 0 : index
    %c0_1 = arith.constant 0 : index
    %c0_2 = arith.constant 0 : index
    %c0_3 = arith.constant 0 : index
    %3 = vector.load %arg3[%c0, %c0_1, %c0_2, %c0_3] : memref<1x1x8x1536xbf16, #tpu.memory_space<vmem>>, vector<1x1x8x1536xbf16>
    %4 = vector.shape_cast %3 : vector<1x1x8x1536xbf16> to vector<8x1536xbf16>
    %c0_4 = arith.constant 0 : index
    %c0_5 = arith.constant 0 : index
    %5 = vector.load %arg9[%c0_4, %c0_5] : memref<8x256xf32, #tpu.memory_space<vmem>>, vector<8x256xf32>
    %c0_6 = arith.constant 0 : index
    %c0_7 = arith.constant 0 : index
    %c0_8 = arith.constant 0 : index
    %6 = vector.load %arg4[%c0_6, %c0_7, %c0_8] : memref<1x1536x256xbf16, #tpu.memory_space<vmem>>, vector<1x1536x256xbf16>
    %7 = vector.shape_cast %6 : vector<1x1536x256xbf16> to vector<1536x256xbf16>
    %cst = arith.constant dense<0.000000e+00> : vector<8x256xf32>
    %8 = tpu.matmul %4, %7, %cst {dimension_numbers = #tpu.dot_dimension_numbers<[1], [0], [0], [1], [0, 0, 1, 1], [], []>} : vector<8x1536xbf16>, vector<1536x256xbf16>, vector<8x256xf32> -> vector<8x256xf32>
    %9 = arith.addf %5, %8 : vector<8x256xf32>
    %c0_9 = arith.constant 0 : index
    %c0_10 = arith.constant 0 : index
    %10 = vector.load %arg9[%c0_9, %c0_10] : memref<8x256xf32, #tpu.memory_space<vmem>>, vector<8x256xf32>
    tpu.vector_store %arg9[%c0_9, %c0_10], %9 {strides = array<i32>} : memref<8x256xf32, #tpu.memory_space<vmem>>, vector<8x256xf32>,
    %c2_i32 = arith.constant 2 : i32
    %11 = arith.cmpi eq, %arg2, %c2_i32 : i32
    %12 = arith.extui %11 : i1 to i32
    %c0_i32_11 = arith.constant 0 : i32
    %13 = arith.cmpi ne, %12, %c0_i32_11 : i32
    scf.if %13 {
      %c0_12 = arith.constant 0 : index
      %c0_13 = arith.constant 0 : index
      %14 = vector.load %arg9[%c0_12, %c0_13] : memref<8x256xf32, #tpu.memory_space<vmem>>, vector<8x256xf32>
      %c0_14 = arith.constant 0 : index
      %c0_15 = arith.constant 0 : index
      %15 = vector.load %arg5[%c0_14, %c0_15] : memref<1x256xf32, #tpu.memory_space<vmem>>, vector<1x256xf32>
      %16 = vector.broadcast %15 : vector<1x256xf32> to vector<8x256xf32>
      %17 = arith.addf %14, %16 : vector<8x256xf32>
      %c0_16 = arith.constant 0 : index
      %c0_17 = arith.constant 0 : index
      %c0_18 = arith.constant 0 : index
      %18 = vector.load %arg6[%c0_16, %c0_17, %c0_18] : memref<1x8x256xbf16, #tpu.memory_space<vmem>>, vector<1x8x256xbf16>
      %19 = vector.shape_cast %18 : vector<1x8x256xbf16> to vector<8x256xbf16>
      %20 = arith.extf %19 : vector<8x256xbf16> to vector<8x256xf32>
      %21 = arith.addf %17, %20 : vector<8x256xf32>
      %cst_19 = arith.constant 0.000000e+00 : f32
      %22 = vector.broadcast %cst_19 : f32 to vector<8x256xf32>
      %23 = arith.maximumf %21, %22 : vector<8x256xf32>
      %24 = arith.truncf %23 : vector<8x256xf32> to vector<8x256xbf16>
      %c0_20 = arith.constant 0 : index
      %c0_21 = arith.constant 0 : index
      %c0_22 = arith.constant 0 : index
      %25 = vector.load %arg7[%c0_20, %c0_21, %c0_22] : memref<1x8x256xbf16, #tpu.memory_space<vmem>>, vector<1x8x256xbf16>
      %26 = vector.shape_cast %25 : vector<1x8x256xbf16> to vector<8x256xbf16>
      %27 = vector.shape_cast %24 : vector<8x256xbf16> to vector<1x8x256xbf16>
      tpu.vector_store %arg7[%c0_20, %c0_21, %c0_22], %27 {strides = array<i32>} : memref<1x8x256xbf16, #tpu.memory_space<vmem>>, vector<1x8x256xbf16>,
      %28 = tpu.iota {dimensions = array<i32: 0>} : vector<8x256xi32>
      %c1_i32 = arith.constant 1 : i32
      %29 = vector.broadcast %c1_i32 : i32 to vector<8x256xi32>
      %30 = arith.cmpi slt, %28, %29 : vector<8x256xi32>
      %cst_23 = arith.constant 0.000000e+00 : f32
      %31 = vector.broadcast %cst_23 : f32 to vector<8x256xf32>
      %32 = arith.select %30, %23, %31 : vector<8x256xi1>, vector<8x256xf32>
      %cst_24 = arith.constant dense<0.000000e+00> : vector<256xf32>
      %33 = vector.multi_reduction <add>, %32, %cst_24 [0] : vector<8x256xf32> to vector<256xf32>
      %34 = vector.shape_cast %33 : vector<256xf32> to vector<1x256xf32>
      %cst_25 = arith.constant 1.000000e+00 : f32
      %35 = vector.broadcast %cst_25 : f32 to vector<1x256xf32>
      %36 = arith.mulf %34, %35 : vector<1x256xf32>
      %c0_26 = arith.constant 0 : index
      %c0_27 = arith.constant 0 : index
      %c0_28 = arith.constant 0 : index
      %37 = vector.load %arg8[%c0_26, %c0_27, %c0_28] : memref<1x1x256xf32, #tpu.memory_space<vmem>>, vector<1x1x256xf32>
      %38 = vector.shape_cast %37 : vector<1x1x256xf32> to vector<1x256xf32>
      %39 = vector.shape_cast %36 : vector<1x256xf32> to vector<1x1x256xf32>
      tpu.vector_store %arg8[%c0_26, %c0_27, %c0_28], %39 {strides = array<i32>} : memref<1x1x256xf32, #tpu.memory_space<vmem>>, vector<1x1x256xf32>,
    } else {
    }
    return
  }
  func.func @transform_0(%arg0: i32, %arg1: i32, %arg2: i32) -> (i32, i32, i32, i32) {
    %c0_i32 = arith.constant 0 : i32
    %c0_i32_0 = arith.constant 0 : i32
    %c0_i32_1 = arith.constant 0 : i32
    return %arg0, %arg2, %c0_i32, %c0_i32_0 : i32, i32, i32, i32
  }
  func.func @transform_1(%arg0: i32, %arg1: i32, %arg2: i32) -> (i32, i32, i32) {
    %c0_i32 = arith.constant 0 : i32
    %c0_i32_0 = arith.constant 0 : i32
    return %arg2, %c0_i32, %arg1 : i32, i32, i32
  }
  func.func @transform_2(%arg0: i32, %arg1: i32, %arg2: i32) -> (i32, i32) {
    %c0_i32 = arith.constant 0 : i32
    %c0_i32_0 = arith.constant 0 : i32
    return %c0_i32, %arg1 : i32, i32
  }
  func.func @transform_3(%arg0: i32, %arg1: i32, %arg2: i32) -> (i32, i32, i32) {
    %c0_i32 = arith.constant 0 : i32
    %c0_i32_0 = arith.constant 0 : i32
    return %arg0, %c0_i32, %arg1 : i32, i32, i32
  }
  func.func @transform_4(%arg0: i32, %arg1: i32, %arg2: i32) -> (i32, i32, i32) {
    %c0_i32 = arith.constant 0 : i32
    %c0_i32_0 = arith.constant 0 : i32
    return %arg0, %c0_i32, %arg1 : i32, i32, i32
  }
  func.func @transform_5(%arg0: i32, %arg1: i32, %arg2: i32) -> (i32, i32, i32) {
    %c0_i32 = arith.constant 0 : i32
    %c0_i32_0 = arith.constant 0 : i32
    return %arg0, %c0_i32, %arg1 : i32, i32, i32
  }
}

</mosaic_0001>

<bundles_post_ra>
// kernel: _lambda_.10
= control target key start
LH: loop header
LB: loop body
LE: loop exit
PB: predicated region body
PF: predicated region fallthrough
CT: control target
= control target key end

     0   :  { %s1483_s12 = smov 0   ;;  %s1485_s13 = smov 0   ;;  %s1808_s0 = inlined_call_operand.vmem [shape: bf16[2,1,256,152], index: 0, kind: input, shape index: {}]   ;;  %s1809_s1 = inlined_call_operand.vmem [shape: bf16[1,152,64], index: 1, kind: input, shape index: {}]   ;;  %s1810_s2 = inlined_call_operand.vmem [shape: f32[1,64], index: 2, kind: input, shape index: {}]   ;;  %s1811_s3 = inlined_call_operand.vmem [shape: bf16[2,256,64], index: 3, kind: output, shape index: {}]  }
   0x1   :  { %s1487_s14 = smov 0  }
   0x2 LB: > { %s32_s15 = sadd.s32 1, %s1456_s13  ;;  %p1172_p0 = scmp.ge.s32.totalorder %s1460_s14, 1  ;;  %s1460_s14 = sphi %s1487_s14, %s13_s14   ;;  %s1456_s13 = sphi %s1485_s13, %s1813_s13   ;;  %s1452_s12 = sphi %s1483_s12, %s1812_s12  }
   0x3   : > { %p34_p1 = scmp.ge.s32.totalorder %s32_s15, 2  ;;  %p187_p2 = scmp.lt.s32.totalorder %s1460_s14, 3 }
   0x5   : > { %s1815_s15 = smov (%p34_p1, %s32_s15), 0  ;;  %p188_p3 = pnand %p1172_p0, %p187_p2 }
   0x6   : > { %p229_p4 = scmp.lt.s32.totalorder (!%p188_p3), %s1452_s12, 1 }
   0x7   : > { %191 = sbr.rel (%p188_p3) target bundleno = 317 (0x13d), region = 32 }
   0xc   : > { %v1400_v0 = vld [vmem:[%s1809_s1 + $0x38] sm:$0xff]  ;;  %v377_v1 = vld [vmem:[%s1809_s1 + $0x48] sm:$0xf]  ;;  %vm628_vm0 = vcmask 1043456   ;;  %v1399_v3 = vld [vmem:[%s1809_s1 + $0x30] sm:$0xff]  ;;  %s1817_s12 = smov (!%p229_p4, %s1452_s12), 1 }
   0xd   : > { %v559_v2 = vunpack.c.l.b16 %v377_v1  ;;  %632 = vmatpush.bf16.msra.mxu0 %v1400_v0  ;;  %1402 = vmatpush.bf16.msra.mxu2 %v1400_v0  ;;  %s1359_s22 = sshll.u32 %s1817_s12, 8  ;;  %v1401_v6 = vld [vmem:[%s1809_s1 + $0x40] sm:$0xff]  ;;  %v1398_v7 = vld [vmem:[%s1809_s1 + $0x28] sm:$0xff]  ;;  %vm579_vm1 = vcmask 195584   ;;  %v1396_v15 = vld [vmem:[%s1809_s1 + $0x18] sm:$0xff]  ;;  %vm262_vm2 = vcmask 523264  }
   0xe   : > { %s1519_s27 = scalar_lea.vmem %s1808_s0, %s1359_s22  ;;  %v1397_v13 = vld [vmem:[%s1809_s1 + $0x20] sm:$0xff]  ;;  %v1395_v16 = vld [vmem:[%s1809_s1 + $0x10] sm:$0xff]  ;;  %v1394_v17 = vld [vmem:[%s1809_s1 + $0x8] sm:$0xff]  ;;  %s1360_s19 = sshll.u32 %s1817_s12, 7  ;;  %vm1010_vm3 = vcmask 519168  }
   0xf   : > { %v569_v4 = vpack.c.b16 %v559_v2, %v559_v2  ;;  %v1361_v8 = vld [vmem:[%s1519_s27 + $0x4] sm:$0xf]  ;;  %v1181_v9 = vld [vmem:[%s1519_s27 + $0x8] sm:$0xf0]  ;;  %v1379_v10 = vld [vmem:[%s1519_s27 + $0x94] sm:$0xf]  ;;  %s1667_s22 = scalar_lea.vmem %s1811_s3, %s1360_s19 }
  0x10   : > { %v1184_v11 = vor.u32 %v1361_v8, %v1181_v9  ;;  %v1253_v12 = vld [vmem:[%s1519_s27 + $0x98] sm:$0xf0]  ;;  %v1363_v18 = vld [vmem:[%s1519_s27 + $0x14] sm:$0xf]  ;;  %v1381_v20 = vld [vmem:[%s1519_s27 + $0xa4] sm:$0xf] }
  0x11   : > { %v630_v5 = vsel %vm628_vm0, %v569_v4, 0  ;;  %633 = vmatpush.bf16.msra.mxu0 %v1399_v3  ;;  %1403 = vmatpush.bf16.msra.mxu2 %v1399_v3  ;;  %v1256_v14 = vor.u32 %v1379_v10, %v1253_v12  ;;  %v1189_v19 = vld [vmem:[%s1519_s27 + $0x18] sm:$0xf0]  ;;  %v1261_v21 = vld [vmem:[%s1519_s27 + $0xa8] sm:$0xf0]  ;;  %v1393_v23 = vld [vmem:[%s1809_s1] sm:$0xff] }
  0x12   : > { %727 = vmatpush.bf16.msra.mxu1 %v630_v5  ;;  %1410 = vmatpush.bf16.msra.mxu3 %v630_v5  ;;  %v1192_v22 = vor.u32 %v1363_v18, %v1189_v19  ;;  %v1179_v24 = vld [vmem:[%s1519_s27] sm:$0xf]  ;;  %v1362_v25 = vld [vmem:[%s1519_s27 + $0x4] sm:$0xf0]  ;;  %v1264_v26 = vor.u32 %v1381_v20, %v1261_v21  ;;  %v1365_v31 = vld [vmem:[%s1519_s27 + $0x24] sm:$0xf] }
  0x13   : > { %v1243_v27 = vld [vmem:[%s1519_s27 + $0x80] sm:$0xf]  ;;  %v1378_v28 = vld [vmem:[%s1519_s27 + $0x84] sm:$0xf0]  ;;  %v1180_v29 = vor.u32 %v1362_v25, %v1179_v24  ;;  %v1197_v32 = vld [vmem:[%s1519_s27 + $0x28] sm:$0xf0] }
  0x14   : > { %v1244_v30 = vor.u32 %v1378_v28, %v1243_v27  ;;  %v1383_v33 = vld [vmem:[%s1519_s27 + $0xb4] sm:$0xf]  ;;  %v1269_v34 = vld [vmem:[%s1519_s27 + $0xb8] sm:$0xf0]  ;;  %v1200_v35 = vor.u32 %v1365_v31, %v1197_v32  ;;  %v1187_v36 = vld [vmem:[%s1519_s27 + $0x10] sm:$0xf] }
  0x15   : > { %634 = vmatpush.bf16.msra.mxu0 %v1398_v7  ;;  %1404 = vmatpush.bf16.msra.mxu2 %v1398_v7  ;;  %v1364_v37 = vld [vmem:[%s1519_s27 + $0x14] sm:$0xf0]  ;;  %v1272_v38 = vor.u32 %v1383_v33, %v1269_v34  ;;  %v1251_v39 = vld [vmem:[%s1519_s27 + $0x90] sm:$0xf]  ;;  %v1367_v43 = vld [vmem:[%s1519_s27 + $0x34] sm:$0xf] }
  0x16   : > { %728 = vmatpush.bf16.msra.mxu1 %v1401_v6  ;;  %1411 = vmatpush.bf16.msra.mxu3 %v1401_v6  ;;  %v1380_v40 = vld [vmem:[%s1519_s27 + $0x94] sm:$0xf0]  ;;  %v1188_v41 = vor.u32 %v1364_v37, %v1187_v36  ;;  %v1205_v44 = vld [vmem:[%s1519_s27 + $0x38] sm:$0xf0]  ;;  %v1385_v45 = vld [vmem:[%s1519_s27 + $0xc4] sm:$0xf] }
  0x17   : > { %v1252_v42 = vor.u32 %v1380_v40, %v1251_v39  ;;  %v1277_v46 = vld [vmem:[%s1519_s27 + $0xc8] sm:$0xf0]  ;;  %v1208_v47 = vor.u32 %v1367_v43, %v1205_v44  ;;  %v1195_v48 = vld [vmem:[%s1519_s27 + $0x20] sm:$0xf]  ;;  %v1366_v49 = vld [vmem:[%s1519_s27 + $0x24] sm:$0xf0] }
  0x18   : > { %v1280_v50 = vor.u32 %v1385_v45, %v1277_v46  ;;  %v1259_v51 = vld [vmem:[%s1519_s27 + $0xa0] sm:$0xf]  ;;  %v1382_v52 = vld [vmem:[%s1519_s27 + $0xa4] sm:$0xf0]  ;;  %v1196_v53 = vor.u32 %v1366_v49, %v1195_v48  ;;  %v1369_v55 = vld [vmem:[%s1519_s27 + $0x44] sm:$0xf] }
  0x19   : > { %1341 = vmatmul.msk.bf16.vlgmr.msra.gmra.mxu1 %vm579_vm1, %v1184_v11  ;;  %635 = vmatpush.bf16.msra.mxu0 %v1397_v13  ;;  %v1260_v54 = vor.u32 %v1382_v52, %v1259_v51  ;;  %v1213_v56 = vld [vmem:[%s1519_s27 + $0x48] sm:$0xf0]  ;;  %v1387_v57 = vld [vmem:[%s1519_s27 + $0xd4] sm:$0xf]  ;;  %v1285_v58 = vld [vmem:[%s1519_s27 + $0xd8] sm:$0xf0] }
  0x1a   : > { %1350 = vmatmul.msk.bf16.vlgmr.msra.gmra.mxu3 %vm579_vm1, %v1256_v14  ;;  %1405 = vmatpush.bf16.msra.mxu2 %v1397_v13  ;;  %v1216_v59 = vor.u32 %v1369_v55, %v1213_v56  ;;  %v1203_v60 = vld [vmem:[%s1519_s27 + $0x30] sm:$0xf]  ;;  %v1368_v61 = vld [vmem:[%s1519_s27 + $0x34] sm:$0xf0]  ;;  %v1288_v62 = vor.u32 %v1387_v57, %v1285_v58  ;;  %v1371_v3 = vld [vmem:[%s1519_s27 + $0x54] sm:$0xf] }
  0x1b   : > { %v1267_v63 = vld [vmem:[%s1519_s27 + $0xb0] sm:$0xf]  ;;  %v1384_v0 = vld [vmem:[%s1519_s27 + $0xb4] sm:$0xf0]  ;;  %v1204_v1 = vor.u32 %v1368_v61, %v1203_v60  ;;  %v1221_v4 = vld [vmem:[%s1519_s27 + $0x58] sm:$0xf0] }
  0x1c   : > { %v1268_v2 = vor.u32 %v1384_v0, %v1267_v63  ;;  %v1389_v5 = vld [vmem:[%s1519_s27 + $0xe4] sm:$0xf]  ;;  %v1293_v6 = vld [vmem:[%s1519_s27 + $0xe8] sm:$0xf0]  ;;  %v1224_v7 = vor.u32 %v1371_v3, %v1221_v4  ;;  %v1211_v8 = vld [vmem:[%s1519_s27 + $0x40] sm:$0xf] }
  0x1d   : > { %636 = vmatpush.bf16.msra.mxu0 %v1396_v15  ;;  %v1370_v9 = vld [vmem:[%s1519_s27 + $0x44] sm:$0xf0]  ;;  %v1296_v10 = vor.u32 %v1389_v5, %v1293_v6  ;;  %v1275_v11 = vld [vmem:[%s1519_s27 + $0xc0] sm:$0xf]  ;;  %v1301_v18 = vld [vmem:[%s1519_s27 + $0xf8] sm:$0xf0] }
  0x1e   : > { %1406 = vmatpush.bf16.msra.mxu2 %v1396_v15  ;;  %v1386_v12 = vld [vmem:[%s1519_s27 + $0xc4] sm:$0xf0]  ;;  %v1212_v13 = vor.u32 %v1370_v9, %v1211_v8  ;;  %v1373_v15 = vld [vmem:[%s1519_s27 + $0x64] sm:$0xf]  ;;  %v1219_v20 = vld [vmem:[%s1519_s27 + $0x50] sm:$0xf] }
  0x1f   : > { %v1276_v14 = vor.u32 %v1386_v12, %v1275_v11  ;;  %v1372_v21 = vld [vmem:[%s1519_s27 + $0x54] sm:$0xf0]  ;;  %v1375_v27 = vld [vmem:[%s1519_s27 + $0x74] sm:$0xf]  ;;  %v1237_v28 = vld [vmem:[%s1519_s27 + $0x78] sm:$0xf0] }
  0x20   : > { %v1388_v24 = vld [vmem:[%s1519_s27 + $0xd4] sm:$0xf0]  ;;  %v1220_v25 = vor.u32 %v1372_v21, %v1219_v20  ;;  %v1374_v31 = vld [vmem:[%s1519_s27 + $0x64] sm:$0xf0]  ;;  %v1462_v32 = vmov 0.0  }
  0x21   : > { %637 = vmatpush.bf16.msra.mxu0 %v1395_v16  ;;  %263 = vst.msk [vmem:[#allocation2] sm:$0xff] %vm262_vm2, %v1462_v32  ;;  %v1291_v33 = vld [vmem:[%s1519_s27 + $0xe0] sm:$0xf]  ;;  %v1390_v34 = vld [vmem:[%s1519_s27 + $0xe4] sm:$0xf0] }
  0x22   : > { %1407 = vmatpush.bf16.msra.mxu2 %v1395_v16  ;;  %v1229_v16 = vld [vmem:[%s1519_s27 + $0x68] sm:$0xf0]  ;;  %264 = vst.msk [vmem:[#allocation2 + $0x8] sm:$0xff] %vm262_vm2, %v1462_v32  ;;  %v1292_v36 = vor.u32 %v1390_v34, %v1291_v33  ;;  %v1377_v37 = vld [vmem:[%s1519_s27 + $0x84] sm:$0xf] }
  0x23   : > { %v1232_v19 = vor.u32 %v1373_v15, %v1229_v16  ;;  %265 = vst.msk [vmem:[#allocation2 + $0x10] sm:$0xff] %vm262_vm2, %v1462_v32  ;;  %v1299_v43 = vld [vmem:[%s1519_s27 + $0xf0] sm:$0xf]  ;;  %v1392_v44 = vld [vmem:[%s1519_s27 + $0xf4] sm:$0xf0] }
  0x24   : > { %266 = vst.msk [vmem:[#allocation2 + $0x18] sm:$0xff] %vm262_vm2, %v1462_v32  ;;  %v1300_v46 = vor.u32 %v1392_v44, %v1299_v43 }
  0x25   : > { %638 = vmatpush.bf16.msra.mxu0 %v1394_v17  ;;  %267 = vst.msk [vmem:[#allocation2 + $0x20] sm:$0xff] %vm262_vm2, %v1462_v32 }
  0x26   : > { %1408 = vmatpush.bf16.msra.mxu2 %v1394_v17  ;;  %v1391_v17 = vld [vmem:[%s1519_s27 + $0xf4] sm:$0xf]  ;;  %268 = vst.msk [vmem:[#allocation2 + $0x28] sm:$0xff] %vm262_vm2, %v1462_v32 }
  0x27   : > { %269 = vst.msk [vmem:[#allocation2 + $0x30] sm:$0xff] %vm262_vm2, %v1462_v32 }
  0x28   : > { %270 = vst.msk [vmem:[#allocation2 + $0x38] sm:$0xff] %vm262_vm2, %v1462_v32 }
  0x29   : > { %1342 = vmatmul.msk.bf16.gmra.mxu1 %vm579_vm1, %v1192_v22  ;;  %639 = vmatpush.bf16.msra.mxu0 %v1393_v23  ;;  %v1304_v22 = vor.u32 %v1391_v17, %v1301_v18  ;;  %271 = vst.msk [vmem:[#allocation2 + $0x40] sm:$0xff] %vm262_vm2, %v1462_v32  ;;  %v328_v57 = vld [vmem:[#allocation2 + $0x8] sm:$0xff] }
  0x2a   : > { %1351 = vmatmul.msk.bf16.gmra.mxu3 %vm579_vm1, %v1264_v26  ;;  %1409 = vmatpush.bf16.msra.mxu2 %v1393_v23  ;;  %v1283_v23 = vld [vmem:[%s1519_s27 + $0xd0] sm:$0xf]  ;;  %272 = vst.msk [vmem:[#allocation2 + $0x48] sm:$0xff] %vm262_vm2, %v1462_v32 }
  0x2b   : > { %v1284_v26 = vor.u32 %v1388_v24, %v1283_v23  ;;  %273 = vst.msk [vmem:[#allocation2 + $0x50] sm:$0xff] %vm262_vm2, %v1462_v32  ;;  %v329_v3 = vld [vmem:[#allocation2 + $0x10] sm:$0xff]  ;;  %v330_v16 = vld [vmem:[#allocation2 + $0x18] sm:$0xff] }
  0x2c   : > { %640 = vmatmul.bf16.vlgmr.msra.gmra.mxu0 %v1180_v29  ;;  %v1240_v29 = vor.u32 %v1375_v27, %v1237_v28  ;;  %274 = vst.msk [vmem:[#allocation2 + $0x58] sm:$0xff] %vm262_vm2, %v1462_v32 }
  0x2d   : > { %680 = vmatmul.bf16.vlgmr.msra.gmra.mxu2 %v1244_v30  ;;  %v1227_v30 = vld [vmem:[%s1519_s27 + $0x60] sm:$0xf]  ;;  %275 = vst.msk [vmem:[#allocation2 + $0x60] sm:$0xff] %vm262_vm2, %v1462_v32 }
  0x2e   : > { %276 = vst.msk [vmem:[#allocation2 + $0x68] sm:$0xff] %vm262_vm2, %v1462_v32 }
  0x2f   : > { %277 = vst.msk [vmem:[#allocation2 + $0x70] sm:$0xff] %vm262_vm2, %v1462_v32 }
  0x30   : > { %278 = vst.msk [vmem:[#allocation2 + $0x78] sm:$0xff] %vm262_vm2, %v1462_v32 }
  0x31   : > { %279 = vst.msk [vmem:[#allocation2 + $0x80] sm:$0xff] %vm262_vm2, %v1462_v32 }
  0x32   : > { %280 = vst.msk [vmem:[#allocation2 + $0x88] sm:$0xff] %vm262_vm2, %v1462_v32 }
  0x33   : > { %281 = vst.msk [vmem:[#allocation2 + $0x90] sm:$0xff] %vm262_vm2, %v1462_v32 }
  0x34   : > { %282 = vst.msk [vmem:[#allocation2 + $0x98] sm:$0xff] %vm262_vm2, %v1462_v32 }
  0x35   : > { %283 = vst.msk [vmem:[#allocation2 + $0xa0] sm:$0xff] %vm262_vm2, %v1462_v32 }
  0x36   : > { %284 = vst.msk [vmem:[#allocation2 + $0xa8] sm:$0xff] %vm262_vm2, %v1462_v32 }
  0x37   : > { %285 = vst.msk [vmem:[#allocation2 + $0xb0] sm:$0xff] %vm262_vm2, %v1462_v32 }
  0x38   : > { %286 = vst.msk [vmem:[#allocation2 + $0xb8] sm:$0xff] %vm262_vm2, %v1462_v32 }
  0x39   : > { %1343 = vmatmul.msk.bf16.gmra.mxu1 %vm579_vm1, %v1200_v35  ;;  %v1228_v35 = vor.u32 %v1374_v31, %v1227_v30  ;;  %287 = vst.msk [vmem:[#allocation2 + $0xc0] sm:$0xff] %vm262_vm2, %v1462_v32  ;;  %v331_v30 = vld [vmem:[#allocation2 + $0x20] sm:$0xff] }
  0x3a   : > { %1352 = vmatmul.msk.bf16.gmra.mxu3 %vm579_vm1, %v1272_v38  ;;  %v1245_v38 = vld [vmem:[%s1519_s27 + $0x88] sm:$0xf0]  ;;  %288 = vst.msk [vmem:[#allocation2 + $0xc8] sm:$0xff] %vm262_vm2, %v1462_v32 }
  0x3b   : > { %v1248_v39 = vor.u32 %v1377_v37, %v1245_v38  ;;  %289 = vst.msk [vmem:[#allocation2 + $0xd0] sm:$0xff] %vm262_vm2, %v1462_v32  ;;  %v346_v27 = vld [vmem:[#allocation2 + $0x98] sm:$0xff] }
  0x3c   : > { %645 = vmatmul.bf16.gmra.mxu0 %v1188_v41  ;;  %v1235_v41 = vld [vmem:[%s1519_s27 + $0x70] sm:$0xf]  ;;  %290 = vst.msk [vmem:[#allocation2 + $0xd8] sm:$0xff] %vm262_vm2, %v1462_v32  ;;  %v347_v44 = vld [vmem:[#allocation2 + $0xa0] sm:$0xff] }
  0x3d   : > { %685 = vmatmul.bf16.gmra.mxu2 %v1252_v42  ;;  %v1376_v42 = vld [vmem:[%s1519_s27 + $0x74] sm:$0xf0]  ;;  %291 = vst.msk [vmem:[#allocation2 + $0xe0] sm:$0xff] %vm262_vm2, %v1462_v32 }
  0x3e   : > { %v1236_v45 = vor.u32 %v1376_v42, %v1235_v41  ;;  %292 = vst.msk [vmem:[#allocation2 + $0xe8] sm:$0xff] %vm262_vm2, %v1462_v32 }
  0x3f   : > { %293 = vst.msk [vmem:[#allocation2 + $0xf0] sm:$0xff] %vm262_vm2, %v1462_v32 }
  0x40   : > { %294 = vst.msk [vmem:[#allocation2 + $0xf8] sm:$0xff] %vm262_vm2, %v1462_v32 }
  0x49   : > { %1344 = vmatmul.msk.bf16.gmra.mxu1 %vm579_vm1, %v1208_v47 }
  0x4a   : > { %1353 = vmatmul.msk.bf16.gmra.mxu3 %vm579_vm1, %v1280_v50  ;;  %v327_v50 = vld [vmem:[#allocation2] sm:$0xff] }
  0x4c   : > { %650 = vmatmul.bf16.gmra.mxu0 %v1196_v53 }
  0x4d   : > { %690 = vmatmul.bf16.gmra.mxu2 %v1260_v54 }
  0x59   : > { %1345 = vmatmul.msk.bf16.gmra.mxu1 %vm579_vm1, %v1216_v59  ;;  %v1657_v59 = vld [vmem:[%s1810_s2] ss:$0 sm:$0xff] }
  0x5a   : > { %1354 = vmatmul.msk.bf16.gmra.mxu3 %vm579_vm1, %v1288_v62 }
  0x5c   : > { %655 = vmatmul.bf16.gmra.mxu0 %v1204_v1 }
  0x5d   : > { %695 = vmatmul.bf16.gmra.mxu2 %v1268_v2 }
  0x69   : > { %1346 = vmatmul.msk.bf16.gmra.mxu1 %vm579_vm1, %v1224_v7 }
  0x6a   : > { %1355 = vmatmul.msk.bf16.gmra.mxu3 %vm579_vm1, %v1296_v10 }
  0x6c   : > { %660 = vmatmul.bf16.gmra.mxu0 %v1212_v13  ;;  %v345_v13 = vld [vmem:[#allocation2 + $0x90] sm:$0xff] }
  0x6d   : > { %700 = vmatmul.bf16.gmra.mxu2 %v1276_v14 }
  0x79   : > { %1347 = vmatmul.msk.bf16.gmra.mxu1 %vm579_vm1, %v1232_v19 }
  0x7a   : > { %1356 = vmatmul.msk.bf16.gmra.mxu3 %vm579_vm1, %v1304_v22 }
  0x7c   : > { %665 = vmatmul.bf16.gmra.mxu0 %v1220_v25 }
  0x7d   : > { %705 = vmatmul.bf16.gmra.mxu2 %v1284_v26 }
  0x89   : > { %1348 = vmatmul.msk.bf16.gmra.mxu1 %vm579_vm1, %v1240_v29 }
  0x8c   : > { %670 = vmatmul.bf16.gmra.mxu0 %v1228_v35 }
  0x8d   : > { %710 = vmatmul.bf16.gmra.mxu2 %v1292_v36 }
  0x96   : > { %v730_v40 = vpop.f32.mrf.mxu1 }
  0x99   : > { %1349 = vmatmul.msk.bf16.gmra.mxu1 %vm579_vm1, %v1248_v39 }
  0x9c   : > { %675 = vmatmul.bf16.gmra.mxu0 %v1236_v45 }
  0x9d   : > { %715 = vmatmul.bf16.gmra.mxu2 %v1300_v46  ;;  %v775_v49 = vpop.f32.mrf.mxu3 }
  0x9e   : > { %v732_v47 = vpop.f32.mrf.mxu1 }
  0xa5   : > { %v777_v56 = vpop.f32.mrf.mxu3 }
  0xa6   : > { %v735_v48 = vpop.f32.mrf.mxu1 }
  0xa9   : > { %v641_v51 = vpop.f32.mrf.mxu0 }
  0xaa   : > { %v731_v52 = vadd.f32 %v730_v40, %v641_v51 }
  0xac   : > { %v810_v53 = vadd.f32 %v731_v52, %v327_v50 }
  0xad   : > { %v780_v7 = vpop.f32.mrf.mxu3 }
  0xae   : > { %v737_v54 = vpop.f32.mrf.mxu1  ;;  %843 = vst.msk [vmem:[#allocation2] sm:$0xff] %vm262_vm2, %v810_v53 }
  0xb0   : > { %v1652_v55 = vpop.f32.mrf.mxu2 }
  0xb1   : > { %v643_v58 = vpop.f32.mrf.mxu0 }
  0xb2   : > { %v733_v60 = vadd.f32 %v732_v47, %v643_v58 }
  0xb4   : > { %v811_v61 = vadd.f32 %v733_v60, %v328_v57 }
  0xb5   : > { %v878_v62 = vld [vmem:[#allocation2] sm:$0xff]  ;;  %v782_v22 = vpop.f32.mrf.mxu3 }
  0xb6   : > { %v740_v63 = vpop.f32.mrf.mxu1  ;;  %v914_v0 = vadd.f32 %v1657_v59, %v878_v62  ;;  %844 = vst.msk [vmem:[#allocation2 + $0x8] sm:$0xff] %vm262_vm2, %v811_v61 }
  0xb8   : > { %v946_v1 = vmax.f32 %v914_v0, 0.0  ;;  %v1662_v2 = vpop.f32.mrf.mxu2 }
  0xb9   : > { %v646_v4 = vpop.f32.mrf.mxu0 }
  0xba   : > { %v978_v5 = vpack.c.bf16 %v946_v1, %v946_v1  ;;  %v736_v6 = vadd.f32 %v735_v48, %v646_v4  ;;  %v332_v48 = vld [vmem:[#allocation2 + $0x28] sm:$0xff] }
  0xbc   : > { %1011 = vst.msk [vmem:[%s1667_s22] sm:$0xf] %vm1010_vm3, %v978_v5  ;;  %v812_v8 = vadd.f32 %v736_v6, %v329_v3  ;;  %v333_v5 = vld [vmem:[#allocation2 + $0x30] sm:$0xff] }
  0xbd   : > { %v879_v9 = vld [vmem:[#allocation2 + $0x8] sm:$0xff]  ;;  %v785_v41 = vpop.f32.mrf.mxu3 }
  0xbe   : > { %v742_v10 = vpop.f32.mrf.mxu1  ;;  %v915_v11 = vadd.f32 %v1657_v59, %v879_v9  ;;  %845 = vst.msk [vmem:[#allocation2 + $0x10] sm:$0xff] %vm262_vm2, %v812_v8 }
  0xc0   : > { %v947_v12 = vmax.f32 %v915_v11, 0.0  ;;  %v686_v14 = vpop.f32.mrf.mxu2 }
  0xc1   : > { %v776_v15 = vadd.f32 %v775_v49, %v686_v14  ;;  %v648_v17 = vpop.f32.mrf.mxu0 }
  0xc2   : > { %v979_v18 = vpack.c.bf16 %v947_v12, %v947_v12  ;;  %v738_v19 = vadd.f32 %v737_v54, %v648_v17 }
  0xc3   : > { %v828_v20 = vadd.f32 %v776_v15, %v345_v13 }
  0xc4   : > { %1012 = vst.msk [vmem:[%s1667_s22 + $0x4] sm:$0xf] %vm1010_vm3, %v979_v18  ;;  %v813_v21 = vadd.f32 %v738_v19, %v330_v16  ;;  %v349_v18 = vld [vmem:[#allocation2 + $0xb0] sm:$0xff] }
  0xc5   : > { %v880_v23 = vld [vmem:[#allocation2 + $0x10] sm:$0xff]  ;;  %861 = vst.msk [vmem:[#allocation2 + $0x90] sm:$0xff] %vm262_vm2, %v828_v20  ;;  %v787_v1 = vpop.f32.mrf.mxu3 }
  0xc6   : > { %v745_v24 = vpop.f32.mrf.mxu1  ;;  %v916_v25 = vadd.f32 %v1657_v59, %v880_v23  ;;  %846 = vst.msk [vmem:[#allocation2 + $0x18] sm:$0xff] %vm262_vm2, %v813_v21 }
  0xc8   : > { %v948_v26 = vmax.f32 %v916_v25, 0.0  ;;  %v688_v28 = vpop.f32.mrf.mxu2 }
  0xc9   : > { %v778_v29 = vadd.f32 %v777_v56, %v688_v28  ;;  %v651_v31 = vpop.f32.mrf.mxu0 }
  0xca   : > { %v980_v32 = vpack.c.bf16 %v948_v26, %v948_v26  ;;  %v741_v33 = vadd.f32 %v740_v63, %v651_v31  ;;  %v348_v63 = vld [vmem:[#allocation2 + $0xa8] sm:$0xff] }
  0xcb   : > { %v829_v34 = vadd.f32 %v778_v29, %v346_v27 }
  0xcc   : > { %1013 = vst.msk [vmem:[%s1667_s22 + $0x8] sm:$0xf] %vm1010_vm3, %v980_v32  ;;  %v896_v35 = vld [vmem:[#allocation2 + $0x90] sm:$0xff]  ;;  %v814_v36 = vadd.f32 %v741_v33, %v331_v30 }
  0xcd   : > { %v932_v37 = vadd.f32 %v1657_v59, %v896_v35  ;;  %v881_v38 = vld [vmem:[#allocation2 + $0x18] sm:$0xff]  ;;  %862 = vst.msk [vmem:[#allocation2 + $0x98] sm:$0xff] %vm262_vm2, %v829_v34  ;;  %v790_v26 = vpop.f32.mrf.mxu3 }
  0xce   : > { %v747_v39 = vpop.f32.mrf.mxu1  ;;  %v917_v40 = vadd.f32 %v1657_v59, %v881_v38  ;;  %847 = vst.msk [vmem:[#allocation2 + $0x20] sm:$0xff] %vm262_vm2, %v814_v36  ;;  %v350_v36 = vld [vmem:[#allocation2 + $0xb8] sm:$0xff] }
  0xcf   : > { %v964_v42 = vmax.f32 %v932_v37, 0.0 }
  0xd0   : > { %v949_v43 = vmax.f32 %v917_v40, 0.0  ;;  %v691_v45 = vpop.f32.mrf.mxu2  ;;  %v335_v40 = vld [vmem:[#allocation2 + $0x40] sm:$0xff] }
  0xd1   : > { %v996_v46 = vpack.c.bf16 %v964_v42, %v964_v42  ;;  %v781_v47 = vadd.f32 %v780_v7, %v691_v45  ;;  %v653_v49 = vpop.f32.mrf.mxu0 }
  0xd2   : > { %v981_v50 = vpack.c.bf16 %v949_v43, %v949_v43  ;;  %v743_v51 = vadd.f32 %v742_v10, %v653_v49 }
  0xd3   : > { %1029 = vst.msk [vmem:[%s1667_s22 + $0x48] sm:$0xf] %vm1010_vm3, %v996_v46  ;;  %v830_v52 = vadd.f32 %v781_v47, %v347_v44 }
  0xd4   : > { %1014 = vst.msk [vmem:[%s1667_s22 + $0xc] sm:$0xf] %vm1010_vm3, %v981_v50  ;;  %v897_v53 = vld [vmem:[#allocation2 + $0x98] sm:$0xff]  ;;  %v815_v54 = vadd.f32 %v743_v51, %v332_v48 }
  0xd5   : > { %v933_v56 = vadd.f32 %v1657_v59, %v897_v53  ;;  %v882_v57 = vld [vmem:[#allocation2 + $0x20] sm:$0xff]  ;;  %863 = vst.msk [vmem:[#allocation2 + $0xa0] sm:$0xff] %vm262_vm2, %v830_v52  ;;  %v792_v47 = vpop.f32.mrf.mxu3 }
  0xd6   : > { %v750_v58 = vpop.f32.mrf.mxu1  ;;  %v918_v60 = vadd.f32 %v1657_v59, %v882_v57  ;;  %848 = vst.msk [vmem:[#allocation2 + $0x28] sm:$0xff] %vm262_vm2, %v815_v54  ;;  %v351_v54 = vld [vmem:[#allocation2 + $0xc0] sm:$0xff] }
  0xd7   : > { %v965_v61 = vmax.f32 %v933_v56, 0.0 }
  0xd8   : > { %v950_v62 = vmax.f32 %v918_v60, 0.0  ;;  %v693_v0 = vpop.f32.mrf.mxu2  ;;  %v336_v60 = vld [vmem:[#allocation2 + $0x48] sm:$0xff] }
  0xd9   : > { %v997_v3 = vpack.c.bf16 %v965_v61, %v965_v61  ;;  %v783_v4 = vadd.f32 %v782_v22, %v693_v0  ;;  %v656_v6 = vpop.f32.mrf.mxu0  ;;  %v334_v22 = vld [vmem:[#allocation2 + $0x38] sm:$0xff] }
  0xda   : > { %v982_v7 = vpack.c.bf16 %v950_v62, %v950_v62  ;;  %v746_v8 = vadd.f32 %v745_v24, %v656_v6 }
  0xdb   : > { %1030 = vst.msk [vmem:[%s1667_s22 + $0x4c] sm:$0xf] %vm1010_vm3, %v997_v3  ;;  %v831_v9 = vadd.f32 %v783_v4, %v348_v63 }
  0xdc   : > { %1015 = vst.msk [vmem:[%s1667_s22 + $0x10] sm:$0xf] %vm1010_vm3, %v982_v7  ;;  %v898_v10 = vld [vmem:[#allocation2 + $0xa0] sm:$0xff]  ;;  %v816_v11 = vadd.f32 %v746_v8, %v333_v5 }
  0xdd   : > { %v934_v12 = vadd.f32 %v1657_v59, %v898_v10  ;;  %v883_v13 = vld [vmem:[#allocation2 + $0x28] sm:$0xff]  ;;  %864 = vst.msk [vmem:[#allocation2 + $0xa8] sm:$0xff] %vm262_vm2, %v831_v9  ;;  %v795_v8 = vpop.f32.mrf.mxu3 }
  0xde   : > { %v752_v14 = vpop.f32.mrf.mxu1  ;;  %v919_v15 = vadd.f32 %v1657_v59, %v883_v13  ;;  %849 = vst.msk [vmem:[#allocation2 + $0x30] sm:$0xff] %vm262_vm2, %v816_v11  ;;  %v352_v11 = vld [vmem:[#allocation2 + $0xc8] sm:$0xff] }
  0xdf   : > { %v966_v16 = vmax.f32 %v934_v12, 0.0 }
  0xe0   : > { %v951_v17 = vmax.f32 %v919_v15, 0.0  ;;  %v696_v19 = vpop.f32.mrf.mxu2  ;;  %v337_v15 = vld [vmem:[#allocation2 + $0x50] sm:$0xff] }
  0xe1   : > { %v998_v20 = vpack.c.bf16 %v966_v16, %v966_v16  ;;  %v786_v21 = vadd.f32 %v785_v41, %v696_v19  ;;  %v658_v23 = vpop.f32.mrf.mxu0 }
  0xe2   : > { %v983_v24 = vpack.c.bf16 %v951_v17, %v951_v17  ;;  %v748_v25 = vadd.f32 %v747_v39, %v658_v23 }
  0xe3   : > { %1031 = vst.msk [vmem:[%s1667_s22 + $0x50] sm:$0xf] %vm1010_vm3, %v998_v20  ;;  %v832_v27 = vadd.f32 %v786_v21, %v349_v18 }
  0xe4   : > { %1016 = vst.msk [vmem:[%s1667_s22 + $0x14] sm:$0xf] %vm1010_vm3, %v983_v24  ;;  %v899_v28 = vld [vmem:[#allocation2 + $0xa8] sm:$0xff]  ;;  %v817_v29 = vadd.f32 %v748_v25, %v334_v22 }
  0xe5   : > { %v935_v30 = vadd.f32 %v1657_v59, %v899_v28  ;;  %v884_v31 = vld [vmem:[#allocation2 + $0x30] sm:$0xff]  ;;  %865 = vst.msk [vmem:[#allocation2 + $0xb0] sm:$0xff] %vm262_vm2, %v832_v27 }
  0xe6   : > { %v755_v32 = vpop.f32.mrf.mxu1  ;;  %v920_v33 = vadd.f32 %v1657_v59, %v884_v31  ;;  %850 = vst.msk [vmem:[#allocation2 + $0x38] sm:$0xff] %vm262_vm2, %v817_v29  ;;  %v353_v28 = vld [vmem:[#allocation2 + $0xd0] sm:$0xff] }
  0xe7   : > { %v967_v34 = vmax.f32 %v935_v30, 0.0  ;;  %v797_v30 = vpop.f32.mrf.mxu3 }
  0xe8   : > { %v952_v35 = vmax.f32 %v920_v33, 0.0  ;;  %v698_v37 = vpop.f32.mrf.mxu2  ;;  %v338_v33 = vld [vmem:[#allocation2 + $0x58] sm:$0xff] }
  0xe9   : > { %v999_v38 = vpack.c.bf16 %v967_v34, %v967_v34  ;;  %v788_v39 = vadd.f32 %v787_v1, %v698_v37  ;;  %v661_v41 = vpop.f32.mrf.mxu0 }
  0xea   : > { %v984_v42 = vpack.c.bf16 %v952_v35, %v952_v35  ;;  %v751_v43 = vadd.f32 %v750_v58, %v661_v41 }
  0xeb   : > { %1032 = vst.msk [vmem:[%s1667_s22 + $0x54] sm:$0xf] %vm1010_vm3, %v999_v38  ;;  %v833_v44 = vadd.f32 %v788_v39, %v350_v36 }
  0xec   : > { %1017 = vst.msk [vmem:[%s1667_s22 + $0x18] sm:$0xf] %vm1010_vm3, %v984_v42  ;;  %v900_v45 = vld [vmem:[#allocation2 + $0xb0] sm:$0xff]  ;;  %v818_v46 = vadd.f32 %v751_v43, %v335_v40 }
  0xed   : > { %v936_v48 = vadd.f32 %v1657_v59, %v900_v45  ;;  %v885_v49 = vld [vmem:[#allocation2 + $0x38] sm:$0xff]  ;;  %866 = vst.msk [vmem:[#allocation2 + $0xb8] sm:$0xff] %vm262_vm2, %v833_v44 }
  0xee   : > { %v757_v50 = vpop.f32.mrf.mxu1  ;;  %v921_v51 = vadd.f32 %v1657_v59, %v885_v49  ;;  %851 = vst.msk [vmem:[#allocation2 + $0x40] sm:$0xff] %vm262_vm2, %v818_v46  ;;  %v354_v46 = vld [vmem:[#allocation2 + $0xd8] sm:$0xff] }
  0xef   : > { %v968_v52 = vmax.f32 %v936_v48, 0.0 }
  0xf0   : > { %v953_v53 = vmax.f32 %v921_v51, 0.0  ;;  %v701_v56 = vpop.f32.mrf.mxu2 }
  0xf1   : > { %v1000_v57 = vpack.c.bf16 %v968_v52, %v968_v52  ;;  %v791_v58 = vadd.f32 %v790_v26, %v701_v56  ;;  %v663_v61 = vpop.f32.mrf.mxu0 }
  0xf2   : > { %v985_v62 = vpack.c.bf16 %v953_v53, %v953_v53  ;;  %v753_v63 = vadd.f32 %v752_v14, %v663_v61  ;;  %v800_v53 = vpop.f32.mrf.mxu3 }
  0xf3   : > { %1033 = vst.msk [vmem:[%s1667_s22 + $0x58] sm:$0xf] %vm1010_vm3, %v1000_v57  ;;  %v834_v0 = vadd.f32 %v791_v58, %v351_v54 }
  0xf4   : > { %1018 = vst.msk [vmem:[%s1667_s22 + $0x1c] sm:$0xf] %vm1010_vm3, %v985_v62  ;;  %v901_v1 = vld [vmem:[#allocation2 + $0xb8] sm:$0xff]  ;;  %v819_v3 = vadd.f32 %v753_v63, %v336_v60 }
  0xf5   : > { %v937_v4 = vadd.f32 %v1657_v59, %v901_v1  ;;  %v886_v5 = vld [vmem:[#allocation2 + $0x40] sm:$0xff]  ;;  %867 = vst.msk [vmem:[#allocation2 + $0xc0] sm:$0xff] %vm262_vm2, %v834_v0 }
  0xf6   : > { %v760_v6 = vpop.f32.mrf.mxu1  ;;  %v922_v7 = vadd.f32 %v1657_v59, %v886_v5  ;;  %852 = vst.msk [vmem:[#allocation2 + $0x48] sm:$0xff] %vm262_vm2, %v819_v3  ;;  %v355_v3 = vld [vmem:[#allocation2 + $0xe0] sm:$0xff] }
  0xf7   : > { %v969_v9 = vmax.f32 %v937_v4, 0.0 }
  0xf8   : > { %v954_v10 = vmax.f32 %v922_v7, 0.0  ;;  %v703_v12 = vpop.f32.mrf.mxu2  ;;  %v340_v7 = vld [vmem:[#allocation2 + $0x68] sm:$0xff] }
  0xf9   : > { %v1001_v13 = vpack.c.bf16 %v969_v9, %v969_v9  ;;  %v793_v14 = vadd.f32 %v792_v47, %v703_v12  ;;  %v666_v16 = vpop.f32.mrf.mxu0 }
  0xfa   : > { %v986_v17 = vpack.c.bf16 %v954_v10, %v954_v10  ;;  %v756_v18 = vadd.f32 %v755_v32, %v666_v16 }
  0xfb   : > { %1034 = vst.msk [vmem:[%s1667_s22 + $0x5c] sm:$0xf] %vm1010_vm3, %v1001_v13  ;;  %v835_v19 = vadd.f32 %v793_v14, %v352_v11  ;;  %v802_v13 = vpop.f32.mrf.mxu3 }
  0xfc   : > { %1019 = vst.msk [vmem:[%s1667_s22 + $0x20] sm:$0xf] %vm1010_vm3, %v986_v17  ;;  %v902_v20 = vld [vmem:[#allocation2 + $0xc0] sm:$0xff]  ;;  %v820_v21 = vadd.f32 %v756_v18, %v337_v15 }
  0xfd   : > { %v938_v22 = vadd.f32 %v1657_v59, %v902_v20  ;;  %v887_v23 = vld [vmem:[#allocation2 + $0x48] sm:$0xff]  ;;  %868 = vst.msk [vmem:[#allocation2 + $0xc8] sm:$0xff] %vm262_vm2, %v835_v19  ;;  %v343_v17 = vld [vmem:[#allocation2 + $0x80] sm:$0xff] }
  0xfe   : > { %v762_v24 = vpop.f32.mrf.mxu1  ;;  %v923_v25 = vadd.f32 %v1657_v59, %v887_v23  ;;  %853 = vst.msk [vmem:[#allocation2 + $0x50] sm:$0xff] %vm262_vm2, %v820_v21 }
  0xff   : > { %v970_v26 = vmax.f32 %v938_v22, 0.0 }
 0x100   : > { %v955_v27 = vmax.f32 %v923_v25, 0.0  ;;  %v706_v29 = vpop.f32.mrf.mxu2 }
 0x101   : > { %v1002_v31 = vpack.c.bf16 %v970_v26, %v970_v26  ;;  %v796_v32 = vadd.f32 %v795_v8, %v706_v29  ;;  %v668_v34 = vpop.f32.mrf.mxu0 }
 0x102   : > { %v987_v35 = vpack.c.bf16 %v955_v27, %v955_v27  ;;  %v758_v36 = vadd.f32 %v757_v50, %v668_v34  ;;  %v339_v50 = vld [vmem:[#allocation2 + $0x60] sm:$0xff] }
 0x103   : > { %1035 = vst.msk [vmem:[%s1667_s22 + $0x60] sm:$0xf] %vm1010_vm3, %v1002_v31  ;;  %v836_v37 = vadd.f32 %v796_v32, %v353_v28  ;;  %v341_v28 = vld [vmem:[#allocation2 + $0x70] sm:$0xff] }
 0x104   : > { %1020 = vst.msk [vmem:[%s1667_s22 + $0x24] sm:$0xf] %vm1010_vm3, %v987_v35  ;;  %v903_v38 = vld [vmem:[#allocation2 + $0xc8] sm:$0xff]  ;;  %v821_v39 = vadd.f32 %v758_v36, %v338_v33 }
 0x105   : > { %v939_v40 = vadd.f32 %v1657_v59, %v903_v38  ;;  %v888_v41 = vld [vmem:[#allocation2 + $0x50] sm:$0xff]  ;;  %869 = vst.msk [vmem:[#allocation2 + $0xd0] sm:$0xff] %vm262_vm2, %v836_v37  ;;  %v344_v36 = vld [vmem:[#allocation2 + $0x88] sm:$0xff] }
 0x106   : > { %v765_v42 = vpop.f32.mrf.mxu1  ;;  %v924_v43 = vadd.f32 %v1657_v59, %v888_v41  ;;  %854 = vst.msk [vmem:[#allocation2 + $0x58] sm:$0xff] %vm262_vm2, %v821_v39  ;;  %v805_v39 = vpop.f32.mrf.mxu3 }
 0x107   : > { %v971_v44 = vmax.f32 %v939_v40, 0.0 }
 0x108   : > { %v956_v45 = vmax.f32 %v924_v43, 0.0  ;;  %v708_v47 = vpop.f32.mrf.mxu2 }
 0x109   : > { %v1003_v48 = vpack.c.bf16 %v971_v44, %v971_v44  ;;  %v798_v49 = vadd.f32 %v797_v30, %v708_v47  ;;  %v671_v51 = vpop.f32.mrf.mxu0  ;;  %v357_v44 = vld [vmem:[#allocation2 + $0xf0] sm:$0xff] }
 0x10a   : > { %v988_v52 = vpack.c.bf16 %v956_v45, %v956_v45  ;;  %v761_v54 = vadd.f32 %v760_v6, %v671_v51 }
 0x10b   : > { %1036 = vst.msk [vmem:[%s1667_s22 + $0x64] sm:$0xf] %vm1010_vm3, %v1003_v48  ;;  %v837_v56 = vadd.f32 %v798_v49, %v354_v46  ;;  %v342_v49 = vld [vmem:[#allocation2 + $0x78] sm:$0xff] }
 0x10c   : > { %1021 = vst.msk [vmem:[%s1667_s22 + $0x28] sm:$0xf] %vm1010_vm3, %v988_v52  ;;  %v904_v57 = vld [vmem:[#allocation2 + $0xd0] sm:$0xff]  ;;  %v822_v58 = vadd.f32 %v761_v54, %v339_v50 }
 0x10d   : > { %v940_v60 = vadd.f32 %v1657_v59, %v904_v57  ;;  %v889_v61 = vld [vmem:[#allocation2 + $0x58] sm:$0xff]  ;;  %870 = vst.msk [vmem:[#allocation2 + $0xd8] sm:$0xff] %vm262_vm2, %v837_v56 }
 0x10e   : > { %v1746_v62 = vpop.f32.mrf.mxu1  ;;  %v925_v63 = vadd.f32 %v1657_v59, %v889_v61  ;;  %855 = vst.msk [vmem:[#allocation2 + $0x60] sm:$0xff] %vm262_vm2, %v822_v58 }
 0x10f   : > { %v972_v0 = vmax.f32 %v940_v60, 0.0 }
 0x110   : > { %v957_v1 = vmax.f32 %v925_v63, 0.0  ;;  %v711_v4 = vpop.f32.mrf.mxu2 }
 0x111   : > { %v1004_v5 = vpack.c.bf16 %v972_v0, %v972_v0  ;;  %v801_v6 = vadd.f32 %v800_v53, %v711_v4  ;;  %v673_v8 = vpop.f32.mrf.mxu0 }
 0x112   : > { %v989_v9 = vpack.c.bf16 %v957_v1, %v957_v1  ;;  %v763_v10 = vadd.f32 %v762_v24, %v673_v8  ;;  %v356_v24 = vld [vmem:[#allocation2 + $0xe8] sm:$0xff]  ;;  %v807_v1 = vpop.f32.mrf.mxu3 }
 0x113   : > { %1037 = vst.msk [vmem:[%s1667_s22 + $0x68] sm:$0xf] %vm1010_vm3, %v1004_v5  ;;  %v838_v11 = vadd.f32 %v801_v6, %v355_v3  ;;  %v358_v3 = vld [vmem:[#allocation2 + $0xf8] sm:$0xff] }
 0x114   : > { %1022 = vst.msk [vmem:[%s1667_s22 + $0x2c] sm:$0xf] %vm1010_vm3, %v989_v9  ;;  %v905_v12 = vld [vmem:[#allocation2 + $0xd8] sm:$0xff]  ;;  %v823_v14 = vadd.f32 %v763_v10, %v340_v7 }
 0x115   : > { %v941_v15 = vadd.f32 %v1657_v59, %v905_v12  ;;  %v890_v16 = vld [vmem:[#allocation2 + $0x60] sm:$0xff]  ;;  %871 = vst.msk [vmem:[#allocation2 + $0xe0] sm:$0xff] %vm262_vm2, %v838_v11 }
 0x116   : > { %v770_v18 = vpop.f32.mrf.mxu1  ;;  %v926_v19 = vadd.f32 %v1657_v59, %v890_v16  ;;  %856 = vst.msk [vmem:[#allocation2 + $0x68] sm:$0xff] %vm262_vm2, %v823_v14 }
 0x117   : > { %v771_v20 = vadd.f32 %v770_v18, %v1652_v55  ;;  %v973_v21 = vmax.f32 %v941_v15, 0.0 }
 0x118   : > { %v958_v22 = vmax.f32 %v926_v19, 0.0  ;;  %v713_v25 = vpop.f32.mrf.mxu2 }
 0x119   : > { %v826_v23 = vadd.f32 %v771_v20, %v343_v17  ;;  %v1005_v26 = vpack.c.bf16 %v973_v21, %v973_v21  ;;  %v803_v27 = vadd.f32 %v802_v13, %v713_v25  ;;  %v676_v29 = vpop.f32.mrf.mxu0 }
 0x11a   : > { %v990_v30 = vpack.c.bf16 %v958_v22, %v958_v22  ;;  %v766_v31 = vadd.f32 %v765_v42, %v676_v29 }
 0x11b   : > { %859 = vst.msk [vmem:[#allocation2 + $0x80] sm:$0xff] %vm262_vm2, %v826_v23  ;;  %v839_v32 = vadd.f32 %v803_v27, %v356_v24 }
 0x11c   : > { %1038 = vst.msk [vmem:[%s1667_s22 + $0x6c] sm:$0xf] %vm1010_vm3, %v1005_v26  ;;  %v906_v33 = vld [vmem:[#allocation2 + $0xe0] sm:$0xff]  ;;  %v824_v55 = vadd.f32 %v766_v31, %v341_v28 }
 0x11d   : > { %1023 = vst.msk [vmem:[%s1667_s22 + $0x30] sm:$0xf] %vm1010_vm3, %v990_v30  ;;  %v942_v34 = vadd.f32 %v1657_v59, %v906_v33  ;;  %v891_v35 = vld [vmem:[#allocation2 + $0x68] sm:$0xff] }
 0x11e   : > { %872 = vst.msk [vmem:[#allocation2 + $0xe8] sm:$0xff] %vm262_vm2, %v839_v32  ;;  %v772_v37 = vpop.f32.mrf.mxu1  ;;  %v927_v38 = vadd.f32 %v1657_v59, %v891_v35 }
 0x11f   : > { %857 = vst.msk [vmem:[#allocation2 + $0x70] sm:$0xff] %vm262_vm2, %v824_v55  ;;  %v773_v40 = vadd.f32 %v772_v37, %v1662_v2  ;;  %v974_v41 = vmax.f32 %v942_v34, 0.0 }
 0x120   : > { %v959_v42 = vmax.f32 %v927_v38, 0.0  ;;  %v716_v45 = vpop.f32.mrf.mxu2 }
 0x121   : > { %v827_v43 = vadd.f32 %v773_v40, %v344_v36  ;;  %v1006_v46 = vpack.c.bf16 %v974_v41, %v974_v41  ;;  %v806_v48 = vadd.f32 %v805_v39, %v716_v45  ;;  %v678_v50 = vpop.f32.mrf.mxu0 }
 0x122   : > { %v894_v47 = vld [vmem:[#allocation2 + $0x80] sm:$0xff]  ;;  %v991_v51 = vpack.c.bf16 %v959_v42, %v959_v42  ;;  %v768_v53 = vadd.f32 %v1746_v62, %v678_v50 }
 0x123   : > { %v930_v52 = vadd.f32 %v1657_v59, %v894_v47  ;;  %860 = vst.msk [vmem:[#allocation2 + $0x88] sm:$0xff] %vm262_vm2, %v827_v43  ;;  %v840_v2 = vadd.f32 %v806_v48, %v357_v44 }
 0x124   : > { %1039 = vst.msk [vmem:[%s1667_s22 + $0x70] sm:$0xf] %vm1010_vm3, %v1006_v46  ;;  %v825_v57 = vadd.f32 %v768_v53, %v342_v49 }
 0x125   : > { %1024 = vst.msk [vmem:[%s1667_s22 + $0x34] sm:$0xf] %vm1010_vm3, %v991_v51  ;;  %v962_v54 = vmax.f32 %v930_v52, 0.0  ;;  %v907_v56 = vld [vmem:[#allocation2 + $0xe8] sm:$0xff] }
 0x126   : > { %v943_v58 = vadd.f32 %v1657_v59, %v907_v56  ;;  %v892_v60 = vld [vmem:[#allocation2 + $0x70] sm:$0xff]  ;;  %873 = vst.msk [vmem:[#allocation2 + $0xf0] sm:$0xff] %vm262_vm2, %v840_v2 }
 0x127   : > { %v994_v61 = vpack.c.bf16 %v962_v54, %v962_v54  ;;  %v928_v63 = vadd.f32 %v1657_v59, %v892_v60  ;;  %858 = vst.msk [vmem:[#allocation2 + $0x78] sm:$0xff] %vm262_vm2, %v825_v57 }
 0x128   : > { %v975_v62 = vmax.f32 %v943_v58, 0.0  ;;  %v718_v4 = vpop.f32.mrf.mxu2 }
 0x129   : > { %1027 = vst.msk [vmem:[%s1667_s22 + $0x40] sm:$0xf] %vm1010_vm3, %v994_v61  ;;  %v960_v0 = vmax.f32 %v928_v63, 0.0  ;;  %v808_v7 = vadd.f32 %v807_v1, %v718_v4 }
 0x12a   : > { %v1007_v5 = vpack.c.bf16 %v975_v62, %v975_v62  ;;  %v895_v6 = vld [vmem:[#allocation2 + $0x88] sm:$0xff] }
 0x12b   : > { %v992_v8 = vpack.c.bf16 %v960_v0, %v960_v0  ;;  %v931_v9 = vadd.f32 %v1657_v59, %v895_v6  ;;  %v841_v10 = vadd.f32 %v808_v7, %v358_v3 }
 0x12c   : > { %1040 = vst.msk [vmem:[%s1667_s22 + $0x74] sm:$0xf] %vm1010_vm3, %v1007_v5 }
 0x12d   : > { %1025 = vst.msk [vmem:[%s1667_s22 + $0x38] sm:$0xf] %vm1010_vm3, %v992_v8  ;;  %v963_v11 = vmax.f32 %v931_v9, 0.0  ;;  %v908_v12 = vld [vmem:[#allocation2 + $0xf0] sm:$0xff] }
 0x12e   : > { %v944_v13 = vadd.f32 %v1657_v59, %v908_v12  ;;  %v893_v14 = vld [vmem:[#allocation2 + $0x78] sm:$0xff]  ;;  %874 = vst.msk [vmem:[#allocation2 + $0xf8] sm:$0xff] %vm262_vm2, %v841_v10 }
 0x12f   : > { %v995_v15 = vpack.c.bf16 %v963_v11, %v963_v11  ;;  %v929_v16 = vadd.f32 %v1657_v59, %v893_v14 }
 0x130   : > { %v976_v17 = vmax.f32 %v944_v13, 0.0 }
 0x131   : > { %1028 = vst.msk [vmem:[%s1667_s22 + $0x44] sm:$0xf] %vm1010_vm3, %v995_v15  ;;  %v961_v18 = vmax.f32 %v929_v16, 0.0 }
 0x132   : > { %v1008_v19 = vpack.c.bf16 %v976_v17, %v976_v17 }
 0x133   : > { %v993_v20 = vpack.c.bf16 %v961_v18, %v961_v18 }
 0x134   : > { %1041 = vst.msk [vmem:[%s1667_s22 + $0x78] sm:$0xf] %vm1010_vm3, %v1008_v19 }
 0x135   : > { %1026 = vst.msk [vmem:[%s1667_s22 + $0x3c] sm:$0xf] %vm1010_vm3, %v993_v20  ;;  %v909_v21 = vld [vmem:[#allocation2 + $0xf8] sm:$0xff] }
 0x136   : > { %v945_v22 = vadd.f32 %v1657_v59, %v909_v21 }
 0x138   : > { %v977_v23 = vmax.f32 %v945_v22, 0.0 }
 0x13a   : > { %v1009_v24 = vpack.c.bf16 %v977_v23, %v977_v23 }
 0x13c   : > { %1042 = vst.msk [vmem:[%s1667_s22 + $0x7c] sm:$0xf] %vm1010_vm3, %v1009_v24 }
 0x13d PF: > { %s13_s14 = sadd.s32 1, %s1460_s14   ;;  %s1812_s12 = smov %s1456_s13 }
 0x13e   : > { %p10_p5 = scmp.ge.s32.totalorder %s13_s14, 4   ;;  %s1813_s13 = smov %s1815_s15 }
 0x140   :  { %12 = sbr.rel (!%p10_p5) target bundleno = 2 (0x2), region = 76 }

// kernel: _lambda_.11
= control target key start
LH: loop header
LB: loop body
LE: loop exit
PB: predicated region body
PF: predicated region fallthrough
CT: control target
= control target key end

     0   :  { %s687_s6 = smov 0   ;;  %s904_s0 = inlined_call_operand.vmem [shape: bf16[2,9,64,64], index: 0, kind: input, shape index: {}]   ;;  %s905_s1 = inlined_call_operand.vmem [shape: bf16[2,64,64], index: 1, kind: output, shape index: {}]  }
   0x1 LB: > { %s470_s7 = sadd.s32 4294967295, %s675_s6   ;;  %p474_p0 = scmp.ge.s32.totalorder %s675_s6, 1  ;;  %s675_s6 = sphi %s687_s6, %s11_s6  }
   0x2   : > { %p87_p1 = scmp.lt.s32.totalorder %s675_s6, 3 }
   0x4   : > { %p88_p2 = pnand %p474_p0, %p87_p1 }
   0x5   : > { %p107_p3 = scmp.lt.s32.totalorder (!%p88_p2), %s470_s7, 1 }
   0x6   : > { %91 = sbr.rel (%p88_p2) target bundleno = 82 (0x52), region = 24 }
   0xb   : > { %s907_s7 = smov (!%p107_p3, %s470_s7), 1  ;;  %vm261_vm0 = vcmask 523264   ;;  %vm406_vm1 = vcmask 519168  }
   0xc   : > { %s660_s8 = smul.u32 288, %s907_s7  ;;  %s480_s12 = sshll.u32 %s907_s7, 5 }
   0xd   : > { %s781_s15 = scalar_lea.vmem %s905_s1, %s480_s12 }
   0xe   : > { %s701_s11 = scalar_lea.vmem %s904_s0, %s660_s8 }
   0xf   : > { %v482_v0 = vld [vmem:[%s701_s11] sm:$0xff]   ;;  %v725_v34 = vld [vmem:[%s701_s11 + $0x8] sm:$0xff]  }
  0x10   : > { %v628_v1 = vld [vmem:[%s701_s11 + $0x20] sm:$0xff]   ;;  %v483_v3 = vunpack.c.l.bf16 %v482_v0  ;;  %v484_v18 = vunpack.c.h.bf16 %v482_v0  ;;  %v728_v35 = vld [vmem:[%s701_s11 + $0x28] sm:$0xff]   ;;  %v487_v48 = vunpack.c.l.bf16 %v725_v34 }
  0x11   : > { %v632_v2 = vld [vmem:[%s701_s11 + $0x40] sm:$0xff]   ;;  %v499_v4 = vunpack.c.l.bf16 %v628_v1  ;;  %v500_v19 = vunpack.c.h.bf16 %v628_v1  ;;  %v732_v40 = vld [vmem:[%s701_s11 + $0x48] sm:$0xff]   ;;  %v503_v49 = vunpack.c.l.bf16 %v728_v35 }
  0x12   : > { %v515_v5 = vunpack.c.l.bf16 %v632_v2  ;;  %v636_v6 = vld [vmem:[%s701_s11 + $0x60] sm:$0xff]   ;;  %v262_v15 = vsel %vm261_vm0, %v483_v3, -inf  ;;  %v516_v25 = vunpack.c.h.bf16 %v632_v2  ;;  %v279_v31 = vsel %vm261_vm0, %v484_v18, -inf  ;;  %v735_v41 = vld [vmem:[%s701_s11 + $0x68] sm:$0xff]  }
  0x13   : > { %v640_v7 = vld [vmem:[%s701_s11 + $0x80] sm:$0xff]   ;;  %v531_v9 = vunpack.c.l.bf16 %v636_v6  ;;  %v263_v16 = vsel %vm261_vm0, %v499_v4, -inf  ;;  %v532_v26 = vunpack.c.h.bf16 %v636_v6  ;;  %v280_v32 = vsel %vm261_vm0, %v500_v19, -inf  ;;  %v743_v50 = vld [vmem:[%s701_s11 + $0x88] sm:$0xff]  }
  0x14   : > { %v644_v8 = vld [vmem:[%s701_s11 + $0xa0] sm:$0xff]   ;;  %v547_v12 = vunpack.c.l.bf16 %v640_v7  ;;  %v265_v17 = vsel %vm261_vm0, %v515_v5, -inf  ;;  %v264_v22 = vmax.f32 %v262_v15, %v263_v16  ;;  %v548_v30 = vunpack.c.h.bf16 %v640_v7  ;;  %v751_v59 = vld [vmem:[%s701_s11 + $0xa8] sm:$0xff]  }
  0x15   : > { %v648_v10 = vld [vmem:[%s701_s11 + $0xc0] sm:$0xff]   ;;  %v563_v13 = vunpack.c.l.bf16 %v644_v8  ;;  %v267_v24 = vsel %vm261_vm0, %v531_v9, -inf  ;;  %v282_v33 = vsel %vm261_vm0, %v516_v25, -inf  ;;  %v564_v38 = vunpack.c.h.bf16 %v644_v8  ;;  %v754_v60 = vld [vmem:[%s701_s11 + $0xc8] sm:$0xff]  }
  0x16   : > { %v652_v11 = vld [vmem:[%s701_s11 + $0xe0] sm:$0xff]   ;;  %v579_v20 = vunpack.c.l.bf16 %v648_v10  ;;  %v266_v27 = vmax.f32 %v264_v22, %v265_v17  ;;  %v269_v28 = vsel %vm261_vm0, %v547_v12, -inf  ;;  %v281_v39 = vmax.f32 %v279_v31, %v280_v32  ;;  %v758_v62 = vld [vmem:[%s701_s11 + $0xe8] sm:$0xff]   ;;  %v789_v31 = vld [vmem:[%s701_s11 + $0x10] sm:$0xff]  }
  0x17   : > { %v712_v14 = vld [vmem:[%s701_s11 + $0x100] sm:$0xff]   ;;  %v595_v21 = vunpack.c.l.bf16 %v652_v11  ;;  %v271_v29 = vsel %vm261_vm0, %v563_v13, -inf  ;;  %v580_v44 = vunpack.c.h.bf16 %v648_v10  ;;  %v284_v45 = vsel %vm261_vm0, %v532_v26, -inf  ;;  %v771_v13 = vld [vmem:[%s701_s11 + $0x108] sm:$0xff]  }
  0x18   : > { %v611_v23 = vunpack.c.l.bf16 %v712_v14  ;;  %v268_v36 = vmax.f32 %v266_v27, %v267_v24  ;;  %v273_v37 = vsel %vm261_vm0, %v579_v20, -inf  ;;  %v283_v47 = vmax.f32 %v281_v39, %v282_v33 }
  0x19   : > { %v275_v42 = vsel %vm261_vm0, %v595_v21, -inf  ;;  %v596_v51 = vunpack.c.h.bf16 %v652_v11  ;;  %v286_v52 = vsel %vm261_vm0, %v548_v30, -inf  ;;  %v519_v53 = vunpack.c.l.bf16 %v732_v40 }
  0x1a   : > { %v277_v43 = vsel %vm261_vm0, %v611_v23, -inf  ;;  %v270_v46 = vmax.f32 %v268_v36, %v269_v28  ;;  %v535_v54 = vunpack.c.l.bf16 %v735_v41  ;;  %v612_v56 = vunpack.c.h.bf16 %v712_v14  ;;  %v630_v36 = vld [vmem:[%s701_s11 + $0x30] sm:$0xff]  }
  0x1b   : > { %v285_v57 = vmax.f32 %v283_v47, %v284_v45  ;;  %v288_v58 = vsel %vm261_vm0, %v564_v38, -inf  ;;  %v551_v61 = vunpack.c.l.bf16 %v743_v50  ;;  %v296_v63 = vsel %vm261_vm0, %v487_v48, -inf }
  0x1c   : > { %v272_v55 = vmax.f32 %v270_v46, %v271_v29  ;;  %v297_v0 = vsel %vm261_vm0, %v503_v49, -inf  ;;  %v299_v1 = vsel %vm261_vm0, %v519_v53, -inf  ;;  %v290_v4 = vsel %vm261_vm0, %v580_v44, -inf }
  0x1d   : > { %v287_v3 = vmax.f32 %v285_v57, %v286_v52  ;;  %v298_v5 = vmax.f32 %v296_v63, %v297_v0  ;;  %v292_v6 = vsel %vm261_vm0, %v596_v51, -inf  ;;  %v567_v7 = vunpack.c.l.bf16 %v751_v59  ;;  %v808_v51 = vld [vmem:[%s701_s11 + $0x90] sm:$0xff]  }
  0x1e   : > { %v274_v2 = vmax.f32 %v272_v55, %v273_v37  ;;  %v583_v8 = vunpack.c.l.bf16 %v754_v60  ;;  %v301_v9 = vsel %vm261_vm0, %v535_v54, -inf  ;;  %v599_v12 = vunpack.c.l.bf16 %v758_v62 }
  0x1f   : > { %v289_v11 = vmax.f32 %v287_v3, %v288_v58  ;;  %v300_v14 = vmax.f32 %v298_v5, %v299_v1  ;;  %v303_v15 = vsel %vm261_vm0, %v551_v61, -inf  ;;  %v488_v16 = vunpack.c.h.bf16 %v725_v34  ;;  %v821_v61 = vld [vmem:[%s701_s11 + $0xd0] sm:$0xff]  }
  0x20   : > { %v276_v10 = vmax.f32 %v274_v2, %v275_v42  ;;  %v504_v17 = vunpack.c.h.bf16 %v728_v35  ;;  %v520_v18 = vunpack.c.h.bf16 %v732_v40  ;;  %v294_v21 = vsel %vm261_vm0, %v612_v56, -inf  ;;  %v801_v42 = vld [vmem:[%s701_s11 + $0x70] sm:$0xff]  }
  0x21   : > { %v291_v20 = vmax.f32 %v289_v11, %v290_v4  ;;  %v302_v22 = vmax.f32 %v300_v14, %v301_v9  ;;  %v615_v23 = vunpack.c.l.bf16 %v771_v13  ;;  %v305_v24 = vsel %vm261_vm0, %v567_v7, -inf }
  0x22   : > { %v278_v19 = vmax.f32 %v276_v10, %v277_v43  ;;  %v307_v25 = vsel %vm261_vm0, %v583_v8, -inf  ;;  %v536_v26 = vunpack.c.h.bf16 %v735_v41  ;;  %v313_v30 = vsel %vm261_vm0, %v488_v16, -inf  ;;  %v634_v41 = vld [vmem:[%s701_s11 + $0x50] sm:$0xff]  }
  0x23   : > { %v293_v28 = vmax.f32 %v291_v20, %v292_v6  ;;  %v304_v29 = vmax.f32 %v302_v22, %v303_v15  ;;  %v309_v32 = vsel %vm261_vm0, %v599_v12, -inf  ;;  %v552_v33 = vunpack.c.h.bf16 %v743_v50  ;;  %v841_v20 = vld [vmem:[%s701_s11 + $0x110] sm:$0xff]  }
  0x24   : > { %v398_v27 = vpack.c.bf16 %v278_v19, %v278_v19  ;;  %v314_v34 = vsel %vm261_vm0, %v504_v17, -inf  ;;  %v316_v35 = vsel %vm261_vm0, %v520_v18, -inf  ;;  %v568_v39 = vunpack.c.h.bf16 %v751_v59 }
  0x25   : > { %v295_v37 = vmax.f32 %v293_v28, %v294_v21  ;;  %v306_v38 = vmax.f32 %v304_v29, %v305_v24  ;;  %v315_v40 = vmax.f32 %v313_v30, %v314_v34  ;;  %v311_v43 = vsel %vm261_vm0, %v615_v23, -inf }
  0x26   : > { %407 = vst.msk [vmem:[%s781_s15] sm:$0xf] %vm406_vm1, %v398_v27  ;;  %v584_v44 = vunpack.c.h.bf16 %v754_v60  ;;  %v318_v45 = vsel %vm261_vm0, %v536_v26, -inf  ;;  %v491_v46 = vunpack.c.l.bf16 %v789_v31  ;;  %v507_v50 = vunpack.c.l.bf16 %v630_v36  ;;  %v818_v60 = vld [vmem:[%s701_s11 + $0xb0] sm:$0xff]  }
  0x27   : > { %v399_v47 = vpack.c.bf16 %v295_v37, %v295_v37  ;;  %v308_v48 = vmax.f32 %v306_v38, %v307_v25  ;;  %v317_v49 = vmax.f32 %v315_v40, %v316_v35  ;;  %v600_v52 = vunpack.c.h.bf16 %v758_v62  ;;  %v825_v62 = vld [vmem:[%s701_s11 + $0xf0] sm:$0xff]   ;;  %v635_v37 = vld [vmem:[%s701_s11 + $0x58] sm:$0xff]  }
  0x28   : > { %v320_v53 = vsel %vm261_vm0, %v552_v33, -inf  ;;  %v523_v54 = vunpack.c.l.bf16 %v634_v41  ;;  %v539_v55 = vunpack.c.l.bf16 %v801_v42  ;;  %v616_v57 = vunpack.c.h.bf16 %v771_v13 }
  0x29   : > { %408 = vst.msk [vmem:[%s781_s15 + $0x4] sm:$0xf] %vm406_vm1, %v399_v47  ;;  %v310_v56 = vmax.f32 %v308_v48, %v309_v32  ;;  %v319_v58 = vmax.f32 %v317_v49, %v318_v45  ;;  %v322_v59 = vsel %vm261_vm0, %v568_v39, -inf  ;;  %v555_v63 = vunpack.c.l.bf16 %v808_v51  ;;  %v631_v32 = vld [vmem:[%s701_s11 + $0x38] sm:$0xff]  }
  0x2a   : > { %v330_v0 = vsel %vm261_vm0, %v491_v46, -inf  ;;  %v331_v1 = vsel %vm261_vm0, %v507_v50, -inf  ;;  %v333_v2 = vsel %vm261_vm0, %v523_v54, -inf  ;;  %v324_v5 = vsel %vm261_vm0, %v584_v44, -inf }
  0x2b   : > { %v312_v3 = vmax.f32 %v310_v56, %v311_v43  ;;  %v321_v4 = vmax.f32 %v319_v58, %v320_v53  ;;  %v332_v6 = vmax.f32 %v330_v0, %v331_v1  ;;  %v326_v7 = vsel %vm261_vm0, %v600_v52, -inf  ;;  %v647_v56 = vld [vmem:[%s701_s11 + $0xb8] sm:$0xff]  }
  0x2c   : > { %v571_v8 = vunpack.c.l.bf16 %v818_v60  ;;  %v587_v9 = vunpack.c.l.bf16 %v821_v61  ;;  %v335_v10 = vsel %vm261_vm0, %v539_v55, -inf  ;;  %v603_v13 = vunpack.c.l.bf16 %v825_v62 }
  0x2d   : > { %v400_v11 = vpack.c.bf16 %v312_v3, %v312_v3  ;;  %v323_v12 = vmax.f32 %v321_v4, %v322_v59  ;;  %v334_v14 = vmax.f32 %v332_v6, %v333_v2  ;;  %v337_v15 = vsel %vm261_vm0, %v555_v63, -inf }
  0x2e   : > { %v492_v16 = vunpack.c.h.bf16 %v789_v31  ;;  %v508_v17 = vunpack.c.h.bf16 %v630_v36  ;;  %v524_v18 = vunpack.c.h.bf16 %v634_v41  ;;  %v540_v22 = vunpack.c.h.bf16 %v801_v42  ;;  %v627_v31 = vld [vmem:[%s701_s11 + $0x18] sm:$0xff]  }
  0x2f   : > { %409 = vst.msk [vmem:[%s781_s15 + $0x8] sm:$0xf] %vm406_vm1, %v400_v11  ;;  %v325_v19 = vmax.f32 %v323_v12, %v324_v5  ;;  %v336_v21 = vmax.f32 %v334_v14, %v335_v10  ;;  %v328_v23 = vsel %vm261_vm0, %v616_v57, -inf  ;;  %v339_v24 = vsel %vm261_vm0, %v571_v8, -inf  ;;  %v639_v42 = vld [vmem:[%s701_s11 + $0x78] sm:$0xff]  }
  0x30   : > { %v556_v25 = vunpack.c.h.bf16 %v808_v51  ;;  %v347_v26 = vsel %vm261_vm0, %v492_v16, -inf  ;;  %v348_v29 = vsel %vm261_vm0, %v508_v17, -inf  ;;  %v350_v30 = vsel %vm261_vm0, %v524_v18, -inf  ;;  %v643_v51 = vld [vmem:[%s701_s11 + $0x98] sm:$0xff]  }
  0x31   : > { %v327_v27 = vmax.f32 %v325_v19, %v326_v7  ;;  %v338_v28 = vmax.f32 %v336_v21, %v337_v15  ;;  %v619_v33 = vunpack.c.l.bf16 %v841_v20  ;;  %v341_v34 = vsel %vm261_vm0, %v587_v9, -inf  ;;  %v655_v9 = vld [vmem:[%s701_s11 + $0xf8] sm:$0xff]  }
  0x32   : > { %v343_v35 = vsel %vm261_vm0, %v603_v13, -inf  ;;  %v349_v36 = vmax.f32 %v347_v26, %v348_v29  ;;  %v572_v40 = vunpack.c.h.bf16 %v818_v60  ;;  %v352_v41 = vsel %vm261_vm0, %v540_v22, -inf  ;;  %v651_v60 = vld [vmem:[%s701_s11 + $0xd8] sm:$0xff]  }
  0x33   : > { %v329_v38 = vmax.f32 %v327_v27, %v328_v23  ;;  %v340_v39 = vmax.f32 %v338_v28, %v339_v24  ;;  %v588_v43 = vunpack.c.h.bf16 %v821_v61  ;;  %v495_v45 = vunpack.c.l.bf16 %v627_v31  ;;  %v659_v16 = vld [vmem:[%s701_s11 + $0x118] sm:$0xff]  }
  0x34   : > { %v351_v44 = vmax.f32 %v349_v36, %v350_v30  ;;  %v511_v46 = vunpack.c.l.bf16 %v631_v32  ;;  %v354_v49 = vsel %vm261_vm0, %v556_v25, -inf  ;;  %v527_v50 = vunpack.c.l.bf16 %v635_v37 }
  0x35   : > { %v401_v47 = vpack.c.bf16 %v329_v38, %v329_v38  ;;  %v342_v48 = vmax.f32 %v340_v39, %v341_v34  ;;  %v345_v52 = vsel %vm261_vm0, %v619_v33, -inf  ;;  %v604_v53 = vunpack.c.h.bf16 %v825_v62 }
  0x36   : > { %v353_v54 = vmax.f32 %v351_v44, %v352_v41  ;;  %v543_v55 = vunpack.c.l.bf16 %v639_v42  ;;  %v620_v58 = vunpack.c.h.bf16 %v841_v20  ;;  %v356_v59 = vsel %vm261_vm0, %v572_v40, -inf }
  0x37   : > { %410 = vst.msk [vmem:[%s781_s15 + $0xc] sm:$0xf] %vm406_vm1, %v401_v47  ;;  %v344_v57 = vmax.f32 %v342_v48, %v343_v35  ;;  %v364_v61 = vsel %vm261_vm0, %v495_v45, -inf  ;;  %v559_v0 = vunpack.c.l.bf16 %v643_v51  ;;  %v365_v1 = vsel %vm261_vm0, %v511_v46, -inf }
  0x38   : > { %v355_v63 = vmax.f32 %v353_v54, %v354_v49  ;;  %v367_v62 = vsel %vm261_vm0, %v527_v50, -inf  ;;  %v358_v3 = vsel %vm261_vm0, %v588_v43, -inf  ;;  %v575_v4 = vunpack.c.l.bf16 %v647_v56 }
  0x39   : > { %v346_v2 = vmax.f32 %v344_v57, %v345_v52  ;;  %v366_v5 = vmax.f32 %v364_v61, %v365_v1  ;;  %v360_v7 = vsel %vm261_vm0, %v604_v53, -inf  ;;  %v591_v8 = vunpack.c.l.bf16 %v651_v60 }
  0x3a   : > { %v357_v6 = vmax.f32 %v355_v63, %v356_v59  ;;  %v369_v10 = vsel %vm261_vm0, %v543_v55, -inf  ;;  %v496_v13 = vunpack.c.h.bf16 %v627_v31  ;;  %v512_v14 = vunpack.c.h.bf16 %v631_v32 }
  0x3b   : > { %v402_v11 = vpack.c.bf16 %v346_v2, %v346_v2  ;;  %v368_v12 = vmax.f32 %v366_v5, %v367_v62  ;;  %v371_v17 = vsel %vm261_vm0, %v559_v0, -inf  ;;  %v528_v18 = vunpack.c.h.bf16 %v635_v37 }
  0x3c   : > { %v359_v15 = vmax.f32 %v357_v6, %v358_v3  ;;  %v544_v19 = vunpack.c.h.bf16 %v639_v42  ;;  %v362_v20 = vsel %vm261_vm0, %v620_v58, -inf  ;;  %v607_v21 = vunpack.c.l.bf16 %v655_v9 }
  0x3d   : > { %411 = vst.msk [vmem:[%s781_s15 + $0x10] sm:$0xf] %vm406_vm1, %v402_v11  ;;  %v370_v22 = vmax.f32 %v368_v12, %v369_v10  ;;  %v373_v23 = vsel %vm261_vm0, %v575_v4, -inf  ;;  %v560_v25 = vunpack.c.h.bf16 %v643_v51  ;;  %v381_v26 = vsel %vm261_vm0, %v496_v13, -inf }
  0x3e   : > { %v361_v24 = vmax.f32 %v359_v15, %v360_v7  ;;  %v382_v27 = vsel %vm261_vm0, %v512_v14, -inf  ;;  %v623_v28 = vunpack.c.l.bf16 %v659_v16  ;;  %v384_v31 = vsel %vm261_vm0, %v528_v18, -inf }
  0x3f   : > { %v372_v29 = vmax.f32 %v370_v22, %v371_v17  ;;  %v383_v30 = vmax.f32 %v381_v26, %v382_v27  ;;  %v375_v33 = vsel %vm261_vm0, %v591_v8, -inf  ;;  %v576_v34 = vunpack.c.h.bf16 %v647_v56 }
  0x40   : > { %v363_v32 = vmax.f32 %v361_v24, %v362_v20  ;;  %v386_v35 = vsel %vm261_vm0, %v544_v19, -inf  ;;  %v377_v39 = vsel %vm261_vm0, %v607_v21, -inf  ;;  %v592_v40 = vunpack.c.h.bf16 %v651_v60 }
  0x41   : > { %v374_v36 = vmax.f32 %v372_v29, %v373_v23  ;;  %v385_v37 = vmax.f32 %v383_v30, %v384_v31  ;;  %v388_v41 = vsel %vm261_vm0, %v560_v25, -inf  ;;  %v379_v44 = vsel %vm261_vm0, %v623_v28, -inf }
  0x42   : > { %v403_v38 = vpack.c.bf16 %v363_v32, %v363_v32  ;;  %v608_v45 = vunpack.c.h.bf16 %v655_v9  ;;  %v390_v46 = vsel %vm261_vm0, %v576_v34, -inf  ;;  %v624_v49 = vunpack.c.h.bf16 %v659_v16 }
  0x43   : > { %v376_v42 = vmax.f32 %v374_v36, %v375_v33  ;;  %v387_v43 = vmax.f32 %v385_v37, %v386_v35  ;;  %v392_v50 = vsel %vm261_vm0, %v592_v40, -inf }
  0x44   : > { %412 = vst.msk [vmem:[%s781_s15 + $0x14] sm:$0xf] %vm406_vm1, %v403_v38  ;;  %v394_v53 = vsel %vm261_vm0, %v608_v45, -inf  ;;  %v396_v56 = vsel %vm261_vm0, %v624_v49, -inf }
  0x45   : > { %v378_v47 = vmax.f32 %v376_v42, %v377_v39  ;;  %v389_v48 = vmax.f32 %v387_v43, %v388_v41 }
  0x47   : > { %v380_v51 = vmax.f32 %v378_v47, %v379_v44  ;;  %v391_v52 = vmax.f32 %v389_v48, %v390_v46 }
  0x49   : > { %v404_v54 = vpack.c.bf16 %v380_v51, %v380_v51  ;;  %v393_v55 = vmax.f32 %v391_v52, %v392_v50 }
  0x4b   : > { %413 = vst.msk [vmem:[%s781_s15 + $0x18] sm:$0xf] %vm406_vm1, %v404_v54  ;;  %v395_v57 = vmax.f32 %v393_v55, %v394_v53 }
  0x4d   : > { %v397_v58 = vmax.f32 %v395_v57, %v396_v56 }
  0x4f   : > { %v405_v59 = vpack.c.bf16 %v397_v58, %v397_v58 }
  0x51   : > { %414 = vst.msk [vmem:[%s781_s15 + $0x1c] sm:$0xf] %vm406_vm1, %v405_v59 }
  0x52 PF: > { %s11_s6 = sadd.s32 1, %s675_s6  }
  0x53   : > { %p8_p4 = scmp.ge.s32.totalorder %s11_s6, 4  }
  0x55   :  { %10 = sbr.rel (!%p8_p4) target bundleno = 1 (0x1), region = 54 }

// kernel: _lambda_.12
= control target key start
LH: loop header
LB: loop body
LE: loop exit
PB: predicated region body
PF: predicated region fallthrough
CT: control target
= control target key end

     0   :  { %s915_s12 = smov 0   ;;  %s917_s13 = smov 0   ;;  %s1040_s0 = inlined_call_operand.vmem [shape: bf16[2,3,64,192], index: 0, kind: input, shape index: {}]   ;;  %s1041_s1 = inlined_call_operand.vmem [shape: bf16[3,192,64], index: 1, kind: input, shape index: {}]   ;;  %s1042_s2 = inlined_call_operand.vmem [shape: f32[1,64], index: 2, kind: input, shape index: {}]   ;;  %s1043_s3 = inlined_call_operand.vmem [shape: bf16[2,64,64], index: 3, kind: output, shape index: {}]  }
   0x1   :  { %s919_s14 = smov 0   ;;  %s921_s15 = smov 0  }
   0x2   :  { %s923_s16 = smov 0  }
   0x3 LB: > { %s25_s17 = sadd.s32 1, %s884_s14  ;;  %s32_s18 = sadd.s32 1, %s888_s15  ;;  %s892_s16 = sphi %s923_s16, %s13_s16   ;;  %s888_s15 = sphi %s921_s15, %s1047_s15   ;;  %s884_s14 = sphi %s919_s14, %s1046_s14   ;;  %s880_s13 = sphi %s917_s13, %s1045_s13   ;;  %s876_s12 = sphi %s915_s12, %s1044_s12  }
   0x4   : > { %p26_p0 = scmp.ge.s32.totalorder %s25_s17, 3  ;;  %p683_p1 = scmp.ge.s32.totalorder %s892_s16, 1 }
   0x5   : > { %p187_p2 = scmp.lt.s32.totalorder %s892_s16, 7 }
   0x6   : > { %s1049_s17 = smov (%p26_p0, %s25_s17), 0  ;;  %s1051_s18 = smov (!%p26_p0, %s32_s18), %s888_s15 }
   0x7   : > { %p188_p3 = pnand %p683_p1, %p187_p2  ;;  %p34_p4 = scmp.ge.s32.totalorder %s1051_s18, 2 }
   0x8   : > { %p229_p5 = scmp.lt.s32.totalorder (!%p188_p3), %s880_s13, 1  ;;  %p231_p6 = scmp.lt.s32.totalorder (!%p188_p3), %s876_s12, 2 }
   0x9   : > { %s1053_s18 = smov (%p34_p4, %s1051_s18), 0  ;;  %191 = sbr.rel (%p188_p3) target bundleno = 244 (0xf4), region = 32 }
   0xa   : > { %p689_p7 = scmp.ne.s32.totalorder (!%p188_p3), %s876_s12, 0 }
   0xe   : > { %s1055_s13 = smov (!%p229_p5, %s880_s13), 1 }
   0xf   : > { %s232_s19 = scalar_select %p231_p6, %s876_s12, 2 }
  0x10   : > { %s810_s20 = smul.u32 48, %s1055_s13  ;;  %s777_s21 = sshll.u32 %s1055_s13, 5 }
  0x11   : > { %s684_s22 = sshll.u32 %s232_s19, 4  ;;  %s811_s23 = smul.u32 96, %s232_s19 }
  0x12   : > { %s235_s24 = sadd.s32 %s810_s20, %s684_s22  ;;  %s952_s27 = scalar_lea.vmem %s1043_s3, %s777_s21 }
  0x13   : > { %s685_s28 = sshll.u32 %s235_s24, 2  ;;  %s957_s4 = scalar_lea.vmem %s1041_s1, %s811_s23 }
  0x14   : > { %s962_s7 = scalar_lea.vmem %s1040_s0, %s685_s28  ;;  %261 = sbr.rel (%p689_p7) target bundleno = 34 (0x22), region = 36 }
  0x19   : > { %vm262_vm0 = vcmask 523264   ;;  %v894_v0 = vmov 0.0  }
  0x1a   : > { %263 = vst.msk [vmem:[#allocation2] sm:$0xff] %vm262_vm0, %v894_v0 }
  0x1b   : > { %264 = vst.msk [vmem:[#allocation2 + $0x8] sm:$0xff] %vm262_vm0, %v894_v0 }
  0x1c   : > { %265 = vst.msk [vmem:[#allocation2 + $0x10] sm:$0xff] %vm262_vm0, %v894_v0 }
  0x1d   : > { %266 = vst.msk [vmem:[#allocation2 + $0x18] sm:$0xff] %vm262_vm0, %v894_v0 }
  0x1e   : > { %267 = vst.msk [vmem:[#allocation2 + $0x20] sm:$0xff] %vm262_vm0, %v894_v0 }
  0x1f   : > { %268 = vst.msk [vmem:[#allocation2 + $0x28] sm:$0xff] %vm262_vm0, %v894_v0 }
  0x20   : > { %269 = vst.msk [vmem:[#allocation2 + $0x30] sm:$0xff] %vm262_vm0, %v894_v0 }
  0x21   : > { %270 = vst.msk [vmem:[#allocation2 + $0x38] sm:$0xff] %vm262_vm0, %v894_v0 }
  0x22 PF: > { %v793_v1 = vld [vmem:[%s957_s4 + $0x38] sm:$0xff]  ;;  %v792_v3 = vld [vmem:[%s957_s4 + $0x30] sm:$0xff]  ;;  %v791_v5 = vld [vmem:[%s957_s4 + $0x28] sm:$0xff]  ;;  %vm419_vm1 = vcmask 523264   ;;  %p774_p8 = scmp.ne.s32.totalorder %s876_s12, 2 }
  0x23   : > { %v797_v2 = vld [vmem:[%s957_s4 + $0x58] sm:$0xff]  ;;  %432 = vmatpush.bf16.msra.mxu0 %v793_v1  ;;  %798 = vmatpush.bf16.msra.mxu2 %v793_v1  ;;  %v796_v4 = vld [vmem:[%s957_s4 + $0x50] sm:$0xff]  ;;  %v795_v6 = vld [vmem:[%s957_s4 + $0x48] sm:$0xff] }
  0x24   : > { %806 = vmatpush.bf16.msra.mxu3 %v797_v2  ;;  %465 = vmatpush.bf16.msra.mxu1 %v797_v2  ;;  %v790_v7 = vld [vmem:[%s957_s4 + $0x20] sm:$0xff]  ;;  %v780_v9 = vld [vmem:[%s962_s7 + $0x14] sm:$0xf]  ;;  %v702_v10 = vld [vmem:[%s962_s7 + $0x18] sm:$0xf0] }
  0x25   : > { %v794_v8 = vld [vmem:[%s957_s4 + $0x40] sm:$0xff]  ;;  %v694_v12 = vld [vmem:[%s962_s7 + $0x8] sm:$0xf0]  ;;  %v705_v13 = vor.u32 %v780_v9, %v702_v10  ;;  %v789_v14 = vld [vmem:[%s957_s4 + $0x18] sm:$0xff] }
  0x26   : > { %v778_v11 = vld [vmem:[%s962_s7 + $0x4] sm:$0xf]  ;;  %v788_v16 = vld [vmem:[%s957_s4 + $0x10] sm:$0xff]  ;;  %v787_v17 = vld [vmem:[%s957_s4 + $0x8] sm:$0xff] }
  0x27   : > { %433 = vmatpush.bf16.msra.mxu0 %v792_v3  ;;  %799 = vmatpush.bf16.msra.mxu2 %v792_v3  ;;  %v697_v15 = vor.u32 %v778_v11, %v694_v12  ;;  %v786_v18 = vld [vmem:[%s957_s4] sm:$0xff]  ;;  %v779_v20 = vld [vmem:[%s962_s7 + $0x4] sm:$0xf0]  ;;  %v710_v24 = vld [vmem:[%s962_s7 + $0x28] sm:$0xf0] }
  0x28   : > { %807 = vmatpush.bf16.msra.mxu3 %v796_v4  ;;  %466 = vmatpush.bf16.msra.mxu1 %v796_v4  ;;  %v692_v19 = vld [vmem:[%s962_s7] sm:$0xf]  ;;  %v783_v22 = vld [vmem:[%s962_s7 + $0x24] sm:$0xf0]  ;;  %v782_v23 = vld [vmem:[%s962_s7 + $0x24] sm:$0xf] }
  0x29   : > { %v708_v21 = vld [vmem:[%s962_s7 + $0x20] sm:$0xf]  ;;  %v693_v25 = vor.u32 %v779_v20, %v692_v19  ;;  %v713_v27 = vor.u32 %v782_v23, %v710_v24  ;;  %v700_v28 = vld [vmem:[%s962_s7 + $0x10] sm:$0xf]  ;;  %v781_v29 = vld [vmem:[%s962_s7 + $0x14] sm:$0xf0] }
  0x2a   : > { %v709_v26 = vor.u32 %v783_v22, %v708_v21  ;;  %v716_v30 = vld [vmem:[%s962_s7 + $0x30] sm:$0xf]  ;;  %v785_v31 = vld [vmem:[%s962_s7 + $0x34] sm:$0xf0]  ;;  %v784_v32 = vld [vmem:[%s962_s7 + $0x34] sm:$0xf]  ;;  %v701_v34 = vor.u32 %v781_v29, %v700_v28 }
  0x2b   : > { %434 = vmatpush.bf16.msra.mxu0 %v791_v5  ;;  %800 = vmatpush.bf16.msra.mxu2 %v791_v5  ;;  %v718_v33 = vld [vmem:[%s962_s7 + $0x38] sm:$0xf0]  ;;  %v717_v35 = vor.u32 %v785_v31, %v716_v30  ;;  %v279_v41 = vld [vmem:[#allocation2] sm:$0xff]  ;;  %v280_v50 = vld [vmem:[#allocation2 + $0x8] sm:$0xff] }
  0x2c   : > { %808 = vmatpush.bf16.msra.mxu3 %v795_v6  ;;  %467 = vmatpush.bf16.msra.mxu1 %v795_v6  ;;  %v721_v36 = vor.u32 %v784_v32, %v718_v33  ;;  %v283_v46 = vld [vmem:[#allocation2 + $0x20] sm:$0xff]  ;;  %v284_v55 = vld [vmem:[#allocation2 + $0x28] sm:$0xff]  ;;  %v281_v58 = vld [vmem:[#allocation2 + $0x10] sm:$0xff] }
  0x2d   : > { %v285_v0 = vld [vmem:[#allocation2 + $0x30] sm:$0xff]  ;;  %v282_v3 = vld [vmem:[#allocation2 + $0x18] sm:$0xff] }
  0x2e   : > { %v286_v9 = vld [vmem:[#allocation2 + $0x38] sm:$0xff] }
  0x2f   : > { %435 = vmatpush.bf16.msra.mxu0 %v790_v7  ;;  %801 = vmatpush.bf16.msra.mxu2 %v790_v7 }
  0x30   : > { %809 = vmatpush.bf16.msra.mxu3 %v794_v8  ;;  %468 = vmatpush.bf16.msra.mxu1 %v794_v8 }
  0x33   : > { %771 = vmatmul.msk.bf16.vlgmr.msra.gmra.mxu3 %vm419_vm1, %v705_v13  ;;  %436 = vmatpush.bf16.msra.mxu0 %v789_v14 }
  0x34   : > { %802 = vmatpush.bf16.msra.mxu2 %v789_v14  ;;  %770 = vmatmul.msk.bf16.vlgmr.msra.gmra.mxu1 %vm419_vm1, %v697_v15 }
  0x37   : > { %437 = vmatpush.bf16.msra.mxu0 %v788_v16 }
  0x38   : > { %803 = vmatpush.bf16.msra.mxu2 %v788_v16 }
  0x3b   : > { %438 = vmatpush.bf16.msra.mxu0 %v787_v17 }
  0x3c   : > { %804 = vmatpush.bf16.msra.mxu2 %v787_v17 }
  0x3f   : > { %439 = vmatpush.bf16.msra.mxu0 %v786_v18 }
  0x40   : > { %805 = vmatpush.bf16.msra.mxu2 %v786_v18 }
  0x42   : > { %440 = vmatmul.bf16.vlgmr.msra.gmra.mxu0 %v693_v25 }
  0x43   : > { %450 = vmatmul.bf16.vlgmr.msra.gmra.mxu2 %v709_v26  ;;  %772 = vmatmul.msk.bf16.gmra.mxu3 %vm419_vm1, %v713_v27 }
  0x52   : > { %445 = vmatmul.bf16.gmra.mxu0 %v701_v34 }
  0x53   : > { %455 = vmatmul.bf16.gmra.mxu2 %v717_v35  ;;  %773 = vmatmul.msk.bf16.gmra.mxu3 %vm419_vm1, %v721_v36 }
  0xb1   : > { %v470_v38 = vpop.f32.mrf.mxu1 }
  0xb6   : > { %v475_v37 = vpop.f32.mrf.mxu3 }
  0xb9   : > { %v472_v44 = vpop.f32.mrf.mxu1 }
  0xbe   : > { %v477_v39 = vpop.f32.mrf.mxu3 }
  0xbf   : > { %v441_v40 = vpop.f32.mrf.mxu0 }
  0xc0   : > { %v471_v42 = vadd.f32 %v470_v38, %v441_v40 }
  0xc2   : > { %v490_v43 = vadd.f32 %v471_v42, %v279_v41 }
  0xc4   : > { %498 = vst.msk [vmem:[#allocation2] sm:$0xff] %vm419_vm1, %v490_v43 }
  0xc6   : > { %v451_v45 = vpop.f32.mrf.mxu2  ;;  %v480_v47 = vpop.f32.mrf.mxu3 }
  0xc7   : > { %v481_v48 = vadd.f32 %v480_v47, %v451_v45  ;;  %v443_v49 = vpop.f32.mrf.mxu0 }
  0xc8   : > { %v473_v51 = vadd.f32 %v472_v44, %v443_v49 }
  0xc9   : > { %v494_v52 = vadd.f32 %v481_v48, %v283_v46 }
  0xca   : > { %v491_v53 = vadd.f32 %v473_v51, %v280_v50 }
  0xcb   : > { %502 = vst.msk [vmem:[#allocation2 + $0x20] sm:$0xff] %vm419_vm1, %v494_v52 }
  0xcc   : > { %499 = vst.msk [vmem:[#allocation2 + $0x8] sm:$0xff] %vm419_vm1, %v491_v53 }
  0xce   : > { %v453_v54 = vpop.f32.mrf.mxu2  ;;  %v482_v56 = vpop.f32.mrf.mxu3 }
  0xcf   : > { %v483_v57 = vadd.f32 %v482_v56, %v453_v54  ;;  %v446_v59 = vpop.f32.mrf.mxu0 }
  0xd0   : > { %v476_v60 = vadd.f32 %v475_v37, %v446_v59 }
  0xd1   : > { %v495_v61 = vadd.f32 %v483_v57, %v284_v55 }
  0xd2   : > { %v492_v62 = vadd.f32 %v476_v60, %v281_v58 }
  0xd3   : > { %503 = vst.msk [vmem:[#allocation2 + $0x28] sm:$0xff] %vm419_vm1, %v495_v61 }
  0xd4   : > { %500 = vst.msk [vmem:[#allocation2 + $0x10] sm:$0xff] %vm419_vm1, %v492_v62 }
  0xd6   : > { %v456_v63 = vpop.f32.mrf.mxu2  ;;  %v485_v1 = vpop.f32.mrf.mxu3 }
  0xd7   : > { %v486_v2 = vadd.f32 %v485_v1, %v456_v63  ;;  %v448_v4 = vpop.f32.mrf.mxu0 }
  0xd8   : > { %v478_v5 = vadd.f32 %v477_v39, %v448_v4 }
  0xd9   : > { %v496_v6 = vadd.f32 %v486_v2, %v285_v0 }
  0xda   : > { %v493_v7 = vadd.f32 %v478_v5, %v282_v3 }
  0xdb   : > { %504 = vst.msk [vmem:[#allocation2 + $0x30] sm:$0xff] %vm419_vm1, %v496_v6 }
  0xdc   : > { %501 = vst.msk [vmem:[#allocation2 + $0x18] sm:$0xff] %vm419_vm1, %v493_v7 }
  0xde   : > { %v458_v8 = vpop.f32.mrf.mxu2  ;;  %v487_v10 = vpop.f32.mrf.mxu3 }
  0xdf   : > { %v488_v11 = vadd.f32 %v487_v10, %v458_v8  ;;  %509 = sbr.rel (%p774_p8) target bundleno = 244 (0xf4), region = 40 }
  0xe1   : > { %v497_v12 = vadd.f32 %v488_v11, %v286_v9 }
  0xe3   : > { %505 = vst.msk [vmem:[#allocation2 + $0x38] sm:$0xff] %vm419_vm1, %v497_v12 }
  0xe4   : > { %v510_v13 = vld [vmem:[#allocation2] sm:$0xff]  ;;  %v511_v15 = vld [vmem:[#allocation2 + $0x8] sm:$0xff]  ;;  %v512_v16 = vld [vmem:[#allocation2 + $0x10] sm:$0xff]  ;;  %vm546_vm2 = vcmask 519168  }
  0xe5   : > { %v853_v14 = vld [vmem:[%s1042_s2] ss:$0 sm:$0xff]  ;;  %v513_v17 = vld [vmem:[#allocation2 + $0x18] sm:$0xff]  ;;  %v515_v23 = vld [vmem:[#allocation2 + $0x28] sm:$0xff] }
  0xe6   : > { %v522_v18 = vadd.f32 %v853_v14, %v510_v13  ;;  %v523_v19 = vadd.f32 %v853_v14, %v511_v15  ;;  %v524_v20 = vadd.f32 %v853_v14, %v512_v16  ;;  %v525_v21 = vadd.f32 %v853_v14, %v513_v17  ;;  %v514_v22 = vld [vmem:[#allocation2 + $0x20] sm:$0xff]  ;;  %v516_v24 = vld [vmem:[#allocation2 + $0x30] sm:$0xff] }
  0xe7   : > { %v526_v25 = vadd.f32 %v853_v14, %v514_v22  ;;  %v527_v26 = vadd.f32 %v853_v14, %v515_v23  ;;  %v528_v27 = vadd.f32 %v853_v14, %v516_v24 }
  0xe8   : > { %v530_v29 = vmax.f32 %v522_v18, 0.0  ;;  %v531_v30 = vmax.f32 %v523_v19, 0.0  ;;  %v532_v31 = vmax.f32 %v524_v20, 0.0  ;;  %v533_v32 = vmax.f32 %v525_v21, 0.0 }
  0xe9   : > { %v534_v33 = vmax.f32 %v526_v25, 0.0  ;;  %v535_v34 = vmax.f32 %v527_v26, 0.0  ;;  %v536_v39 = vmax.f32 %v528_v27, 0.0 }
  0xea   : > { %v517_v28 = vld [vmem:[#allocation2 + $0x38] sm:$0xff]  ;;  %v538_v36 = vpack.c.bf16 %v530_v29, %v530_v29  ;;  %v539_v37 = vpack.c.bf16 %v531_v30, %v531_v30  ;;  %v540_v38 = vpack.c.bf16 %v532_v31, %v532_v31  ;;  %v541_v40 = vpack.c.bf16 %v533_v32, %v533_v32 }
  0xeb   : > { %v529_v35 = vadd.f32 %v853_v14, %v517_v28  ;;  %v542_v42 = vpack.c.bf16 %v534_v33, %v534_v33  ;;  %v543_v43 = vpack.c.bf16 %v535_v34, %v535_v34  ;;  %v544_v44 = vpack.c.bf16 %v536_v39, %v536_v39 }
  0xec   : > { %547 = vst.msk [vmem:[%s952_s27] sm:$0xf] %vm546_vm2, %v538_v36 }
  0xed   : > { %v537_v41 = vmax.f32 %v529_v35, 0.0  ;;  %548 = vst.msk [vmem:[%s952_s27 + $0x4] sm:$0xf] %vm546_vm2, %v539_v37 }
  0xee   : > { %549 = vst.msk [vmem:[%s952_s27 + $0x8] sm:$0xf] %vm546_vm2, %v540_v38 }
  0xef   : > { %550 = vst.msk [vmem:[%s952_s27 + $0xc] sm:$0xf] %vm546_vm2, %v541_v40  ;;  %v545_v45 = vpack.c.bf16 %v537_v41, %v537_v41 }
  0xf0   : > { %551 = vst.msk [vmem:[%s952_s27 + $0x10] sm:$0xf] %vm546_vm2, %v542_v42 }
  0xf1   : > { %552 = vst.msk [vmem:[%s952_s27 + $0x14] sm:$0xf] %vm546_vm2, %v543_v43 }
  0xf2   : > { %553 = vst.msk [vmem:[%s952_s27 + $0x18] sm:$0xf] %vm546_vm2, %v544_v44 }
  0xf3   : > { %554 = vst.msk [vmem:[%s952_s27 + $0x1c] sm:$0xf] %vm546_vm2, %v545_v45 }
  0xf4 PF: > { %s13_s16 = sadd.s32 1, %s892_s16   ;;  %s1044_s12 = smov %s884_s14 }
  0xf5   : > { %p10_p9 = scmp.ge.s32.totalorder %s13_s16, 8   ;;  %s1045_s13 = smov %s888_s15 }
  0xf6   : > { %s1046_s14 = smov %s1049_s17  ;;  %s1047_s15 = smov %s1053_s18 }
  0xf7   :  { %12 = sbr.rel (!%p10_p9) target bundleno = 3 (0x3), region = 76 }

// kernel: _lambda_.13
= control target key start
LH: loop header
LB: loop body
LE: loop exit
PB: predicated region body
PF: predicated region fallthrough
CT: control target
= control target key end

     0   :  { %s1042_s15 = smov 0   ;;  %s1044_s16 = smov 0   ;;  %s1176_s0 = inlined_call_operand.vmem [shape: bf16[2,3,64,192], index: 0, kind: input, shape index: {}]   ;;  %s1177_s1 = inlined_call_operand.vmem [shape: bf16[3,192,64], index: 1, kind: input, shape index: {}]   ;;  %s1178_s2 = inlined_call_operand.vmem [shape: f32[1,64], index: 2, kind: input, shape index: {}]   ;;  %s1179_s3 = inlined_call_operand.vmem [shape: bf16[2,64,64], index: 3, kind: input, shape index: {}]   ;;  %s1180_s4 = inlined_call_operand.vmem [shape: bf16[2,64,64], index: 4, kind: output, shape index: {}]  }
   0x1   :  { %s1046_s17 = smov 0   ;;  %s1048_s18 = smov 0  }
   0x2   :  { %s1050_s19 = smov 0  }
   0x3 LB: > { %s26_s20 = sadd.s32 1, %s1006_s17  ;;  %s33_s21 = sadd.s32 1, %s1010_s18  ;;  %s1014_s19 = sphi %s1050_s19, %s14_s19   ;;  %s1010_s18 = sphi %s1048_s18, %s1184_s18   ;;  %s1006_s17 = sphi %s1046_s17, %s1183_s17   ;;  %s1002_s16 = sphi %s1044_s16, %s1182_s16   ;;  %s998_s15 = sphi %s1042_s15, %s1181_s15  }
   0x4   : > { %p27_p0 = scmp.ge.s32.totalorder %s26_s20, 3  ;;  %p783_p1 = scmp.ge.s32.totalorder %s1014_s19, 1 }
   0x5   : > { %p227_p2 = scmp.lt.s32.totalorder %s1014_s19, 7 }
   0x6   : > { %s1186_s20 = smov (%p27_p0, %s26_s20), 0  ;;  %s1188_s21 = smov (!%p27_p0, %s33_s21), %s1010_s18 }
   0x7   : > { %p228_p3 = pnand %p783_p1, %p227_p2  ;;  %p35_p4 = scmp.ge.s32.totalorder %s1188_s21, 2 }
   0x8   : > { %p279_p5 = scmp.lt.s32.totalorder (!%p228_p3), %s1002_s16, 1  ;;  %p281_p6 = scmp.lt.s32.totalorder (!%p228_p3), %s998_s15, 2 }
   0x9   : > { %s1190_s21 = smov (%p35_p4, %s1188_s21), 0  ;;  %231 = sbr.rel (%p228_p3) target bundleno = 248 (0xf8), region = 36 }
   0xa   : > { %p791_p7 = scmp.ne.s32.totalorder (!%p228_p3), %s998_s15, 0 }
   0xe   : > { %s1192_s16 = smov (!%p279_p5, %s1002_s16), 1 }
   0xf   : > { %s282_s22 = scalar_select %p281_p6, %s998_s15, 2 }
  0x10   : > { %s932_s23 = smul.u32 48, %s1192_s16  ;;  %s879_s24 = sshll.u32 %s1192_s16, 5 }
  0x11   : > { %s784_s25 = sshll.u32 %s282_s22, 4  ;;  %s933_s26 = smul.u32 96, %s282_s22 }
  0x12   : > { %s285_s27 = sadd.s32 %s932_s23, %s784_s25  ;;  %s1079_s30 = scalar_lea.vmem %s1179_s3, %s879_s24 }
  0x13   : > { %s785_s5 = sshll.u32 %s285_s27, 2  ;;  %s1084_s8 = scalar_lea.vmem %s1177_s1, %s933_s26 }
  0x14   : > { %s1089_s11 = scalar_lea.vmem %s1176_s0, %s785_s5  ;;  %s1094_s14 = scalar_lea.vmem %s1180_s4, %s879_s24 }
  0x15   : > { %319 = sbr.rel (%p791_p7) target bundleno = 35 (0x23), region = 40 }
  0x1a   : > { %vm320_vm0 = vcmask 523264   ;;  %v1016_v0 = vmov 0.0  }
  0x1b   : > { %321 = vst.msk [vmem:[#allocation2] sm:$0xff] %vm320_vm0, %v1016_v0 }
  0x1c   : > { %322 = vst.msk [vmem:[#allocation2 + $0x8] sm:$0xff] %vm320_vm0, %v1016_v0 }
  0x1d   : > { %323 = vst.msk [vmem:[#allocation2 + $0x10] sm:$0xff] %vm320_vm0, %v1016_v0 }
  0x1e   : > { %324 = vst.msk [vmem:[#allocation2 + $0x18] sm:$0xff] %vm320_vm0, %v1016_v0 }
  0x1f   : > { %325 = vst.msk [vmem:[#allocation2 + $0x20] sm:$0xff] %vm320_vm0, %v1016_v0 }
  0x20   : > { %326 = vst.msk [vmem:[#allocation2 + $0x28] sm:$0xff] %vm320_vm0, %v1016_v0 }
  0x21   : > { %327 = vst.msk [vmem:[#allocation2 + $0x30] sm:$0xff] %vm320_vm0, %v1016_v0 }
  0x22   : > { %328 = vst.msk [vmem:[#allocation2 + $0x38] sm:$0xff] %vm320_vm0, %v1016_v0 }
  0x23 PF: > { %v896_v1 = vld [vmem:[%s1084_s8 + $0x38] sm:$0xff]  ;;  %v895_v3 = vld [vmem:[%s1084_s8 + $0x30] sm:$0xff]  ;;  %v894_v5 = vld [vmem:[%s1084_s8 + $0x28] sm:$0xff]  ;;  %vm477_vm1 = vcmask 523264   ;;  %p876_p8 = scmp.ne.s32.totalorder %s998_s15, 2 }
  0x24   : > { %v900_v2 = vld [vmem:[%s1084_s8 + $0x58] sm:$0xff]  ;;  %490 = vmatpush.bf16.msra.mxu0 %v896_v1  ;;  %920 = vmatpush.bf16.msra.mxu2 %v896_v1  ;;  %v899_v4 = vld [vmem:[%s1084_s8 + $0x50] sm:$0xff]  ;;  %v898_v6 = vld [vmem:[%s1084_s8 + $0x48] sm:$0xff] }
  0x25   : > { %928 = vmatpush.bf16.msra.mxu3 %v900_v2  ;;  %523 = vmatpush.bf16.msra.mxu1 %v900_v2  ;;  %v893_v7 = vld [vmem:[%s1084_s8 + $0x20] sm:$0xff]  ;;  %v883_v9 = vld [vmem:[%s1089_s11 + $0x14] sm:$0xf]  ;;  %v804_v10 = vld [vmem:[%s1089_s11 + $0x18] sm:$0xf0] }
  0x26   : > { %v897_v8 = vld [vmem:[%s1084_s8 + $0x40] sm:$0xff]  ;;  %v796_v12 = vld [vmem:[%s1089_s11 + $0x8] sm:$0xf0]  ;;  %v807_v13 = vor.u32 %v883_v9, %v804_v10  ;;  %v892_v14 = vld [vmem:[%s1084_s8 + $0x18] sm:$0xff] }
  0x27   : > { %v881_v11 = vld [vmem:[%s1089_s11 + $0x4] sm:$0xf]  ;;  %v891_v16 = vld [vmem:[%s1084_s8 + $0x10] sm:$0xff]  ;;  %v890_v17 = vld [vmem:[%s1084_s8 + $0x8] sm:$0xff] }
  0x28   : > { %491 = vmatpush.bf16.msra.mxu0 %v895_v3  ;;  %921 = vmatpush.bf16.msra.mxu2 %v895_v3  ;;  %v799_v15 = vor.u32 %v881_v11, %v796_v12  ;;  %v889_v18 = vld [vmem:[%s1084_s8] sm:$0xff]  ;;  %v882_v20 = vld [vmem:[%s1089_s11 + $0x4] sm:$0xf0]  ;;  %v812_v24 = vld [vmem:[%s1089_s11 + $0x28] sm:$0xf0] }
  0x29   : > { %929 = vmatpush.bf16.msra.mxu3 %v899_v4  ;;  %524 = vmatpush.bf16.msra.mxu1 %v899_v4  ;;  %v794_v19 = vld [vmem:[%s1089_s11] sm:$0xf]  ;;  %v886_v22 = vld [vmem:[%s1089_s11 + $0x24] sm:$0xf0]  ;;  %v885_v23 = vld [vmem:[%s1089_s11 + $0x24] sm:$0xf] }
  0x2a   : > { %v810_v21 = vld [vmem:[%s1089_s11 + $0x20] sm:$0xf]  ;;  %v795_v25 = vor.u32 %v882_v20, %v794_v19  ;;  %v815_v27 = vor.u32 %v885_v23, %v812_v24  ;;  %v802_v28 = vld [vmem:[%s1089_s11 + $0x10] sm:$0xf]  ;;  %v884_v29 = vld [vmem:[%s1089_s11 + $0x14] sm:$0xf0] }
  0x2b   : > { %v811_v26 = vor.u32 %v886_v22, %v810_v21  ;;  %v818_v30 = vld [vmem:[%s1089_s11 + $0x30] sm:$0xf]  ;;  %v888_v31 = vld [vmem:[%s1089_s11 + $0x34] sm:$0xf0]  ;;  %v887_v32 = vld [vmem:[%s1089_s11 + $0x34] sm:$0xf]  ;;  %v803_v34 = vor.u32 %v884_v29, %v802_v28 }
  0x2c   : > { %492 = vmatpush.bf16.msra.mxu0 %v894_v5  ;;  %922 = vmatpush.bf16.msra.mxu2 %v894_v5  ;;  %v820_v33 = vld [vmem:[%s1089_s11 + $0x38] sm:$0xf0]  ;;  %v819_v35 = vor.u32 %v888_v31, %v818_v30  ;;  %v337_v41 = vld [vmem:[#allocation2] sm:$0xff]  ;;  %v338_v50 = vld [vmem:[#allocation2 + $0x8] sm:$0xff] }
  0x2d   : > { %930 = vmatpush.bf16.msra.mxu3 %v898_v6  ;;  %525 = vmatpush.bf16.msra.mxu1 %v898_v6  ;;  %v823_v36 = vor.u32 %v887_v32, %v820_v33  ;;  %v341_v46 = vld [vmem:[#allocation2 + $0x20] sm:$0xff]  ;;  %v342_v55 = vld [vmem:[#allocation2 + $0x28] sm:$0xff]  ;;  %v339_v58 = vld [vmem:[#allocation2 + $0x10] sm:$0xff] }
  0x2e   : > { %v343_v0 = vld [vmem:[#allocation2 + $0x30] sm:$0xff]  ;;  %v340_v3 = vld [vmem:[#allocation2 + $0x18] sm:$0xff] }
  0x2f   : > { %v344_v9 = vld [vmem:[#allocation2 + $0x38] sm:$0xff] }
  0x30   : > { %493 = vmatpush.bf16.msra.mxu0 %v893_v7  ;;  %923 = vmatpush.bf16.msra.mxu2 %v893_v7 }
  0x31   : > { %931 = vmatpush.bf16.msra.mxu3 %v897_v8  ;;  %526 = vmatpush.bf16.msra.mxu1 %v897_v8 }
  0x34   : > { %873 = vmatmul.msk.bf16.vlgmr.msra.gmra.mxu3 %vm477_vm1, %v807_v13  ;;  %494 = vmatpush.bf16.msra.mxu0 %v892_v14 }
  0x35   : > { %924 = vmatpush.bf16.msra.mxu2 %v892_v14  ;;  %872 = vmatmul.msk.bf16.vlgmr.msra.gmra.mxu1 %vm477_vm1, %v799_v15 }
  0x38   : > { %495 = vmatpush.bf16.msra.mxu0 %v891_v16 }
  0x39   : > { %925 = vmatpush.bf16.msra.mxu2 %v891_v16 }
  0x3c   : > { %496 = vmatpush.bf16.msra.mxu0 %v890_v17 }
  0x3d   : > { %926 = vmatpush.bf16.msra.mxu2 %v890_v17 }
  0x40   : > { %497 = vmatpush.bf16.msra.mxu0 %v889_v18 }
  0x41   : > { %927 = vmatpush.bf16.msra.mxu2 %v889_v18 }
  0x43   : > { %498 = vmatmul.bf16.vlgmr.msra.gmra.mxu0 %v795_v25 }
  0x44   : > { %508 = vmatmul.bf16.vlgmr.msra.gmra.mxu2 %v811_v26  ;;  %874 = vmatmul.msk.bf16.gmra.mxu3 %vm477_vm1, %v815_v27 }
  0x53   : > { %503 = vmatmul.bf16.gmra.mxu0 %v803_v34 }
  0x54   : > { %513 = vmatmul.bf16.gmra.mxu2 %v819_v35  ;;  %875 = vmatmul.msk.bf16.gmra.mxu3 %vm477_vm1, %v823_v36 }
  0xb2   : > { %v528_v38 = vpop.f32.mrf.mxu1 }
  0xb7   : > { %v533_v37 = vpop.f32.mrf.mxu3 }
  0xba   : > { %v530_v44 = vpop.f32.mrf.mxu1 }
  0xbf   : > { %v535_v39 = vpop.f32.mrf.mxu3 }
  0xc0   : > { %v499_v40 = vpop.f32.mrf.mxu0 }
  0xc1   : > { %v529_v42 = vadd.f32 %v528_v38, %v499_v40 }
  0xc3   : > { %v548_v43 = vadd.f32 %v529_v42, %v337_v41 }
  0xc5   : > { %556 = vst.msk [vmem:[#allocation2] sm:$0xff] %vm477_vm1, %v548_v43 }
  0xc7   : > { %v509_v45 = vpop.f32.mrf.mxu2  ;;  %v538_v47 = vpop.f32.mrf.mxu3 }
  0xc8   : > { %v539_v48 = vadd.f32 %v538_v47, %v509_v45  ;;  %v501_v49 = vpop.f32.mrf.mxu0 }
  0xc9   : > { %v531_v51 = vadd.f32 %v530_v44, %v501_v49 }
  0xca   : > { %v552_v52 = vadd.f32 %v539_v48, %v341_v46 }
  0xcb   : > { %v549_v53 = vadd.f32 %v531_v51, %v338_v50 }
  0xcc   : > { %560 = vst.msk [vmem:[#allocation2 + $0x20] sm:$0xff] %vm477_vm1, %v552_v52 }
  0xcd   : > { %557 = vst.msk [vmem:[#allocation2 + $0x8] sm:$0xff] %vm477_vm1, %v549_v53 }
  0xcf   : > { %v511_v54 = vpop.f32.mrf.mxu2  ;;  %v540_v56 = vpop.f32.mrf.mxu3 }
  0xd0   : > { %v541_v57 = vadd.f32 %v540_v56, %v511_v54  ;;  %v504_v59 = vpop.f32.mrf.mxu0 }
  0xd1   : > { %v534_v60 = vadd.f32 %v533_v37, %v504_v59 }
  0xd2   : > { %v553_v61 = vadd.f32 %v541_v57, %v342_v55 }
  0xd3   : > { %v550_v62 = vadd.f32 %v534_v60, %v339_v58 }
  0xd4   : > { %561 = vst.msk [vmem:[#allocation2 + $0x28] sm:$0xff] %vm477_vm1, %v553_v61 }
  0xd5   : > { %558 = vst.msk [vmem:[#allocation2 + $0x10] sm:$0xff] %vm477_vm1, %v550_v62 }
  0xd7   : > { %v514_v63 = vpop.f32.mrf.mxu2  ;;  %v543_v1 = vpop.f32.mrf.mxu3 }
  0xd8   : > { %v544_v2 = vadd.f32 %v543_v1, %v514_v63  ;;  %v506_v4 = vpop.f32.mrf.mxu0 }
  0xd9   : > { %v536_v5 = vadd.f32 %v535_v39, %v506_v4 }
  0xda   : > { %v554_v6 = vadd.f32 %v544_v2, %v343_v0 }
  0xdb   : > { %v551_v7 = vadd.f32 %v536_v5, %v340_v3 }
  0xdc   : > { %562 = vst.msk [vmem:[#allocation2 + $0x30] sm:$0xff] %vm477_vm1, %v554_v6 }
  0xdd   : > { %559 = vst.msk [vmem:[#allocation2 + $0x18] sm:$0xff] %vm477_vm1, %v551_v7 }
  0xdf   : > { %v516_v8 = vpop.f32.mrf.mxu2  ;;  %v545_v10 = vpop.f32.mrf.mxu3 }
  0xe0   : > { %v546_v11 = vadd.f32 %v545_v10, %v516_v8  ;;  %567 = sbr.rel (%p876_p8) target bundleno = 248 (0xf8), region = 44 }
  0xe2   : > { %v555_v12 = vadd.f32 %v546_v11, %v344_v9 }
  0xe4   : > { %563 = vst.msk [vmem:[#allocation2 + $0x38] sm:$0xff] %vm477_vm1, %v555_v12 }
  0xe5   : > { %v568_v13 = vld [vmem:[#allocation2] sm:$0xff]  ;;  %vm628_vm2 = vcmask 519168   ;;  %v569_v16 = vld [vmem:[#allocation2 + $0x8] sm:$0xff]  ;;  %v570_v17 = vld [vmem:[#allocation2 + $0x10] sm:$0xff] }
  0xe6   : > { %v975_v14 = vld [vmem:[%s1178_s2] ss:$0 sm:$0xff]  ;;  %v917_v22 = vld [vmem:[%s1079_s30 + $0x8] sm:$0xff]   ;;  %v571_v23 = vld [vmem:[#allocation2 + $0x18] sm:$0xff] }
  0xe7   : > { %v902_v15 = vld [vmem:[%s1079_s30] sm:$0xff]   ;;  %v580_v18 = vadd.f32 %v975_v14, %v568_v13  ;;  %v581_v20 = vadd.f32 %v975_v14, %v569_v16  ;;  %v582_v25 = vadd.f32 %v975_v14, %v570_v17  ;;  %v907_v26 = vunpack.c.l.bf16 %v917_v22  ;;  %v918_v29 = vld [vmem:[%s1079_s30 + $0x10] sm:$0xff]   ;;  %v573_v30 = vld [vmem:[#allocation2 + $0x28] sm:$0xff] }
  0xe8   : > { %v903_v19 = vunpack.c.l.bf16 %v902_v15  ;;  %v904_v21 = vunpack.c.h.bf16 %v902_v15  ;;  %v572_v24 = vld [vmem:[#allocation2 + $0x20] sm:$0xff]  ;;  %v583_v27 = vadd.f32 %v975_v14, %v571_v23  ;;  %v908_v28 = vunpack.c.h.bf16 %v917_v22  ;;  %v574_v31 = vld [vmem:[#allocation2 + $0x30] sm:$0xff]  ;;  %v919_v36 = vld [vmem:[%s1079_s30 + $0x18] sm:$0xff]  }
  0xe9   : > { %v584_v34 = vadd.f32 %v975_v14, %v572_v24  ;;  %v911_v35 = vunpack.c.l.bf16 %v918_v29  ;;  %v606_v37 = vadd.f32 %v907_v26, %v582_v25  ;;  %v585_v39 = vadd.f32 %v975_v14, %v573_v30 }
  0xea   : > { %v604_v32 = vadd.f32 %v903_v19, %v580_v18  ;;  %v605_v33 = vadd.f32 %v904_v21, %v581_v20  ;;  %v607_v38 = vadd.f32 %v908_v28, %v583_v27  ;;  %v912_v40 = vunpack.c.h.bf16 %v918_v29 }
  0xeb   : > { %v575_v41 = vld [vmem:[#allocation2 + $0x38] sm:$0xff]  ;;  %v608_v44 = vadd.f32 %v911_v35, %v584_v34  ;;  %v586_v45 = vadd.f32 %v975_v14, %v574_v31  ;;  %v614_v46 = vmax.f32 %v606_v37, 0.0  ;;  %v915_v49 = vunpack.c.l.bf16 %v919_v36 }
  0xec   : > { %v612_v42 = vmax.f32 %v604_v32, 0.0  ;;  %v613_v43 = vmax.f32 %v605_v33, 0.0  ;;  %v615_v47 = vmax.f32 %v607_v38, 0.0  ;;  %v609_v48 = vadd.f32 %v912_v40, %v585_v39 }
  0xed   : > { %v616_v52 = vmax.f32 %v608_v44, 0.0  ;;  %v587_v53 = vadd.f32 %v975_v14, %v575_v41  ;;  %v622_v54 = vpack.c.bf16 %v614_v46, %v614_v46  ;;  %v610_v57 = vadd.f32 %v915_v49, %v586_v45 }
  0xee   : > { %v620_v50 = vpack.c.bf16 %v612_v42, %v612_v42  ;;  %v621_v51 = vpack.c.bf16 %v613_v43, %v613_v43  ;;  %v623_v55 = vpack.c.bf16 %v615_v47, %v615_v47  ;;  %v617_v56 = vmax.f32 %v609_v48, 0.0 }
  0xef   : > { %v624_v58 = vpack.c.bf16 %v616_v52, %v616_v52  ;;  %v916_v59 = vunpack.c.h.bf16 %v919_v36  ;;  %v618_v61 = vmax.f32 %v610_v57, 0.0  ;;  %631 = vst.msk [vmem:[%s1094_s14 + $0x8] sm:$0xf] %vm628_vm2, %v622_v54 }
  0xf0   : > { %629 = vst.msk [vmem:[%s1094_s14] sm:$0xf] %vm628_vm2, %v620_v50  ;;  %v625_v60 = vpack.c.bf16 %v617_v56, %v617_v56 }
  0xf1   : > { %630 = vst.msk [vmem:[%s1094_s14 + $0x4] sm:$0xf] %vm628_vm2, %v621_v51  ;;  %v611_v62 = vadd.f32 %v916_v59, %v587_v53  ;;  %v626_v63 = vpack.c.bf16 %v618_v61, %v618_v61 }
  0xf2   : > { %632 = vst.msk [vmem:[%s1094_s14 + $0xc] sm:$0xf] %vm628_vm2, %v623_v55 }
  0xf3   : > { %633 = vst.msk [vmem:[%s1094_s14 + $0x10] sm:$0xf] %vm628_vm2, %v624_v58  ;;  %v619_v0 = vmax.f32 %v611_v62, 0.0 }
  0xf4   : > { %634 = vst.msk [vmem:[%s1094_s14 + $0x14] sm:$0xf] %vm628_vm2, %v625_v60 }
  0xf5   : > { %635 = vst.msk [vmem:[%s1094_s14 + $0x18] sm:$0xf] %vm628_vm2, %v626_v63  ;;  %v627_v1 = vpack.c.bf16 %v619_v0, %v619_v0 }
  0xf7   : > { %636 = vst.msk [vmem:[%s1094_s14 + $0x1c] sm:$0xf] %vm628_vm2, %v627_v1 }
  0xf8 PF: > { %s14_s19 = sadd.s32 1, %s1014_s19   ;;  %s1181_s15 = smov %s1006_s17 }
  0xf9   : > { %p11_p9 = scmp.ge.s32.totalorder %s14_s19, 8   ;;  %s1182_s16 = smov %s1010_s18 }
  0xfa   : > { %s1183_s17 = smov %s1186_s20  ;;  %s1184_s18 = smov %s1190_s21 }
  0xfb   :  { %13 = sbr.rel (!%p11_p9) target bundleno = 3 (0x3), region = 83 }

// kernel: _lambda_.14
= control target key start
LH: loop header
LB: loop body
LE: loop exit
PB: predicated region body
PF: predicated region fallthrough
CT: control target
= control target key end

     0   :  { %s1178_s21 = smov 0   ;;  %s1180_s22 = smov 0   ;;  %s1312_s0 = inlined_call_operand.vmem [shape: bf16[2,3,16,192], index: 0, kind: input, shape index: {}]   ;;  %s1313_s1 = inlined_call_operand.vmem [shape: bf16[3,192,128], index: 1, kind: input, shape index: {}]   ;;  %s1314_s2 = inlined_call_operand.vmem [shape: f32[1,128], index: 2, kind: input, shape index: {}, may-alias: {2,4}]   ;;  %s1315_s3 = inlined_call_operand.vmem [shape: bf16[192,128], index: 3, kind: input, shape index: {}]   ;;  %s1316_s4 = inlined_call_operand.vmem [shape: f32[1,128], index: 4, kind: input, shape index: {}, may-alias: {2,4}]   ;;  %s1317_s5 = inlined_call_operand.vmem [shape: bf16[2,16,128], index: 5, kind: output, shape index: {0}]   ;;  %s1318_s6 = inlined_call_operand.vmem [shape: bf16[2,16,128], index: 6, kind: output, shape index: {1}]  }
   0x1   :  { %s1182_s23 = smov 0   ;;  %s1184_s24 = smov 0  }
   0x2   :  { %s1186_s25 = smov 0  }
   0x3 LB: > { %s29_s26 = sadd.s32 1, %s1132_s23  ;;  %s36_s27 = sadd.s32 1, %s1136_s24  ;;  %s1140_s25 = sphi %s1186_s25, %s17_s25   ;;  %s1136_s24 = sphi %s1184_s24, %s1322_s24   ;;  %s1132_s23 = sphi %s1182_s23, %s1321_s23   ;;  %s1128_s22 = sphi %s1180_s22, %s1320_s22   ;;  %s1124_s21 = sphi %s1178_s21, %s1319_s21  }
   0x4   : > { %p30_p0 = scmp.ge.s32.totalorder %s29_s26, 3  ;;  %p900_p1 = scmp.ge.s32.totalorder %s1140_s25, 1 }
   0x5   : > { %p284_p2 = scmp.lt.s32.totalorder %s1140_s25, 7 }
   0x6   : > { %s1324_s26 = smov (%p30_p0, %s29_s26), 0  ;;  %s1326_s27 = smov (!%p30_p0, %s36_s27), %s1136_s24 }
   0x7   : > { %p285_p3 = pnand %p900_p1, %p284_p2  ;;  %p38_p4 = scmp.ge.s32.totalorder %s1326_s27, 2 }
   0x8   : > { %p347_p5 = scmp.lt.s32.totalorder (!%p285_p3), %s1128_s22, 1  ;;  %p349_p6 = scmp.lt.s32.totalorder (!%p285_p3), %s1124_s21, 2 }
   0x9   : > { %s1328_s27 = smov (%p38_p4, %s1326_s27), 0  ;;  %288 = sbr.rel (%p285_p3) target bundleno = 389 (0x185), region = 40 }
   0xa   : > { %p908_p7 = scmp.ne.s32.totalorder (!%p285_p3), %s1124_s21, 0 }
   0xe   : > { %s1330_s22 = smov (!%p347_p5, %s1128_s22), 1 }
   0xf   : > { %s350_s28 = scalar_select %p349_p6, %s1124_s21, 2 }
  0x10   : > { %s1057_s29 = smul.u32 12, %s1330_s22  ;;  %s1019_s30 = sshll.u32 %s1330_s22, 3 }
  0x11   : > { %s901_s7 = sshll.u32 %s350_s28, 2  ;;  %s1058_s8 = smul.u32 96, %s350_s28 }
  0x12   : > { %s353_s9 = sadd.s32 %s1057_s29, %s901_s7  ;;  %s1215_s12 = scalar_lea.vmem %s1317_s5, %s1019_s30 }
  0x13   : > { %s902_s13 = sshll.u32 %s353_s9, 2  ;;  %s1220_s16 = scalar_lea.vmem %s1313_s1, %s1058_s8 }
  0x14   : > { %s1225_s19 = scalar_lea.vmem %s1312_s0, %s902_s13  ;;  %s1230_s28 = scalar_lea.vmem %s1318_s6, %s1019_s30 }
  0x15   : > { %394 = sbr.rel (%p908_p7) target bundleno = 29 (0x1d), region = 44 }
  0x1a   : > { %v1142_v0 = vmov 0.0  }
  0x1b   : > { %395 = vst [vmem:[#allocation2] sm:$0xff] %v1142_v0 }
  0x1c   : > { %396 = vst [vmem:[#allocation2 + $0x8] sm:$0xff] %v1142_v0 }
  0x1d PF: > { %v1030_v1 = vld [vmem:[%s1220_s16 + $0x38] sm:$0xff]  ;;  %v1029_v3 = vld [vmem:[%s1220_s16 + $0x30] sm:$0xff]  ;;  %v1028_v5 = vld [vmem:[%s1220_s16 + $0x28] sm:$0xff]  ;;  %vm506_vm0 = vcmask 523264   ;;  %p966_p8 = scmp.ne.s32.totalorder %s1124_s21, 1 }
  0x1e   : > { %v1034_v2 = vld [vmem:[%s1220_s16 + $0x58] sm:$0xff]  ;;  %510 = vmatpush.bf16.msra.mxu0 %v1030_v1  ;;  %v1033_v4 = vld [vmem:[%s1220_s16 + $0x50] sm:$0xff]  ;;  %v1032_v6 = vld [vmem:[%s1220_s16 + $0x48] sm:$0xff] }
  0x1f   : > { %528 = vmatpush.bf16.msra.mxu1 %v1034_v2  ;;  %v1027_v7 = vld [vmem:[%s1220_s16 + $0x20] sm:$0xff]  ;;  %v913_v10 = vld [vmem:[%s1225_s19 + $0x8] sm:$0xf0]  ;;  %v1026_v11 = vld [vmem:[%s1220_s16 + $0x18] sm:$0xff] }
  0x20   : > { %v1031_v8 = vld [vmem:[%s1220_s16 + $0x40] sm:$0xff]  ;;  %v1025_v13 = vld [vmem:[%s1220_s16 + $0x10] sm:$0xff]  ;;  %v1024_v14 = vld [vmem:[%s1220_s16 + $0x8] sm:$0xff] }
  0x21   : > { %v1021_v9 = vld [vmem:[%s1225_s19 + $0x4] sm:$0xf]  ;;  %v911_v16 = vld [vmem:[%s1225_s19] sm:$0xf]  ;;  %v1022_v17 = vld [vmem:[%s1225_s19 + $0x4] sm:$0xf0] }
  0x22   : > { %511 = vmatpush.bf16.msra.mxu0 %v1029_v3  ;;  %v916_v12 = vor.u32 %v1021_v9, %v913_v10  ;;  %v1023_v15 = vld [vmem:[%s1220_s16] sm:$0xff]  ;;  %v912_v18 = vor.u32 %v1022_v17, %v911_v16 }
  0x23   : > { %529 = vmatpush.bf16.msra.mxu1 %v1033_v4  ;;  %v399_v20 = vld [vmem:[#allocation2] sm:$0xff]  ;;  %v400_v25 = vld [vmem:[#allocation2 + $0x8] sm:$0xff] }
  0x26   : > { %512 = vmatpush.bf16.msra.mxu0 %v1028_v5 }
  0x27   : > { %530 = vmatpush.bf16.msra.mxu1 %v1032_v6 }
  0x2a   : > { %513 = vmatpush.bf16.msra.mxu0 %v1027_v7 }
  0x2b   : > { %531 = vmatpush.bf16.msra.mxu1 %v1031_v8 }
  0x2e   : > { %514 = vmatpush.bf16.msra.mxu0 %v1026_v11  ;;  %965 = vmatmul.msk.bf16.vlgmr.msra.gmra.mxu1 %vm506_vm0, %v916_v12 }
  0x32   : > { %515 = vmatpush.bf16.msra.mxu0 %v1025_v13 }
  0x36   : > { %516 = vmatpush.bf16.msra.mxu0 %v1024_v14 }
  0x3a   : > { %517 = vmatpush.bf16.msra.mxu0 %v1023_v15 }
  0x3d   : > { %518 = vmatmul.bf16.vlgmr.msra.gmra.mxu0 %v912_v18 }
  0xab   : > { %v533_v19 = vpop.f32.mrf.mxu1 }
  0xb3   : > { %v535_v24 = vpop.f32.mrf.mxu1 }
  0xba   : > { %v519_v21 = vpop.f32.mrf.mxu0 }
  0xbb   : > { %v534_v22 = vadd.f32 %v533_v19, %v519_v21 }
  0xbd   : > { %v538_v23 = vadd.f32 %v534_v22, %v399_v20 }
  0xbf   : > { %540 = vst [vmem:[#allocation2] sm:$0xff] %v538_v23 }
  0xc2   : > { %v521_v26 = vpop.f32.mrf.mxu0 }
  0xc3   : > { %v536_v27 = vadd.f32 %v535_v24, %v521_v26  ;;  %545 = sbr.rel (%p966_p8) target bundleno = 373 (0x175), region = 48 }
  0xc5   : > { %v539_v28 = vadd.f32 %v536_v27, %v400_v25 }
  0xc7   : > { %541 = vst [vmem:[#allocation2 + $0x8] sm:$0xff] %v539_v28 }
  0xc8   : > { %v1042_v29 = vld [vmem:[%s1315_s3 + $0x38] sm:$0xff]  ;;  %v1041_v31 = vld [vmem:[%s1315_s3 + $0x30] sm:$0xff]  ;;  %v1040_v33 = vld [vmem:[%s1315_s3 + $0x28] sm:$0xff] }
  0xc9   : > { %v1046_v30 = vld [vmem:[%s1315_s3 + $0x58] sm:$0xff]  ;;  %646 = vmatpush.bf16.msra.mxu0 %v1042_v29  ;;  %v1045_v32 = vld [vmem:[%s1315_s3 + $0x50] sm:$0xff]  ;;  %v1044_v34 = vld [vmem:[%s1315_s3 + $0x48] sm:$0xff] }
  0xca   : > { %664 = vmatpush.bf16.msra.mxu1 %v1046_v30  ;;  %v1039_v35 = vld [vmem:[%s1315_s3 + $0x20] sm:$0xff]  ;;  %v1038_v37 = vld [vmem:[%s1315_s3 + $0x18] sm:$0xff]  ;;  %v1037_v38 = vld [vmem:[%s1315_s3 + $0x10] sm:$0xff] }
  0xcb   : > { %v1043_v36 = vld [vmem:[%s1315_s3 + $0x40] sm:$0xff]  ;;  %v1036_v39 = vld [vmem:[%s1315_s3 + $0x8] sm:$0xff] }
  0xcc   : > { %v1035_v40 = vld [vmem:[%s1315_s3] sm:$0xff] }
  0xcd   : > { %647 = vmatpush.bf16.msra.mxu0 %v1041_v31  ;;  %v1100_v43 = vld [vmem:[%s1316_s4] ss:$0 sm:$0xff] }
  0xce   : > { %665 = vmatpush.bf16.msra.mxu1 %v1045_v32 }
  0xd1   : > { %648 = vmatpush.bf16.msra.mxu0 %v1040_v33 }
  0xd2   : > { %666 = vmatpush.bf16.msra.mxu1 %v1044_v34 }
  0xd5   : > { %649 = vmatpush.bf16.msra.mxu0 %v1039_v35 }
  0xd6   : > { %667 = vmatpush.bf16.msra.mxu1 %v1043_v36 }
  0xd9   : > { %650 = vmatpush.bf16.msra.mxu0 %v1038_v37  ;;  %1015 = vmatmul.msk.bf16.vlgmr.msra.gmra.mxu1 %vm506_vm0, %v916_v12 }
  0xdd   : > { %651 = vmatpush.bf16.msra.mxu0 %v1037_v38 }
  0xe1   : > { %652 = vmatpush.bf16.msra.mxu0 %v1036_v39 }
  0xe5   : > { %653 = vmatpush.bf16.msra.mxu0 %v1035_v40 }
  0xe8   : > { %654 = vmatmul.bf16.vlgmr.msra.gmra.mxu0 %v912_v18 }
 0x156   : > { %v669_v41 = vpop.f32.mrf.mxu1 }
 0x15e   : > { %v671_v47 = vpop.f32.mrf.mxu1 }
 0x165   : > { %v655_v42 = vpop.f32.mrf.mxu0 }
 0x166   : > { %v656_v44 = vadd.f32 %v1100_v43, %v655_v42 }
 0x168   : > { %v670_v48 = vadd.f32 %v669_v41, %v656_v44 }
 0x16d   : > { %v657_v45 = vpop.f32.mrf.mxu0 }
 0x16e   : > { %v658_v46 = vadd.f32 %v1100_v43, %v657_v45 }
 0x170   : > { %v672_v49 = vadd.f32 %v671_v47, %v658_v46 }
 0x172   : > { %v1050_v50 = vpack.c.bf16 %v672_v49, %v670_v48 }
 0x174   : > { %1051 = vst [vmem:[%s1230_s28] sm:$0xff] %v1050_v50  }
 0x175 PF: > { %p1016_p9 = scmp.ne.s32.totalorder %s1124_s21, 2 }
 0x177   : > { %681 = sbr.rel (%p1016_p9) target bundleno = 389 (0x185), region = 52 }
 0x17c   : > { %v682_v51 = vld [vmem:[#allocation2] sm:$0xff]  ;;  %v683_v52 = vld [vmem:[#allocation2 + $0x8] sm:$0xff] }
 0x17d   : > { %v1101_v53 = vld [vmem:[%s1314_s2] ss:$0 sm:$0xff] }
 0x17e   : > { %v688_v54 = vadd.f32 %v1101_v53, %v682_v51  ;;  %v689_v55 = vadd.f32 %v1101_v53, %v683_v52 }
 0x180   : > { %v690_v56 = vmax.f32 %v688_v54, 0.0  ;;  %v691_v57 = vmax.f32 %v689_v55, 0.0 }
 0x182   : > { %v1055_v58 = vpack.c.bf16 %v691_v57, %v690_v56 }
 0x184   : > { %1056 = vst [vmem:[%s1215_s12] sm:$0xff] %v1055_v58  }
 0x185 PF: > { %s17_s25 = sadd.s32 1, %s1140_s25   ;;  %s1319_s21 = smov %s1132_s23 }
 0x186   : > { %p14_p10 = scmp.ge.s32.totalorder %s17_s25, 8   ;;  %s1320_s22 = smov %s1136_s24 }
 0x187   : > { %s1321_s23 = smov %s1324_s26  ;;  %s1322_s24 = smov %s1328_s27 }
 0x188   :  { %16 = sbr.rel (!%p14_p10) target bundleno = 3 (0x3), region = 106 }

// kernel: _lambda_.15
= control target key start
LH: loop header
LB: loop body
LE: loop exit
PB: predicated region body
PF: predicated region fallthrough
CT: control target
= control target key end

     0   :  { %s1019_s15 = smov 0   ;;  %s1021_s16 = smov 0   ;;  %s1125_s0 = inlined_call_operand.vmem [shape: bf16[2,3,16,384], index: 0, kind: input, shape index: {}]   ;;  %s1126_s1 = inlined_call_operand.vmem [shape: bf16[3,384,128], index: 1, kind: input, shape index: {}]   ;;  %s1127_s2 = inlined_call_operand.vmem [shape: f32[1,128], index: 2, kind: input, shape index: {}]   ;;  %s1128_s3 = inlined_call_operand.vmem [shape: bf16[2,16,128], index: 3, kind: input, shape index: {}]   ;;  %s1129_s4 = inlined_call_operand.vmem [shape: bf16[2,16,128], index: 4, kind: output, shape index: {}]  }
   0x1   :  { %s1023_s17 = smov 0   ;;  %s1025_s18 = smov 0  }
   0x2   :  { %s1027_s19 = smov 0  }
   0x3 LB: > { %s26_s20 = sadd.s32 1, %s983_s17  ;;  %s33_s21 = sadd.s32 1, %s987_s18  ;;  %s991_s19 = sphi %s1027_s19, %s14_s19   ;;  %s987_s18 = sphi %s1025_s18, %s1133_s18   ;;  %s983_s17 = sphi %s1023_s17, %s1132_s17   ;;  %s979_s16 = sphi %s1021_s16, %s1131_s16   ;;  %s975_s15 = sphi %s1019_s15, %s1130_s15  }
   0x4   : > { %p27_p0 = scmp.ge.s32.totalorder %s26_s20, 3  ;;  %p751_p1 = scmp.ge.s32.totalorder %s991_s19, 1 }
   0x5   : > { %p227_p2 = scmp.lt.s32.totalorder %s991_s19, 7 }
   0x6   : > { %s1135_s20 = smov (%p27_p0, %s26_s20), 0  ;;  %s1137_s21 = smov (!%p27_p0, %s33_s21), %s987_s18 }
   0x7   : > { %p228_p3 = pnand %p751_p1, %p227_p2  ;;  %p35_p4 = scmp.ge.s32.totalorder %s1137_s21, 2 }
   0x8   : > { %p279_p5 = scmp.lt.s32.totalorder (!%p228_p3), %s979_s16, 1  ;;  %p281_p6 = scmp.lt.s32.totalorder (!%p228_p3), %s975_s15, 2 }
   0x9   : > { %s1139_s21 = smov (%p35_p4, %s1137_s21), 0  ;;  %231 = sbr.rel (%p228_p3) target bundleno = 222 (0xde), region = 36 }
   0xa   : > { %p758_p7 = scmp.ne.s32.totalorder (!%p228_p3), %s975_s15, 0 }
   0xe   : > { %s1141_s16 = smov (!%p279_p5, %s979_s16), 1 }
   0xf   : > { %s282_s22 = scalar_select %p281_p6, %s975_s15, 2 }
  0x10   : > { %s909_s23 = smul.u32 18, %s1141_s16  ;;  %s870_s24 = sshll.u32 %s1141_s16, 3 }
  0x11   : > { %s908_s25 = smul.u32 6, %s282_s22  ;;  %s1056_s28 = scalar_lea.vmem %s1128_s3, %s870_s24 }
  0x12   : > { %s910_s29 = smul.u32 192, %s282_s22  ;;  %s1061_s6 = scalar_lea.vmem %s1129_s4, %s870_s24 }
  0x13   : > { %s285_s7 = sadd.s32 %s909_s23, %s908_s25  ;;  %318 = sbr.rel (%p758_p7) target bundleno = 27 (0x1b), region = 40 }
  0x14   : > { %s752_s8 = sshll.u32 %s285_s7, 2  ;;  %s1066_s11 = scalar_lea.vmem %s1126_s1, %s910_s29 }
  0x15   : > { %s1071_s14 = scalar_lea.vmem %s1125_s0, %s752_s8 }
  0x18   : > { %v993_v0 = vmov 0.0  }
  0x19   : > { %319 = vst [vmem:[#allocation2] sm:$0xff] %v993_v0 }
  0x1a   : > { %320 = vst [vmem:[#allocation2 + $0x8] sm:$0xff] %v993_v0 }
  0x1b PF: > { %v882_v1 = vld [vmem:[%s1066_s11 + $0x38] sm:$0xff]  ;;  %v881_v4 = vld [vmem:[%s1066_s11 + $0x30] sm:$0xff]  ;;  %v880_v7 = vld [vmem:[%s1066_s11 + $0x28] sm:$0xff]  ;;  %p867_p8 = scmp.ne.s32.totalorder %s975_s15, 2 }
  0x1c   : > { %v890_v2 = vld [vmem:[%s1066_s11 + $0x78] sm:$0xff]  ;;  %535 = vmatpush.bf16.msra.mxu0 %v882_v1  ;;  %v889_v5 = vld [vmem:[%s1066_s11 + $0x70] sm:$0xff]  ;;  %v888_v8 = vld [vmem:[%s1066_s11 + $0x68] sm:$0xff] }
  0x1d   : > { %v898_v3 = vld [vmem:[%s1066_s11 + $0xb8] sm:$0xff]  ;;  %549 = vmatpush.bf16.msra.mxu1 %v890_v2  ;;  %v897_v6 = vld [vmem:[%s1066_s11 + $0xb0] sm:$0xff]  ;;  %v896_v9 = vld [vmem:[%s1066_s11 + $0xa8] sm:$0xff] }
  0x1e   : > { %563 = vmatpush.bf16.msra.mxu2 %v898_v3  ;;  %v879_v10 = vld [vmem:[%s1066_s11 + $0x20] sm:$0xff]  ;;  %v878_v13 = vld [vmem:[%s1066_s11 + $0x18] sm:$0xff]  ;;  %v877_v16 = vld [vmem:[%s1066_s11 + $0x10] sm:$0xff] }
  0x1f   : > { %v887_v11 = vld [vmem:[%s1066_s11 + $0x60] sm:$0xff]  ;;  %v886_v14 = vld [vmem:[%s1066_s11 + $0x58] sm:$0xff]  ;;  %v885_v17 = vld [vmem:[%s1066_s11 + $0x50] sm:$0xff] }
  0x20   : > { %536 = vmatpush.bf16.msra.mxu0 %v881_v4  ;;  %v895_v12 = vld [vmem:[%s1066_s11 + $0xa0] sm:$0xff]  ;;  %v894_v15 = vld [vmem:[%s1066_s11 + $0x98] sm:$0xff]  ;;  %v893_v18 = vld [vmem:[%s1066_s11 + $0x90] sm:$0xff] }
  0x21   : > { %550 = vmatpush.bf16.msra.mxu1 %v889_v5  ;;  %v876_v19 = vld [vmem:[%s1066_s11 + $0x8] sm:$0xff]  ;;  %v875_v22 = vld [vmem:[%s1066_s11] sm:$0xff]  ;;  %v763_v27 = vld [vmem:[%s1071_s14 + $0xc] sm:$0xf0] }
  0x22   : > { %564 = vmatpush.bf16.msra.mxu2 %v897_v6  ;;  %v884_v20 = vld [vmem:[%s1066_s11 + $0x48] sm:$0xff]  ;;  %v883_v23 = vld [vmem:[%s1066_s11 + $0x40] sm:$0xff]  ;;  %v874_v30 = vld [vmem:[%s1071_s14 + $0x10] sm:$0xf0] }
  0x23   : > { %v892_v21 = vld [vmem:[%s1066_s11 + $0x88] sm:$0xff]  ;;  %v761_v24 = vld [vmem:[%s1071_s14] sm:$0xf]  ;;  %v872_v26 = vld [vmem:[%s1071_s14 + $0x4] sm:$0xf] }
  0x24   : > { %537 = vmatpush.bf16.msra.mxu0 %v880_v7  ;;  %v873_v25 = vld [vmem:[%s1071_s14 + $0x8] sm:$0xf0]  ;;  %v891_v28 = vld [vmem:[%s1066_s11 + $0x80] sm:$0xff]  ;;  %v769_v29 = vld [vmem:[%s1071_s14 + $0x8] sm:$0xf]  ;;  %v766_v32 = vor.u32 %v872_v26, %v763_v27 }
  0x25   : > { %551 = vmatpush.bf16.msra.mxu1 %v888_v8  ;;  %v762_v31 = vor.u32 %v873_v25, %v761_v24  ;;  %v770_v33 = vor.u32 %v874_v30, %v769_v29  ;;  %v325_v37 = vld [vmem:[#allocation2] sm:$0xff]  ;;  %v326_v44 = vld [vmem:[#allocation2 + $0x8] sm:$0xff] }
  0x26   : > { %565 = vmatpush.bf16.msra.mxu2 %v896_v9 }
  0x28   : > { %538 = vmatpush.bf16.msra.mxu0 %v879_v10 }
  0x29   : > { %552 = vmatpush.bf16.msra.mxu1 %v887_v11 }
  0x2a   : > { %566 = vmatpush.bf16.msra.mxu2 %v895_v12 }
  0x2c   : > { %539 = vmatpush.bf16.msra.mxu0 %v878_v13 }
  0x2d   : > { %553 = vmatpush.bf16.msra.mxu1 %v886_v14 }
  0x2e   : > { %567 = vmatpush.bf16.msra.mxu2 %v894_v15 }
  0x30   : > { %540 = vmatpush.bf16.msra.mxu0 %v877_v16 }
  0x31   : > { %554 = vmatpush.bf16.msra.mxu1 %v885_v17 }
  0x32   : > { %568 = vmatpush.bf16.msra.mxu2 %v893_v18 }
  0x34   : > { %541 = vmatpush.bf16.msra.mxu0 %v876_v19 }
  0x35   : > { %555 = vmatpush.bf16.msra.mxu1 %v884_v20 }
  0x36   : > { %569 = vmatpush.bf16.msra.mxu2 %v892_v21 }
  0x38   : > { %542 = vmatpush.bf16.msra.mxu0 %v875_v22 }
  0x39   : > { %556 = vmatpush.bf16.msra.mxu1 %v883_v23 }
  0x3a   : > { %570 = vmatpush.bf16.msra.mxu2 %v891_v28 }
  0x3b   : > { %543 = vmatmul.bf16.vlgmr.msra.gmra.mxu0 %v762_v31 }
  0x3c   : > { %557 = vmatmul.bf16.vlgmr.msra.gmra.mxu1 %v766_v32 }
  0x3d   : > { %571 = vmatmul.bf16.vlgmr.msra.gmra.mxu2 %v770_v33 }
  0xb8   : > { %v544_v34 = vpop.f32.mrf.mxu0 }
  0xb9   : > { %v558_v35 = vpop.f32.mrf.mxu1 }
  0xba   : > { %v559_v36 = vadd.f32 %v558_v35, %v544_v34 }
  0xc0   : > { %v572_v38 = vpop.f32.mrf.mxu2  ;;  %v546_v41 = vpop.f32.mrf.mxu0 }
  0xc1   : > { %v573_v39 = vadd.f32 %v572_v38, %v559_v36  ;;  %v560_v42 = vpop.f32.mrf.mxu1 }
  0xc2   : > { %v561_v43 = vadd.f32 %v560_v42, %v546_v41 }
  0xc3   : > { %v577_v40 = vadd.f32 %v573_v39, %v325_v37 }
  0xc5   : > { %579 = vst [vmem:[#allocation2] sm:$0xff] %v577_v40 }
  0xc8   : > { %v574_v45 = vpop.f32.mrf.mxu2 }
  0xc9   : > { %v575_v46 = vadd.f32 %v574_v45, %v561_v43  ;;  %584 = sbr.rel (%p867_p8) target bundleno = 222 (0xde), region = 44 }
  0xcb   : > { %v578_v47 = vadd.f32 %v575_v46, %v326_v44 }
  0xcd   : > { %580 = vst [vmem:[#allocation2 + $0x8] sm:$0xff] %v578_v47 }
  0xce   : > { %v585_v48 = vld [vmem:[#allocation2] sm:$0xff] }
  0xcf   : > { %v952_v50 = vld [vmem:[%s1127_s2] ss:$0 sm:$0xff] }
  0xd0   : > { %v900_v51 = vld [vmem:[%s1056_s28] sm:$0xff]   ;;  %v591_v54 = vadd.f32 %v952_v50, %v585_v48 }
  0xd1   : > { %v901_v52 = vunpack.c.l.bf16 %v900_v51  ;;  %v902_v53 = vunpack.c.h.bf16 %v900_v51 }
  0xd3   : > { %v597_v56 = vadd.f32 %v901_v52, %v591_v54 }
  0xd4   : > { %v586_v49 = vld [vmem:[#allocation2 + $0x8] sm:$0xff] }
  0xd5   : > { %v592_v55 = vadd.f32 %v952_v50, %v586_v49  ;;  %v599_v58 = vmax.f32 %v597_v56, 0.0 }
  0xd7   : > { %v598_v57 = vadd.f32 %v902_v53, %v592_v55 }
  0xd9   : > { %v600_v59 = vmax.f32 %v598_v57, 0.0 }
  0xdb   : > { %v906_v60 = vpack.c.bf16 %v600_v59, %v599_v58 }
  0xdd   : > { %907 = vst [vmem:[%s1061_s6] sm:$0xff] %v906_v60  }
  0xde PF: > { %s14_s19 = sadd.s32 1, %s991_s19   ;;  %s1130_s15 = smov %s983_s17 }
  0xdf   : > { %p11_p9 = scmp.ge.s32.totalorder %s14_s19, 8   ;;  %s1131_s16 = smov %s987_s18 }
  0xe0   : > { %s1132_s17 = smov %s1135_s20  ;;  %s1133_s18 = smov %s1139_s21 }
  0xe1   :  { %13 = sbr.rel (!%p11_p9) target bundleno = 3 (0x3), region = 83 }

// kernel: _lambda_.16
= control target key start
LH: loop header
LB: loop body
LE: loop exit
PB: predicated region body
PF: predicated region fallthrough
CT: control target
= control target key end

     0   :  { %s2027_s21 = smov 0   ;;  %s2029_s22 = smov 0   ;;  %s2511_s0 = inlined_call_operand.vmem [shape: bf16[2,3,8,384], index: 0, kind: input, shape index: {}]   ;;  %s2512_s1 = inlined_call_operand.vmem [shape: bf16[3,384,256], index: 1, kind: input, shape index: {}]   ;;  %s2513_s2 = inlined_call_operand.vmem [shape: f32[1,256], index: 2, kind: input, shape index: {}, may-alias: {2,4}]   ;;  %s2514_s3 = inlined_call_operand.vmem [shape: bf16[384,256], index: 3, kind: input, shape index: {}]   ;;  %s2515_s4 = inlined_call_operand.vmem [shape: f32[1,256], index: 4, kind: input, shape index: {}, may-alias: {2,4}]   ;;  %s2516_s5 = inlined_call_operand.vmem [shape: bf16[2,8,256], index: 5, kind: output, shape index: {0}]   ;;  %s2517_s6 = inlined_call_operand.vmem [shape: bf16[2,8,256], index: 6, kind: output, shape index: {1}]  }
   0x1   :  { %s2031_s23 = smov 0   ;;  %s2033_s24 = smov 0  }
   0x2   :  { %s2035_s25 = smov 0  }
   0x3 LB: > { %s29_s26 = sadd.s32 1, %s1981_s23  ;;  %s36_s27 = sadd.s32 1, %s1985_s24  ;;  %s1989_s25 = sphi %s2035_s25, %s17_s25   ;;  %s1985_s24 = sphi %s2033_s24, %s2523_s24   ;;  %s1981_s23 = sphi %s2031_s23, %s2522_s23   ;;  %s1977_s22 = sphi %s2029_s22, %s2521_s22   ;;  %s1973_s21 = sphi %s2027_s21, %s2520_s21  }
   0x4   : > { %p30_p0 = scmp.ge.s32.totalorder %s29_s26, 3  ;;  %p1413_p1 = scmp.ge.s32.totalorder %s1989_s25, 1 }
   0x5   : > { %p292_p2 = scmp.lt.s32.totalorder %s1989_s25, 7 }
   0x6   : > { %s2525_s26 = smov (%p30_p0, %s29_s26), 0  ;;  %s2527_s27 = smov (!%p30_p0, %s36_s27), %s1985_s24 }
   0x7   : > { %p293_p3 = pnand %p1413_p1, %p292_p2  ;;  %p38_p4 = scmp.ge.s32.totalorder %s2527_s27, 2 }
   0x8   : > { %p361_p5 = scmp.lt.s32.totalorder (!%p293_p3), %s1977_s22, 1  ;;  %p363_p6 = scmp.lt.s32.totalorder (!%p293_p3), %s1973_s21, 2 }
   0x9   : > { %s2529_s27 = smov (%p38_p4, %s2527_s27), 0  ;;  %296 = sbr.rel (%p293_p3) target bundleno = 447 (0x1bf), region = 40 }
   0xa   : > { %2518 = sst [smem:[#allocation3_spill]] %s2529_s27  ;;  %p1420_p7 = scmp.ne.s32.totalorder (!%p293_p3), %s1973_s21, 0 }
   0xe   : > { %s2531_s22 = smov (!%p361_p5, %s1977_s22), 1 }
   0xf   : > { %s364_s28 = scalar_select %p363_p6, %s1973_s21, 2 }
  0x10   : > { %s1908_s29 = smul.u32 9, %s2531_s22  ;;  %s1809_s30 = sshll.u32 %s2531_s22, 3 }
  0x11   : > { %s1907_s7 = smul.u32 3, %s364_s28  ;;  %s2064_s10 = scalar_lea.vmem %s2516_s5, %s1809_s30 }
  0x12   : > { %s1909_s11 = smul.u32 384, %s364_s28  ;;  %s2069_s14 = scalar_lea.vmem %s2517_s6, %s1809_s30 }
  0x13   : > { %s367_s15 = sadd.s32 %s1908_s29, %s1907_s7  ;;  %419 = sbr.rel (%p1420_p7) target bundleno = 27 (0x1b), region = 44 }
  0x14   : > { %s1414_s16 = sshll.u32 %s367_s15, 2  ;;  %s2074_s19 = scalar_lea.vmem %s2512_s1, %s1909_s11 }
  0x15   : > { %s2079_s27 = scalar_lea.vmem %s2511_s0, %s1414_s16 }
  0x18   : > { %v1991_v0 = vmov 0.0  }
  0x19   : > { %420 = vst [vmem:[#allocation2] sm:$0xff] %v1991_v0 }
  0x1a   : > { %421 = vst [vmem:[#allocation2 + $0x8] sm:$0xff] %v1991_v0 }
  0x1b PF: > { %v1479_v1 = vld [vmem:[%s2074_s19 + $0x70] sm:$0xf]  ;;  %v1826_v2 = vld [vmem:[%s2074_s19 + $0x74] sm:$0xf0]  ;;  %v1471_v6 = vld [vmem:[%s2074_s19 + $0x60] sm:$0xf] }
  0x1c   : > { %v1543_v3 = vld [vmem:[%s2074_s19 + $0xf0] sm:$0xf]  ;;  %v1480_v4 = vor.u32 %v1826_v2, %v1479_v1  ;;  %v1842_v5 = vld [vmem:[%s2074_s19 + $0xf4] sm:$0xf0]  ;;  %v1824_v7 = vld [vmem:[%s2074_s19 + $0x64] sm:$0xf0] }
  0x1d   : > { %v1544_v8 = vor.u32 %v1842_v5, %v1543_v3  ;;  %v1535_v9 = vld [vmem:[%s2074_s19 + $0xe0] sm:$0xf]  ;;  %v1840_v10 = vld [vmem:[%s2074_s19 + $0xe4] sm:$0xf0]  ;;  %v1472_v11 = vor.u32 %v1824_v7, %v1471_v6  ;;  %v1463_v12 = vld [vmem:[%s2074_s19 + $0x50] sm:$0xf] }
  0x1e   : > { %725 = vmatpush.bf16.msra.mxu0 %v1480_v4  ;;  %v1536_v13 = vor.u32 %v1840_v10, %v1535_v9  ;;  %v1822_v14 = vld [vmem:[%s2074_s19 + $0x54] sm:$0xf0]  ;;  %v1607_v15 = vld [vmem:[%s2074_s19 + $0x170] sm:$0xf]  ;;  %v1599_v20 = vld [vmem:[%s2074_s19 + $0x160] sm:$0xf] }
  0x1f   : > { %738 = vmatpush.bf16.msra.mxu1 %v1544_v8  ;;  %v1858_v16 = vld [vmem:[%s2074_s19 + $0x174] sm:$0xf0]  ;;  %v1527_v17 = vld [vmem:[%s2074_s19 + $0xd0] sm:$0xf]  ;;  %v1856_v21 = vld [vmem:[%s2074_s19 + $0x164] sm:$0xf0]  ;;  %v1464_v23 = vor.u32 %v1822_v14, %v1463_v12 }
  0x20   : > { %v1838_v18 = vld [vmem:[%s2074_s19 + $0xd4] sm:$0xf0]  ;;  %v1608_v19 = vor.u32 %v1858_v16, %v1607_v15  ;;  %v1825_v22 = vld [vmem:[%s2074_s19 + $0x74] sm:$0xf]  ;;  %v1455_v24 = vld [vmem:[%s2074_s19 + $0x40] sm:$0xf]  ;;  %v1600_v26 = vor.u32 %v1856_v21, %v1599_v20 }
  0x21   : > { %v1820_v25 = vld [vmem:[%s2074_s19 + $0x44] sm:$0xf0]  ;;  %v1481_v27 = vld [vmem:[%s2074_s19 + $0x78] sm:$0xf0]  ;;  %v1528_v28 = vor.u32 %v1838_v18, %v1527_v17  ;;  %v1519_v29 = vld [vmem:[%s2074_s19 + $0xc0] sm:$0xf] }
  0x22   : > { %726 = vmatpush.bf16.msra.mxu0 %v1472_v11  ;;  %751 = vmatpush.bf16.msra.mxu2 %v1608_v19  ;;  %v1836_v30 = vld [vmem:[%s2074_s19 + $0xc4] sm:$0xf0]  ;;  %v1484_v31 = vor.u32 %v1825_v22, %v1481_v27  ;;  %v1591_v32 = vld [vmem:[%s2074_s19 + $0x150] sm:$0xf]  ;;  %v1854_v33 = vld [vmem:[%s2074_s19 + $0x154] sm:$0xf0]  ;;  %v1456_v37 = vor.u32 %v1820_v25, %v1455_v24 }
  0x23   : > { %739 = vmatpush.bf16.msra.mxu1 %v1536_v13  ;;  %v1823_v34 = vld [vmem:[%s2074_s19 + $0x64] sm:$0xf]  ;;  %v1473_v35 = vld [vmem:[%s2074_s19 + $0x68] sm:$0xf0]  ;;  %v1447_v38 = vld [vmem:[%s2074_s19 + $0x30] sm:$0xf]  ;;  %v1592_v40 = vor.u32 %v1854_v33, %v1591_v32  ;;  %v1520_v42 = vor.u32 %v1836_v30, %v1519_v29 }
  0x24   : > { %764 = vmatpush.bf16.msra.mxu3 %v1484_v31  ;;  %v1476_v36 = vor.u32 %v1823_v34, %v1473_v35  ;;  %v1818_v39 = vld [vmem:[%s2074_s19 + $0x34] sm:$0xf0]  ;;  %v1583_v41 = vld [vmem:[%s2074_s19 + $0x140] sm:$0xf]  ;;  %v1852_v43 = vld [vmem:[%s2074_s19 + $0x144] sm:$0xf0] }
  0x25   : > { %v1821_v44 = vld [vmem:[%s2074_s19 + $0x54] sm:$0xf]  ;;  %v1465_v45 = vld [vmem:[%s2074_s19 + $0x58] sm:$0xf0]  ;;  %v1511_v46 = vld [vmem:[%s2074_s19 + $0xb0] sm:$0xf]  ;;  %v1448_v49 = vor.u32 %v1818_v39, %v1447_v38  ;;  %v1584_v51 = vor.u32 %v1852_v43, %v1583_v41 }
  0x26   : > { %727 = vmatpush.bf16.msra.mxu0 %v1464_v23  ;;  %752 = vmatpush.bf16.msra.mxu2 %v1600_v26  ;;  %v1834_v47 = vld [vmem:[%s2074_s19 + $0xb4] sm:$0xf0]  ;;  %v1468_v48 = vor.u32 %v1821_v44, %v1465_v45  ;;  %v1439_v50 = vld [vmem:[%s2074_s19 + $0x20] sm:$0xf]  ;;  %v1819_v52 = vld [vmem:[%s2074_s19 + $0x44] sm:$0xf] }
  0x27   : > { %740 = vmatpush.bf16.msra.mxu1 %v1528_v28  ;;  %v1457_v53 = vld [vmem:[%s2074_s19 + $0x48] sm:$0xf0]  ;;  %v1512_v54 = vor.u32 %v1834_v47, %v1511_v46  ;;  %v1816_v55 = vld [vmem:[%s2074_s19 + $0x24] sm:$0xf0]  ;;  %v1575_v56 = vld [vmem:[%s2074_s19 + $0x130] sm:$0xf] }
  0x28   : > { %765 = vmatpush.bf16.msra.mxu3 %v1476_v36  ;;  %v1850_v57 = vld [vmem:[%s2074_s19 + $0x134] sm:$0xf0]  ;;  %v1503_v58 = vld [vmem:[%s2074_s19 + $0xa0] sm:$0xf]  ;;  %v1832_v59 = vld [vmem:[%s2074_s19 + $0xa4] sm:$0xf0]  ;;  %v1460_v60 = vor.u32 %v1819_v52, %v1457_v53  ;;  %v1440_v61 = vor.u32 %v1816_v55, %v1439_v50 }
  0x29   : > { %v1431_v62 = vld [vmem:[%s2074_s19 + $0x10] sm:$0xf]  ;;  %v1576_v63 = vor.u32 %v1850_v57, %v1575_v56  ;;  %v1817_v0 = vld [vmem:[%s2074_s19 + $0x34] sm:$0xf]  ;;  %v1449_v1 = vld [vmem:[%s2074_s19 + $0x38] sm:$0xf0]  ;;  %v1504_v2 = vor.u32 %v1832_v59, %v1503_v58 }
  0x2a   : > { %728 = vmatpush.bf16.msra.mxu0 %v1456_v37  ;;  %753 = vmatpush.bf16.msra.mxu2 %v1592_v40  ;;  %v1814_v3 = vld [vmem:[%s2074_s19 + $0x14] sm:$0xf0]  ;;  %v1567_v4 = vld [vmem:[%s2074_s19 + $0x120] sm:$0xf]  ;;  %v1848_v5 = vld [vmem:[%s2074_s19 + $0x124] sm:$0xf0]  ;;  %v1452_v10 = vor.u32 %v1817_v0, %v1449_v1 }
  0x2b   : > { %741 = vmatpush.bf16.msra.mxu1 %v1520_v42  ;;  %v1495_v6 = vld [vmem:[%s2074_s19 + $0x90] sm:$0xf]  ;;  %v1830_v7 = vld [vmem:[%s2074_s19 + $0x94] sm:$0xf0]  ;;  %v1423_v8 = vld [vmem:[%s2074_s19] sm:$0xf]  ;;  %v1432_v11 = vor.u32 %v1814_v3, %v1431_v62  ;;  %v1568_v12 = vor.u32 %v1848_v5, %v1567_v4 }
  0x2c   : > { %766 = vmatpush.bf16.msra.mxu3 %v1468_v48  ;;  %v1812_v9 = vld [vmem:[%s2074_s19 + $0x4] sm:$0xf0]  ;;  %v1815_v13 = vld [vmem:[%s2074_s19 + $0x24] sm:$0xf]  ;;  %v1441_v14 = vld [vmem:[%s2074_s19 + $0x28] sm:$0xf0]  ;;  %v1496_v16 = vor.u32 %v1830_v7, %v1495_v6 }
  0x2d   : > { %v422_v15 = vld [vmem:[%s2079_s27] sm:$0xff]  ;;  %v1559_v18 = vld [vmem:[%s2074_s19 + $0x110] sm:$0xf]  ;;  %v1846_v19 = vld [vmem:[%s2074_s19 + $0x114] sm:$0xf0]  ;;  %v1444_v25 = vor.u32 %v1815_v13, %v1441_v14  ;;  %v1424_v27 = vor.u32 %v1812_v9, %v1423_v8  ;;  %p1613_p8 = scmp.ne.s32.totalorder %s1973_s21, 1 }
  0x2e   : > { %729 = vmatpush.bf16.msra.mxu0 %v1448_v49  ;;  %754 = vmatpush.bf16.msra.mxu2 %v1584_v51  ;;  %v1487_v17 = vld [vmem:[%s2074_s19 + $0x80] sm:$0xf]  ;;  %v1828_v20 = vld [vmem:[%s2074_s19 + $0x84] sm:$0xf0]  ;;  %v1841_v21 = vld [vmem:[%s2074_s19 + $0xf4] sm:$0xf]  ;;  %v476_v26 = vunpack.c.l.b16 %v422_v15  ;;  %v1560_v28 = vor.u32 %v1846_v19, %v1559_v18  ;;  %v477_v29 = vunpack.c.h.b16 %v422_v15 }
  0x2f   : > { %742 = vmatpush.bf16.msra.mxu1 %v1512_v54  ;;  %v1545_v22 = vld [vmem:[%s2074_s19 + $0xf8] sm:$0xf0]  ;;  %v1857_v23 = vld [vmem:[%s2074_s19 + $0x174] sm:$0xf]  ;;  %v423_v32 = vld [vmem:[%s2079_s27 + $0x8] sm:$0xf]  ;;  %v1488_v33 = vor.u32 %v1828_v20, %v1487_v17 }
  0x30   : > { %767 = vmatpush.bf16.msra.mxu3 %v1460_v60  ;;  %v1609_v24 = vld [vmem:[%s2074_s19 + $0x178] sm:$0xf0]  ;;  %v1813_v30 = vld [vmem:[%s2074_s19 + $0x14] sm:$0xf]  ;;  %v1548_v34 = vor.u32 %v1841_v21, %v1545_v22  ;;  %v1551_v35 = vld [vmem:[%s2074_s19 + $0x100] sm:$0xf]  ;;  %v2154_v42 = vpack.c.b16 %v476_v26, %v476_v26  ;;  %v478_v44 = vunpack.c.l.b16 %v423_v32  ;;  %v2156_v45 = vpack.c.b16 %v477_v29, %v477_v29 }
  0x31   : > { %v1433_v31 = vld [vmem:[%s2074_s19 + $0x18] sm:$0xf0]  ;;  %v1844_v36 = vld [vmem:[%s2074_s19 + $0x104] sm:$0xf0]  ;;  %v1612_v37 = vor.u32 %v1857_v23, %v1609_v24  ;;  %v1839_v38 = vld [vmem:[%s2074_s19 + $0xe4] sm:$0xf] }
  0x32   : > { %730 = vmatpush.bf16.msra.mxu0 %v1440_v61  ;;  %755 = vmatpush.bf16.msra.mxu2 %v1576_v63  ;;  %v1537_v39 = vld [vmem:[%s2074_s19 + $0xe8] sm:$0xf0]  ;;  %v1855_v40 = vld [vmem:[%s2074_s19 + $0x164] sm:$0xf]  ;;  %v1436_v43 = vor.u32 %v1813_v30, %v1433_v31  ;;  %v1552_v46 = vor.u32 %v1844_v36, %v1551_v35  ;;  %v1837_v51 = vld [vmem:[%s2074_s19 + $0xd4] sm:$0xf]  ;;  %v2165_v55 = vpack.c.b16 %v478_v44, %v478_v44 }
  0x33   : > { %743 = vmatpush.bf16.msra.mxu1 %v1504_v2  ;;  %v1601_v41 = vld [vmem:[%s2074_s19 + $0x168] sm:$0xf0]  ;;  %v1811_v47 = vld [vmem:[%s2074_s19 + $0x4] sm:$0xf]  ;;  %v1540_v49 = vor.u32 %v1839_v38, %v1537_v39  ;;  %v1529_v52 = vld [vmem:[%s2074_s19 + $0xd8] sm:$0xf0] }
  0x34   : > { %768 = vmatpush.bf16.msra.mxu3 %v1452_v10  ;;  %v1425_v48 = vld [vmem:[%s2074_s19 + $0x8] sm:$0xf0]  ;;  %v1604_v50 = vor.u32 %v1855_v40, %v1601_v41  ;;  %v1853_v53 = vld [vmem:[%s2074_s19 + $0x154] sm:$0xf]  ;;  %v1593_v54 = vld [vmem:[%s2074_s19 + $0x158] sm:$0xf0]  ;;  %v1532_v57 = vor.u32 %v1837_v51, %v1529_v52 }
  0x35   : > { %v1428_v56 = vor.u32 %v1811_v47, %v1425_v48  ;;  %v1596_v58 = vor.u32 %v1853_v53, %v1593_v54  ;;  %v1835_v59 = vld [vmem:[%s2074_s19 + $0xc4] sm:$0xf]  ;;  %v1521_v60 = vld [vmem:[%s2074_s19 + $0xc8] sm:$0xf0]  ;;  %v1833_v1 = vld [vmem:[%s2074_s19 + $0xb4] sm:$0xf] }
  0x36   : > { %731 = vmatpush.bf16.msra.mxu0 %v1432_v11  ;;  %756 = vmatpush.bf16.msra.mxu2 %v1568_v12  ;;  %v1851_v61 = vld [vmem:[%s2074_s19 + $0x144] sm:$0xf]  ;;  %v1585_v62 = vld [vmem:[%s2074_s19 + $0x148] sm:$0xf0]  ;;  %v1524_v63 = vor.u32 %v1835_v59, %v1521_v60  ;;  %v1513_v2 = vld [vmem:[%s2074_s19 + $0xb8] sm:$0xf0] }
  0x37   : > { %744 = vmatpush.bf16.msra.mxu1 %v1496_v16  ;;  %v1588_v0 = vor.u32 %v1851_v61, %v1585_v62  ;;  %v1849_v3 = vld [vmem:[%s2074_s19 + $0x134] sm:$0xf]  ;;  %v1577_v4 = vld [vmem:[%s2074_s19 + $0x138] sm:$0xf0]  ;;  %v1516_v5 = vor.u32 %v1833_v1, %v1513_v2  ;;  %v1831_v7 = vld [vmem:[%s2074_s19 + $0xa4] sm:$0xf] }
  0x38   : > { %769 = vmatpush.bf16.msra.mxu3 %v1444_v25  ;;  %v1580_v6 = vor.u32 %v1849_v3, %v1577_v4  ;;  %v1505_v8 = vld [vmem:[%s2074_s19 + $0xa8] sm:$0xf0]  ;;  %v1847_v9 = vld [vmem:[%s2074_s19 + $0x124] sm:$0xf]  ;;  %v1829_v13 = vld [vmem:[%s2074_s19 + $0x94] sm:$0xf] }
  0x39   : > { %v1569_v10 = vld [vmem:[%s2074_s19 + $0x128] sm:$0xf0]  ;;  %v1508_v11 = vor.u32 %v1831_v7, %v1505_v8  ;;  %v1497_v14 = vld [vmem:[%s2074_s19 + $0x98] sm:$0xf0]  ;;  %v1845_v15 = vld [vmem:[%s2074_s19 + $0x114] sm:$0xf] }
  0x3a   : > { %732 = vmatpush.bf16.msra.mxu0 %v1424_v27  ;;  %757 = vmatpush.bf16.msra.mxu2 %v1560_v28  ;;  %v1572_v12 = vor.u32 %v1847_v9, %v1569_v10  ;;  %v1561_v16 = vld [vmem:[%s2074_s19 + $0x118] sm:$0xf0]  ;;  %v1500_v17 = vor.u32 %v1829_v13, %v1497_v14  ;;  %v1827_v19 = vld [vmem:[%s2074_s19 + $0x84] sm:$0xf]  ;;  %v1489_v20 = vld [vmem:[%s2074_s19 + $0x88] sm:$0xf0] }
  0x3b   : > { %745 = vmatpush.bf16.msra.mxu1 %v1488_v33  ;;  %v1564_v18 = vor.u32 %v1845_v15, %v1561_v16  ;;  %v1843_v21 = vld [vmem:[%s2074_s19 + $0x104] sm:$0xf]  ;;  %v1553_v22 = vld [vmem:[%s2074_s19 + $0x108] sm:$0xf0]  ;;  %v1492_v23 = vor.u32 %v1827_v19, %v1489_v20 }
  0x3c   : > { %770 = vmatpush.bf16.msra.mxu3 %v1436_v43  ;;  %v1556_v24 = vor.u32 %v1843_v21, %v1553_v22  ;;  %v424_v30 = vld [vmem:[#allocation2] sm:$0xff]  ;;  %v425_v40 = vld [vmem:[#allocation2 + $0x8] sm:$0xff] }
  0x3d   : > { %733 = vmatmul.bf16.vlgmr.msra.gmra.mxu0 %v2154_v42 }
  0x3e   : > { %777 = vmatpush.bf16.msrb.mxu0 %v1548_v34  ;;  %746 = vmatmul.bf16.vlgmr.msra.gmra.mxu1 %v2156_v45 }
  0x3f   : > { %790 = vmatpush.bf16.msrb.mxu1 %v1612_v37  ;;  %758 = vmatpush.bf16.msra.mxu2 %v1552_v46 }
  0x40   : > { %771 = vmatpush.bf16.msra.mxu3 %v1428_v56 }
  0x42   : > { %778 = vmatpush.bf16.msrb.mxu0 %v1540_v49  ;;  %759 = vmatmul.bf16.vlgmr.msra.gmra.mxu2 %v2165_v55 }
  0x43   : > { %791 = vmatpush.bf16.msrb.mxu1 %v1604_v50  ;;  %772 = vmatmul.bf16.vlgmr.msra.gmra.mxu3 %v2154_v42 }
  0x46   : > { %779 = vmatpush.bf16.msrb.mxu0 %v1532_v57 }
  0x47   : > { %792 = vmatpush.bf16.msrb.mxu1 %v1596_v58 }
  0x4a   : > { %780 = vmatpush.bf16.msrb.mxu0 %v1524_v63 }
  0x4b   : > { %793 = vmatpush.bf16.msrb.mxu1 %v1588_v0 }
  0x4e   : > { %781 = vmatpush.bf16.msrb.mxu0 %v1516_v5 }
  0x4f   : > { %794 = vmatpush.bf16.msrb.mxu1 %v1580_v6 }
  0x52   : > { %782 = vmatpush.bf16.msrb.mxu0 %v1508_v11 }
  0x53   : > { %795 = vmatpush.bf16.msrb.mxu1 %v1572_v12 }
  0x56   : > { %783 = vmatpush.bf16.msrb.mxu0 %v1500_v17 }
  0x57   : > { %796 = vmatpush.bf16.msrb.mxu1 %v1564_v18 }
  0x5a   : > { %784 = vmatpush.bf16.msrb.mxu0 %v1492_v23 }
  0x5b   : > { %797 = vmatpush.bf16.msrb.mxu1 %v1556_v24 }
  0x5d   : > { %785 = vmatmul.bf16.vlgmr.msrb.gmra.mxu0 %v2156_v45 }
  0x5e   : > { %798 = vmatmul.bf16.vlgmr.msrb.gmra.mxu1 %v2165_v55 }
  0xba   : > { %v734_v25 = vpop.f32.mrf.mxu0 }
  0xbb   : > { %v747_v26 = vpop.f32.mrf.mxu1 }
  0xbc   : > { %v748_v27 = vadd.f32 %v747_v26, %v734_v25 }
  0xc2   : > { %v736_v28 = vpop.f32.mrf.mxu0 }
  0xc3   : > { %v749_v29 = vpop.f32.mrf.mxu1 }
  0xc5   : > { %v760_v31 = vpop.f32.mrf.mxu2 }
  0xc6   : > { %v761_v32 = vadd.f32 %v760_v31, %v748_v27  ;;  %v773_v34 = vpop.f32.mrf.mxu3 }
  0xc8   : > { %v803_v33 = vadd.f32 %v761_v32, %v424_v30 }
  0xca   : > { %805 = vst [vmem:[#allocation2] sm:$0xff] %v803_v33 }
  0xcd   : > { %v762_v35 = vpop.f32.mrf.mxu2 }
  0xce   : > { %v775_v36 = vpop.f32.mrf.mxu3 }
  0xda   : > { %v786_v37 = vpop.f32.mrf.mxu0 }
  0xdb   : > { %v787_v38 = vadd.f32 %v786_v37, %v773_v34  ;;  %v799_v39 = vpop.f32.mrf.mxu1 }
  0xdd   : > { %v800_v41 = vadd.f32 %v799_v39, %v787_v38 }
  0xdf   : > { %v804_v43 = vadd.f32 %v800_v41, %v425_v40  ;;  %810 = sbr.rel (%p1613_p8) target bundleno = 429 (0x1ad), region = 48 }
  0xe1   : > { %806 = vst [vmem:[#allocation2 + $0x8] sm:$0xff] %v804_v43 }
  0xe2   : > { %v788_v44 = vpop.f32.mrf.mxu0 }
  0xe3   : > { %v801_v46 = vpop.f32.mrf.mxu1 }
  0xe4   : > { %v1672_v47 = vld [vmem:[%s2514_s3 + $0x70] sm:$0xf]  ;;  %v1874_v48 = vld [vmem:[%s2514_s3 + $0x74] sm:$0xf0]  ;;  %v1664_v52 = vld [vmem:[%s2514_s3 + $0x60] sm:$0xf] }
  0xe5   : > { %v1736_v49 = vld [vmem:[%s2514_s3 + $0xf0] sm:$0xf]  ;;  %v1673_v50 = vor.u32 %v1874_v48, %v1672_v47  ;;  %v1890_v51 = vld [vmem:[%s2514_s3 + $0xf4] sm:$0xf0]  ;;  %v1872_v53 = vld [vmem:[%s2514_s3 + $0x64] sm:$0xf0] }
  0xe6   : > { %v1737_v54 = vor.u32 %v1890_v51, %v1736_v49  ;;  %v1728_v56 = vld [vmem:[%s2514_s3 + $0xe0] sm:$0xf]  ;;  %v1888_v57 = vld [vmem:[%s2514_s3 + $0xe4] sm:$0xf0]  ;;  %v1665_v58 = vor.u32 %v1872_v53, %v1664_v52  ;;  %v1656_v59 = vld [vmem:[%s2514_s3 + $0x50] sm:$0xf] }
  0xe7   : > { %1105 = vmatpush.bf16.msra.mxu0 %v1673_v50  ;;  %v1729_v60 = vor.u32 %v1888_v57, %v1728_v56  ;;  %v1870_v61 = vld [vmem:[%s2514_s3 + $0x54] sm:$0xf0]  ;;  %v1800_v62 = vld [vmem:[%s2514_s3 + $0x170] sm:$0xf]  ;;  %v1792_v3 = vld [vmem:[%s2514_s3 + $0x160] sm:$0xf] }
  0xe8   : > { %1118 = vmatpush.bf16.msra.mxu1 %v1737_v54  ;;  %v1906_v63 = vld [vmem:[%s2514_s3 + $0x174] sm:$0xf0]  ;;  %v1720_v0 = vld [vmem:[%s2514_s3 + $0xd0] sm:$0xf]  ;;  %v1904_v4 = vld [vmem:[%s2514_s3 + $0x164] sm:$0xf0]  ;;  %v1657_v6 = vor.u32 %v1870_v61, %v1656_v59 }
  0xe9   : > { %v1886_v1 = vld [vmem:[%s2514_s3 + $0xd4] sm:$0xf0]  ;;  %v1801_v2 = vor.u32 %v1906_v63, %v1800_v62  ;;  %v1873_v5 = vld [vmem:[%s2514_s3 + $0x74] sm:$0xf]  ;;  %v1648_v7 = vld [vmem:[%s2514_s3 + $0x40] sm:$0xf]  ;;  %v1793_v9 = vor.u32 %v1904_v4, %v1792_v3 }
  0xea   : > { %v1868_v8 = vld [vmem:[%s2514_s3 + $0x44] sm:$0xf0]  ;;  %v1674_v10 = vld [vmem:[%s2514_s3 + $0x78] sm:$0xf0]  ;;  %v1721_v11 = vor.u32 %v1886_v1, %v1720_v0  ;;  %v1712_v12 = vld [vmem:[%s2514_s3 + $0xc0] sm:$0xf] }
  0xeb   : > { %1106 = vmatpush.bf16.msra.mxu0 %v1665_v58  ;;  %1131 = vmatpush.bf16.msra.mxu2 %v1801_v2  ;;  %v1884_v13 = vld [vmem:[%s2514_s3 + $0xc4] sm:$0xf0]  ;;  %v1677_v14 = vor.u32 %v1873_v5, %v1674_v10  ;;  %v1784_v15 = vld [vmem:[%s2514_s3 + $0x150] sm:$0xf]  ;;  %v1902_v16 = vld [vmem:[%s2514_s3 + $0x154] sm:$0xf0]  ;;  %v1649_v20 = vor.u32 %v1868_v8, %v1648_v7 }
  0xec   : > { %1119 = vmatpush.bf16.msra.mxu1 %v1729_v60  ;;  %v1871_v17 = vld [vmem:[%s2514_s3 + $0x64] sm:$0xf]  ;;  %v1666_v18 = vld [vmem:[%s2514_s3 + $0x68] sm:$0xf0]  ;;  %v1640_v21 = vld [vmem:[%s2514_s3 + $0x30] sm:$0xf]  ;;  %v1785_v23 = vor.u32 %v1902_v16, %v1784_v15  ;;  %v1713_v25 = vor.u32 %v1884_v13, %v1712_v12 }
  0xed   : > { %1144 = vmatpush.bf16.msra.mxu3 %v1677_v14  ;;  %v1669_v19 = vor.u32 %v1871_v17, %v1666_v18  ;;  %v1866_v22 = vld [vmem:[%s2514_s3 + $0x34] sm:$0xf0]  ;;  %v1776_v24 = vld [vmem:[%s2514_s3 + $0x140] sm:$0xf]  ;;  %v1900_v26 = vld [vmem:[%s2514_s3 + $0x144] sm:$0xf0] }
  0xee   : > { %v1869_v27 = vld [vmem:[%s2514_s3 + $0x54] sm:$0xf]  ;;  %v1658_v28 = vld [vmem:[%s2514_s3 + $0x58] sm:$0xf0]  ;;  %v1704_v29 = vld [vmem:[%s2514_s3 + $0xb0] sm:$0xf]  ;;  %v1641_v32 = vor.u32 %v1866_v22, %v1640_v21  ;;  %v1777_v34 = vor.u32 %v1900_v26, %v1776_v24 }
  0xef   : > { %1107 = vmatpush.bf16.msra.mxu0 %v1657_v6  ;;  %1132 = vmatpush.bf16.msra.mxu2 %v1793_v9  ;;  %v1882_v30 = vld [vmem:[%s2514_s3 + $0xb4] sm:$0xf0]  ;;  %v1661_v31 = vor.u32 %v1869_v27, %v1658_v28  ;;  %v1632_v33 = vld [vmem:[%s2514_s3 + $0x20] sm:$0xf]  ;;  %v1867_v35 = vld [vmem:[%s2514_s3 + $0x44] sm:$0xf] }
  0xf0   : > { %1120 = vmatpush.bf16.msra.mxu1 %v1721_v11  ;;  %v1650_v36 = vld [vmem:[%s2514_s3 + $0x48] sm:$0xf0]  ;;  %v1705_v37 = vor.u32 %v1882_v30, %v1704_v29  ;;  %v1864_v38 = vld [vmem:[%s2514_s3 + $0x24] sm:$0xf0]  ;;  %v1768_v39 = vld [vmem:[%s2514_s3 + $0x130] sm:$0xf] }
  0xf1   : > { %1145 = vmatpush.bf16.msra.mxu3 %v1669_v19  ;;  %v1898_v40 = vld [vmem:[%s2514_s3 + $0x134] sm:$0xf0]  ;;  %v1696_v41 = vld [vmem:[%s2514_s3 + $0xa0] sm:$0xf]  ;;  %v1880_v43 = vld [vmem:[%s2514_s3 + $0xa4] sm:$0xf0]  ;;  %v1653_v44 = vor.u32 %v1867_v35, %v1650_v36  ;;  %v1633_v46 = vor.u32 %v1864_v38, %v1632_v33 }
  0xf2   : > { %v1624_v47 = vld [vmem:[%s2514_s3 + $0x10] sm:$0xf]  ;;  %v1769_v48 = vor.u32 %v1898_v40, %v1768_v39  ;;  %v1865_v49 = vld [vmem:[%s2514_s3 + $0x34] sm:$0xf]  ;;  %v1642_v50 = vld [vmem:[%s2514_s3 + $0x38] sm:$0xf0]  ;;  %v1697_v51 = vor.u32 %v1880_v43, %v1696_v41 }
  0xf3   : > { %1108 = vmatpush.bf16.msra.mxu0 %v1649_v20  ;;  %1133 = vmatpush.bf16.msra.mxu2 %v1785_v23  ;;  %v1862_v52 = vld [vmem:[%s2514_s3 + $0x14] sm:$0xf0]  ;;  %v1760_v53 = vld [vmem:[%s2514_s3 + $0x120] sm:$0xf]  ;;  %v1896_v54 = vld [vmem:[%s2514_s3 + $0x124] sm:$0xf0]  ;;  %v1645_v59 = vor.u32 %v1865_v49, %v1642_v50 }
  0xf4   : > { %1121 = vmatpush.bf16.msra.mxu1 %v1713_v25  ;;  %v1688_v56 = vld [vmem:[%s2514_s3 + $0x90] sm:$0xf]  ;;  %v1878_v57 = vld [vmem:[%s2514_s3 + $0x94] sm:$0xf0]  ;;  %v1616_v58 = vld [vmem:[%s2514_s3] sm:$0xf]  ;;  %v1625_v60 = vor.u32 %v1862_v52, %v1624_v47  ;;  %v1761_v62 = vor.u32 %v1896_v54, %v1760_v53 }
  0xf5   : > { %1146 = vmatpush.bf16.msra.mxu3 %v1661_v31  ;;  %v1860_v61 = vld [vmem:[%s2514_s3 + $0x4] sm:$0xf0]  ;;  %v1863_v63 = vld [vmem:[%s2514_s3 + $0x24] sm:$0xf]  ;;  %v1634_v0 = vld [vmem:[%s2514_s3 + $0x28] sm:$0xf0]  ;;  %v1689_v1 = vor.u32 %v1878_v57, %v1688_v56 }
  0xf6   : > { %v1680_v2 = vld [vmem:[%s2514_s3 + $0x80] sm:$0xf]  ;;  %v1752_v3 = vld [vmem:[%s2514_s3 + $0x110] sm:$0xf]  ;;  %v1894_v4 = vld [vmem:[%s2514_s3 + $0x114] sm:$0xf0]  ;;  %v1637_v10 = vor.u32 %v1863_v63, %v1634_v0  ;;  %v1617_v11 = vor.u32 %v1860_v61, %v1616_v58 }
  0xf7   : > { %1109 = vmatpush.bf16.msra.mxu0 %v1641_v32  ;;  %1134 = vmatpush.bf16.msra.mxu2 %v1777_v34  ;;  %v1876_v5 = vld [vmem:[%s2514_s3 + $0x84] sm:$0xf0]  ;;  %v1889_v6 = vld [vmem:[%s2514_s3 + $0xf4] sm:$0xf]  ;;  %v1738_v7 = vld [vmem:[%s2514_s3 + $0xf8] sm:$0xf0]  ;;  %v1753_v12 = vor.u32 %v1894_v4, %v1752_v3 }
  0xf8   : > { %1122 = vmatpush.bf16.msra.mxu1 %v1705_v37  ;;  %v1905_v8 = vld [vmem:[%s2514_s3 + $0x174] sm:$0xf]  ;;  %v1802_v9 = vld [vmem:[%s2514_s3 + $0x178] sm:$0xf0]  ;;  %v1681_v15 = vor.u32 %v1876_v5, %v1680_v2  ;;  %v1741_v16 = vor.u32 %v1889_v6, %v1738_v7  ;;  %v1744_v17 = vld [vmem:[%s2514_s3 + $0x100] sm:$0xf] }
  0xf9   : > { %1147 = vmatpush.bf16.msra.mxu3 %v1653_v44  ;;  %v1861_v13 = vld [vmem:[%s2514_s3 + $0x14] sm:$0xf]  ;;  %v1626_v14 = vld [vmem:[%s2514_s3 + $0x18] sm:$0xf0]  ;;  %v1892_v18 = vld [vmem:[%s2514_s3 + $0x104] sm:$0xf0]  ;;  %v1805_v19 = vor.u32 %v1905_v8, %v1802_v9 }
  0xfa   : > { %v1887_v20 = vld [vmem:[%s2514_s3 + $0xe4] sm:$0xf]  ;;  %v1730_v21 = vld [vmem:[%s2514_s3 + $0xe8] sm:$0xf0]  ;;  %v1629_v24 = vor.u32 %v1861_v13, %v1626_v14  ;;  %v1745_v25 = vor.u32 %v1892_v18, %v1744_v17  ;;  %v1885_v30 = vld [vmem:[%s2514_s3 + $0xd4] sm:$0xf] }
  0xfb   : > { %1110 = vmatpush.bf16.msra.mxu0 %v1633_v46  ;;  %1135 = vmatpush.bf16.msra.mxu2 %v1769_v48  ;;  %v1903_v22 = vld [vmem:[%s2514_s3 + $0x164] sm:$0xf]  ;;  %v1794_v23 = vld [vmem:[%s2514_s3 + $0x168] sm:$0xf0]  ;;  %v1733_v28 = vor.u32 %v1887_v20, %v1730_v21  ;;  %v1722_v31 = vld [vmem:[%s2514_s3 + $0xd8] sm:$0xf0] }
  0xfc   : > { %1123 = vmatpush.bf16.msra.mxu1 %v1697_v51  ;;  %v1859_v26 = vld [vmem:[%s2514_s3 + $0x4] sm:$0xf]  ;;  %v1618_v27 = vld [vmem:[%s2514_s3 + $0x8] sm:$0xf0]  ;;  %v1797_v29 = vor.u32 %v1903_v22, %v1794_v23  ;;  %v1901_v32 = vld [vmem:[%s2514_s3 + $0x154] sm:$0xf]  ;;  %v1725_v35 = vor.u32 %v1885_v30, %v1722_v31 }
  0xfd   : > { %1148 = vmatpush.bf16.msra.mxu3 %v1645_v59  ;;  %v1786_v33 = vld [vmem:[%s2514_s3 + $0x158] sm:$0xf0]  ;;  %v1621_v34 = vor.u32 %v1859_v26, %v1618_v27  ;;  %v1883_v37 = vld [vmem:[%s2514_s3 + $0xc4] sm:$0xf]  ;;  %v1714_v38 = vld [vmem:[%s2514_s3 + $0xc8] sm:$0xf0] }
  0xfe   : > { %v1789_v36 = vor.u32 %v1901_v32, %v1786_v33  ;;  %v1899_v39 = vld [vmem:[%s2514_s3 + $0x144] sm:$0xf]  ;;  %v1778_v40 = vld [vmem:[%s2514_s3 + $0x148] sm:$0xf0]  ;;  %v1717_v41 = vor.u32 %v1883_v37, %v1714_v38  ;;  %v1881_v44 = vld [vmem:[%s2514_s3 + $0xb4] sm:$0xf] }
  0xff   : > { %1111 = vmatpush.bf16.msra.mxu0 %v1625_v60  ;;  %1136 = vmatpush.bf16.msra.mxu2 %v1761_v62  ;;  %v1781_v43 = vor.u32 %v1899_v39, %v1778_v40  ;;  %v1706_v46 = vld [vmem:[%s2514_s3 + $0xb8] sm:$0xf0]  ;;  %v1897_v47 = vld [vmem:[%s2514_s3 + $0x134] sm:$0xf]  ;;  %v1879_v50 = vld [vmem:[%s2514_s3 + $0xa4] sm:$0xf] }
 0x100   : > { %1124 = vmatpush.bf16.msra.mxu1 %v1689_v1  ;;  %v1770_v48 = vld [vmem:[%s2514_s3 + $0x138] sm:$0xf0]  ;;  %v1709_v49 = vor.u32 %v1881_v44, %v1706_v46  ;;  %v1698_v51 = vld [vmem:[%s2514_s3 + $0xa8] sm:$0xf0]  ;;  %v1895_v52 = vld [vmem:[%s2514_s3 + $0x124] sm:$0xf] }
 0x101   : > { %1149 = vmatpush.bf16.msra.mxu3 %v1637_v10  ;;  %v1762_v53 = vld [vmem:[%s2514_s3 + $0x128] sm:$0xf0]  ;;  %v1701_v54 = vor.u32 %v1879_v50, %v1698_v51  ;;  %v1877_v57 = vld [vmem:[%s2514_s3 + $0x94] sm:$0xf]  ;;  %v1690_v58 = vld [vmem:[%s2514_s3 + $0x98] sm:$0xf0] }
 0x102   : > { %v1765_v56 = vor.u32 %v1895_v52, %v1762_v53  ;;  %v1893_v59 = vld [vmem:[%s2514_s3 + $0x114] sm:$0xf]  ;;  %v1754_v60 = vld [vmem:[%s2514_s3 + $0x118] sm:$0xf0]  ;;  %v1693_v61 = vor.u32 %v1877_v57, %v1690_v58  ;;  %v1875_v63 = vld [vmem:[%s2514_s3 + $0x84] sm:$0xf] }
 0x103   : > { %1112 = vmatpush.bf16.msra.mxu0 %v1617_v11  ;;  %1137 = vmatpush.bf16.msra.mxu2 %v1753_v12  ;;  %v1757_v62 = vor.u32 %v1893_v59, %v1754_v60  ;;  %v1682_v0 = vld [vmem:[%s2514_s3 + $0x88] sm:$0xf0]  ;;  %v1891_v1 = vld [vmem:[%s2514_s3 + $0x104] sm:$0xf]  ;;  %v859_v11 = vld [vmem:[%s2515_s4] sm:$0x3] }
 0x104   : > { %1125 = vmatpush.bf16.msra.mxu1 %v1681_v15  ;;  %v1746_v2 = vld [vmem:[%s2514_s3 + $0x108] sm:$0xf0]  ;;  %v1685_v3 = vor.u32 %v1875_v63, %v1682_v0  ;;  %v861_v13 = vperm.slane %v859_v11, 0  ;;  %v862_v15 = vperm.slane %v859_v11, 1 }
 0x105   : > { %1150 = vmatpush.bf16.msra.mxu3 %v1629_v24  ;;  %v1749_v4 = vor.u32 %v1891_v1, %v1746_v2 }
 0x106   : > { %1113 = vmatmul.bf16.vlgmr.msra.gmra.mxu0 %v2154_v42 }
 0x107   : > { %1157 = vmatpush.bf16.msrb.mxu0 %v1741_v16  ;;  %1126 = vmatmul.bf16.vlgmr.msra.gmra.mxu1 %v2156_v45 }
 0x108   : > { %1170 = vmatpush.bf16.msrb.mxu1 %v1805_v19  ;;  %1138 = vmatpush.bf16.msra.mxu2 %v1745_v25 }
 0x109   : > { %1151 = vmatpush.bf16.msra.mxu3 %v1621_v34 }
 0x10b   : > { %1158 = vmatpush.bf16.msrb.mxu0 %v1733_v28  ;;  %1139 = vmatmul.bf16.vlgmr.msra.gmra.mxu2 %v2165_v55 }
 0x10c   : > { %1171 = vmatpush.bf16.msrb.mxu1 %v1797_v29  ;;  %1152 = vmatmul.bf16.vlgmr.msra.gmra.mxu3 %v2154_v42  ;;  %v1773_v42 = vor.u32 %v1897_v47, %v1770_v48 }
 0x10f   : > { %1159 = vmatpush.bf16.msrb.mxu0 %v1725_v35 }
 0x110   : > { %1172 = vmatpush.bf16.msrb.mxu1 %v1789_v36 }
 0x113   : > { %1160 = vmatpush.bf16.msrb.mxu0 %v1717_v41 }
 0x114   : > { %1173 = vmatpush.bf16.msrb.mxu1 %v1781_v43 }
 0x117   : > { %1161 = vmatpush.bf16.msrb.mxu0 %v1709_v49 }
 0x118   : > { %1174 = vmatpush.bf16.msrb.mxu1 %v1773_v42 }
 0x11b   : > { %1162 = vmatpush.bf16.msrb.mxu0 %v1701_v54 }
 0x11c   : > { %1175 = vmatpush.bf16.msrb.mxu1 %v1765_v56 }
 0x11f   : > { %1163 = vmatpush.bf16.msrb.mxu0 %v1693_v61 }
 0x120   : > { %1176 = vmatpush.bf16.msrb.mxu1 %v1757_v62 }
 0x123   : > { %1164 = vmatpush.bf16.msrb.mxu0 %v1685_v3 }
 0x124   : > { %1177 = vmatpush.bf16.msrb.mxu1 %v1749_v4 }
 0x126   : > { %1165 = vmatmul.bf16.vlgmr.msrb.gmra.mxu0 %v2156_v45 }
 0x127   : > { %1178 = vmatmul.bf16.vlgmr.msrb.gmra.mxu1 %v2165_v55 }
 0x183   : > { %v1114_v5 = vpop.f32.mrf.mxu0 }
 0x184   : > { %v1127_v6 = vpop.f32.mrf.mxu1  ;;  %v1115_v16 = vadd.f32 %v1114_v5, %v861_v13 }
 0x186   : > { %v1128_v45 = vadd.f32 %v1127_v6, %v1115_v16 }
 0x18b   : > { %v1116_v7 = vpop.f32.mrf.mxu0 }
 0x18c   : > { %v1129_v8 = vpop.f32.mrf.mxu1 }
 0x18e   : > { %v1140_v9 = vpop.f32.mrf.mxu2 }
 0x18f   : > { %v1153_v10 = vpop.f32.mrf.mxu3  ;;  %v1141_v20 = vadd.f32 %v1140_v9, %v1128_v45 }
 0x190   : > { %v1154_v17 = vadd.f32 %v1153_v10, %v862_v15 }
 0x196   : > { %v1142_v12 = vpop.f32.mrf.mxu2 }
 0x197   : > { %v1155_v14 = vpop.f32.mrf.mxu3 }
 0x1a3   : > { %v1166_v18 = vpop.f32.mrf.mxu0 }
 0x1a4   : > { %v1167_v55 = vadd.f32 %v1166_v18, %v1154_v17  ;;  %v1179_v19 = vpop.f32.mrf.mxu1 }
 0x1a6   : > { %v1180_v21 = vadd.f32 %v1179_v19, %v1167_v55 }
 0x1a8   : > { %v1183_v22 = vpack.c.bf16 %v1180_v21, %v1141_v20 }
 0x1aa   : > { %1184 = vst [vmem:[%s2069_s14] sm:$0xff] %v1183_v22 }
 0x1ab   : > { %v1168_v23 = vpop.f32.mrf.mxu0 }
 0x1ac   : > { %v1181_v24 = vpop.f32.mrf.mxu1 }
 0x1ad PF: > { %p1806_p9 = scmp.ne.s32.totalorder %s1973_s21, 2 }
 0x1af   : > { %1188 = sbr.rel (%p1806_p9) target bundleno = 447 (0x1bf), region = 52 }
 0x1b4   : > { %v1189_v25 = vld [vmem:[#allocation2] sm:$0xff]  ;;  %v1190_v26 = vld [vmem:[#allocation2 + $0x8] sm:$0xff] }
 0x1b5   : > { %v1191_v27 = vld [vmem:[%s2513_s2] sm:$0x3] }
 0x1b6   : > { %v1193_v28 = vperm.slane %v1191_v27, 0  ;;  %v1194_v29 = vperm.slane %v1191_v27, 1 }
 0x1b8   : > { %v1197_v30 = vadd.f32 %v1193_v28, %v1189_v25  ;;  %v1198_v31 = vadd.f32 %v1194_v29, %v1190_v26 }
 0x1ba   : > { %v1199_v32 = vmax.f32 %v1197_v30, 0.0  ;;  %v1200_v33 = vmax.f32 %v1198_v31, 0.0 }
 0x1bc   : > { %v1201_v34 = vpack.c.bf16 %v1200_v33, %v1199_v32 }
 0x1be   : > { %1202 = vst [vmem:[%s2064_s10] sm:$0xff] %v1201_v34 }
 0x1bf PF: > { %s17_s25 = sadd.s32 1, %s1989_s25   ;;  %s2519_s14 = sld [smem:[#allocation3_spill]] }
 0x1c0   : > { %p14_p10 = scmp.ge.s32.totalorder %s17_s25, 8   ;;  %s2520_s21 = smov %s1981_s23 }
 0x1c1   : > { %s2521_s22 = smov %s1985_s24  ;;  %s2522_s23 = smov %s2525_s26 }
 0x1c2   :  { %16 = sbr.rel (!%p14_p10) target bundleno = 3 (0x3), region = 106 }
 0x1c5   : > { %s2523_s24 = smov %s2519_s14 }

// kernel: _lambda_.17
= control target key start
LH: loop header
LB: loop body
LE: loop exit
PB: predicated region body
PF: predicated region fallthrough
CT: control target
= control target key end

     0   :  { %s1876_s15 = smov 0   ;;  %s1878_s16 = smov 0   ;;  %s2171_s0 = inlined_call_operand.vmem [shape: bf16[2,3,8,768], index: 0, kind: input, shape index: {}]   ;;  %s2172_s1 = inlined_call_operand.vmem [shape: bf16[3,768,256], index: 1, kind: input, shape index: {}]   ;;  %s2173_s2 = inlined_call_operand.vmem [shape: f32[1,256], index: 2, kind: input, shape index: {}]   ;;  %s2174_s3 = inlined_call_operand.vmem [shape: bf16[2,8,256], index: 3, kind: input, shape index: {}]   ;;  %s2175_s4 = inlined_call_operand.vmem [shape: bf16[2,8,256], index: 4, kind: output, shape index: {}]  }
   0x1   :  { %s1880_s17 = smov 0   ;;  %s1882_s18 = smov 0  }
   0x2   :  { %s1884_s19 = smov 0  }
   0x3 LB: > { %s26_s20 = sadd.s32 1, %s1840_s17  ;;  %s33_s21 = sadd.s32 1, %s1844_s18  ;;  %s1848_s19 = sphi %s1884_s19, %s14_s19   ;;  %s1844_s18 = sphi %s1882_s18, %s2179_s18   ;;  %s1840_s17 = sphi %s1880_s17, %s2178_s17   ;;  %s1836_s16 = sphi %s1878_s16, %s2177_s16   ;;  %s1832_s15 = sphi %s1876_s15, %s2176_s15  }
   0x4   : > { %p27_p0 = scmp.ge.s32.totalorder %s26_s20, 3  ;;  %p1273_p1 = scmp.ge.s32.totalorder %s1848_s19, 1 }
   0x5   : > { %p233_p2 = scmp.lt.s32.totalorder %s1848_s19, 7 }
   0x6   : > { %s2181_s20 = smov (%p27_p0, %s26_s20), 0  ;;  %s2183_s21 = smov (!%p27_p0, %s33_s21), %s1844_s18 }
   0x7   : > { %p234_p3 = pnand %p1273_p1, %p233_p2  ;;  %p35_p4 = scmp.ge.s32.totalorder %s2183_s21, 2 }
   0x8   : > { %p289_p5 = scmp.lt.s32.totalorder (!%p234_p3), %s1836_s16, 1  ;;  %p291_p6 = scmp.lt.s32.totalorder (!%p234_p3), %s1832_s15, 2 }
   0x9   : > { %s2185_s21 = smov (%p35_p4, %s2183_s21), 0  ;;  %237 = sbr.rel (%p234_p3) target bundleno = 282 (0x11a), region = 36 }
   0xa   : > { %p1280_p7 = scmp.ne.s32.totalorder (!%p234_p3), %s1832_s15, 0 }
   0xe   : > { %s2187_s16 = smov (!%p289_p5, %s1836_s16), 1 }
   0xf   : > { %s292_s22 = scalar_select %p291_p6, %s1832_s15, 2 }
  0x10   : > { %s1767_s23 = smul.u32 18, %s2187_s16  ;;  %s1668_s24 = sshll.u32 %s2187_s16, 3 }
  0x11   : > { %s1766_s25 = smul.u32 6, %s292_s22  ;;  %s1913_s28 = scalar_lea.vmem %s2174_s3, %s1668_s24 }
  0x12   : > { %s1768_s29 = smul.u32 768, %s292_s22  ;;  %s1918_s6 = scalar_lea.vmem %s2175_s4, %s1668_s24 }
  0x13   : > { %s295_s7 = sadd.s32 %s1767_s23, %s1766_s25  ;;  %336 = sbr.rel (%p1280_p7) target bundleno = 27 (0x1b), region = 40 }
  0x14   : > { %s1274_s8 = sshll.u32 %s295_s7, 2  ;;  %s1923_s11 = scalar_lea.vmem %s2172_s1, %s1768_s29 }
  0x15   : > { %s1928_s14 = scalar_lea.vmem %s2171_s0, %s1274_s8 }
  0x18   : > { %v1850_v0 = vmov 0.0  }
  0x19   : > { %337 = vst [vmem:[#allocation2] sm:$0xff] %v1850_v0 }
  0x1a   : > { %338 = vst [vmem:[#allocation2 + $0x8] sm:$0xff] %v1850_v0 }
  0x1b PF: > { %v1339_v1 = vld [vmem:[%s1923_s11 + $0x70] sm:$0xf]  ;;  %v1685_v2 = vld [vmem:[%s1923_s11 + $0x74] sm:$0xf0]  ;;  %v1331_v12 = vld [vmem:[%s1923_s11 + $0x60] sm:$0xf] }
  0x1c   : > { %v1403_v3 = vld [vmem:[%s1923_s11 + $0xf0] sm:$0xf]  ;;  %v1340_v4 = vor.u32 %v1685_v2, %v1339_v1  ;;  %v1701_v5 = vld [vmem:[%s1923_s11 + $0xf4] sm:$0xf0]  ;;  %v1683_v14 = vld [vmem:[%s1923_s11 + $0x64] sm:$0xf0] }
  0x1d   : > { %v1467_v6 = vld [vmem:[%s1923_s11 + $0x170] sm:$0xf]  ;;  %v1717_v7 = vld [vmem:[%s1923_s11 + $0x174] sm:$0xf0]  ;;  %v1404_v8 = vor.u32 %v1701_v5, %v1403_v3  ;;  %v1395_v15 = vld [vmem:[%s1923_s11 + $0xe0] sm:$0xf]  ;;  %v1332_v17 = vor.u32 %v1683_v14, %v1331_v12 }
  0x1e   : > { %v1468_v9 = vor.u32 %v1717_v7, %v1467_v6  ;;  %v1531_v10 = vld [vmem:[%s1923_s11 + $0x1f0] sm:$0xf]  ;;  %v1733_v11 = vld [vmem:[%s1923_s11 + $0x1f4] sm:$0xf0]  ;;  %941 = vmatpush.bf16.msra.mxu0 %v1340_v4  ;;  %v1699_v16 = vld [vmem:[%s1923_s11 + $0xe4] sm:$0xf0] }
  0x1f   : > { %v1532_v13 = vor.u32 %v1733_v11, %v1531_v10  ;;  %954 = vmatpush.bf16.msra.mxu1 %v1404_v8  ;;  %v1396_v18 = vor.u32 %v1699_v16, %v1395_v15  ;;  %v1459_v19 = vld [vmem:[%s1923_s11 + $0x160] sm:$0xf]  ;;  %v1715_v20 = vld [vmem:[%s1923_s11 + $0x164] sm:$0xf0]  ;;  %v1323_v24 = vld [vmem:[%s1923_s11 + $0x50] sm:$0xf] }
  0x20   : > { %967 = vmatpush.bf16.msra.mxu2 %v1468_v9  ;;  %v1523_v21 = vld [vmem:[%s1923_s11 + $0x1e0] sm:$0xf]  ;;  %v1460_v22 = vor.u32 %v1715_v20, %v1459_v19  ;;  %v1731_v23 = vld [vmem:[%s1923_s11 + $0x1e4] sm:$0xf0]  ;;  %v1681_v25 = vld [vmem:[%s1923_s11 + $0x54] sm:$0xf0] }
  0x21   : > { %980 = vmatpush.bf16.msra.mxu3 %v1532_v13  ;;  %v1524_v26 = vor.u32 %v1731_v23, %v1523_v21  ;;  %v1387_v27 = vld [vmem:[%s1923_s11 + $0xd0] sm:$0xf]  ;;  %v1697_v28 = vld [vmem:[%s1923_s11 + $0xd4] sm:$0xf0]  ;;  %v1324_v30 = vor.u32 %v1681_v25, %v1323_v24  ;;  %v1315_v36 = vld [vmem:[%s1923_s11 + $0x40] sm:$0xf] }
  0x22   : > { %v1451_v29 = vld [vmem:[%s1923_s11 + $0x150] sm:$0xf]  ;;  %942 = vmatpush.bf16.msra.mxu0 %v1332_v17  ;;  %v1713_v31 = vld [vmem:[%s1923_s11 + $0x154] sm:$0xf0]  ;;  %v1388_v34 = vor.u32 %v1697_v28, %v1387_v27  ;;  %v1679_v37 = vld [vmem:[%s1923_s11 + $0x44] sm:$0xf0] }
  0x23   : > { %v1515_v32 = vld [vmem:[%s1923_s11 + $0x1d0] sm:$0xf]  ;;  %v1729_v33 = vld [vmem:[%s1923_s11 + $0x1d4] sm:$0xf0]  ;;  %955 = vmatpush.bf16.msra.mxu1 %v1396_v18  ;;  %v1452_v35 = vor.u32 %v1713_v31, %v1451_v29  ;;  %v1379_v38 = vld [vmem:[%s1923_s11 + $0xc0] sm:$0xf]  ;;  %v1316_v45 = vor.u32 %v1679_v37, %v1315_v36 }
  0x24   : > { %968 = vmatpush.bf16.msra.mxu2 %v1460_v22  ;;  %v1516_v39 = vor.u32 %v1729_v33, %v1515_v32  ;;  %v1695_v40 = vld [vmem:[%s1923_s11 + $0xc4] sm:$0xf0]  ;;  %v1443_v41 = vld [vmem:[%s1923_s11 + $0x140] sm:$0xf]  ;;  %v1307_v48 = vld [vmem:[%s1923_s11 + $0x30] sm:$0xf] }
  0x25   : > { %981 = vmatpush.bf16.msra.mxu3 %v1524_v26  ;;  %v1711_v42 = vld [vmem:[%s1923_s11 + $0x144] sm:$0xf0]  ;;  %v1507_v43 = vld [vmem:[%s1923_s11 + $0x1c0] sm:$0xf]  ;;  %v1380_v46 = vor.u32 %v1695_v40, %v1379_v38  ;;  %v1677_v49 = vld [vmem:[%s1923_s11 + $0x34] sm:$0xf0] }
  0x26   : > { %v1727_v44 = vld [vmem:[%s1923_s11 + $0x1c4] sm:$0xf0]  ;;  %943 = vmatpush.bf16.msra.mxu0 %v1324_v30  ;;  %v1444_v47 = vor.u32 %v1711_v42, %v1443_v41  ;;  %v1371_v50 = vld [vmem:[%s1923_s11 + $0xb0] sm:$0xf]  ;;  %v1693_v52 = vld [vmem:[%s1923_s11 + $0xb4] sm:$0xf0]  ;;  %v1308_v57 = vor.u32 %v1677_v49, %v1307_v48 }
  0x27   : > { %956 = vmatpush.bf16.msra.mxu1 %v1388_v34  ;;  %v1508_v51 = vor.u32 %v1727_v44, %v1507_v43  ;;  %v1435_v53 = vld [vmem:[%s1923_s11 + $0x130] sm:$0xf]  ;;  %v1709_v54 = vld [vmem:[%s1923_s11 + $0x134] sm:$0xf0]  ;;  %v1372_v58 = vor.u32 %v1693_v52, %v1371_v50  ;;  %v1299_v60 = vld [vmem:[%s1923_s11 + $0x20] sm:$0xf] }
  0x28   : > { %969 = vmatpush.bf16.msra.mxu2 %v1452_v35  ;;  %v1499_v55 = vld [vmem:[%s1923_s11 + $0x1b0] sm:$0xf]  ;;  %v1725_v56 = vld [vmem:[%s1923_s11 + $0x1b4] sm:$0xf0]  ;;  %v1436_v59 = vor.u32 %v1709_v54, %v1435_v53  ;;  %v1675_v61 = vld [vmem:[%s1923_s11 + $0x24] sm:$0xf0] }
  0x29   : > { %982 = vmatpush.bf16.msra.mxu3 %v1516_v39  ;;  %v1363_v62 = vld [vmem:[%s1923_s11 + $0xa0] sm:$0xf]  ;;  %v1500_v63 = vor.u32 %v1725_v56, %v1499_v55  ;;  %v1691_v0 = vld [vmem:[%s1923_s11 + $0xa4] sm:$0xf0]  ;;  %v1300_v5 = vor.u32 %v1675_v61, %v1299_v60  ;;  %v1291_v8 = vld [vmem:[%s1923_s11 + $0x10] sm:$0xf] }
  0x2a   : > { %944 = vmatpush.bf16.msra.mxu0 %v1316_v45  ;;  %v1427_v1 = vld [vmem:[%s1923_s11 + $0x120] sm:$0xf]  ;;  %v1707_v2 = vld [vmem:[%s1923_s11 + $0x124] sm:$0xf0]  ;;  %v1364_v6 = vor.u32 %v1691_v0, %v1363_v62  ;;  %v1673_v9 = vld [vmem:[%s1923_s11 + $0x14] sm:$0xf0] }
  0x2b   : > { %957 = vmatpush.bf16.msra.mxu1 %v1380_v46  ;;  %v1491_v3 = vld [vmem:[%s1923_s11 + $0x1a0] sm:$0xf]  ;;  %v1723_v4 = vld [vmem:[%s1923_s11 + $0x1a4] sm:$0xf0]  ;;  %v1428_v7 = vor.u32 %v1707_v2, %v1427_v1  ;;  %v1355_v10 = vld [vmem:[%s1923_s11 + $0x90] sm:$0xf]  ;;  %v1292_v17 = vor.u32 %v1673_v9, %v1291_v8 }
  0x2c   : > { %970 = vmatpush.bf16.msra.mxu2 %v1444_v47  ;;  %v1492_v11 = vor.u32 %v1723_v4, %v1491_v3  ;;  %v1689_v12 = vld [vmem:[%s1923_s11 + $0x94] sm:$0xf0]  ;;  %v1419_v13 = vld [vmem:[%s1923_s11 + $0x110] sm:$0xf]  ;;  %v1283_v18 = vld [vmem:[%s1923_s11] sm:$0xf] }
  0x2d   : > { %983 = vmatpush.bf16.msra.mxu3 %v1508_v51  ;;  %v1705_v14 = vld [vmem:[%s1923_s11 + $0x114] sm:$0xf0]  ;;  %v1483_v15 = vld [vmem:[%s1923_s11 + $0x190] sm:$0xf]  ;;  %v1671_v19 = vld [vmem:[%s1923_s11 + $0x4] sm:$0xf0]  ;;  %v1356_v20 = vor.u32 %v1689_v12, %v1355_v10 }
  0x2e   : > { %945 = vmatpush.bf16.msra.mxu0 %v1308_v57  ;;  %v1721_v16 = vld [vmem:[%s1923_s11 + $0x194] sm:$0xf0]  ;;  %v1420_v21 = vor.u32 %v1705_v14, %v1419_v13  ;;  %v1347_v22 = vld [vmem:[%s1923_s11 + $0x80] sm:$0xf]  ;;  %v1687_v23 = vld [vmem:[%s1923_s11 + $0x84] sm:$0xf0]  ;;  %v1284_v32 = vor.u32 %v1671_v19, %v1283_v18 }
  0x2f   : > { %958 = vmatpush.bf16.msra.mxu1 %v1372_v58  ;;  %v1411_v24 = vld [vmem:[%s1923_s11 + $0x100] sm:$0xf]  ;;  %v1484_v25 = vor.u32 %v1721_v16, %v1483_v15  ;;  %v1703_v26 = vld [vmem:[%s1923_s11 + $0x104] sm:$0xf0]  ;;  %v1595_v29 = vld [vmem:[%s1923_s11 + $0x270] sm:$0xf]  ;;  %v1348_v36 = vor.u32 %v1687_v23, %v1347_v22 }
  0x30   : > { %971 = vmatpush.bf16.msra.mxu2 %v1436_v59  ;;  %v1475_v27 = vld [vmem:[%s1923_s11 + $0x180] sm:$0xf]  ;;  %v1719_v28 = vld [vmem:[%s1923_s11 + $0x184] sm:$0xf0]  ;;  %v1749_v30 = vld [vmem:[%s1923_s11 + $0x274] sm:$0xf0]  ;;  %v1412_v37 = vor.u32 %v1703_v26, %v1411_v24 }
  0x31   : > { %984 = vmatpush.bf16.msra.mxu3 %v1500_v63  ;;  %v1659_v31 = vld [vmem:[%s1923_s11 + $0x2f0] sm:$0xf]  ;;  %v1765_v33 = vld [vmem:[%s1923_s11 + $0x2f4] sm:$0xf0]  ;;  %v1684_v34 = vld [vmem:[%s1923_s11 + $0x74] sm:$0xf]  ;;  %v1476_v40 = vor.u32 %v1719_v28, %v1475_v27  ;;  %v1596_v41 = vor.u32 %v1749_v30, %v1595_v29 }
  0x32   : > { %946 = vmatpush.bf16.msra.mxu0 %v1300_v5  ;;  %v1341_v35 = vld [vmem:[%s1923_s11 + $0x78] sm:$0xf0]  ;;  %v1700_v38 = vld [vmem:[%s1923_s11 + $0xf4] sm:$0xf]  ;;  %v1660_v42 = vor.u32 %v1765_v33, %v1659_v31  ;;  %v1587_v44 = vld [vmem:[%s1923_s11 + $0x260] sm:$0xf] }
  0x33   : > { %959 = vmatpush.bf16.msra.mxu1 %v1364_v6  ;;  %v1405_v39 = vld [vmem:[%s1923_s11 + $0xf8] sm:$0xf0]  ;;  %v1344_v43 = vor.u32 %v1684_v34, %v1341_v35  ;;  %v1747_v45 = vld [vmem:[%s1923_s11 + $0x264] sm:$0xf0]  ;;  %v1651_v46 = vld [vmem:[%s1923_s11 + $0x2e0] sm:$0xf] }
  0x34   : > { %972 = vmatpush.bf16.msra.mxu2 %v1428_v7  ;;  %v1408_v47 = vor.u32 %v1700_v38, %v1405_v39  ;;  %v1763_v48 = vld [vmem:[%s1923_s11 + $0x2e4] sm:$0xf0]  ;;  %v1682_v49 = vld [vmem:[%s1923_s11 + $0x64] sm:$0xf]  ;;  %v1333_v50 = vld [vmem:[%s1923_s11 + $0x68] sm:$0xf0]  ;;  %v1588_v53 = vor.u32 %v1747_v45, %v1587_v44 }
  0x35   : > { %985 = vmatpush.bf16.msra.mxu3 %v1492_v11  ;;  %v1698_v51 = vld [vmem:[%s1923_s11 + $0xe4] sm:$0xf]  ;;  %v1397_v52 = vld [vmem:[%s1923_s11 + $0xe8] sm:$0xf0]  ;;  %v1579_v54 = vld [vmem:[%s1923_s11 + $0x250] sm:$0xf]  ;;  %v1652_v56 = vor.u32 %v1763_v48, %v1651_v46  ;;  %v1336_v57 = vor.u32 %v1682_v49, %v1333_v50 }
  0x36   : > { %947 = vmatpush.bf16.msra.mxu0 %v1292_v17  ;;  %v1745_v55 = vld [vmem:[%s1923_s11 + $0x254] sm:$0xf0]  ;;  %v1643_v58 = vld [vmem:[%s1923_s11 + $0x2d0] sm:$0xf]  ;;  %v339_v60 = vld [vmem:[%s1928_s14] sm:$0xff]  ;;  %v1400_v61 = vor.u32 %v1698_v51, %v1397_v52  ;;  %p1665_p8 = scmp.ne.s32.totalorder %s1832_s15, 2 }
  0x37   : > { %960 = vmatpush.bf16.msra.mxu1 %v1356_v20  ;;  %v1761_v59 = vld [vmem:[%s1923_s11 + $0x2d4] sm:$0xf0]  ;;  %v1680_v62 = vld [vmem:[%s1923_s11 + $0x54] sm:$0xf]  ;;  %v1325_v63 = vld [vmem:[%s1923_s11 + $0x58] sm:$0xf0]  ;;  %v443_v0 = vunpack.c.l.b16 %v339_v60  ;;  %v444_v2 = vunpack.c.h.b16 %v339_v60  ;;  %v1580_v7 = vor.u32 %v1745_v55, %v1579_v54 }
  0x38   : > { %973 = vmatpush.bf16.msra.mxu2 %v1420_v21  ;;  %v340_v1 = vld [vmem:[%s1928_s14 + $0x8] sm:$0xff]  ;;  %v1696_v3 = vld [vmem:[%s1923_s11 + $0xd4] sm:$0xf]  ;;  %v1389_v4 = vld [vmem:[%s1923_s11 + $0xd8] sm:$0xf0]  ;;  %v1644_v8 = vor.u32 %v1761_v59, %v1643_v58  ;;  %v1328_v11 = vor.u32 %v1680_v62, %v1325_v63 }
  0x39   : > { %986 = vmatpush.bf16.msra.mxu3 %v1484_v25  ;;  %v445_v5 = vunpack.c.l.b16 %v340_v1  ;;  %v446_v6 = vunpack.c.h.b16 %v340_v1  ;;  %v2021_v9 = vpack.c.b16 %v443_v0, %v443_v0  ;;  %v2023_v10 = vpack.c.b16 %v444_v2, %v444_v2  ;;  %v1571_v12 = vld [vmem:[%s1923_s11 + $0x240] sm:$0xf]  ;;  %v1743_v13 = vld [vmem:[%s1923_s11 + $0x244] sm:$0xf0]  ;;  %v1678_v19 = vld [vmem:[%s1923_s11 + $0x44] sm:$0xf] }
  0x3a   : > { %948 = vmatpush.bf16.msra.mxu0 %v1284_v32  ;;  %v1635_v14 = vld [vmem:[%s1923_s11 + $0x2c0] sm:$0xf]  ;;  %v1392_v17 = vor.u32 %v1696_v3, %v1389_v4  ;;  %v1759_v18 = vld [vmem:[%s1923_s11 + $0x2c4] sm:$0xf0]  ;;  %v1317_v20 = vld [vmem:[%s1923_s11 + $0x48] sm:$0xf0]  ;;  %v1572_v23 = vor.u32 %v1743_v13, %v1571_v12 }
  0x3b   : > { %961 = vmatpush.bf16.msra.mxu1 %v1348_v36  ;;  %v2028_v15 = vpack.c.b16 %v445_v5, %v445_v5  ;;  %v2030_v16 = vpack.c.b16 %v446_v6, %v446_v6  ;;  %v1694_v21 = vld [vmem:[%s1923_s11 + $0xc4] sm:$0xf]  ;;  %v1381_v22 = vld [vmem:[%s1923_s11 + $0xc8] sm:$0xf0]  ;;  %v1636_v24 = vor.u32 %v1759_v18, %v1635_v14  ;;  %v1320_v25 = vor.u32 %v1678_v19, %v1317_v20  ;;  %v1563_v26 = vld [vmem:[%s1923_s11 + $0x230] sm:$0xf] }
  0x3c   : > { %974 = vmatpush.bf16.msra.mxu2 %v1412_v37  ;;  %v1741_v27 = vld [vmem:[%s1923_s11 + $0x234] sm:$0xf0]  ;;  %v1627_v28 = vld [vmem:[%s1923_s11 + $0x2b0] sm:$0xf]  ;;  %v1384_v29 = vor.u32 %v1694_v21, %v1381_v22  ;;  %v1676_v31 = vld [vmem:[%s1923_s11 + $0x34] sm:$0xf] }
  0x3d   : > { %987 = vmatpush.bf16.msra.mxu3 %v1476_v40  ;;  %949 = vmatmul.bf16.vlgmr.msra.gmra.mxu0 %v2021_v9  ;;  %v1757_v30 = vld [vmem:[%s1923_s11 + $0x2b4] sm:$0xf0]  ;;  %v1309_v32 = vld [vmem:[%s1923_s11 + $0x38] sm:$0xf0]  ;;  %v1692_v33 = vld [vmem:[%s1923_s11 + $0xb4] sm:$0xf]  ;;  %v1564_v35 = vor.u32 %v1741_v27, %v1563_v26 }
  0x3e   : > { %993 = vmatpush.bf16.msrb.mxu0 %v1596_v41  ;;  %962 = vmatmul.bf16.vlgmr.msra.gmra.mxu1 %v2023_v10  ;;  %v1373_v34 = vld [vmem:[%s1923_s11 + $0xb8] sm:$0xf0]  ;;  %v1628_v36 = vor.u32 %v1757_v30, %v1627_v28  ;;  %v1312_v37 = vor.u32 %v1676_v31, %v1309_v32  ;;  %v1555_v38 = vld [vmem:[%s1923_s11 + $0x220] sm:$0xf]  ;;  %v1739_v39 = vld [vmem:[%s1923_s11 + $0x224] sm:$0xf0] }
  0x3f   : > { %1006 = vmatpush.bf16.msrb.mxu1 %v1660_v42  ;;  %975 = vmatmul.bf16.vlgmr.msra.gmra.mxu2 %v2028_v15  ;;  %v1619_v40 = vld [vmem:[%s1923_s11 + $0x2a0] sm:$0xf]  ;;  %v1376_v41 = vor.u32 %v1692_v33, %v1373_v34  ;;  %v1755_v42 = vld [vmem:[%s1923_s11 + $0x2a4] sm:$0xf0]  ;;  %v1301_v44 = vld [vmem:[%s1923_s11 + $0x28] sm:$0xf0] }
  0x40   : > { %1019 = vmatpush.bf16.msrb.mxu2 %v1344_v43  ;;  %988 = vmatmul.bf16.vlgmr.msra.gmra.mxu3 %v2030_v16  ;;  %v1674_v43 = vld [vmem:[%s1923_s11 + $0x24] sm:$0xf]  ;;  %v1365_v46 = vld [vmem:[%s1923_s11 + $0xa8] sm:$0xf0]  ;;  %v1620_v48 = vor.u32 %v1755_v42, %v1619_v40  ;;  %v1547_v50 = vld [vmem:[%s1923_s11 + $0x210] sm:$0xf] }
  0x41   : > { %1032 = vmatpush.bf16.msrb.mxu3 %v1408_v47  ;;  %v1690_v45 = vld [vmem:[%s1923_s11 + $0xa4] sm:$0xf]  ;;  %v1556_v47 = vor.u32 %v1739_v39, %v1555_v38  ;;  %v1304_v49 = vor.u32 %v1674_v43, %v1301_v44  ;;  %v1737_v51 = vld [vmem:[%s1923_s11 + $0x214] sm:$0xf0]  ;;  %v1611_v52 = vld [vmem:[%s1923_s11 + $0x290] sm:$0xf] }
  0x42   : > { %994 = vmatpush.bf16.msrb.mxu0 %v1588_v53  ;;  %v1368_v53 = vor.u32 %v1690_v45, %v1365_v46  ;;  %v1753_v54 = vld [vmem:[%s1923_s11 + $0x294] sm:$0xf0]  ;;  %v1672_v55 = vld [vmem:[%s1923_s11 + $0x14] sm:$0xf]  ;;  %v1357_v58 = vld [vmem:[%s1923_s11 + $0x98] sm:$0xf0]  ;;  %v1548_v59 = vor.u32 %v1737_v51, %v1547_v50 }
  0x43   : > { %1007 = vmatpush.bf16.msrb.mxu1 %v1652_v56  ;;  %v1293_v56 = vld [vmem:[%s1923_s11 + $0x18] sm:$0xf0]  ;;  %v1539_v60 = vld [vmem:[%s1923_s11 + $0x200] sm:$0xf]  ;;  %v1612_v63 = vor.u32 %v1753_v54, %v1611_v52  ;;  %v1751_v1 = vld [vmem:[%s1923_s11 + $0x284] sm:$0xf0] }
  0x44   : > { %1020 = vmatpush.bf16.msrb.mxu2 %v1336_v57  ;;  %v1688_v57 = vld [vmem:[%s1923_s11 + $0x94] sm:$0xf]  ;;  %v1603_v62 = vld [vmem:[%s1923_s11 + $0x280] sm:$0xf]  ;;  %v1296_v0 = vor.u32 %v1672_v55, %v1293_v56  ;;  %v1670_v2 = vld [vmem:[%s1923_s11 + $0x4] sm:$0xf] }
  0x45   : > { %1033 = vmatpush.bf16.msrb.mxu3 %v1400_v61  ;;  %v1735_v61 = vld [vmem:[%s1923_s11 + $0x204] sm:$0xf0]  ;;  %v341_v3 = vld [vmem:[%s1928_s14 + $0x10] sm:$0xff]  ;;  %v1360_v4 = vor.u32 %v1688_v57, %v1357_v58  ;;  %v1285_v5 = vld [vmem:[%s1923_s11 + $0x8] sm:$0xf0]  ;;  %v1604_v20 = vor.u32 %v1751_v1, %v1603_v62 }
  0x46   : > { %995 = vmatpush.bf16.msrb.mxu0 %v1580_v7  ;;  %v1686_v6 = vld [vmem:[%s1923_s11 + $0x84] sm:$0xf]  ;;  %v1349_v7 = vld [vmem:[%s1923_s11 + $0x88] sm:$0xf0]  ;;  %v1732_v12 = vld [vmem:[%s1923_s11 + $0x1f4] sm:$0xf]  ;;  %v1540_v13 = vor.u32 %v1735_v61, %v1539_v60  ;;  %v447_v19 = vunpack.c.l.b16 %v341_v3  ;;  %v1288_v21 = vor.u32 %v1670_v2, %v1285_v5  ;;  %v448_v26 = vunpack.c.h.b16 %v341_v3 }
  0x47   : > { %1008 = vmatpush.bf16.msrb.mxu1 %v1644_v8  ;;  %v1716_v8 = vld [vmem:[%s1923_s11 + $0x174] sm:$0xf]  ;;  %v1533_v14 = vld [vmem:[%s1923_s11 + $0x1f8] sm:$0xf0]  ;;  %v1461_v30 = vld [vmem:[%s1923_s11 + $0x168] sm:$0xf0] }
  0x48   : > { %1021 = vmatpush.bf16.msrb.mxu2 %v1328_v11  ;;  %v1469_v11 = vld [vmem:[%s1923_s11 + $0x178] sm:$0xf0]  ;;  %v1764_v22 = vld [vmem:[%s1923_s11 + $0x2f4] sm:$0xf]  ;;  %v1536_v27 = vor.u32 %v1732_v12, %v1533_v14  ;;  %v1730_v31 = vld [vmem:[%s1923_s11 + $0x1e4] sm:$0xf]  ;;  %v2092_v40 = vpack.c.b16 %v448_v26, %v448_v26 }
  0x49   : > { %1034 = vmatpush.bf16.msrb.mxu3 %v1392_v17  ;;  %v1748_v17 = vld [vmem:[%s1923_s11 + $0x274] sm:$0xf]  ;;  %v1597_v18 = vld [vmem:[%s1923_s11 + $0x278] sm:$0xf0]  ;;  %v1525_v33 = vld [vmem:[%s1923_s11 + $0x1e8] sm:$0xf0] }
  0x4a   : > { %996 = vmatpush.bf16.msrb.mxu0 %v1572_v23  ;;  %v1661_v23 = vld [vmem:[%s1923_s11 + $0x2f8] sm:$0xf0]  ;;  %v1600_v28 = vor.u32 %v1748_v17, %v1597_v18  ;;  %v1746_v34 = vld [vmem:[%s1923_s11 + $0x264] sm:$0xf]  ;;  %v1653_v38 = vld [vmem:[%s1923_s11 + $0x2e8] sm:$0xf0] }
  0x4b   : > { %1009 = vmatpush.bf16.msrb.mxu1 %v1636_v24  ;;  %v1352_v24 = vor.u32 %v1686_v6, %v1349_v7  ;;  %v1664_v32 = vor.u32 %v1764_v22, %v1661_v23  ;;  %v1712_v43 = vld [vmem:[%s1923_s11 + $0x154] sm:$0xf]  ;;  %v1453_v44 = vld [vmem:[%s1923_s11 + $0x158] sm:$0xf0]  ;;  %v1710_v55 = vld [vmem:[%s1923_s11 + $0x144] sm:$0xf] }
  0x4c   : > { %1022 = vmatpush.bf16.msrb.mxu2 %v1320_v25  ;;  %v1472_v25 = vor.u32 %v1716_v8, %v1469_v11  ;;  %v1728_v45 = vld [vmem:[%s1923_s11 + $0x1d4] sm:$0xf]  ;;  %v1645_v51 = vld [vmem:[%s1923_s11 + $0x2d8] sm:$0xf0]  ;;  %v1456_v52 = vor.u32 %v1712_v43, %v1453_v44  ;;  %v1726_v56 = vld [vmem:[%s1923_s11 + $0x1c4] sm:$0xf] }
  0x4d   : > { %1035 = vmatpush.bf16.msrb.mxu3 %v1384_v29  ;;  %v1714_v29 = vld [vmem:[%s1923_s11 + $0x164] sm:$0xf]  ;;  %v1760_v50 = vld [vmem:[%s1923_s11 + $0x2d4] sm:$0xf]  ;;  %v1509_v57 = vld [vmem:[%s1923_s11 + $0x1c8] sm:$0xf0] }
  0x4e   : > { %997 = vmatpush.bf16.msrb.mxu0 %v1564_v35  ;;  %v1589_v35 = vld [vmem:[%s1923_s11 + $0x268] sm:$0xf0]  ;;  %v1464_v39 = vor.u32 %v1714_v29, %v1461_v30  ;;  %v1742_v58 = vld [vmem:[%s1923_s11 + $0x244] sm:$0xf]  ;;  %v1708_v1 = vld [vmem:[%s1923_s11 + $0x134] sm:$0xf] }
  0x4f   : > { %1010 = vmatpush.bf16.msrb.mxu1 %v1628_v36  ;;  %v2088_v36 = vpack.c.b16 %v447_v19, %v447_v19  ;;  %v1592_v42 = vor.u32 %v1746_v34, %v1589_v35  ;;  %v1758_v60 = vld [vmem:[%s1923_s11 + $0x2c4] sm:$0xf]  ;;  %v1637_v61 = vld [vmem:[%s1923_s11 + $0x2c8] sm:$0xf0]  ;;  %v1437_v2 = vld [vmem:[%s1923_s11 + $0x138] sm:$0xf0] }
  0x50   : > { %1023 = vmatpush.bf16.msrb.mxu2 %v1312_v37  ;;  %v1762_v37 = vld [vmem:[%s1923_s11 + $0x2e4] sm:$0xf]  ;;  %v1724_v3 = vld [vmem:[%s1923_s11 + $0x1b4] sm:$0xf]  ;;  %v1501_v5 = vld [vmem:[%s1923_s11 + $0x1b8] sm:$0xf0]  ;;  %v1440_v12 = vor.u32 %v1708_v1, %v1437_v2 }
  0x51   : > { %1036 = vmatpush.bf16.msrb.mxu3 %v1376_v41  ;;  %v1528_v41 = vor.u32 %v1730_v31, %v1525_v33  ;;  %v1656_v46 = vor.u32 %v1762_v37, %v1653_v38  ;;  %v1740_v6 = vld [vmem:[%s1923_s11 + $0x234] sm:$0xf]  ;;  %v1565_v7 = vld [vmem:[%s1923_s11 + $0x238] sm:$0xf0]  ;;  %v1706_v17 = vld [vmem:[%s1923_s11 + $0x124] sm:$0xf] }
  0x52   : > { %998 = vmatpush.bf16.msrb.mxu0 %v1556_v47  ;;  %v1517_v47 = vld [vmem:[%s1923_s11 + $0x1d8] sm:$0xf0]  ;;  %v1756_v8 = vld [vmem:[%s1923_s11 + $0x2b4] sm:$0xf]  ;;  %v1568_v14 = vor.u32 %v1740_v6, %v1565_v7  ;;  %v1429_v18 = vld [vmem:[%s1923_s11 + $0x128] sm:$0xf0] }
  0x53   : > { %1011 = vmatpush.bf16.msrb.mxu1 %v1620_v48  ;;  %v1744_v48 = vld [vmem:[%s1923_s11 + $0x254] sm:$0xf]  ;;  %v1629_v11 = vld [vmem:[%s1923_s11 + $0x2b8] sm:$0xf0]  ;;  %v1722_v19 = vld [vmem:[%s1923_s11 + $0x1a4] sm:$0xf]  ;;  %v1432_v26 = vor.u32 %v1706_v17, %v1429_v18 }
  0x54   : > { %1024 = vmatpush.bf16.msrb.mxu2 %v1304_v49  ;;  %v1581_v49 = vld [vmem:[%s1923_s11 + $0x258] sm:$0xf0]  ;;  %v1738_v22 = vld [vmem:[%s1923_s11 + $0x224] sm:$0xf]  ;;  %v1557_v23 = vld [vmem:[%s1923_s11 + $0x228] sm:$0xf0] }
  0x55   : > { %1037 = vmatpush.bf16.msrb.mxu3 %v1368_v53  ;;  %v1520_v53 = vor.u32 %v1728_v45, %v1517_v47  ;;  %v1584_v54 = vor.u32 %v1744_v48, %v1581_v49  ;;  %v1704_v29 = vld [vmem:[%s1923_s11 + $0x114] sm:$0xf]  ;;  %v1421_v30 = vld [vmem:[%s1923_s11 + $0x118] sm:$0xf0]  ;;  %v1702_v43 = vld [vmem:[%s1923_s11 + $0x104] sm:$0xf] }
  0x56   : > { %999 = vmatpush.bf16.msrb.mxu0 %v1548_v59  ;;  %v1573_v59 = vld [vmem:[%s1923_s11 + $0x248] sm:$0xf0]  ;;  %v1720_v31 = vld [vmem:[%s1923_s11 + $0x194] sm:$0xf]  ;;  %v1485_v33 = vld [vmem:[%s1923_s11 + $0x198] sm:$0xf0] }
  0x57   : > { %1012 = vmatpush.bf16.msrb.mxu1 %v1612_v63  ;;  %v1512_v63 = vor.u32 %v1726_v56, %v1509_v57  ;;  %v1736_v34 = vld [vmem:[%s1923_s11 + $0x214] sm:$0xf]  ;;  %v1549_v35 = vld [vmem:[%s1923_s11 + $0x218] sm:$0xf0]  ;;  %v1413_v44 = vld [vmem:[%s1923_s11 + $0x108] sm:$0xf0] }
  0x58   : > { %1025 = vmatpush.bf16.msrb.mxu2 %v1296_v0  ;;  %v1576_v0 = vor.u32 %v1742_v58, %v1573_v59  ;;  %v1752_v37 = vld [vmem:[%s1923_s11 + $0x294] sm:$0xf]  ;;  %v1613_v38 = vld [vmem:[%s1923_s11 + $0x298] sm:$0xf0]  ;;  %v1718_v45 = vld [vmem:[%s1923_s11 + $0x184] sm:$0xf] }
  0x59   : > { %1038 = vmatpush.bf16.msrb.mxu3 %v1360_v4  ;;  %v1640_v4 = vor.u32 %v1758_v60, %v1637_v61  ;;  %v1477_v47 = vld [vmem:[%s1923_s11 + $0x188] sm:$0xf0]  ;;  %v1734_v48 = vld [vmem:[%s1923_s11 + $0x204] sm:$0xf] }
  0x5a   : > { %1000 = vmatpush.bf16.msrb.mxu0 %v1540_v13  ;;  %v1504_v13 = vor.u32 %v1724_v3, %v1501_v5  ;;  %v1541_v49 = vld [vmem:[%s1923_s11 + $0x208] sm:$0xf0] }
  0x5b   : > { %1013 = vmatpush.bf16.msrb.mxu1 %v1604_v20  ;;  %v1632_v20 = vor.u32 %v1756_v8, %v1629_v11 }
  0x5c   : > { %1026 = vmatpush.bf16.msrb.mxu2 %v1288_v21  ;;  %v1493_v21 = vld [vmem:[%s1923_s11 + $0x1a8] sm:$0xf0] }
  0x5d   : > { %1039 = vmatpush.bf16.msrb.mxu3 %v1352_v24  ;;  %1001 = vmatmul.bf16.vlgmr.msrb.gmra.mxu0 %v2088_v36  ;;  %v1754_v24 = vld [vmem:[%s1923_s11 + $0x2a4] sm:$0xf] }
  0x5e   : > { %1045 = vmatpush.bf16.msra.mxu0 %v1472_v25  ;;  %1014 = vmatmul.bf16.vlgmr.msrb.gmra.mxu1 %v2092_v40  ;;  %v1621_v25 = vld [vmem:[%s1923_s11 + $0x2a8] sm:$0xf0] }
  0x5f   : > { %1058 = vmatpush.bf16.msra.mxu1 %v1536_v27  ;;  %1027 = vmatmul.bf16.vlgmr.msrb.gmra.mxu2 %v2021_v9  ;;  %v1445_v9 = vld [vmem:[%s1923_s11 + $0x148] sm:$0xf0]  ;;  %v1496_v27 = vor.u32 %v1722_v19, %v1493_v21 }
  0x60   : > { %1071 = vmatpush.bf16.msra.mxu2 %v1600_v28  ;;  %1040 = vmatmul.bf16.vlgmr.msrb.gmra.mxu3 %v2023_v10  ;;  %v1648_v10 = vor.u32 %v1760_v50, %v1645_v51  ;;  %v1448_v62 = vor.u32 %v1710_v55, %v1445_v9  ;;  %v1560_v28 = vor.u32 %v1738_v22, %v1557_v23  ;;  %v1750_v50 = vld [vmem:[%s1923_s11 + $0x284] sm:$0xf]  ;;  %v1605_v51 = vld [vmem:[%s1923_s11 + $0x288] sm:$0xf0] }
  0x61   : > { %1084 = vmatpush.bf16.msra.mxu3 %v1664_v32  ;;  %v1624_v32 = vor.u32 %v1754_v24, %v1621_v25  ;;  %v1608_v55 = vor.u32 %v1750_v50, %v1605_v51  ;;  %v343_v22 = vld [vmem:[#allocation2 + $0x8] sm:$0xff] }
  0x62   : > { %1046 = vmatpush.bf16.msra.mxu0 %v1464_v39  ;;  %v1424_v39 = vor.u32 %v1704_v29, %v1421_v30 }
  0x63   : > { %1059 = vmatpush.bf16.msra.mxu1 %v1528_v41  ;;  %v1488_v41 = vor.u32 %v1720_v31, %v1485_v33 }
  0x64   : > { %1072 = vmatpush.bf16.msra.mxu2 %v1592_v42  ;;  %v1552_v42 = vor.u32 %v1736_v34, %v1549_v35 }
  0x65   : > { %1085 = vmatpush.bf16.msra.mxu3 %v1656_v46  ;;  %v1616_v46 = vor.u32 %v1752_v37, %v1613_v38 }
  0x66   : > { %1047 = vmatpush.bf16.msra.mxu0 %v1456_v52  ;;  %v1416_v52 = vor.u32 %v1702_v43, %v1413_v44 }
  0x67   : > { %1060 = vmatpush.bf16.msra.mxu1 %v1520_v53  ;;  %v1480_v53 = vor.u32 %v1718_v45, %v1477_v47 }
  0x68   : > { %1073 = vmatpush.bf16.msra.mxu2 %v1584_v54  ;;  %v1544_v54 = vor.u32 %v1734_v48, %v1541_v49 }
  0x69   : > { %1086 = vmatpush.bf16.msra.mxu3 %v1648_v10 }
  0x6a   : > { %1048 = vmatpush.bf16.msra.mxu0 %v1448_v62 }
  0x6b   : > { %1061 = vmatpush.bf16.msra.mxu1 %v1512_v63 }
  0x6c   : > { %1074 = vmatpush.bf16.msra.mxu2 %v1576_v0 }
  0x6d   : > { %1087 = vmatpush.bf16.msra.mxu3 %v1640_v4 }
  0x6e   : > { %1049 = vmatpush.bf16.msra.mxu0 %v1440_v12 }
  0x6f   : > { %1062 = vmatpush.bf16.msra.mxu1 %v1504_v13 }
  0x70   : > { %1075 = vmatpush.bf16.msra.mxu2 %v1568_v14 }
  0x71   : > { %1088 = vmatpush.bf16.msra.mxu3 %v1632_v20 }
  0x72   : > { %1050 = vmatpush.bf16.msra.mxu0 %v1432_v26 }
  0x73   : > { %1063 = vmatpush.bf16.msra.mxu1 %v1496_v27 }
  0x74   : > { %1076 = vmatpush.bf16.msra.mxu2 %v1560_v28 }
  0x75   : > { %1089 = vmatpush.bf16.msra.mxu3 %v1624_v32 }
  0x76   : > { %1051 = vmatpush.bf16.msra.mxu0 %v1424_v39 }
  0x77   : > { %1064 = vmatpush.bf16.msra.mxu1 %v1488_v41 }
  0x78   : > { %1077 = vmatpush.bf16.msra.mxu2 %v1552_v42 }
  0x79   : > { %1090 = vmatpush.bf16.msra.mxu3 %v1616_v46 }
  0x7a   : > { %1052 = vmatpush.bf16.msra.mxu0 %v1416_v52 }
  0x7b   : > { %1065 = vmatpush.bf16.msra.mxu1 %v1480_v53 }
  0x7c   : > { %1078 = vmatpush.bf16.msra.mxu2 %v1544_v54 }
  0x7d   : > { %1091 = vmatpush.bf16.msra.mxu3 %v1608_v55  ;;  %1053 = vmatmul.bf16.vlgmr.msra.gmra.mxu0 %v2028_v15  ;;  %v342_v15 = vld [vmem:[#allocation2] sm:$0xff] }
  0x7e   : > { %1066 = vmatmul.bf16.vlgmr.msra.gmra.mxu1 %v2030_v16 }
  0x7f   : > { %1079 = vmatmul.bf16.vlgmr.msra.gmra.mxu2 %v2088_v36 }
  0x80   : > { %1092 = vmatmul.bf16.vlgmr.msra.gmra.mxu3 %v2092_v40 }
  0xba   : > { %v950_v9 = vpop.f32.mrf.mxu0 }
  0xbb   : > { %v963_v56 = vpop.f32.mrf.mxu1 }
  0xbc   : > { %v964_v60 = vadd.f32 %v963_v56, %v950_v9 }
  0xc2   : > { %v976_v10 = vpop.f32.mrf.mxu2  ;;  %v952_v58 = vpop.f32.mrf.mxu0 }
  0xc3   : > { %v989_v57 = vpop.f32.mrf.mxu3  ;;  %v965_v59 = vpop.f32.mrf.mxu1  ;;  %v977_v63 = vadd.f32 %v976_v10, %v964_v60 }
  0xc5   : > { %v990_v0 = vadd.f32 %v989_v57, %v977_v63 }
  0xca   : > { %v978_v61 = vpop.f32.mrf.mxu2 }
  0xcb   : > { %v991_v62 = vpop.f32.mrf.mxu3 }
  0xda   : > { %v1002_v1 = vpop.f32.mrf.mxu0 }
  0xdb   : > { %v1003_v2 = vadd.f32 %v1002_v1, %v990_v0  ;;  %v1015_v3 = vpop.f32.mrf.mxu1 }
  0xdd   : > { %v1016_v16 = vadd.f32 %v1015_v3, %v1003_v2 }
  0xdf   : > { %v1097_v4 = vadd.f32 %v1016_v16, %v342_v15 }
  0xe1   : > { %1099 = vst [vmem:[#allocation2] sm:$0xff] %v1097_v4 }
  0xe2   : > { %v1028_v36 = vpop.f32.mrf.mxu2  ;;  %v1004_v5 = vpop.f32.mrf.mxu0 }
  0xe3   : > { %v1041_v40 = vpop.f32.mrf.mxu3  ;;  %v1017_v6 = vpop.f32.mrf.mxu1 }
  0xe4   : > { %v1042_v11 = vadd.f32 %v1041_v40, %v1028_v36 }
  0xea   : > { %v1030_v7 = vpop.f32.mrf.mxu2 }
  0xeb   : > { %v1043_v8 = vpop.f32.mrf.mxu3 }
  0xfa   : > { %v1054_v12 = vpop.f32.mrf.mxu0 }
  0xfb   : > { %v1067_v13 = vpop.f32.mrf.mxu1  ;;  %v1055_v14 = vadd.f32 %v1054_v12, %v1042_v11 }
  0xfd   : > { %v1068_v17 = vadd.f32 %v1067_v13, %v1055_v14 }
 0x102   : > { %v1080_v18 = vpop.f32.mrf.mxu2  ;;  %v1056_v21 = vpop.f32.mrf.mxu0 }
 0x103   : > { %v1081_v19 = vadd.f32 %v1080_v18, %v1068_v17  ;;  %v1093_v20 = vpop.f32.mrf.mxu3  ;;  %v1069_v23 = vpop.f32.mrf.mxu1 }
 0x105   : > { %v1094_v24 = vadd.f32 %v1093_v20, %v1081_v19 }
 0x107   : > { %v1098_v25 = vadd.f32 %v1094_v24, %v343_v22  ;;  %1104 = sbr.rel (%p1665_p8) target bundleno = 282 (0x11a), region = 44 }
 0x109   : > { %1100 = vst [vmem:[#allocation2 + $0x8] sm:$0xff] %v1098_v25 }
 0x10a   : > { %v1082_v26 = vpop.f32.mrf.mxu2 }
 0x10b   : > { %v1095_v27 = vpop.f32.mrf.mxu3 }
 0x10c   : > { %v1105_v28 = vld [vmem:[#allocation2] sm:$0xff] }
 0x10d   : > { %v1107_v30 = vld [vmem:[%s2173_s2] sm:$0x3] }
 0x10e   : > { %v1109_v31 = vperm.slane %v1107_v30, 0  ;;  %v1110_v32 = vperm.slane %v1107_v30, 1  ;;  %v1115_v33 = vld [vmem:[%s1913_s28] sm:$0xff] }
 0x10f   : > { %v1116_v34 = vunpack.c.l.bf16 %v1115_v33  ;;  %v1117_v35 = vunpack.c.h.bf16 %v1115_v33 }
 0x110   : > { %v1106_v29 = vld [vmem:[#allocation2 + $0x8] sm:$0xff]  ;;  %v1113_v37 = vadd.f32 %v1109_v31, %v1105_v28 }
 0x111   : > { %v1114_v38 = vadd.f32 %v1110_v32, %v1106_v29 }
 0x112   : > { %v1118_v39 = vadd.f32 %v1116_v34, %v1113_v37 }
 0x113   : > { %v1119_v41 = vadd.f32 %v1117_v35, %v1114_v38 }
 0x114   : > { %v1120_v42 = vmax.f32 %v1118_v39, 0.0 }
 0x115   : > { %v1121_v43 = vmax.f32 %v1119_v41, 0.0 }
 0x117   : > { %v1122_v44 = vpack.c.bf16 %v1121_v43, %v1120_v42 }
 0x119   : > { %1123 = vst [vmem:[%s1918_s6] sm:$0xff] %v1122_v44 }
 0x11a PF: > { %s14_s19 = sadd.s32 1, %s1848_s19   ;;  %s2176_s15 = smov %s1840_s17 }
 0x11b   : > { %p11_p9 = scmp.ge.s32.totalorder %s14_s19, 8   ;;  %s2177_s16 = smov %s1844_s18 }
 0x11c   : > { %s2178_s17 = smov %s2181_s20  ;;  %s2179_s18 = smov %s2185_s21 }
 0x11d   :  { %13 = sbr.rel (!%p11_p9) target bundleno = 3 (0x3), region = 83 }

// kernel: _lambda_.18
= control target key start
LH: loop header
LB: loop body
LE: loop exit
PB: predicated region body
PF: predicated region fallthrough
CT: control target
= control target key end

     0   :  { %s5185_s0 = inlined_call_operand.vmem [shape: bf16[2,3,8,768], index: 0, kind: input, shape index: {}]   ;;  %s5186_s1 = inlined_call_operand.vmem [shape: bf16[3,768,512], index: 1, kind: input, shape index: {}]   ;;  %s5187_s2 = inlined_call_operand.vmem [shape: f32[1,512], index: 2, kind: input, shape index: {}, may-alias: {2,4}]   ;;  %s5188_s3 = inlined_call_operand.vmem [shape: bf16[768,512], index: 3, kind: input, shape index: {}]   ;;  %s5189_s4 = inlined_call_operand.vmem [shape: f32[1,512], index: 4, kind: input, shape index: {}, may-alias: {2,4}]   ;;  %s5190_s5 = inlined_call_operand.vmem [shape: bf16[2,8,512], index: 5, kind: output, shape index: {0}]   ;;  %s5191_s6 = inlined_call_operand.vmem [shape: bf16[2,8,512], index: 6, kind: output, shape index: {1}]  }
   0x1   :  { %5198 = sst [smem:[#allocation13_spill]] %s5186_s1 }
   0x2   :  { %5199 = sst [smem:[#allocation14_spill]] %s5188_s3 }
   0x3   :  { %s4176_s21 = smov 0   ;;  %s4178_s22 = smov 0  }
   0x4   :  { %s4180_s23 = smov 0   ;;  %s4182_s24 = smov 0  }
   0x5   :  { %s4184_s25 = smov 0   ;;  %s4186_s26 = smov 0  }
   0x6   :  { %s4188_s27 = smov 0   ;;  %s4190_s28 = smov 0  }
   0x7   :  { %s4192_s29 = smov 0   ;;  %s4194_s30 = smov 0  }
   0x8   :  { %s4196_s7 = smov 0  }
   0x9 LB: > { %5200 = sst [smem:[#allocation5_spill]] %s4110_s24  ;;  %s29_s8 = sadd.s32 1, %s4126_s28  ;;  %s4138_s7 = sphi %s4196_s7, %s17_s7   ;;  %s4134_s30 = sphi %s4194_s30, %s5219_s30   ;;  %s4130_s29 = sphi %s4192_s29, %s5218_s29   ;;  %s4126_s28 = sphi %s4190_s28, %s5217_s28   ;;  %s4122_s27 = sphi %s4188_s27, %s5216_s27   ;;  %s4118_s26 = sphi %s4186_s26, %s5215_s26   ;;  %s4114_s25 = sphi %s4184_s25, %s5214_s25   ;;  %s4110_s24 = sphi %s4182_s24, %s5213_s24   ;;  %s4106_s23 = sphi %s4180_s23, %s5212_s23   ;;  %s4102_s22 = sphi %s4178_s22, %s5221_s22   ;;  %s4098_s21 = sphi %s4176_s21, %s5220_s21  }
   0xa   : > { %5201 = sst [smem:[#allocation6_spill]] %s4126_s28  ;;  %s32_s9 = sadd.s32 1, %s4130_s29 }
   0xb   : > { %5202 = sst [smem:[#allocation7_spill]] %s4130_s29  ;;  %p30_p0 = scmp.ge.s32.totalorder %s29_s8, 3 }
   0xc   : > { %5203 = sst [smem:[#allocation8_spill]] %s4134_s30  ;;  %s36_s10 = sadd.s32 1, %s4134_s30 }
   0xd   : > { %s73_s11 = sadd.s32 1, %s4110_s24  ;;  %p80_p1 = scmp.ne.s32.totalorder %s4110_s24, %s4106_s23 }
   0xe   : > { %s5223_s8 = smov (%p30_p0, %s29_s8), 0  ;;  %s5225_s9 = smov (!%p30_p0, %s32_s9), %s4130_s29 }
   0xf   : > { %5204 = sst [smem:[#allocation9_spill]] %s5223_s8  ;;  %s68_s12 = ssub.s32 %s4126_s28, %s5223_s8 }
  0x10   : > { %p81_p2 = scmp.eq.s32.totalorder %s4138_s7, 0  ;;  %p34_p3 = scmp.ge.s32.totalorder %s5225_s9, 2 }
  0x11   : > { %s125_s13 = sadd.s32 1, %s4102_s22  ;;  %p132_p5 = scmp.ne.s32.totalorder %s4102_s22, %s4098_s21 }
  0x12   : > { %p4244_p4 = por %p81_p2, %p80_p1  ;;  %s5227_s9 = smov (%p34_p3, %s5225_s9), 0 }
  0x13   : > { %5206 = sst [smem:[#allocation10_spill]] %s5227_s9  ;;  %s5229_s10 = smov (!%p34_p3, %s36_s10), %s4134_s30 }
  0x14   : > { %s69_s15 = ssub.s32 %s4130_s29, %s5227_s9  ;;  %p4255_p6 = por %p132_p5, %p81_p2 }
  0x15   : > { %p38_p7 = scmp.ge.s32.totalorder %s5229_s10, 2  ;;  %s70_s17 = sor.u32 %s69_s15, %s68_s12 }
  0x16   : > { %p71_p8 = scmp.eq.s32.totalorder %s70_s17, 0  ;;  %p123_p9 = scmp.eq.s32.totalorder %s69_s15, 0 }
  0x17   : > { %s5231_s10 = smov (%p38_p7, %s5229_s10), 0  ;;  %p2975_p10 = scmp.ge.s32.totalorder %s4138_s7, 12 }
  0x18   : > { %5208 = sst [smem:[#allocation11_spill]] %s5231_s10 }
  0x19   : > { %s4262_s18 = scalar_select %p71_p8, %s4110_s24, %s73_s11  }
  0x1a   : > { %s4265_s19 = scalar_select %p123_p9, %s4102_s22, %s125_s13  }
  0x1b   : > { %5209 = sst [smem:[#allocation12_spill]] %s4262_s18  ;;  %240 = sbr.rel (%p2975_p10) target bundleno = 244 (0xf4), region = 16 }
  0x20   : > { %255 = sbr.rel (!%p4244_p4) target bundleno = 138 (0x8a), region = 24  ;;  %s257_s20 = sand.u32 (%p4244_p4), 1, %s4110_s24  }
  0x21   : > { %s3956_s9 = smul.u32 (%p4244_p4), 768, %s257_s20  ;;  %s2976_s12 = sshll.u32 (%p4244_p4), %s4130_s29, 1 }
  0x22   : > { %s3957_s17 = smul.u32 (%p4244_p4), 384, %s4126_s28  ;;  %s5210_s1 = sld [smem:[#allocation13_spill]] (%p4244_p4) }
  0x23   : > { %s4281_s14 = scalar_lea.vmem (%p4244_p4), [#allocation3], %s3956_s9 }
  0x24   : > { %s262_s15 = sadd.s32 (%p4244_p4), %s3957_s17, %s2976_s12 }
  0x25   : > { %s2977_s8 = sshll.u32 %s262_s15, 2 }
  0x28   : > { %s4276_s13 = scalar_lea.vmem %s5210_s1, %s2977_s8 }
  0x29   : > { %v483_v0 = vld [vmem:[%s4276_s13] sm:$0xff]  ;;  %v485_v1 = vld [vmem:[%s4276_s13 + $0x10] sm:$0xff] }
  0x2a   : > { %v487_v2 = vld [vmem:[%s4276_s13 + $0x20] sm:$0xff]  ;;  %484 = vst [vmem:[%s4281_s14] sm:$0xff] %v483_v0  ;;  %v489_v3 = vld [vmem:[%s4276_s13 + $0x30] sm:$0xff] }
  0x2b   : > { %486 = vst [vmem:[%s4281_s14 + $0x8] sm:$0xff] %v485_v1  ;;  %v491_v4 = vld [vmem:[%s4276_s13 + $0x40] sm:$0xff]  ;;  %v493_v5 = vld [vmem:[%s4276_s13 + $0x50] sm:$0xff] }
  0x2c   : > { %488 = vst [vmem:[%s4281_s14 + $0x10] sm:$0xff] %v487_v2  ;;  %v495_v6 = vld [vmem:[%s4276_s13 + $0x60] sm:$0xff]  ;;  %v497_v7 = vld [vmem:[%s4276_s13 + $0x70] sm:$0xff] }
  0x2d   : > { %490 = vst [vmem:[%s4281_s14 + $0x18] sm:$0xff] %v489_v3  ;;  %v499_v8 = vld [vmem:[%s4276_s13 + $0x80] sm:$0xff]  ;;  %v501_v9 = vld [vmem:[%s4276_s13 + $0x90] sm:$0xff] }
  0x2e   : > { %492 = vst [vmem:[%s4281_s14 + $0x20] sm:$0xff] %v491_v4  ;;  %v503_v10 = vld [vmem:[%s4276_s13 + $0xa0] sm:$0xff]  ;;  %v505_v11 = vld [vmem:[%s4276_s13 + $0xb0] sm:$0xff] }
  0x2f   : > { %494 = vst [vmem:[%s4281_s14 + $0x28] sm:$0xff] %v493_v5  ;;  %v507_v12 = vld [vmem:[%s4276_s13 + $0xc0] sm:$0xff]  ;;  %v509_v13 = vld [vmem:[%s4276_s13 + $0xd0] sm:$0xff] }
  0x30   : > { %496 = vst [vmem:[%s4281_s14 + $0x30] sm:$0xff] %v495_v6  ;;  %v511_v14 = vld [vmem:[%s4276_s13 + $0xe0] sm:$0xff]  ;;  %v513_v15 = vld [vmem:[%s4276_s13 + $0xf0] sm:$0xff] }
  0x31   : > { %498 = vst [vmem:[%s4281_s14 + $0x38] sm:$0xff] %v497_v7  ;;  %v515_v16 = vld [vmem:[%s4276_s13 + $0x100] sm:$0xff]  ;;  %v517_v17 = vld [vmem:[%s4276_s13 + $0x110] sm:$0xff] }
  0x32   : > { %500 = vst [vmem:[%s4281_s14 + $0x40] sm:$0xff] %v499_v8  ;;  %v519_v18 = vld [vmem:[%s4276_s13 + $0x120] sm:$0xff]  ;;  %v521_v19 = vld [vmem:[%s4276_s13 + $0x130] sm:$0xff] }
  0x33   : > { %502 = vst [vmem:[%s4281_s14 + $0x48] sm:$0xff] %v501_v9  ;;  %v523_v20 = vld [vmem:[%s4276_s13 + $0x140] sm:$0xff]  ;;  %v525_v21 = vld [vmem:[%s4276_s13 + $0x150] sm:$0xff] }
  0x34   : > { %504 = vst [vmem:[%s4281_s14 + $0x50] sm:$0xff] %v503_v10  ;;  %v527_v22 = vld [vmem:[%s4276_s13 + $0x160] sm:$0xff]  ;;  %v529_v23 = vld [vmem:[%s4276_s13 + $0x170] sm:$0xff] }
  0x35   : > { %506 = vst [vmem:[%s4281_s14 + $0x58] sm:$0xff] %v505_v11  ;;  %v531_v24 = vld [vmem:[%s4276_s13 + $0x180] sm:$0xff]  ;;  %v533_v25 = vld [vmem:[%s4276_s13 + $0x190] sm:$0xff] }
  0x36   : > { %508 = vst [vmem:[%s4281_s14 + $0x60] sm:$0xff] %v507_v12  ;;  %v535_v26 = vld [vmem:[%s4276_s13 + $0x1a0] sm:$0xff]  ;;  %v537_v27 = vld [vmem:[%s4276_s13 + $0x1b0] sm:$0xff] }
  0x37   : > { %510 = vst [vmem:[%s4281_s14 + $0x68] sm:$0xff] %v509_v13  ;;  %v539_v28 = vld [vmem:[%s4276_s13 + $0x1c0] sm:$0xff]  ;;  %v541_v29 = vld [vmem:[%s4276_s13 + $0x1d0] sm:$0xff] }
  0x38   : > { %512 = vst [vmem:[%s4281_s14 + $0x70] sm:$0xff] %v511_v14  ;;  %v543_v30 = vld [vmem:[%s4276_s13 + $0x1e0] sm:$0xff]  ;;  %v545_v31 = vld [vmem:[%s4276_s13 + $0x1f0] sm:$0xff] }
  0x39   : > { %514 = vst [vmem:[%s4281_s14 + $0x78] sm:$0xff] %v513_v15  ;;  %v547_v32 = vld [vmem:[%s4276_s13 + $0x200] sm:$0xff]  ;;  %v549_v33 = vld [vmem:[%s4276_s13 + $0x210] sm:$0xff] }
  0x3a   : > { %516 = vst [vmem:[%s4281_s14 + $0x80] sm:$0xff] %v515_v16  ;;  %v551_v34 = vld [vmem:[%s4276_s13 + $0x220] sm:$0xff]  ;;  %v553_v35 = vld [vmem:[%s4276_s13 + $0x230] sm:$0xff] }
  0x3b   : > { %518 = vst [vmem:[%s4281_s14 + $0x88] sm:$0xff] %v517_v17  ;;  %v555_v36 = vld [vmem:[%s4276_s13 + $0x240] sm:$0xff]  ;;  %v557_v37 = vld [vmem:[%s4276_s13 + $0x250] sm:$0xff] }
  0x3c   : > { %520 = vst [vmem:[%s4281_s14 + $0x90] sm:$0xff] %v519_v18  ;;  %v559_v38 = vld [vmem:[%s4276_s13 + $0x260] sm:$0xff]  ;;  %v561_v39 = vld [vmem:[%s4276_s13 + $0x270] sm:$0xff] }
  0x3d   : > { %522 = vst [vmem:[%s4281_s14 + $0x98] sm:$0xff] %v521_v19  ;;  %v563_v40 = vld [vmem:[%s4276_s13 + $0x280] sm:$0xff]  ;;  %v565_v41 = vld [vmem:[%s4276_s13 + $0x290] sm:$0xff] }
  0x3e   : > { %524 = vst [vmem:[%s4281_s14 + $0xa0] sm:$0xff] %v523_v20  ;;  %v567_v42 = vld [vmem:[%s4276_s13 + $0x2a0] sm:$0xff]  ;;  %v569_v43 = vld [vmem:[%s4276_s13 + $0x2b0] sm:$0xff] }
  0x3f   : > { %526 = vst [vmem:[%s4281_s14 + $0xa8] sm:$0xff] %v525_v21  ;;  %v571_v44 = vld [vmem:[%s4276_s13 + $0x2c0] sm:$0xff]  ;;  %v573_v45 = vld [vmem:[%s4276_s13 + $0x2d0] sm:$0xff] }
  0x40   : > { %528 = vst [vmem:[%s4281_s14 + $0xb0] sm:$0xff] %v527_v22  ;;  %v575_v46 = vld [vmem:[%s4276_s13 + $0x2e0] sm:$0xff]  ;;  %v577_v47 = vld [vmem:[%s4276_s13 + $0x2f0] sm:$0xff] }
  0x41   : > { %530 = vst [vmem:[%s4281_s14 + $0xb8] sm:$0xff] %v529_v23  ;;  %v579_v48 = vld [vmem:[%s4276_s13 + $0x300] sm:$0xff]  ;;  %v581_v49 = vld [vmem:[%s4276_s13 + $0x310] sm:$0xff] }
  0x42   : > { %532 = vst [vmem:[%s4281_s14 + $0xc0] sm:$0xff] %v531_v24  ;;  %v583_v50 = vld [vmem:[%s4276_s13 + $0x320] sm:$0xff]  ;;  %v585_v51 = vld [vmem:[%s4276_s13 + $0x330] sm:$0xff] }
  0x43   : > { %534 = vst [vmem:[%s4281_s14 + $0xc8] sm:$0xff] %v533_v25  ;;  %v587_v52 = vld [vmem:[%s4276_s13 + $0x340] sm:$0xff]  ;;  %v589_v53 = vld [vmem:[%s4276_s13 + $0x350] sm:$0xff] }
  0x44   : > { %536 = vst [vmem:[%s4281_s14 + $0xd0] sm:$0xff] %v535_v26  ;;  %v591_v54 = vld [vmem:[%s4276_s13 + $0x360] sm:$0xff]  ;;  %v593_v55 = vld [vmem:[%s4276_s13 + $0x370] sm:$0xff] }
  0x45   : > { %538 = vst [vmem:[%s4281_s14 + $0xd8] sm:$0xff] %v537_v27  ;;  %v595_v56 = vld [vmem:[%s4276_s13 + $0x380] sm:$0xff]  ;;  %v597_v57 = vld [vmem:[%s4276_s13 + $0x390] sm:$0xff] }
  0x46   : > { %540 = vst [vmem:[%s4281_s14 + $0xe0] sm:$0xff] %v539_v28  ;;  %v599_v58 = vld [vmem:[%s4276_s13 + $0x3a0] sm:$0xff]  ;;  %v601_v59 = vld [vmem:[%s4276_s13 + $0x3b0] sm:$0xff] }
  0x47   : > { %542 = vst [vmem:[%s4281_s14 + $0xe8] sm:$0xff] %v541_v29  ;;  %v603_v60 = vld [vmem:[%s4276_s13 + $0x3c0] sm:$0xff]  ;;  %v605_v61 = vld [vmem:[%s4276_s13 + $0x3d0] sm:$0xff] }
  0x48   : > { %544 = vst [vmem:[%s4281_s14 + $0xf0] sm:$0xff] %v543_v30  ;;  %v607_v62 = vld [vmem:[%s4276_s13 + $0x3e0] sm:$0xff]  ;;  %v609_v63 = vld [vmem:[%s4276_s13 + $0x3f0] sm:$0xff] }
  0x49   : > { %546 = vst [vmem:[%s4281_s14 + $0xf8] sm:$0xff] %v545_v31  ;;  %v611_v0 = vld [vmem:[%s4276_s13 + $0x400] sm:$0xff]  ;;  %v613_v1 = vld [vmem:[%s4276_s13 + $0x410] sm:$0xff] }
  0x4a   : > { %548 = vst [vmem:[%s4281_s14 + $0x100] sm:$0xff] %v547_v32  ;;  %v615_v2 = vld [vmem:[%s4276_s13 + $0x420] sm:$0xff]  ;;  %v617_v3 = vld [vmem:[%s4276_s13 + $0x430] sm:$0xff] }
  0x4b   : > { %550 = vst [vmem:[%s4281_s14 + $0x108] sm:$0xff] %v549_v33  ;;  %v619_v4 = vld [vmem:[%s4276_s13 + $0x440] sm:$0xff]  ;;  %v621_v5 = vld [vmem:[%s4276_s13 + $0x450] sm:$0xff] }
  0x4c   : > { %552 = vst [vmem:[%s4281_s14 + $0x110] sm:$0xff] %v551_v34  ;;  %v623_v6 = vld [vmem:[%s4276_s13 + $0x460] sm:$0xff]  ;;  %v625_v7 = vld [vmem:[%s4276_s13 + $0x470] sm:$0xff] }
  0x4d   : > { %554 = vst [vmem:[%s4281_s14 + $0x118] sm:$0xff] %v553_v35  ;;  %v627_v8 = vld [vmem:[%s4276_s13 + $0x480] sm:$0xff]  ;;  %v629_v9 = vld [vmem:[%s4276_s13 + $0x490] sm:$0xff] }
  0x4e   : > { %556 = vst [vmem:[%s4281_s14 + $0x120] sm:$0xff] %v555_v36  ;;  %v631_v10 = vld [vmem:[%s4276_s13 + $0x4a0] sm:$0xff]  ;;  %v633_v11 = vld [vmem:[%s4276_s13 + $0x4b0] sm:$0xff] }
  0x4f   : > { %558 = vst [vmem:[%s4281_s14 + $0x128] sm:$0xff] %v557_v37  ;;  %v635_v12 = vld [vmem:[%s4276_s13 + $0x4c0] sm:$0xff]  ;;  %v637_v13 = vld [vmem:[%s4276_s13 + $0x4d0] sm:$0xff] }
  0x50   : > { %560 = vst [vmem:[%s4281_s14 + $0x130] sm:$0xff] %v559_v38  ;;  %v639_v14 = vld [vmem:[%s4276_s13 + $0x4e0] sm:$0xff]  ;;  %v641_v15 = vld [vmem:[%s4276_s13 + $0x4f0] sm:$0xff] }
  0x51   : > { %562 = vst [vmem:[%s4281_s14 + $0x138] sm:$0xff] %v561_v39  ;;  %v643_v16 = vld [vmem:[%s4276_s13 + $0x500] sm:$0xff]  ;;  %v645_v17 = vld [vmem:[%s4276_s13 + $0x510] sm:$0xff] }
  0x52   : > { %564 = vst [vmem:[%s4281_s14 + $0x140] sm:$0xff] %v563_v40  ;;  %v647_v18 = vld [vmem:[%s4276_s13 + $0x520] sm:$0xff]  ;;  %v649_v19 = vld [vmem:[%s4276_s13 + $0x530] sm:$0xff] }
  0x53   : > { %566 = vst [vmem:[%s4281_s14 + $0x148] sm:$0xff] %v565_v41  ;;  %v651_v20 = vld [vmem:[%s4276_s13 + $0x540] sm:$0xff]  ;;  %v653_v21 = vld [vmem:[%s4276_s13 + $0x550] sm:$0xff] }
  0x54   : > { %568 = vst [vmem:[%s4281_s14 + $0x150] sm:$0xff] %v567_v42  ;;  %v655_v22 = vld [vmem:[%s4276_s13 + $0x560] sm:$0xff]  ;;  %v657_v23 = vld [vmem:[%s4276_s13 + $0x570] sm:$0xff] }
  0x55   : > { %570 = vst [vmem:[%s4281_s14 + $0x158] sm:$0xff] %v569_v43  ;;  %v659_v24 = vld [vmem:[%s4276_s13 + $0x580] sm:$0xff]  ;;  %v661_v25 = vld [vmem:[%s4276_s13 + $0x590] sm:$0xff] }
  0x56   : > { %572 = vst [vmem:[%s4281_s14 + $0x160] sm:$0xff] %v571_v44  ;;  %v663_v26 = vld [vmem:[%s4276_s13 + $0x5a0] sm:$0xff]  ;;  %v665_v27 = vld [vmem:[%s4276_s13 + $0x5b0] sm:$0xff] }
  0x57   : > { %574 = vst [vmem:[%s4281_s14 + $0x168] sm:$0xff] %v573_v45  ;;  %v667_v28 = vld [vmem:[%s4276_s13 + $0x5c0] sm:$0xff]  ;;  %v669_v29 = vld [vmem:[%s4276_s13 + $0x5d0] sm:$0xff] }
  0x58   : > { %576 = vst [vmem:[%s4281_s14 + $0x170] sm:$0xff] %v575_v46  ;;  %v671_v30 = vld [vmem:[%s4276_s13 + $0x5e0] sm:$0xff]  ;;  %v673_v31 = vld [vmem:[%s4276_s13 + $0x5f0] sm:$0xff] }
  0x59   : > { %578 = vst [vmem:[%s4281_s14 + $0x178] sm:$0xff] %v577_v47 }
  0x5a   : > { %580 = vst [vmem:[%s4281_s14 + $0x180] sm:$0xff] %v579_v48 }
  0x5b   : > { %582 = vst [vmem:[%s4281_s14 + $0x188] sm:$0xff] %v581_v49 }
  0x5c   : > { %584 = vst [vmem:[%s4281_s14 + $0x190] sm:$0xff] %v583_v50 }
  0x5d   : > { %586 = vst [vmem:[%s4281_s14 + $0x198] sm:$0xff] %v585_v51 }
  0x5e   : > { %588 = vst [vmem:[%s4281_s14 + $0x1a0] sm:$0xff] %v587_v52 }
  0x5f   : > { %590 = vst [vmem:[%s4281_s14 + $0x1a8] sm:$0xff] %v589_v53 }
  0x60   : > { %592 = vst [vmem:[%s4281_s14 + $0x1b0] sm:$0xff] %v591_v54 }
  0x61   : > { %594 = vst [vmem:[%s4281_s14 + $0x1b8] sm:$0xff] %v593_v55 }
  0x62   : > { %596 = vst [vmem:[%s4281_s14 + $0x1c0] sm:$0xff] %v595_v56 }
  0x63   : > { %598 = vst [vmem:[%s4281_s14 + $0x1c8] sm:$0xff] %v597_v57 }
  0x64   : > { %600 = vst [vmem:[%s4281_s14 + $0x1d0] sm:$0xff] %v599_v58 }
  0x65   : > { %602 = vst [vmem:[%s4281_s14 + $0x1d8] sm:$0xff] %v601_v59 }
  0x66   : > { %604 = vst [vmem:[%s4281_s14 + $0x1e0] sm:$0xff] %v603_v60 }
  0x67   : > { %606 = vst [vmem:[%s4281_s14 + $0x1e8] sm:$0xff] %v605_v61 }
  0x68   : > { %608 = vst [vmem:[%s4281_s14 + $0x1f0] sm:$0xff] %v607_v62 }
  0x69   : > { %610 = vst [vmem:[%s4281_s14 + $0x1f8] sm:$0xff] %v609_v63 }
  0x6a   : > { %612 = vst [vmem:[%s4281_s14 + $0x200] sm:$0xff] %v611_v0 }
  0x6b   : > { %614 = vst [vmem:[%s4281_s14 + $0x208] sm:$0xff] %v613_v1 }
  0x6c   : > { %616 = vst [vmem:[%s4281_s14 + $0x210] sm:$0xff] %v615_v2 }
  0x6d   : > { %618 = vst [vmem:[%s4281_s14 + $0x218] sm:$0xff] %v617_v3 }
  0x6e   : > { %620 = vst [vmem:[%s4281_s14 + $0x220] sm:$0xff] %v619_v4 }
  0x6f   : > { %622 = vst [vmem:[%s4281_s14 + $0x228] sm:$0xff] %v621_v5 }
  0x70   : > { %624 = vst [vmem:[%s4281_s14 + $0x230] sm:$0xff] %v623_v6 }
  0x71   : > { %626 = vst [vmem:[%s4281_s14 + $0x238] sm:$0xff] %v625_v7 }
  0x72   : > { %628 = vst [vmem:[%s4281_s14 + $0x240] sm:$0xff] %v627_v8 }
  0x73   : > { %630 = vst [vmem:[%s4281_s14 + $0x248] sm:$0xff] %v629_v9 }
  0x74   : > { %632 = vst [vmem:[%s4281_s14 + $0x250] sm:$0xff] %v631_v10 }
  0x75   : > { %634 = vst [vmem:[%s4281_s14 + $0x258] sm:$0xff] %v633_v11 }
  0x76   : > { %636 = vst [vmem:[%s4281_s14 + $0x260] sm:$0xff] %v635_v12 }
  0x77   : > { %638 = vst [vmem:[%s4281_s14 + $0x268] sm:$0xff] %v637_v13 }
  0x78   : > { %640 = vst [vmem:[%s4281_s14 + $0x270] sm:$0xff] %v639_v14 }
  0x79   : > { %642 = vst [vmem:[%s4281_s14 + $0x278] sm:$0xff] %v641_v15 }
  0x7a   : > { %644 = vst [vmem:[%s4281_s14 + $0x280] sm:$0xff] %v643_v16 }
  0x7b   : > { %646 = vst [vmem:[%s4281_s14 + $0x288] sm:$0xff] %v645_v17 }
  0x7c   : > { %648 = vst [vmem:[%s4281_s14 + $0x290] sm:$0xff] %v647_v18 }
  0x7d   : > { %650 = vst [vmem:[%s4281_s14 + $0x298] sm:$0xff] %v649_v19 }
  0x7e   : > { %652 = vst [vmem:[%s4281_s14 + $0x2a0] sm:$0xff] %v651_v20 }
  0x7f   : > { %654 = vst [vmem:[%s4281_s14 + $0x2a8] sm:$0xff] %v653_v21 }
  0x80   : > { %656 = vst [vmem:[%s4281_s14 + $0x2b0] sm:$0xff] %v655_v22 }
  0x81   : > { %658 = vst [vmem:[%s4281_s14 + $0x2b8] sm:$0xff] %v657_v23 }
  0x82   : > { %660 = vst [vmem:[%s4281_s14 + $0x2c0] sm:$0xff] %v659_v24 }
  0x83   : > { %662 = vst [vmem:[%s4281_s14 + $0x2c8] sm:$0xff] %v661_v25 }
  0x84   : > { %664 = vst [vmem:[%s4281_s14 + $0x2d0] sm:$0xff] %v663_v26 }
  0x85   : > { %666 = vst [vmem:[%s4281_s14 + $0x2d8] sm:$0xff] %v665_v27 }
  0x86   : > { %668 = vst [vmem:[%s4281_s14 + $0x2e0] sm:$0xff] %v667_v28 }
  0x87   : > { %670 = vst [vmem:[%s4281_s14 + $0x2e8] sm:$0xff] %v669_v29 }
  0x88   : > { %672 = vst [vmem:[%s4281_s14 + $0x2f0] sm:$0xff] %v671_v30 }
  0x89   : > { %674 = vst [vmem:[%s4281_s14 + $0x2f8] sm:$0xff] %v673_v31 }
  0x8a PF: > { %688 = sbr.rel (!%p4255_p6) target bundleno = 244 (0xf4), region = 66  ;;  %s690_s8 = sand.u32 (%p4255_p6), 1, %s4102_s22  }
  0x8b   : > { %s3763_s9 = sshll.u32 (%p4255_p6), %s4130_s29, 3  ;;  %s3958_s10 = smul.u32 (%p4255_p6), 768, %s690_s8 }
  0x8c   : > { %s5211_s3 = sld [smem:[#allocation14_spill]] (%p4255_p6) }
  0x8d   : > { %s4484_s16 = scalar_lea.vmem (%p4255_p6), [#allocation4], %s3958_s10 }
  0x92   : > { %s4479_s17 = scalar_lea.vmem %s5211_s3, %s3763_s9 }
  0x93   : > { %v914_v32 = vld [vmem:[%s4479_s17] sm:$0xff]  ;;  %v916_v33 = vld [vmem:[%s4479_s17 + $0x10] sm:$0xff] }
  0x94   : > { %v918_v34 = vld [vmem:[%s4479_s17 + $0x20] sm:$0xff]  ;;  %915 = vst [vmem:[%s4484_s16] sm:$0xff] %v914_v32  ;;  %v920_v35 = vld [vmem:[%s4479_s17 + $0x30] sm:$0xff] }
  0x95   : > { %917 = vst [vmem:[%s4484_s16 + $0x8] sm:$0xff] %v916_v33  ;;  %v922_v36 = vld [vmem:[%s4479_s17 + $0x40] sm:$0xff]  ;;  %v924_v37 = vld [vmem:[%s4479_s17 + $0x50] sm:$0xff] }
  0x96   : > { %919 = vst [vmem:[%s4484_s16 + $0x10] sm:$0xff] %v918_v34  ;;  %v926_v38 = vld [vmem:[%s4479_s17 + $0x60] sm:$0xff]  ;;  %v928_v39 = vld [vmem:[%s4479_s17 + $0x70] sm:$0xff] }
  0x97   : > { %921 = vst [vmem:[%s4484_s16 + $0x18] sm:$0xff] %v920_v35  ;;  %v930_v40 = vld [vmem:[%s4479_s17 + $0x80] sm:$0xff]  ;;  %v932_v41 = vld [vmem:[%s4479_s17 + $0x90] sm:$0xff] }
  0x98   : > { %923 = vst [vmem:[%s4484_s16 + $0x20] sm:$0xff] %v922_v36  ;;  %v934_v42 = vld [vmem:[%s4479_s17 + $0xa0] sm:$0xff]  ;;  %v936_v43 = vld [vmem:[%s4479_s17 + $0xb0] sm:$0xff] }
  0x99   : > { %925 = vst [vmem:[%s4484_s16 + $0x28] sm:$0xff] %v924_v37  ;;  %v938_v44 = vld [vmem:[%s4479_s17 + $0xc0] sm:$0xff]  ;;  %v940_v45 = vld [vmem:[%s4479_s17 + $0xd0] sm:$0xff] }
  0x9a   : > { %927 = vst [vmem:[%s4484_s16 + $0x30] sm:$0xff] %v926_v38  ;;  %v942_v46 = vld [vmem:[%s4479_s17 + $0xe0] sm:$0xff]  ;;  %v944_v47 = vld [vmem:[%s4479_s17 + $0xf0] sm:$0xff] }
  0x9b   : > { %929 = vst [vmem:[%s4484_s16 + $0x38] sm:$0xff] %v928_v39  ;;  %v946_v48 = vld [vmem:[%s4479_s17 + $0x100] sm:$0xff]  ;;  %v948_v49 = vld [vmem:[%s4479_s17 + $0x110] sm:$0xff] }
  0x9c   : > { %931 = vst [vmem:[%s4484_s16 + $0x40] sm:$0xff] %v930_v40  ;;  %v950_v50 = vld [vmem:[%s4479_s17 + $0x120] sm:$0xff]  ;;  %v952_v51 = vld [vmem:[%s4479_s17 + $0x130] sm:$0xff] }
  0x9d   : > { %933 = vst [vmem:[%s4484_s16 + $0x48] sm:$0xff] %v932_v41  ;;  %v954_v52 = vld [vmem:[%s4479_s17 + $0x140] sm:$0xff]  ;;  %v956_v53 = vld [vmem:[%s4479_s17 + $0x150] sm:$0xff] }
  0x9e   : > { %935 = vst [vmem:[%s4484_s16 + $0x50] sm:$0xff] %v934_v42  ;;  %v958_v54 = vld [vmem:[%s4479_s17 + $0x160] sm:$0xff]  ;;  %v960_v55 = vld [vmem:[%s4479_s17 + $0x170] sm:$0xff] }
  0x9f   : > { %937 = vst [vmem:[%s4484_s16 + $0x58] sm:$0xff] %v936_v43  ;;  %v962_v56 = vld [vmem:[%s4479_s17 + $0x180] sm:$0xff]  ;;  %v964_v57 = vld [vmem:[%s4479_s17 + $0x190] sm:$0xff] }
  0xa0   : > { %939 = vst [vmem:[%s4484_s16 + $0x60] sm:$0xff] %v938_v44  ;;  %v966_v58 = vld [vmem:[%s4479_s17 + $0x1a0] sm:$0xff]  ;;  %v968_v59 = vld [vmem:[%s4479_s17 + $0x1b0] sm:$0xff] }
  0xa1   : > { %941 = vst [vmem:[%s4484_s16 + $0x68] sm:$0xff] %v940_v45  ;;  %v970_v60 = vld [vmem:[%s4479_s17 + $0x1c0] sm:$0xff]  ;;  %v972_v61 = vld [vmem:[%s4479_s17 + $0x1d0] sm:$0xff] }
  0xa2   : > { %943 = vst [vmem:[%s4484_s16 + $0x70] sm:$0xff] %v942_v46  ;;  %v974_v62 = vld [vmem:[%s4479_s17 + $0x1e0] sm:$0xff]  ;;  %v976_v63 = vld [vmem:[%s4479_s17 + $0x1f0] sm:$0xff] }
  0xa3   : > { %945 = vst [vmem:[%s4484_s16 + $0x78] sm:$0xff] %v944_v47  ;;  %v978_v0 = vld [vmem:[%s4479_s17 + $0x200] sm:$0xff]  ;;  %v980_v1 = vld [vmem:[%s4479_s17 + $0x210] sm:$0xff] }
  0xa4   : > { %947 = vst [vmem:[%s4484_s16 + $0x80] sm:$0xff] %v946_v48  ;;  %v982_v2 = vld [vmem:[%s4479_s17 + $0x220] sm:$0xff]  ;;  %v984_v3 = vld [vmem:[%s4479_s17 + $0x230] sm:$0xff] }
  0xa5   : > { %949 = vst [vmem:[%s4484_s16 + $0x88] sm:$0xff] %v948_v49  ;;  %v986_v4 = vld [vmem:[%s4479_s17 + $0x240] sm:$0xff]  ;;  %v988_v5 = vld [vmem:[%s4479_s17 + $0x250] sm:$0xff] }
  0xa6   : > { %951 = vst [vmem:[%s4484_s16 + $0x90] sm:$0xff] %v950_v50  ;;  %v990_v6 = vld [vmem:[%s4479_s17 + $0x260] sm:$0xff]  ;;  %v992_v7 = vld [vmem:[%s4479_s17 + $0x270] sm:$0xff] }
  0xa7   : > { %953 = vst [vmem:[%s4484_s16 + $0x98] sm:$0xff] %v952_v51  ;;  %v994_v8 = vld [vmem:[%s4479_s17 + $0x280] sm:$0xff]  ;;  %v996_v9 = vld [vmem:[%s4479_s17 + $0x290] sm:$0xff] }
  0xa8   : > { %955 = vst [vmem:[%s4484_s16 + $0xa0] sm:$0xff] %v954_v52  ;;  %v998_v10 = vld [vmem:[%s4479_s17 + $0x2a0] sm:$0xff]  ;;  %v1000_v11 = vld [vmem:[%s4479_s17 + $0x2b0] sm:$0xff] }
  0xa9   : > { %957 = vst [vmem:[%s4484_s16 + $0xa8] sm:$0xff] %v956_v53  ;;  %v1002_v12 = vld [vmem:[%s4479_s17 + $0x2c0] sm:$0xff]  ;;  %v1004_v13 = vld [vmem:[%s4479_s17 + $0x2d0] sm:$0xff] }
  0xaa   : > { %959 = vst [vmem:[%s4484_s16 + $0xb0] sm:$0xff] %v958_v54  ;;  %v1006_v14 = vld [vmem:[%s4479_s17 + $0x2e0] sm:$0xff]  ;;  %v1008_v15 = vld [vmem:[%s4479_s17 + $0x2f0] sm:$0xff] }
  0xab   : > { %961 = vst [vmem:[%s4484_s16 + $0xb8] sm:$0xff] %v960_v55  ;;  %v1010_v16 = vld [vmem:[%s4479_s17 + $0x300] sm:$0xff]  ;;  %v1012_v17 = vld [vmem:[%s4479_s17 + $0x310] sm:$0xff] }
  0xac   : > { %963 = vst [vmem:[%s4484_s16 + $0xc0] sm:$0xff] %v962_v56  ;;  %v1014_v18 = vld [vmem:[%s4479_s17 + $0x320] sm:$0xff]  ;;  %v1016_v19 = vld [vmem:[%s4479_s17 + $0x330] sm:$0xff] }
  0xad   : > { %965 = vst [vmem:[%s4484_s16 + $0xc8] sm:$0xff] %v964_v57  ;;  %v1018_v20 = vld [vmem:[%s4479_s17 + $0x340] sm:$0xff]  ;;  %v1020_v21 = vld [vmem:[%s4479_s17 + $0x350] sm:$0xff] }
  0xae   : > { %967 = vst [vmem:[%s4484_s16 + $0xd0] sm:$0xff] %v966_v58  ;;  %v1022_v22 = vld [vmem:[%s4479_s17 + $0x360] sm:$0xff]  ;;  %v1024_v23 = vld [vmem:[%s4479_s17 + $0x370] sm:$0xff] }
  0xaf   : > { %969 = vst [vmem:[%s4484_s16 + $0xd8] sm:$0xff] %v968_v59  ;;  %v1026_v24 = vld [vmem:[%s4479_s17 + $0x380] sm:$0xff]  ;;  %v1028_v25 = vld [vmem:[%s4479_s17 + $0x390] sm:$0xff] }
  0xb0   : > { %971 = vst [vmem:[%s4484_s16 + $0xe0] sm:$0xff] %v970_v60  ;;  %v1030_v26 = vld [vmem:[%s4479_s17 + $0x3a0] sm:$0xff]  ;;  %v1032_v27 = vld [vmem:[%s4479_s17 + $0x3b0] sm:$0xff] }
  0xb1   : > { %973 = vst [vmem:[%s4484_s16 + $0xe8] sm:$0xff] %v972_v61  ;;  %v1034_v28 = vld [vmem:[%s4479_s17 + $0x3c0] sm:$0xff]  ;;  %v1036_v29 = vld [vmem:[%s4479_s17 + $0x3d0] sm:$0xff] }
  0xb2   : > { %975 = vst [vmem:[%s4484_s16 + $0xf0] sm:$0xff] %v974_v62  ;;  %v1038_v30 = vld [vmem:[%s4479_s17 + $0x3e0] sm:$0xff]  ;;  %v1040_v31 = vld [vmem:[%s4479_s17 + $0x3f0] sm:$0xff] }
  0xb3   : > { %977 = vst [vmem:[%s4484_s16 + $0xf8] sm:$0xff] %v976_v63  ;;  %v1042_v32 = vld [vmem:[%s4479_s17 + $0x400] sm:$0xff]  ;;  %v1044_v33 = vld [vmem:[%s4479_s17 + $0x410] sm:$0xff] }
  0xb4   : > { %979 = vst [vmem:[%s4484_s16 + $0x100] sm:$0xff] %v978_v0  ;;  %v1046_v34 = vld [vmem:[%s4479_s17 + $0x420] sm:$0xff]  ;;  %v1048_v35 = vld [vmem:[%s4479_s17 + $0x430] sm:$0xff] }
  0xb5   : > { %981 = vst [vmem:[%s4484_s16 + $0x108] sm:$0xff] %v980_v1  ;;  %v1050_v36 = vld [vmem:[%s4479_s17 + $0x440] sm:$0xff]  ;;  %v1052_v37 = vld [vmem:[%s4479_s17 + $0x450] sm:$0xff] }
  0xb6   : > { %983 = vst [vmem:[%s4484_s16 + $0x110] sm:$0xff] %v982_v2  ;;  %v1054_v38 = vld [vmem:[%s4479_s17 + $0x460] sm:$0xff]  ;;  %v1056_v39 = vld [vmem:[%s4479_s17 + $0x470] sm:$0xff] }
  0xb7   : > { %985 = vst [vmem:[%s4484_s16 + $0x118] sm:$0xff] %v984_v3  ;;  %v1058_v40 = vld [vmem:[%s4479_s17 + $0x480] sm:$0xff]  ;;  %v1060_v41 = vld [vmem:[%s4479_s17 + $0x490] sm:$0xff] }
  0xb8   : > { %987 = vst [vmem:[%s4484_s16 + $0x120] sm:$0xff] %v986_v4  ;;  %v1062_v42 = vld [vmem:[%s4479_s17 + $0x4a0] sm:$0xff]  ;;  %v1064_v43 = vld [vmem:[%s4479_s17 + $0x4b0] sm:$0xff] }
  0xb9   : > { %989 = vst [vmem:[%s4484_s16 + $0x128] sm:$0xff] %v988_v5  ;;  %v1066_v44 = vld [vmem:[%s4479_s17 + $0x4c0] sm:$0xff]  ;;  %v1068_v45 = vld [vmem:[%s4479_s17 + $0x4d0] sm:$0xff] }
  0xba   : > { %991 = vst [vmem:[%s4484_s16 + $0x130] sm:$0xff] %v990_v6  ;;  %v1070_v46 = vld [vmem:[%s4479_s17 + $0x4e0] sm:$0xff]  ;;  %v1072_v47 = vld [vmem:[%s4479_s17 + $0x4f0] sm:$0xff] }
  0xbb   : > { %993 = vst [vmem:[%s4484_s16 + $0x138] sm:$0xff] %v992_v7  ;;  %v1074_v48 = vld [vmem:[%s4479_s17 + $0x500] sm:$0xff]  ;;  %v1076_v49 = vld [vmem:[%s4479_s17 + $0x510] sm:$0xff] }
  0xbc   : > { %995 = vst [vmem:[%s4484_s16 + $0x140] sm:$0xff] %v994_v8  ;;  %v1078_v50 = vld [vmem:[%s4479_s17 + $0x520] sm:$0xff]  ;;  %v1080_v51 = vld [vmem:[%s4479_s17 + $0x530] sm:$0xff] }
  0xbd   : > { %997 = vst [vmem:[%s4484_s16 + $0x148] sm:$0xff] %v996_v9  ;;  %v1082_v52 = vld [vmem:[%s4479_s17 + $0x540] sm:$0xff]  ;;  %v1084_v53 = vld [vmem:[%s4479_s17 + $0x550] sm:$0xff] }
  0xbe   : > { %999 = vst [vmem:[%s4484_s16 + $0x150] sm:$0xff] %v998_v10  ;;  %v1086_v54 = vld [vmem:[%s4479_s17 + $0x560] sm:$0xff]  ;;  %v1088_v55 = vld [vmem:[%s4479_s17 + $0x570] sm:$0xff] }
  0xbf   : > { %1001 = vst [vmem:[%s4484_s16 + $0x158] sm:$0xff] %v1000_v11  ;;  %v1090_v56 = vld [vmem:[%s4479_s17 + $0x580] sm:$0xff]  ;;  %v1092_v57 = vld [vmem:[%s4479_s17 + $0x590] sm:$0xff] }
  0xc0   : > { %1003 = vst [vmem:[%s4484_s16 + $0x160] sm:$0xff] %v1002_v12  ;;  %v1094_v58 = vld [vmem:[%s4479_s17 + $0x5a0] sm:$0xff]  ;;  %v1096_v59 = vld [vmem:[%s4479_s17 + $0x5b0] sm:$0xff] }
  0xc1   : > { %1005 = vst [vmem:[%s4484_s16 + $0x168] sm:$0xff] %v1004_v13  ;;  %v1098_v60 = vld [vmem:[%s4479_s17 + $0x5c0] sm:$0xff]  ;;  %v1100_v61 = vld [vmem:[%s4479_s17 + $0x5d0] sm:$0xff] }
  0xc2   : > { %1007 = vst [vmem:[%s4484_s16 + $0x170] sm:$0xff] %v1006_v14  ;;  %v1102_v62 = vld [vmem:[%s4479_s17 + $0x5e0] sm:$0xff]  ;;  %v1104_v63 = vld [vmem:[%s4479_s17 + $0x5f0] sm:$0xff] }
  0xc3   : > { %1009 = vst [vmem:[%s4484_s16 + $0x178] sm:$0xff] %v1008_v15 }
  0xc4   : > { %1011 = vst [vmem:[%s4484_s16 + $0x180] sm:$0xff] %v1010_v16 }
  0xc5   : > { %1013 = vst [vmem:[%s4484_s16 + $0x188] sm:$0xff] %v1012_v17 }
  0xc6   : > { %1015 = vst [vmem:[%s4484_s16 + $0x190] sm:$0xff] %v1014_v18 }
  0xc7   : > { %1017 = vst [vmem:[%s4484_s16 + $0x198] sm:$0xff] %v1016_v19 }
  0xc8   : > { %1019 = vst [vmem:[%s4484_s16 + $0x1a0] sm:$0xff] %v1018_v20 }
  0xc9   : > { %1021 = vst [vmem:[%s4484_s16 + $0x1a8] sm:$0xff] %v1020_v21 }
  0xca   : > { %1023 = vst [vmem:[%s4484_s16 + $0x1b0] sm:$0xff] %v1022_v22 }
  0xcb   : > { %1025 = vst [vmem:[%s4484_s16 + $0x1b8] sm:$0xff] %v1024_v23 }
  0xcc   : > { %1027 = vst [vmem:[%s4484_s16 + $0x1c0] sm:$0xff] %v1026_v24 }
  0xcd   : > { %1029 = vst [vmem:[%s4484_s16 + $0x1c8] sm:$0xff] %v1028_v25 }
  0xce   : > { %1031 = vst [vmem:[%s4484_s16 + $0x1d0] sm:$0xff] %v1030_v26 }
  0xcf   : > { %1033 = vst [vmem:[%s4484_s16 + $0x1d8] sm:$0xff] %v1032_v27 }
  0xd0   : > { %1035 = vst [vmem:[%s4484_s16 + $0x1e0] sm:$0xff] %v1034_v28 }
  0xd1   : > { %1037 = vst [vmem:[%s4484_s16 + $0x1e8] sm:$0xff] %v1036_v29 }
  0xd2   : > { %1039 = vst [vmem:[%s4484_s16 + $0x1f0] sm:$0xff] %v1038_v30 }
  0xd3   : > { %1041 = vst [vmem:[%s4484_s16 + $0x1f8] sm:$0xff] %v1040_v31 }
  0xd4   : > { %1043 = vst [vmem:[%s4484_s16 + $0x200] sm:$0xff] %v1042_v32 }
  0xd5   : > { %1045 = vst [vmem:[%s4484_s16 + $0x208] sm:$0xff] %v1044_v33 }
  0xd6   : > { %1047 = vst [vmem:[%s4484_s16 + $0x210] sm:$0xff] %v1046_v34 }
  0xd7   : > { %1049 = vst [vmem:[%s4484_s16 + $0x218] sm:$0xff] %v1048_v35 }
  0xd8   : > { %1051 = vst [vmem:[%s4484_s16 + $0x220] sm:$0xff] %v1050_v36 }
  0xd9   : > { %1053 = vst [vmem:[%s4484_s16 + $0x228] sm:$0xff] %v1052_v37 }
  0xda   : > { %1055 = vst [vmem:[%s4484_s16 + $0x230] sm:$0xff] %v1054_v38 }
  0xdb   : > { %1057 = vst [vmem:[%s4484_s16 + $0x238] sm:$0xff] %v1056_v39 }
  0xdc   : > { %1059 = vst [vmem:[%s4484_s16 + $0x240] sm:$0xff] %v1058_v40 }
  0xdd   : > { %1061 = vst [vmem:[%s4484_s16 + $0x248] sm:$0xff] %v1060_v41 }
  0xde   : > { %1063 = vst [vmem:[%s4484_s16 + $0x250] sm:$0xff] %v1062_v42 }
  0xdf   : > { %1065 = vst [vmem:[%s4484_s16 + $0x258] sm:$0xff] %v1064_v43 }
  0xe0   : > { %1067 = vst [vmem:[%s4484_s16 + $0x260] sm:$0xff] %v1066_v44 }
  0xe1   : > { %1069 = vst [vmem:[%s4484_s16 + $0x268] sm:$0xff] %v1068_v45 }
  0xe2   : > { %1071 = vst [vmem:[%s4484_s16 + $0x270] sm:$0xff] %v1070_v46 }
  0xe3   : > { %1073 = vst [vmem:[%s4484_s16 + $0x278] sm:$0xff] %v1072_v47 }
  0xe4   : > { %1075 = vst [vmem:[%s4484_s16 + $0x280] sm:$0xff] %v1074_v48 }
  0xe5   : > { %1077 = vst [vmem:[%s4484_s16 + $0x288] sm:$0xff] %v1076_v49 }
  0xe6   : > { %1079 = vst [vmem:[%s4484_s16 + $0x290] sm:$0xff] %v1078_v50 }
  0xe7   : > { %1081 = vst [vmem:[%s4484_s16 + $0x298] sm:$0xff] %v1080_v51 }
  0xe8   : > { %1083 = vst [vmem:[%s4484_s16 + $0x2a0] sm:$0xff] %v1082_v52 }
  0xe9   : > { %1085 = vst [vmem:[%s4484_s16 + $0x2a8] sm:$0xff] %v1084_v53 }
  0xea   : > { %1087 = vst [vmem:[%s4484_s16 + $0x2b0] sm:$0xff] %v1086_v54 }
  0xeb   : > { %1089 = vst [vmem:[%s4484_s16 + $0x2b8] sm:$0xff] %v1088_v55 }
  0xec   : > { %1091 = vst [vmem:[%s4484_s16 + $0x2c0] sm:$0xff] %v1090_v56 }
  0xed   : > { %1093 = vst [vmem:[%s4484_s16 + $0x2c8] sm:$0xff] %v1092_v57 }
  0xee   : > { %1095 = vst [vmem:[%s4484_s16 + $0x2d0] sm:$0xff] %v1094_v58 }
  0xef   : > { %1097 = vst [vmem:[%s4484_s16 + $0x2d8] sm:$0xff] %v1096_v59 }
  0xf0   : > { %1099 = vst [vmem:[%s4484_s16 + $0x2e0] sm:$0xff] %v1098_v60 }
  0xf1   : > { %1101 = vst [vmem:[%s4484_s16 + $0x2e8] sm:$0xff] %v1100_v61 }
  0xf2   : > { %1103 = vst [vmem:[%s4484_s16 + $0x2f0] sm:$0xff] %v1102_v62 }
  0xf3   : > { %1105 = vst [vmem:[%s4484_s16 + $0x2f8] sm:$0xff] %v1104_v63 }
  0xf4 PF: > { %p2980_p11 = scmp.ge.s32.totalorder %s4138_s7, 1  ;;  %p1118_p12 = scmp.lt.s32.totalorder %s4138_s7, 13 }
  0xf6   : > { %p1119_p13 = pnand %p2980_p11, %p1118_p12 }
  0xf7   : > { %s1125_s15 = sand.u32 (!%p1119_p13), 1, %s4106_s23   ;;  %s1132_s11 = sand.u32 (!%p1119_p13), 1, %s4098_s21  }
  0xf8   : > { %1122 = sbr.rel (%p1119_p13) target bundleno = 769 (0x301), region = 108  ;;  %p1195_p0 = scmp.lt.s32.totalorder (!%p1119_p13), %s4122_s27, 1 }
  0xf9   : > { %s3959_s13 = smul.u32 (!%p1119_p13), 768, %s1125_s15  ;;  %p1197_p1 = scmp.lt.s32.totalorder (!%p1119_p13), %s4114_s25, 2 }
  0xfa   : > { %s3960_s14 = smul.u32 (!%p1119_p13), 768, %s1132_s11  ;;  %s2982_s8 = sshll.u32 (!%p1119_p13), %s4118_s26, 1 }
  0xfb   : > { %p1206_p2 = scmp.lt.s32.totalorder (!%p1119_p13), %s2982_s8, 3  ;;  %s4710_s23 = scalar_lea.vmem (!%p1119_p13), [#allocation3], %s3959_s13 }
  0xfc   : > { %s4712_s1 = scalar_lea.vmem (!%p1119_p13), [#allocation4], %s3960_s14  ;;  %p2990_p3 = scmp.ne.s32.totalorder (!%p1119_p13), %s4114_s25, 0 }
  0xfd   : > { %s5233_s27 = smov (!%p1195_p0, %s4122_s27), 1  ;;  %s5235_s8 = smov (!%p1206_p2, %s2982_s8), 3 }
  0xfe   : > { %s1198_s9 = scalar_select %p1197_p1, %s4114_s25, 2 }
  0xff   : > { %s3962_s10 = smul.u32 18, %s5233_s27  ;;  %s2985_s17 = sshll.u32 %s5233_s27, 2 }
 0x100   : > { %s3961_s20 = smul.u32 6, %s1198_s9  ;;  %s1208_s15 = scalar_lea.vmem %s5187_s2, %s5235_s8 }
 0x101   : > { %s1214_s9 = scalar_lea.vmem %s5189_s4, %s5235_s8  ;;  %s1222_s29 = sadd.s32 %s2985_s17, %s5235_s8 }
 0x102   : > { %s1201_s12 = sadd.s32 %s3962_s10, %s3961_s20  ;;  %s2986_s28 = sshll.u32 %s1222_s29, 2 }
 0x103   : > { %s2981_s16 = sshll.u32 %s1201_s12, 2  ;;  %s4703_s27 = scalar_lea.vmem %s5190_s5, %s2986_s28 }
 0x104   : > { %s4693_s26 = scalar_lea.vmem %s5185_s0, %s2981_s16  ;;  %s4708_s12 = scalar_lea.vmem %s5191_s6, %s2986_s28 }
 0x105   : > { %1239 = sbr.rel (%p2990_p3) target bundleno = 269 (0x10d), region = 120 }
 0x10a   : > { %v4140_v0 = vmov 0.0  }
 0x10b   : > { %1240 = vst [vmem:[#allocation2] sm:$0xff] %v4140_v0 }
 0x10c   : > { %1241 = vst [vmem:[#allocation2 + $0x8] sm:$0xff] %v4140_v0 }
 0x10d PF: > { %v3049_v1 = vld [vmem:[%s4710_s23 + $0x70] sm:$0xf]  ;;  %v3779_v2 = vld [vmem:[%s4710_s23 + $0x74] sm:$0xf0]  ;;  %v3041_v12 = vld [vmem:[%s4710_s23 + $0x60] sm:$0xf] }
 0x10e   : > { %v3113_v3 = vld [vmem:[%s4710_s23 + $0xf0] sm:$0xf]  ;;  %v3050_v4 = vor.u32 %v3779_v2, %v3049_v1  ;;  %v3795_v5 = vld [vmem:[%s4710_s23 + $0xf4] sm:$0xf0]  ;;  %v3777_v14 = vld [vmem:[%s4710_s23 + $0x64] sm:$0xf0] }
 0x10f   : > { %v3177_v6 = vld [vmem:[%s4710_s23 + $0x170] sm:$0xf]  ;;  %v3811_v7 = vld [vmem:[%s4710_s23 + $0x174] sm:$0xf0]  ;;  %v3114_v8 = vor.u32 %v3795_v5, %v3113_v3  ;;  %v3105_v15 = vld [vmem:[%s4710_s23 + $0xe0] sm:$0xf]  ;;  %v3042_v17 = vor.u32 %v3777_v14, %v3041_v12 }
 0x110   : > { %v3178_v9 = vor.u32 %v3811_v7, %v3177_v6  ;;  %v3241_v10 = vld [vmem:[%s4710_s23 + $0x1f0] sm:$0xf]  ;;  %v3827_v11 = vld [vmem:[%s4710_s23 + $0x1f4] sm:$0xf0]  ;;  %1844 = vmatpush.bf16.msra.mxu0 %v3050_v4  ;;  %v3793_v16 = vld [vmem:[%s4710_s23 + $0xe4] sm:$0xf0] }
 0x111   : > { %v3242_v13 = vor.u32 %v3827_v11, %v3241_v10  ;;  %1857 = vmatpush.bf16.msra.mxu1 %v3114_v8  ;;  %v3106_v18 = vor.u32 %v3793_v16, %v3105_v15  ;;  %v3169_v19 = vld [vmem:[%s4710_s23 + $0x160] sm:$0xf]  ;;  %v3809_v20 = vld [vmem:[%s4710_s23 + $0x164] sm:$0xf0]  ;;  %v3033_v24 = vld [vmem:[%s4710_s23 + $0x50] sm:$0xf] }
 0x112   : > { %1870 = vmatpush.bf16.msra.mxu2 %v3178_v9  ;;  %v3233_v21 = vld [vmem:[%s4710_s23 + $0x1e0] sm:$0xf]  ;;  %v3170_v22 = vor.u32 %v3809_v20, %v3169_v19  ;;  %v3825_v23 = vld [vmem:[%s4710_s23 + $0x1e4] sm:$0xf0]  ;;  %v3775_v25 = vld [vmem:[%s4710_s23 + $0x54] sm:$0xf0] }
 0x113   : > { %1883 = vmatpush.bf16.msra.mxu3 %v3242_v13  ;;  %v3234_v26 = vor.u32 %v3825_v23, %v3233_v21  ;;  %v3097_v27 = vld [vmem:[%s4710_s23 + $0xd0] sm:$0xf]  ;;  %v3791_v28 = vld [vmem:[%s4710_s23 + $0xd4] sm:$0xf0]  ;;  %v3034_v30 = vor.u32 %v3775_v25, %v3033_v24  ;;  %v3025_v36 = vld [vmem:[%s4710_s23 + $0x40] sm:$0xf] }
 0x114   : > { %v3161_v29 = vld [vmem:[%s4710_s23 + $0x150] sm:$0xf]  ;;  %1845 = vmatpush.bf16.msra.mxu0 %v3042_v17  ;;  %v3807_v31 = vld [vmem:[%s4710_s23 + $0x154] sm:$0xf0]  ;;  %v3098_v34 = vor.u32 %v3791_v28, %v3097_v27  ;;  %v3773_v37 = vld [vmem:[%s4710_s23 + $0x44] sm:$0xf0] }
 0x115   : > { %v3225_v32 = vld [vmem:[%s4710_s23 + $0x1d0] sm:$0xf]  ;;  %v3823_v33 = vld [vmem:[%s4710_s23 + $0x1d4] sm:$0xf0]  ;;  %1858 = vmatpush.bf16.msra.mxu1 %v3106_v18  ;;  %v3162_v35 = vor.u32 %v3807_v31, %v3161_v29  ;;  %v3089_v38 = vld [vmem:[%s4710_s23 + $0xc0] sm:$0xf]  ;;  %v3026_v45 = vor.u32 %v3773_v37, %v3025_v36 }
 0x116   : > { %1871 = vmatpush.bf16.msra.mxu2 %v3170_v22  ;;  %v3226_v39 = vor.u32 %v3823_v33, %v3225_v32  ;;  %v3789_v40 = vld [vmem:[%s4710_s23 + $0xc4] sm:$0xf0]  ;;  %v3153_v41 = vld [vmem:[%s4710_s23 + $0x140] sm:$0xf]  ;;  %v3017_v48 = vld [vmem:[%s4710_s23 + $0x30] sm:$0xf] }
 0x117   : > { %1884 = vmatpush.bf16.msra.mxu3 %v3234_v26  ;;  %v3805_v42 = vld [vmem:[%s4710_s23 + $0x144] sm:$0xf0]  ;;  %v3217_v43 = vld [vmem:[%s4710_s23 + $0x1c0] sm:$0xf]  ;;  %v3090_v46 = vor.u32 %v3789_v40, %v3089_v38  ;;  %v3771_v49 = vld [vmem:[%s4710_s23 + $0x34] sm:$0xf0] }
 0x118   : > { %v3821_v44 = vld [vmem:[%s4710_s23 + $0x1c4] sm:$0xf0]  ;;  %1846 = vmatpush.bf16.msra.mxu0 %v3034_v30  ;;  %v3154_v47 = vor.u32 %v3805_v42, %v3153_v41  ;;  %v3081_v50 = vld [vmem:[%s4710_s23 + $0xb0] sm:$0xf]  ;;  %v3787_v52 = vld [vmem:[%s4710_s23 + $0xb4] sm:$0xf0]  ;;  %v3018_v57 = vor.u32 %v3771_v49, %v3017_v48 }
 0x119   : > { %1859 = vmatpush.bf16.msra.mxu1 %v3098_v34  ;;  %v3218_v51 = vor.u32 %v3821_v44, %v3217_v43  ;;  %v3145_v53 = vld [vmem:[%s4710_s23 + $0x130] sm:$0xf]  ;;  %v3803_v54 = vld [vmem:[%s4710_s23 + $0x134] sm:$0xf0]  ;;  %v3082_v58 = vor.u32 %v3787_v52, %v3081_v50  ;;  %v3009_v60 = vld [vmem:[%s4710_s23 + $0x20] sm:$0xf] }
 0x11a   : > { %1872 = vmatpush.bf16.msra.mxu2 %v3162_v35  ;;  %v3209_v55 = vld [vmem:[%s4710_s23 + $0x1b0] sm:$0xf]  ;;  %v3819_v56 = vld [vmem:[%s4710_s23 + $0x1b4] sm:$0xf0]  ;;  %v3146_v59 = vor.u32 %v3803_v54, %v3145_v53  ;;  %v3769_v61 = vld [vmem:[%s4710_s23 + $0x24] sm:$0xf0] }
 0x11b   : > { %1885 = vmatpush.bf16.msra.mxu3 %v3226_v39  ;;  %v3073_v62 = vld [vmem:[%s4710_s23 + $0xa0] sm:$0xf]  ;;  %v3210_v63 = vor.u32 %v3819_v56, %v3209_v55  ;;  %v3785_v0 = vld [vmem:[%s4710_s23 + $0xa4] sm:$0xf0]  ;;  %v3010_v5 = vor.u32 %v3769_v61, %v3009_v60  ;;  %v3001_v8 = vld [vmem:[%s4710_s23 + $0x10] sm:$0xf] }
 0x11c   : > { %1847 = vmatpush.bf16.msra.mxu0 %v3026_v45  ;;  %v3137_v1 = vld [vmem:[%s4710_s23 + $0x120] sm:$0xf]  ;;  %v3801_v2 = vld [vmem:[%s4710_s23 + $0x124] sm:$0xf0]  ;;  %v3074_v6 = vor.u32 %v3785_v0, %v3073_v62  ;;  %v3767_v9 = vld [vmem:[%s4710_s23 + $0x14] sm:$0xf0] }
 0x11d   : > { %1860 = vmatpush.bf16.msra.mxu1 %v3090_v46  ;;  %v3201_v3 = vld [vmem:[%s4710_s23 + $0x1a0] sm:$0xf]  ;;  %v3817_v4 = vld [vmem:[%s4710_s23 + $0x1a4] sm:$0xf0]  ;;  %v3138_v7 = vor.u32 %v3801_v2, %v3137_v1  ;;  %v3065_v10 = vld [vmem:[%s4710_s23 + $0x90] sm:$0xf]  ;;  %v3002_v17 = vor.u32 %v3767_v9, %v3001_v8 }
 0x11e   : > { %1873 = vmatpush.bf16.msra.mxu2 %v3154_v47  ;;  %v3202_v11 = vor.u32 %v3817_v4, %v3201_v3  ;;  %v3783_v12 = vld [vmem:[%s4710_s23 + $0x94] sm:$0xf0]  ;;  %v3129_v13 = vld [vmem:[%s4710_s23 + $0x110] sm:$0xf]  ;;  %v2993_v18 = vld [vmem:[%s4710_s23] sm:$0xf] }
 0x11f   : > { %1886 = vmatpush.bf16.msra.mxu3 %v3218_v51  ;;  %v3799_v14 = vld [vmem:[%s4710_s23 + $0x114] sm:$0xf0]  ;;  %v3193_v15 = vld [vmem:[%s4710_s23 + $0x190] sm:$0xf]  ;;  %v3765_v19 = vld [vmem:[%s4710_s23 + $0x4] sm:$0xf0]  ;;  %v3066_v20 = vor.u32 %v3783_v12, %v3065_v10 }
 0x120   : > { %1848 = vmatpush.bf16.msra.mxu0 %v3018_v57  ;;  %v3815_v16 = vld [vmem:[%s4710_s23 + $0x194] sm:$0xf0]  ;;  %v3130_v21 = vor.u32 %v3799_v14, %v3129_v13  ;;  %v3057_v22 = vld [vmem:[%s4710_s23 + $0x80] sm:$0xf]  ;;  %v3781_v23 = vld [vmem:[%s4710_s23 + $0x84] sm:$0xf0]  ;;  %v2994_v32 = vor.u32 %v3765_v19, %v2993_v18 }
 0x121   : > { %1861 = vmatpush.bf16.msra.mxu1 %v3082_v58  ;;  %v3121_v24 = vld [vmem:[%s4710_s23 + $0x100] sm:$0xf]  ;;  %v3194_v25 = vor.u32 %v3815_v16, %v3193_v15  ;;  %v3797_v26 = vld [vmem:[%s4710_s23 + $0x104] sm:$0xf0]  ;;  %v3305_v29 = vld [vmem:[%s4710_s23 + $0x270] sm:$0xf]  ;;  %v3058_v36 = vor.u32 %v3781_v23, %v3057_v22 }
 0x122   : > { %1874 = vmatpush.bf16.msra.mxu2 %v3146_v59  ;;  %v3185_v27 = vld [vmem:[%s4710_s23 + $0x180] sm:$0xf]  ;;  %v3813_v28 = vld [vmem:[%s4710_s23 + $0x184] sm:$0xf0]  ;;  %v3843_v30 = vld [vmem:[%s4710_s23 + $0x274] sm:$0xf0]  ;;  %v3122_v37 = vor.u32 %v3797_v26, %v3121_v24 }
 0x123   : > { %1887 = vmatpush.bf16.msra.mxu3 %v3210_v63  ;;  %v3369_v31 = vld [vmem:[%s4710_s23 + $0x2f0] sm:$0xf]  ;;  %v3859_v33 = vld [vmem:[%s4710_s23 + $0x2f4] sm:$0xf0]  ;;  %v3778_v34 = vld [vmem:[%s4710_s23 + $0x74] sm:$0xf]  ;;  %v3186_v40 = vor.u32 %v3813_v28, %v3185_v27  ;;  %v3306_v41 = vor.u32 %v3843_v30, %v3305_v29 }
 0x124   : > { %1849 = vmatpush.bf16.msra.mxu0 %v3010_v5  ;;  %v3051_v35 = vld [vmem:[%s4710_s23 + $0x78] sm:$0xf0]  ;;  %v3794_v38 = vld [vmem:[%s4710_s23 + $0xf4] sm:$0xf]  ;;  %v3370_v42 = vor.u32 %v3859_v33, %v3369_v31  ;;  %v3297_v44 = vld [vmem:[%s4710_s23 + $0x260] sm:$0xf] }
 0x125   : > { %1862 = vmatpush.bf16.msra.mxu1 %v3074_v6  ;;  %v3115_v39 = vld [vmem:[%s4710_s23 + $0xf8] sm:$0xf0]  ;;  %v3054_v43 = vor.u32 %v3778_v34, %v3051_v35  ;;  %v3841_v45 = vld [vmem:[%s4710_s23 + $0x264] sm:$0xf0]  ;;  %v3361_v46 = vld [vmem:[%s4710_s23 + $0x2e0] sm:$0xf] }
 0x126   : > { %1875 = vmatpush.bf16.msra.mxu2 %v3138_v7  ;;  %v3118_v47 = vor.u32 %v3794_v38, %v3115_v39  ;;  %v3857_v48 = vld [vmem:[%s4710_s23 + $0x2e4] sm:$0xf0]  ;;  %v3776_v49 = vld [vmem:[%s4710_s23 + $0x64] sm:$0xf]  ;;  %v3043_v50 = vld [vmem:[%s4710_s23 + $0x68] sm:$0xf0]  ;;  %v3298_v53 = vor.u32 %v3841_v45, %v3297_v44 }
 0x127   : > { %1888 = vmatpush.bf16.msra.mxu3 %v3202_v11  ;;  %v3792_v51 = vld [vmem:[%s4710_s23 + $0xe4] sm:$0xf]  ;;  %v3107_v52 = vld [vmem:[%s4710_s23 + $0xe8] sm:$0xf0]  ;;  %v3289_v54 = vld [vmem:[%s4710_s23 + $0x250] sm:$0xf]  ;;  %v3362_v56 = vor.u32 %v3857_v48, %v3361_v46  ;;  %v3046_v57 = vor.u32 %v3776_v49, %v3043_v50 }
 0x128   : > { %1850 = vmatpush.bf16.msra.mxu0 %v3002_v17  ;;  %v3839_v55 = vld [vmem:[%s4710_s23 + $0x254] sm:$0xf0]  ;;  %v3353_v58 = vld [vmem:[%s4710_s23 + $0x2d0] sm:$0xf]  ;;  %v3110_v61 = vor.u32 %v3792_v51, %v3107_v52  ;;  %v3774_v62 = vld [vmem:[%s4710_s23 + $0x54] sm:$0xf] }
 0x129   : > { %1863 = vmatpush.bf16.msra.mxu1 %v3066_v20  ;;  %v3855_v59 = vld [vmem:[%s4710_s23 + $0x2d4] sm:$0xf0]  ;;  %v1242_v60 = vld [vmem:[%s4693_s26] sm:$0xff]  ;;  %v3035_v63 = vld [vmem:[%s4710_s23 + $0x58] sm:$0xf0]  ;;  %v3290_v7 = vor.u32 %v3839_v55, %v3289_v54  ;;  %p3375_p4 = scmp.ne.s32.totalorder %s4114_s25, 1 }
 0x12a   : > { %1876 = vmatpush.bf16.msra.mxu2 %v3130_v21  ;;  %v1346_v0 = vunpack.c.l.b16 %v1242_v60  ;;  %v1243_v1 = vld [vmem:[%s4693_s26 + $0x8] sm:$0xff]  ;;  %v1347_v2 = vunpack.c.h.b16 %v1242_v60  ;;  %v3790_v3 = vld [vmem:[%s4710_s23 + $0xd4] sm:$0xf]  ;;  %v3354_v8 = vor.u32 %v3855_v59, %v3353_v58  ;;  %v3038_v11 = vor.u32 %v3774_v62, %v3035_v63  ;;  %v3281_v12 = vld [vmem:[%s4710_s23 + $0x240] sm:$0xf] }
 0x12b   : > { %1889 = vmatpush.bf16.msra.mxu3 %v3194_v25  ;;  %v3099_v4 = vld [vmem:[%s4710_s23 + $0xd8] sm:$0xf0]  ;;  %v1348_v5 = vunpack.c.l.b16 %v1243_v1  ;;  %v1349_v6 = vunpack.c.h.b16 %v1243_v1  ;;  %v3837_v13 = vld [vmem:[%s4710_s23 + $0x244] sm:$0xf0]  ;;  %v3345_v14 = vld [vmem:[%s4710_s23 + $0x2c0] sm:$0xf] }
 0x12c   : > { %1851 = vmatpush.bf16.msra.mxu0 %v2994_v32  ;;  %v4805_v9 = vpack.c.b16 %v1346_v0, %v1346_v0  ;;  %v4807_v10 = vpack.c.b16 %v1347_v2, %v1347_v2  ;;  %v3102_v17 = vor.u32 %v3790_v3, %v3099_v4  ;;  %v3853_v18 = vld [vmem:[%s4710_s23 + $0x2c4] sm:$0xf0]  ;;  %v3772_v19 = vld [vmem:[%s4710_s23 + $0x44] sm:$0xf]  ;;  %v3027_v20 = vld [vmem:[%s4710_s23 + $0x48] sm:$0xf0]  ;;  %v3282_v23 = vor.u32 %v3837_v13, %v3281_v12 }
 0x12d   : > { %1864 = vmatpush.bf16.msra.mxu1 %v3058_v36  ;;  %v4812_v15 = vpack.c.b16 %v1348_v5, %v1348_v5  ;;  %v4814_v16 = vpack.c.b16 %v1349_v6, %v1349_v6  ;;  %v3788_v21 = vld [vmem:[%s4710_s23 + $0xc4] sm:$0xf]  ;;  %v3091_v22 = vld [vmem:[%s4710_s23 + $0xc8] sm:$0xf0]  ;;  %v3346_v24 = vor.u32 %v3853_v18, %v3345_v14  ;;  %v3030_v25 = vor.u32 %v3772_v19, %v3027_v20  ;;  %v3273_v26 = vld [vmem:[%s4710_s23 + $0x230] sm:$0xf] }
 0x12e   : > { %1877 = vmatpush.bf16.msra.mxu2 %v3122_v37  ;;  %v3835_v27 = vld [vmem:[%s4710_s23 + $0x234] sm:$0xf0]  ;;  %v3337_v28 = vld [vmem:[%s4710_s23 + $0x2b0] sm:$0xf]  ;;  %v3094_v29 = vor.u32 %v3788_v21, %v3091_v22  ;;  %v3770_v31 = vld [vmem:[%s4710_s23 + $0x34] sm:$0xf] }
 0x12f   : > { %1890 = vmatpush.bf16.msra.mxu3 %v3186_v40  ;;  %1852 = vmatmul.bf16.vlgmr.msra.gmra.mxu0 %v4805_v9  ;;  %v3851_v30 = vld [vmem:[%s4710_s23 + $0x2b4] sm:$0xf0]  ;;  %v3019_v32 = vld [vmem:[%s4710_s23 + $0x38] sm:$0xf0]  ;;  %v3786_v33 = vld [vmem:[%s4710_s23 + $0xb4] sm:$0xf]  ;;  %v3274_v35 = vor.u32 %v3835_v27, %v3273_v26 }
 0x130   : > { %1896 = vmatpush.bf16.msrb.mxu0 %v3306_v41  ;;  %1865 = vmatmul.bf16.vlgmr.msra.gmra.mxu1 %v4807_v10  ;;  %v3083_v34 = vld [vmem:[%s4710_s23 + $0xb8] sm:$0xf0]  ;;  %v3338_v36 = vor.u32 %v3851_v30, %v3337_v28  ;;  %v3022_v37 = vor.u32 %v3770_v31, %v3019_v32  ;;  %v3265_v38 = vld [vmem:[%s4710_s23 + $0x220] sm:$0xf]  ;;  %v3833_v39 = vld [vmem:[%s4710_s23 + $0x224] sm:$0xf0] }
 0x131   : > { %1909 = vmatpush.bf16.msrb.mxu1 %v3370_v42  ;;  %1878 = vmatmul.bf16.vlgmr.msra.gmra.mxu2 %v4812_v15  ;;  %v3329_v40 = vld [vmem:[%s4710_s23 + $0x2a0] sm:$0xf]  ;;  %v3086_v41 = vor.u32 %v3786_v33, %v3083_v34  ;;  %v3849_v42 = vld [vmem:[%s4710_s23 + $0x2a4] sm:$0xf0]  ;;  %v3011_v44 = vld [vmem:[%s4710_s23 + $0x28] sm:$0xf0] }
 0x132   : > { %1922 = vmatpush.bf16.msrb.mxu2 %v3054_v43  ;;  %1891 = vmatmul.bf16.vlgmr.msra.gmra.mxu3 %v4814_v16  ;;  %v3768_v43 = vld [vmem:[%s4710_s23 + $0x24] sm:$0xf]  ;;  %v3075_v46 = vld [vmem:[%s4710_s23 + $0xa8] sm:$0xf0]  ;;  %v3330_v48 = vor.u32 %v3849_v42, %v3329_v40  ;;  %v3257_v50 = vld [vmem:[%s4710_s23 + $0x210] sm:$0xf] }
 0x133   : > { %1935 = vmatpush.bf16.msrb.mxu3 %v3118_v47  ;;  %v3784_v45 = vld [vmem:[%s4710_s23 + $0xa4] sm:$0xf]  ;;  %v3266_v47 = vor.u32 %v3833_v39, %v3265_v38  ;;  %v3014_v49 = vor.u32 %v3768_v43, %v3011_v44  ;;  %v3831_v51 = vld [vmem:[%s4710_s23 + $0x214] sm:$0xf0]  ;;  %v3321_v52 = vld [vmem:[%s4710_s23 + $0x290] sm:$0xf] }
 0x134   : > { %1897 = vmatpush.bf16.msrb.mxu0 %v3298_v53  ;;  %v3078_v53 = vor.u32 %v3784_v45, %v3075_v46  ;;  %v3847_v54 = vld [vmem:[%s4710_s23 + $0x294] sm:$0xf0]  ;;  %v3766_v55 = vld [vmem:[%s4710_s23 + $0x14] sm:$0xf]  ;;  %v3067_v58 = vld [vmem:[%s4710_s23 + $0x98] sm:$0xf0]  ;;  %v3258_v59 = vor.u32 %v3831_v51, %v3257_v50 }
 0x135   : > { %1910 = vmatpush.bf16.msrb.mxu1 %v3362_v56  ;;  %v3003_v56 = vld [vmem:[%s4710_s23 + $0x18] sm:$0xf0]  ;;  %v3249_v60 = vld [vmem:[%s4710_s23 + $0x200] sm:$0xf]  ;;  %v3322_v63 = vor.u32 %v3847_v54, %v3321_v52  ;;  %v3845_v1 = vld [vmem:[%s4710_s23 + $0x284] sm:$0xf0] }
 0x136   : > { %1923 = vmatpush.bf16.msrb.mxu2 %v3046_v57  ;;  %v3782_v57 = vld [vmem:[%s4710_s23 + $0x94] sm:$0xf]  ;;  %v3313_v62 = vld [vmem:[%s4710_s23 + $0x280] sm:$0xf]  ;;  %v3006_v0 = vor.u32 %v3766_v55, %v3003_v56  ;;  %v3764_v2 = vld [vmem:[%s4710_s23 + $0x4] sm:$0xf] }
 0x137   : > { %1936 = vmatpush.bf16.msrb.mxu3 %v3110_v61  ;;  %v3829_v61 = vld [vmem:[%s4710_s23 + $0x204] sm:$0xf0]  ;;  %v1244_v3 = vld [vmem:[%s4693_s26 + $0x10] sm:$0xff]  ;;  %v3070_v4 = vor.u32 %v3782_v57, %v3067_v58  ;;  %v2995_v5 = vld [vmem:[%s4710_s23 + $0x8] sm:$0xf0]  ;;  %v3314_v20 = vor.u32 %v3845_v1, %v3313_v62 }
 0x138   : > { %1898 = vmatpush.bf16.msrb.mxu0 %v3290_v7  ;;  %v3780_v6 = vld [vmem:[%s4710_s23 + $0x84] sm:$0xf]  ;;  %v3059_v7 = vld [vmem:[%s4710_s23 + $0x88] sm:$0xf0]  ;;  %v3826_v12 = vld [vmem:[%s4710_s23 + $0x1f4] sm:$0xf]  ;;  %v3250_v13 = vor.u32 %v3829_v61, %v3249_v60  ;;  %v1350_v19 = vunpack.c.l.b16 %v1244_v3  ;;  %v2998_v21 = vor.u32 %v3764_v2, %v2995_v5  ;;  %v1351_v26 = vunpack.c.h.b16 %v1244_v3 }
 0x139   : > { %1911 = vmatpush.bf16.msrb.mxu1 %v3354_v8  ;;  %v3810_v8 = vld [vmem:[%s4710_s23 + $0x174] sm:$0xf]  ;;  %v3243_v14 = vld [vmem:[%s4710_s23 + $0x1f8] sm:$0xf0]  ;;  %v3171_v30 = vld [vmem:[%s4710_s23 + $0x168] sm:$0xf0] }
 0x13a   : > { %1924 = vmatpush.bf16.msrb.mxu2 %v3038_v11  ;;  %v3179_v11 = vld [vmem:[%s4710_s23 + $0x178] sm:$0xf0]  ;;  %v3858_v22 = vld [vmem:[%s4710_s23 + $0x2f4] sm:$0xf]  ;;  %v3246_v27 = vor.u32 %v3826_v12, %v3243_v14  ;;  %v3824_v31 = vld [vmem:[%s4710_s23 + $0x1e4] sm:$0xf]  ;;  %v4876_v40 = vpack.c.b16 %v1351_v26, %v1351_v26 }
 0x13b   : > { %1937 = vmatpush.bf16.msrb.mxu3 %v3102_v17  ;;  %v3842_v17 = vld [vmem:[%s4710_s23 + $0x274] sm:$0xf]  ;;  %v3307_v18 = vld [vmem:[%s4710_s23 + $0x278] sm:$0xf0]  ;;  %v3235_v33 = vld [vmem:[%s4710_s23 + $0x1e8] sm:$0xf0] }
 0x13c   : > { %1899 = vmatpush.bf16.msrb.mxu0 %v3282_v23  ;;  %v3371_v23 = vld [vmem:[%s4710_s23 + $0x2f8] sm:$0xf0]  ;;  %v3310_v28 = vor.u32 %v3842_v17, %v3307_v18  ;;  %v3840_v34 = vld [vmem:[%s4710_s23 + $0x264] sm:$0xf]  ;;  %v3363_v38 = vld [vmem:[%s4710_s23 + $0x2e8] sm:$0xf0] }
 0x13d   : > { %1912 = vmatpush.bf16.msrb.mxu1 %v3346_v24  ;;  %v3062_v24 = vor.u32 %v3780_v6, %v3059_v7  ;;  %v3374_v32 = vor.u32 %v3858_v22, %v3371_v23  ;;  %v3806_v43 = vld [vmem:[%s4710_s23 + $0x154] sm:$0xf]  ;;  %v3163_v44 = vld [vmem:[%s4710_s23 + $0x158] sm:$0xf0]  ;;  %v3804_v55 = vld [vmem:[%s4710_s23 + $0x144] sm:$0xf] }
 0x13e   : > { %1925 = vmatpush.bf16.msrb.mxu2 %v3030_v25  ;;  %v3182_v25 = vor.u32 %v3810_v8, %v3179_v11  ;;  %v3822_v45 = vld [vmem:[%s4710_s23 + $0x1d4] sm:$0xf]  ;;  %v3355_v51 = vld [vmem:[%s4710_s23 + $0x2d8] sm:$0xf0]  ;;  %v3166_v52 = vor.u32 %v3806_v43, %v3163_v44  ;;  %v3155_v56 = vld [vmem:[%s4710_s23 + $0x148] sm:$0xf0] }
 0x13f   : > { %1938 = vmatpush.bf16.msrb.mxu3 %v3094_v29  ;;  %v3808_v29 = vld [vmem:[%s4710_s23 + $0x164] sm:$0xf]  ;;  %v3854_v50 = vld [vmem:[%s4710_s23 + $0x2d4] sm:$0xf]  ;;  %v3283_v61 = vld [vmem:[%s4710_s23 + $0x248] sm:$0xf0] }
 0x140   : > { %1900 = vmatpush.bf16.msrb.mxu0 %v3274_v35  ;;  %v3299_v35 = vld [vmem:[%s4710_s23 + $0x268] sm:$0xf0]  ;;  %v3174_v39 = vor.u32 %v3808_v29, %v3171_v30  ;;  %v3820_v57 = vld [vmem:[%s4710_s23 + $0x1c4] sm:$0xf]  ;;  %v3358_v58 = vor.u32 %v3854_v50, %v3355_v51  ;;  %v3802_v3 = vld [vmem:[%s4710_s23 + $0x134] sm:$0xf] }
 0x141   : > { %1913 = vmatpush.bf16.msrb.mxu1 %v3338_v36  ;;  %v4872_v36 = vpack.c.b16 %v1350_v19, %v1350_v19  ;;  %v3302_v42 = vor.u32 %v3840_v34, %v3299_v35  ;;  %v3836_v60 = vld [vmem:[%s4710_s23 + $0x244] sm:$0xf]  ;;  %v3818_v5 = vld [vmem:[%s4710_s23 + $0x1b4] sm:$0xf]  ;;  %v3211_v7 = vld [vmem:[%s4710_s23 + $0x1b8] sm:$0xf0] }
 0x142   : > { %1926 = vmatpush.bf16.msrb.mxu2 %v3022_v37  ;;  %v3856_v37 = vld [vmem:[%s4710_s23 + $0x2e4] sm:$0xf]  ;;  %v3286_v2 = vor.u32 %v3836_v60, %v3283_v61  ;;  %v3834_v8 = vld [vmem:[%s4710_s23 + $0x234] sm:$0xf]  ;;  %v3275_v11 = vld [vmem:[%s4710_s23 + $0x238] sm:$0xf0]  ;;  %v3214_v17 = vor.u32 %v3818_v5, %v3211_v7 }
 0x143   : > { %1939 = vmatpush.bf16.msrb.mxu3 %v3086_v41  ;;  %v3238_v41 = vor.u32 %v3824_v31, %v3235_v33  ;;  %v3366_v46 = vor.u32 %v3856_v37, %v3363_v38  ;;  %v3852_v62 = vld [vmem:[%s4710_s23 + $0x2c4] sm:$0xf]  ;;  %v3850_v12 = vld [vmem:[%s4710_s23 + $0x2b4] sm:$0xf]  ;;  %v3278_v18 = vor.u32 %v3834_v8, %v3275_v11  ;;  %v3203_v23 = vld [vmem:[%s4710_s23 + $0x1a8] sm:$0xf0] }
 0x144   : > { %1901 = vmatpush.bf16.msrb.mxu0 %v3266_v47  ;;  %v3227_v47 = vld [vmem:[%s4710_s23 + $0x1d8] sm:$0xf0]  ;;  %v3800_v19 = vld [vmem:[%s4710_s23 + $0x124] sm:$0xf]  ;;  %v3798_v31 = vld [vmem:[%s4710_s23 + $0x114] sm:$0xf] }
 0x145   : > { %1914 = vmatpush.bf16.msrb.mxu1 %v3330_v48  ;;  %v3838_v48 = vld [vmem:[%s4710_s23 + $0x254] sm:$0xf]  ;;  %v3848_v26 = vld [vmem:[%s4710_s23 + $0x2a4] sm:$0xf]  ;;  %v3195_v35 = vld [vmem:[%s4710_s23 + $0x198] sm:$0xf0] }
 0x146   : > { %1927 = vmatpush.bf16.msrb.mxu2 %v3014_v49  ;;  %v3291_v49 = vld [vmem:[%s4710_s23 + $0x258] sm:$0xf0]  ;;  %v3814_v33 = vld [vmem:[%s4710_s23 + $0x194] sm:$0xf]  ;;  %v3828_v50 = vld [vmem:[%s4710_s23 + $0x204] sm:$0xf] }
 0x147   : > { %1940 = vmatpush.bf16.msrb.mxu3 %v3078_v53  ;;  %v3230_v53 = vor.u32 %v3822_v45, %v3227_v47  ;;  %v3294_v54 = vor.u32 %v3838_v48, %v3291_v49  ;;  %v3830_v37 = vld [vmem:[%s4710_s23 + $0x214] sm:$0xf]  ;;  %v3259_v38 = vld [vmem:[%s4710_s23 + $0x218] sm:$0xf0]  ;;  %v3198_v43 = vor.u32 %v3814_v33, %v3195_v35  ;;  %v3796_v45 = vld [vmem:[%s4710_s23 + $0x104] sm:$0xf] }
 0x148   : > { %1902 = vmatpush.bf16.msrb.mxu0 %v3258_v59  ;;  %v3219_v59 = vld [vmem:[%s4710_s23 + $0x1c8] sm:$0xf0]  ;;  %v3262_v44 = vor.u32 %v3830_v37, %v3259_v38  ;;  %v3812_v47 = vld [vmem:[%s4710_s23 + $0x184] sm:$0xf]  ;;  %v1245_v7 = vld [vmem:[#allocation2] sm:$0xff] }
 0x149   : > { %1915 = vmatpush.bf16.msrb.mxu1 %v3322_v63  ;;  %v3347_v63 = vld [vmem:[%s4710_s23 + $0x2c8] sm:$0xf0]  ;;  %v3222_v1 = vor.u32 %v3820_v57, %v3219_v59 }
 0x14a   : > { %1928 = vmatpush.bf16.msrb.mxu2 %v3006_v0  ;;  %v3158_v0 = vor.u32 %v3804_v55, %v3155_v56  ;;  %v3350_v6 = vor.u32 %v3852_v62, %v3347_v63  ;;  %v3187_v49 = vld [vmem:[%s4710_s23 + $0x188] sm:$0xf0] }
 0x14b   : > { %1941 = vmatpush.bf16.msrb.mxu3 %v3070_v4  ;;  %v3147_v4 = vld [vmem:[%s4710_s23 + $0x138] sm:$0xf0]  ;;  %v3251_v51 = vld [vmem:[%s4710_s23 + $0x208] sm:$0xf0]  ;;  %v3190_v55 = vor.u32 %v3812_v47, %v3187_v49 }
 0x14c   : > { %1903 = vmatpush.bf16.msrb.mxu0 %v3250_v13  ;;  %v3339_v13 = vld [vmem:[%s4710_s23 + $0x2b8] sm:$0xf0]  ;;  %v3150_v14 = vor.u32 %v3802_v3, %v3147_v4  ;;  %v3254_v56 = vor.u32 %v3828_v50, %v3251_v51 }
 0x14d   : > { %1916 = vmatpush.bf16.msrb.mxu1 %v3314_v20  ;;  %v3139_v20 = vld [vmem:[%s4710_s23 + $0x128] sm:$0xf0]  ;;  %v3342_v22 = vor.u32 %v3850_v12, %v3339_v13 }
 0x14e   : > { %1929 = vmatpush.bf16.msrb.mxu2 %v2998_v21  ;;  %v3816_v21 = vld [vmem:[%s4710_s23 + $0x1a4] sm:$0xf] }
 0x14f   : > { %1942 = vmatpush.bf16.msrb.mxu3 %v3062_v24  ;;  %1904 = vmatmul.bf16.vlgmr.msrb.gmra.mxu0 %v4872_v36  ;;  %v3832_v24 = vld [vmem:[%s4710_s23 + $0x224] sm:$0xf]  ;;  %v3206_v29 = vor.u32 %v3816_v21, %v3203_v23 }
 0x150   : > { %1948 = vmatpush.bf16.msra.mxu0 %v3182_v25  ;;  %1917 = vmatmul.bf16.vlgmr.msrb.gmra.mxu1 %v4876_v40  ;;  %v3267_v25 = vld [vmem:[%s4710_s23 + $0x228] sm:$0xf0] }
 0x151   : > { %1961 = vmatpush.bf16.msra.mxu1 %v3246_v27  ;;  %1930 = vmatmul.bf16.vlgmr.msrb.gmra.mxu2 %v4805_v9  ;;  %v3331_v27 = vld [vmem:[%s4710_s23 + $0x2a8] sm:$0xf0]  ;;  %v3270_v30 = vor.u32 %v3832_v24, %v3267_v25 }
 0x152   : > { %1974 = vmatpush.bf16.msra.mxu2 %v3310_v28  ;;  %1943 = vmatmul.bf16.vlgmr.msrb.gmra.mxu3 %v4807_v10  ;;  %v3142_v28 = vor.u32 %v3800_v19, %v3139_v20  ;;  %v3334_v34 = vor.u32 %v3848_v26, %v3331_v27 }
 0x153   : > { %1987 = vmatpush.bf16.msra.mxu3 %v3374_v32  ;;  %v3131_v32 = vld [vmem:[%s4710_s23 + $0x118] sm:$0xf0] }
 0x154   : > { %1949 = vmatpush.bf16.msra.mxu0 %v3174_v39  ;;  %v3846_v39 = vld [vmem:[%s4710_s23 + $0x294] sm:$0xf] }
 0x155   : > { %1962 = vmatpush.bf16.msra.mxu1 %v3238_v41  ;;  %v3323_v41 = vld [vmem:[%s4710_s23 + $0x298] sm:$0xf0] }
 0x156   : > { %1975 = vmatpush.bf16.msra.mxu2 %v3302_v42  ;;  %v3134_v42 = vor.u32 %v3798_v31, %v3131_v32  ;;  %v3326_v48 = vor.u32 %v3846_v39, %v3323_v41 }
 0x157   : > { %1988 = vmatpush.bf16.msra.mxu3 %v3366_v46  ;;  %v3123_v46 = vld [vmem:[%s4710_s23 + $0x108] sm:$0xf0] }
 0x158   : > { %1950 = vmatpush.bf16.msra.mxu0 %v3166_v52  ;;  %v3844_v52 = vld [vmem:[%s4710_s23 + $0x284] sm:$0xf] }
 0x159   : > { %1963 = vmatpush.bf16.msra.mxu1 %v3230_v53  ;;  %v3315_v53 = vld [vmem:[%s4710_s23 + $0x288] sm:$0xf0] }
 0x15a   : > { %1976 = vmatpush.bf16.msra.mxu2 %v3294_v54  ;;  %v3126_v54 = vor.u32 %v3796_v45, %v3123_v46  ;;  %v3318_v57 = vor.u32 %v3844_v52, %v3315_v53 }
 0x15b   : > { %1989 = vmatpush.bf16.msra.mxu3 %v3358_v58 }
 0x15c   : > { %1951 = vmatpush.bf16.msra.mxu0 %v3158_v0 }
 0x15d   : > { %1964 = vmatpush.bf16.msra.mxu1 %v3222_v1 }
 0x15e   : > { %1977 = vmatpush.bf16.msra.mxu2 %v3286_v2 }
 0x15f   : > { %1990 = vmatpush.bf16.msra.mxu3 %v3350_v6 }
 0x160   : > { %1952 = vmatpush.bf16.msra.mxu0 %v3150_v14 }
 0x161   : > { %1965 = vmatpush.bf16.msra.mxu1 %v3214_v17 }
 0x162   : > { %1978 = vmatpush.bf16.msra.mxu2 %v3278_v18 }
 0x163   : > { %1991 = vmatpush.bf16.msra.mxu3 %v3342_v22 }
 0x164   : > { %1953 = vmatpush.bf16.msra.mxu0 %v3142_v28 }
 0x165   : > { %1966 = vmatpush.bf16.msra.mxu1 %v3206_v29 }
 0x166   : > { %1979 = vmatpush.bf16.msra.mxu2 %v3270_v30  ;;  %v1246_v30 = vld [vmem:[#allocation2 + $0x8] sm:$0xff] }
 0x167   : > { %1992 = vmatpush.bf16.msra.mxu3 %v3334_v34 }
 0x168   : > { %1954 = vmatpush.bf16.msra.mxu0 %v3134_v42 }
 0x169   : > { %1967 = vmatpush.bf16.msra.mxu1 %v3198_v43 }
 0x16a   : > { %1980 = vmatpush.bf16.msra.mxu2 %v3262_v44 }
 0x16b   : > { %1993 = vmatpush.bf16.msra.mxu3 %v3326_v48 }
 0x16c   : > { %1955 = vmatpush.bf16.msra.mxu0 %v3126_v54 }
 0x16d   : > { %1968 = vmatpush.bf16.msra.mxu1 %v3190_v55 }
 0x16e   : > { %1981 = vmatpush.bf16.msra.mxu2 %v3254_v56 }
 0x16f   : > { %1994 = vmatpush.bf16.msra.mxu3 %v3318_v57  ;;  %1956 = vmatmul.bf16.vlgmr.msra.gmra.mxu0 %v4812_v15 }
 0x170   : > { %1969 = vmatmul.bf16.vlgmr.msra.gmra.mxu1 %v4814_v16 }
 0x171   : > { %1982 = vmatmul.bf16.vlgmr.msra.gmra.mxu2 %v4872_v36 }
 0x172   : > { %1995 = vmatmul.bf16.vlgmr.msra.gmra.mxu3 %v4876_v40 }
 0x1ac   : > { %v1853_v58 = vpop.f32.mrf.mxu0 }
 0x1ad   : > { %v1866_v59 = vpop.f32.mrf.mxu1 }
 0x1ae   : > { %v1867_v0 = vadd.f32 %v1866_v59, %v1853_v58 }
 0x1b4   : > { %v1879_v60 = vpop.f32.mrf.mxu2  ;;  %v1855_v62 = vpop.f32.mrf.mxu0 }
 0x1b5   : > { %v1892_v61 = vpop.f32.mrf.mxu3  ;;  %v1868_v63 = vpop.f32.mrf.mxu1  ;;  %v1880_v3 = vadd.f32 %v1879_v60, %v1867_v0 }
 0x1b7   : > { %v1893_v4 = vadd.f32 %v1892_v61, %v1880_v3 }
 0x1bc   : > { %v1881_v1 = vpop.f32.mrf.mxu2 }
 0x1bd   : > { %v1894_v2 = vpop.f32.mrf.mxu3 }
 0x1cc   : > { %v1905_v5 = vpop.f32.mrf.mxu0 }
 0x1cd   : > { %v1906_v6 = vadd.f32 %v1905_v5, %v1893_v4  ;;  %v1918_v8 = vpop.f32.mrf.mxu1 }
 0x1cf   : > { %v1919_v11 = vadd.f32 %v1918_v8, %v1906_v6 }
 0x1d1   : > { %v2000_v12 = vadd.f32 %v1919_v11, %v1245_v7 }
 0x1d3   : > { %2002 = vst [vmem:[#allocation2] sm:$0xff] %v2000_v12 }
 0x1d4   : > { %v1931_v13 = vpop.f32.mrf.mxu2  ;;  %v1907_v17 = vpop.f32.mrf.mxu0 }
 0x1d5   : > { %v1944_v14 = vpop.f32.mrf.mxu3  ;;  %v1920_v18 = vpop.f32.mrf.mxu1 }
 0x1d6   : > { %v1945_v21 = vadd.f32 %v1944_v14, %v1931_v13 }
 0x1dc   : > { %v1933_v19 = vpop.f32.mrf.mxu2 }
 0x1dd   : > { %v1946_v20 = vpop.f32.mrf.mxu3 }
 0x1ec   : > { %v1957_v22 = vpop.f32.mrf.mxu0 }
 0x1ed   : > { %v1970_v23 = vpop.f32.mrf.mxu1  ;;  %v1958_v24 = vadd.f32 %v1957_v22, %v1945_v21 }
 0x1ef   : > { %v1971_v25 = vadd.f32 %v1970_v23, %v1958_v24 }
 0x1f4   : > { %v1983_v26 = vpop.f32.mrf.mxu2  ;;  %v1959_v29 = vpop.f32.mrf.mxu0 }
 0x1f5   : > { %v1984_v27 = vadd.f32 %v1983_v26, %v1971_v25  ;;  %v1996_v28 = vpop.f32.mrf.mxu3  ;;  %v1972_v31 = vpop.f32.mrf.mxu1 }
 0x1f7   : > { %v1997_v32 = vadd.f32 %v1996_v28, %v1984_v27 }
 0x1f9   : > { %v2001_v33 = vadd.f32 %v1997_v32, %v1246_v30  ;;  %2007 = sbr.rel (%p3375_p4) target bundleno = 751 (0x2ef), region = 124 }
 0x1fb   : > { %2003 = vst [vmem:[#allocation2 + $0x8] sm:$0xff] %v2001_v33 }
 0x1fc   : > { %v1985_v34 = vpop.f32.mrf.mxu2 }
 0x1fd   : > { %v1998_v35 = vpop.f32.mrf.mxu3 }
 0x1fe   : > { %v3434_v37 = vld [vmem:[%s4712_s1 + $0x70] sm:$0xf]  ;;  %v3875_v38 = vld [vmem:[%s4712_s1 + $0x74] sm:$0xf0]  ;;  %v3426_v49 = vld [vmem:[%s4712_s1 + $0x60] sm:$0xf] }
 0x1ff   : > { %v3498_v39 = vld [vmem:[%s4712_s1 + $0xf0] sm:$0xf]  ;;  %v3435_v41 = vor.u32 %v3875_v38, %v3434_v37  ;;  %v3891_v42 = vld [vmem:[%s4712_s1 + $0xf4] sm:$0xf0]  ;;  %v3873_v51 = vld [vmem:[%s4712_s1 + $0x64] sm:$0xf0] }
 0x200   : > { %v3562_v43 = vld [vmem:[%s4712_s1 + $0x170] sm:$0xf]  ;;  %v3907_v44 = vld [vmem:[%s4712_s1 + $0x174] sm:$0xf0]  ;;  %v3499_v45 = vor.u32 %v3891_v42, %v3498_v39  ;;  %v3490_v52 = vld [vmem:[%s4712_s1 + $0xe0] sm:$0xf]  ;;  %v3427_v54 = vor.u32 %v3873_v51, %v3426_v49 }
 0x201   : > { %v3563_v46 = vor.u32 %v3907_v44, %v3562_v43  ;;  %v3626_v47 = vld [vmem:[%s4712_s1 + $0x1f0] sm:$0xf]  ;;  %v3923_v48 = vld [vmem:[%s4712_s1 + $0x1f4] sm:$0xf0]  ;;  %2590 = vmatpush.bf16.msra.mxu0 %v3435_v41  ;;  %v3889_v53 = vld [vmem:[%s4712_s1 + $0xe4] sm:$0xf0] }
 0x202   : > { %v3627_v50 = vor.u32 %v3923_v48, %v3626_v47  ;;  %2603 = vmatpush.bf16.msra.mxu1 %v3499_v45  ;;  %v3491_v55 = vor.u32 %v3889_v53, %v3490_v52  ;;  %v3554_v56 = vld [vmem:[%s4712_s1 + $0x160] sm:$0xf]  ;;  %v3905_v57 = vld [vmem:[%s4712_s1 + $0x164] sm:$0xf0]  ;;  %v3418_v61 = vld [vmem:[%s4712_s1 + $0x50] sm:$0xf] }
 0x203   : > { %2616 = vmatpush.bf16.msra.mxu2 %v3563_v46  ;;  %v3618_v58 = vld [vmem:[%s4712_s1 + $0x1e0] sm:$0xf]  ;;  %v3555_v59 = vor.u32 %v3905_v57, %v3554_v56  ;;  %v3921_v60 = vld [vmem:[%s4712_s1 + $0x1e4] sm:$0xf0]  ;;  %v3871_v62 = vld [vmem:[%s4712_s1 + $0x54] sm:$0xf0] }
 0x204   : > { %2629 = vmatpush.bf16.msra.mxu3 %v3627_v50  ;;  %v3619_v63 = vor.u32 %v3921_v60, %v3618_v58  ;;  %v3482_v0 = vld [vmem:[%s4712_s1 + $0xd0] sm:$0xf]  ;;  %v3887_v1 = vld [vmem:[%s4712_s1 + $0xd4] sm:$0xf0]  ;;  %v3419_v3 = vor.u32 %v3871_v62, %v3418_v61  ;;  %v3410_v11 = vld [vmem:[%s4712_s1 + $0x40] sm:$0xf] }
 0x205   : > { %v3546_v2 = vld [vmem:[%s4712_s1 + $0x150] sm:$0xf]  ;;  %2591 = vmatpush.bf16.msra.mxu0 %v3427_v54  ;;  %v3903_v4 = vld [vmem:[%s4712_s1 + $0x154] sm:$0xf0]  ;;  %v3483_v7 = vor.u32 %v3887_v1, %v3482_v0  ;;  %v3869_v12 = vld [vmem:[%s4712_s1 + $0x44] sm:$0xf0] }
 0x206   : > { %v3610_v5 = vld [vmem:[%s4712_s1 + $0x1d0] sm:$0xf]  ;;  %v3919_v6 = vld [vmem:[%s4712_s1 + $0x1d4] sm:$0xf0]  ;;  %2604 = vmatpush.bf16.msra.mxu1 %v3491_v55  ;;  %v3547_v8 = vor.u32 %v3903_v4, %v3546_v2  ;;  %v3474_v13 = vld [vmem:[%s4712_s1 + $0xc0] sm:$0xf]  ;;  %v3411_v22 = vor.u32 %v3869_v12, %v3410_v11 }
 0x207   : > { %2617 = vmatpush.bf16.msra.mxu2 %v3555_v59  ;;  %v3611_v14 = vor.u32 %v3919_v6, %v3610_v5  ;;  %v3885_v17 = vld [vmem:[%s4712_s1 + $0xc4] sm:$0xf0]  ;;  %v3538_v18 = vld [vmem:[%s4712_s1 + $0x140] sm:$0xf]  ;;  %v3402_v25 = vld [vmem:[%s4712_s1 + $0x30] sm:$0xf] }
 0x208   : > { %2630 = vmatpush.bf16.msra.mxu3 %v3619_v63  ;;  %v3901_v19 = vld [vmem:[%s4712_s1 + $0x144] sm:$0xf0]  ;;  %v3602_v20 = vld [vmem:[%s4712_s1 + $0x1c0] sm:$0xf]  ;;  %v3475_v23 = vor.u32 %v3885_v17, %v3474_v13  ;;  %v3867_v26 = vld [vmem:[%s4712_s1 + $0x34] sm:$0xf0] }
 0x209   : > { %v3917_v21 = vld [vmem:[%s4712_s1 + $0x1c4] sm:$0xf0]  ;;  %2592 = vmatpush.bf16.msra.mxu0 %v3419_v3  ;;  %v3539_v24 = vor.u32 %v3901_v19, %v3538_v18  ;;  %v3466_v27 = vld [vmem:[%s4712_s1 + $0xb0] sm:$0xf]  ;;  %v3883_v29 = vld [vmem:[%s4712_s1 + $0xb4] sm:$0xf0]  ;;  %v3403_v34 = vor.u32 %v3867_v26, %v3402_v25 }
 0x20a   : > { %2605 = vmatpush.bf16.msra.mxu1 %v3483_v7  ;;  %v3603_v28 = vor.u32 %v3917_v21, %v3602_v20  ;;  %v3530_v30 = vld [vmem:[%s4712_s1 + $0x130] sm:$0xf]  ;;  %v3899_v31 = vld [vmem:[%s4712_s1 + $0x134] sm:$0xf0]  ;;  %v3467_v35 = vor.u32 %v3883_v29, %v3466_v27  ;;  %v3394_v38 = vld [vmem:[%s4712_s1 + $0x20] sm:$0xf] }
 0x20b   : > { %2618 = vmatpush.bf16.msra.mxu2 %v3547_v8  ;;  %v3594_v32 = vld [vmem:[%s4712_s1 + $0x1b0] sm:$0xf]  ;;  %v3915_v33 = vld [vmem:[%s4712_s1 + $0x1b4] sm:$0xf0]  ;;  %v3531_v37 = vor.u32 %v3899_v31, %v3530_v30  ;;  %v3865_v39 = vld [vmem:[%s4712_s1 + $0x24] sm:$0xf0] }
 0x20c   : > { %2631 = vmatpush.bf16.msra.mxu3 %v3611_v14  ;;  %v3458_v41 = vld [vmem:[%s4712_s1 + $0xa0] sm:$0xf]  ;;  %v3595_v42 = vor.u32 %v3915_v33, %v3594_v32  ;;  %v3881_v43 = vld [vmem:[%s4712_s1 + $0xa4] sm:$0xf0]  ;;  %v3395_v48 = vor.u32 %v3865_v39, %v3394_v38  ;;  %v3386_v51 = vld [vmem:[%s4712_s1 + $0x10] sm:$0xf] }
 0x20d   : > { %2593 = vmatpush.bf16.msra.mxu0 %v3411_v22  ;;  %v3522_v44 = vld [vmem:[%s4712_s1 + $0x120] sm:$0xf]  ;;  %v3897_v45 = vld [vmem:[%s4712_s1 + $0x124] sm:$0xf0]  ;;  %v3459_v49 = vor.u32 %v3881_v43, %v3458_v41  ;;  %v3863_v52 = vld [vmem:[%s4712_s1 + $0x14] sm:$0xf0] }
 0x20e   : > { %2606 = vmatpush.bf16.msra.mxu1 %v3475_v23  ;;  %v3586_v46 = vld [vmem:[%s4712_s1 + $0x1a0] sm:$0xf]  ;;  %v3913_v47 = vld [vmem:[%s4712_s1 + $0x1a4] sm:$0xf0]  ;;  %v3523_v50 = vor.u32 %v3897_v45, %v3522_v44  ;;  %v3450_v53 = vld [vmem:[%s4712_s1 + $0x90] sm:$0xf]  ;;  %v3387_v60 = vor.u32 %v3863_v52, %v3386_v51 }
 0x20f   : > { %2619 = vmatpush.bf16.msra.mxu2 %v3539_v24  ;;  %v3587_v54 = vor.u32 %v3913_v47, %v3586_v46  ;;  %v3879_v55 = vld [vmem:[%s4712_s1 + $0x94] sm:$0xf0]  ;;  %v3514_v56 = vld [vmem:[%s4712_s1 + $0x110] sm:$0xf]  ;;  %v3378_v61 = vld [vmem:[%s4712_s1] sm:$0xf] }
 0x210   : > { %2632 = vmatpush.bf16.msra.mxu3 %v3603_v28  ;;  %v3895_v57 = vld [vmem:[%s4712_s1 + $0x114] sm:$0xf0]  ;;  %v3578_v58 = vld [vmem:[%s4712_s1 + $0x190] sm:$0xf]  ;;  %v3861_v62 = vld [vmem:[%s4712_s1 + $0x4] sm:$0xf0]  ;;  %v3451_v63 = vor.u32 %v3879_v55, %v3450_v53 }
 0x211   : > { %2594 = vmatpush.bf16.msra.mxu0 %v3403_v34  ;;  %v3911_v59 = vld [vmem:[%s4712_s1 + $0x194] sm:$0xf0]  ;;  %v3515_v0 = vor.u32 %v3895_v57, %v3514_v56  ;;  %v3442_v1 = vld [vmem:[%s4712_s1 + $0x80] sm:$0xf]  ;;  %v3877_v2 = vld [vmem:[%s4712_s1 + $0x84] sm:$0xf0]  ;;  %v3379_v13 = vor.u32 %v3861_v62, %v3378_v61 }
 0x212   : > { %2607 = vmatpush.bf16.msra.mxu1 %v3467_v35  ;;  %v3506_v3 = vld [vmem:[%s4712_s1 + $0x100] sm:$0xf]  ;;  %v3579_v4 = vor.u32 %v3911_v59, %v3578_v58  ;;  %v3893_v5 = vld [vmem:[%s4712_s1 + $0x104] sm:$0xf0]  ;;  %v3690_v8 = vld [vmem:[%s4712_s1 + $0x270] sm:$0xf]  ;;  %v3443_v19 = vor.u32 %v3877_v2, %v3442_v1 }
 0x213   : > { %2620 = vmatpush.bf16.msra.mxu2 %v3531_v37  ;;  %v3570_v6 = vld [vmem:[%s4712_s1 + $0x180] sm:$0xf]  ;;  %v3909_v7 = vld [vmem:[%s4712_s1 + $0x184] sm:$0xf0]  ;;  %v3939_v11 = vld [vmem:[%s4712_s1 + $0x274] sm:$0xf0]  ;;  %v3507_v20 = vor.u32 %v3893_v5, %v3506_v3 }
 0x214   : > { %2633 = vmatpush.bf16.msra.mxu3 %v3595_v42  ;;  %v3754_v12 = vld [vmem:[%s4712_s1 + $0x2f0] sm:$0xf]  ;;  %v3955_v14 = vld [vmem:[%s4712_s1 + $0x2f4] sm:$0xf0]  ;;  %v3874_v17 = vld [vmem:[%s4712_s1 + $0x74] sm:$0xf]  ;;  %v3571_v23 = vor.u32 %v3909_v7, %v3570_v6  ;;  %v3691_v24 = vor.u32 %v3939_v11, %v3690_v8 }
 0x215   : > { %2595 = vmatpush.bf16.msra.mxu0 %v3395_v48  ;;  %v3436_v18 = vld [vmem:[%s4712_s1 + $0x78] sm:$0xf0]  ;;  %v3890_v21 = vld [vmem:[%s4712_s1 + $0xf4] sm:$0xf]  ;;  %v3755_v25 = vor.u32 %v3955_v14, %v3754_v12  ;;  %v3682_v27 = vld [vmem:[%s4712_s1 + $0x260] sm:$0xf] }
 0x216   : > { %2608 = vmatpush.bf16.msra.mxu1 %v3459_v49  ;;  %v3500_v22 = vld [vmem:[%s4712_s1 + $0xf8] sm:$0xf0]  ;;  %v3439_v26 = vor.u32 %v3874_v17, %v3436_v18  ;;  %v3937_v28 = vld [vmem:[%s4712_s1 + $0x264] sm:$0xf0]  ;;  %v3746_v29 = vld [vmem:[%s4712_s1 + $0x2e0] sm:$0xf] }
 0x217   : > { %2621 = vmatpush.bf16.msra.mxu2 %v3523_v50  ;;  %v3503_v30 = vor.u32 %v3890_v21, %v3500_v22  ;;  %v3953_v31 = vld [vmem:[%s4712_s1 + $0x2e4] sm:$0xf0]  ;;  %v3872_v32 = vld [vmem:[%s4712_s1 + $0x64] sm:$0xf]  ;;  %v3428_v33 = vld [vmem:[%s4712_s1 + $0x68] sm:$0xf0]  ;;  %v3683_v37 = vor.u32 %v3937_v28, %v3682_v27 }
 0x218   : > { %2634 = vmatpush.bf16.msra.mxu3 %v3587_v54  ;;  %v3888_v34 = vld [vmem:[%s4712_s1 + $0xe4] sm:$0xf]  ;;  %v3492_v35 = vld [vmem:[%s4712_s1 + $0xe8] sm:$0xf0]  ;;  %v3747_v38 = vor.u32 %v3953_v31, %v3746_v29  ;;  %v3431_v39 = vor.u32 %v3872_v32, %v3428_v33  ;;  %v3674_v41 = vld [vmem:[%s4712_s1 + $0x250] sm:$0xf] }
 0x219   : > { %2596 = vmatpush.bf16.msra.mxu0 %v3387_v60  ;;  %v3935_v42 = vld [vmem:[%s4712_s1 + $0x254] sm:$0xf0]  ;;  %v3738_v43 = vld [vmem:[%s4712_s1 + $0x2d0] sm:$0xf]  ;;  %v3495_v44 = vor.u32 %v3888_v34, %v3492_v35  ;;  %v3870_v46 = vld [vmem:[%s4712_s1 + $0x54] sm:$0xf] }
 0x21a   : > { %2609 = vmatpush.bf16.msra.mxu1 %v3451_v63  ;;  %v3951_v45 = vld [vmem:[%s4712_s1 + $0x2d4] sm:$0xf0]  ;;  %v3420_v47 = vld [vmem:[%s4712_s1 + $0x58] sm:$0xf0]  ;;  %v3886_v48 = vld [vmem:[%s4712_s1 + $0xd4] sm:$0xf]  ;;  %v3675_v50 = vor.u32 %v3935_v42, %v3674_v41 }
 0x21b   : > { %2622 = vmatpush.bf16.msra.mxu2 %v3515_v0  ;;  %v3484_v49 = vld [vmem:[%s4712_s1 + $0xd8] sm:$0xf0]  ;;  %v3739_v51 = vor.u32 %v3951_v45, %v3738_v43  ;;  %v3423_v52 = vor.u32 %v3870_v46, %v3420_v47  ;;  %v3666_v53 = vld [vmem:[%s4712_s1 + $0x240] sm:$0xf]  ;;  %v3933_v54 = vld [vmem:[%s4712_s1 + $0x244] sm:$0xf0] }
 0x21c   : > { %2635 = vmatpush.bf16.msra.mxu3 %v3579_v4  ;;  %v3730_v55 = vld [vmem:[%s4712_s1 + $0x2c0] sm:$0xf]  ;;  %v3487_v56 = vor.u32 %v3886_v48, %v3484_v49  ;;  %v3949_v57 = vld [vmem:[%s4712_s1 + $0x2c4] sm:$0xf0]  ;;  %v3868_v58 = vld [vmem:[%s4712_s1 + $0x44] sm:$0xf]  ;;  %v3667_v62 = vor.u32 %v3933_v54, %v3666_v53 }
 0x21d   : > { %2597 = vmatpush.bf16.msra.mxu0 %v3379_v13  ;;  %v3412_v59 = vld [vmem:[%s4712_s1 + $0x48] sm:$0xf0]  ;;  %v3884_v60 = vld [vmem:[%s4712_s1 + $0xc4] sm:$0xf]  ;;  %v3731_v63 = vor.u32 %v3949_v57, %v3730_v55  ;;  %v3658_v1 = vld [vmem:[%s4712_s1 + $0x230] sm:$0xf] }
 0x21e   : > { %2610 = vmatpush.bf16.msra.mxu1 %v3443_v19  ;;  %v3476_v61 = vld [vmem:[%s4712_s1 + $0xc8] sm:$0xf0]  ;;  %v3415_v0 = vor.u32 %v3868_v58, %v3412_v59  ;;  %v3931_v2 = vld [vmem:[%s4712_s1 + $0x234] sm:$0xf0]  ;;  %v3722_v3 = vld [vmem:[%s4712_s1 + $0x2b0] sm:$0xf] }
 0x21f   : > { %2623 = vmatpush.bf16.msra.mxu2 %v3507_v20  ;;  %v3479_v4 = vor.u32 %v3884_v60, %v3476_v61  ;;  %v3947_v5 = vld [vmem:[%s4712_s1 + $0x2b4] sm:$0xf0]  ;;  %v3866_v6 = vld [vmem:[%s4712_s1 + $0x34] sm:$0xf]  ;;  %v3404_v7 = vld [vmem:[%s4712_s1 + $0x38] sm:$0xf0]  ;;  %v3659_v12 = vor.u32 %v3931_v2, %v3658_v1 }
 0x220   : > { %2636 = vmatpush.bf16.msra.mxu3 %v3571_v23  ;;  %2598 = vmatmul.bf16.vlgmr.msra.gmra.mxu0 %v4805_v9  ;;  %v3882_v8 = vld [vmem:[%s4712_s1 + $0xb4] sm:$0xf]  ;;  %v3468_v11 = vld [vmem:[%s4712_s1 + $0xb8] sm:$0xf0]  ;;  %v3723_v13 = vor.u32 %v3947_v5, %v3722_v3  ;;  %v3407_v14 = vor.u32 %v3866_v6, %v3404_v7  ;;  %v3650_v17 = vld [vmem:[%s4712_s1 + $0x220] sm:$0xf] }
 0x221   : > { %2642 = vmatpush.bf16.msrb.mxu0 %v3691_v24  ;;  %2611 = vmatmul.bf16.vlgmr.msra.gmra.mxu1 %v4807_v10  ;;  %v3929_v18 = vld [vmem:[%s4712_s1 + $0x224] sm:$0xf0]  ;;  %v3714_v19 = vld [vmem:[%s4712_s1 + $0x2a0] sm:$0xf]  ;;  %v3471_v20 = vor.u32 %v3882_v8, %v3468_v11  ;;  %v3864_v22 = vld [vmem:[%s4712_s1 + $0x24] sm:$0xf] }
 0x222   : > { %2655 = vmatpush.bf16.msrb.mxu1 %v3755_v25  ;;  %2624 = vmatmul.bf16.vlgmr.msra.gmra.mxu2 %v4812_v15  ;;  %v3945_v21 = vld [vmem:[%s4712_s1 + $0x2a4] sm:$0xf0]  ;;  %v3396_v23 = vld [vmem:[%s4712_s1 + $0x28] sm:$0xf0]  ;;  %v3880_v24 = vld [vmem:[%s4712_s1 + $0xa4] sm:$0xf] }
 0x223   : > { %2668 = vmatpush.bf16.msrb.mxu2 %v3439_v26  ;;  %2637 = vmatmul.bf16.vlgmr.msra.gmra.mxu3 %v4814_v16  ;;  %v3460_v25 = vld [vmem:[%s4712_s1 + $0xa8] sm:$0xf0]  ;;  %v3651_v26 = vor.u32 %v3929_v18, %v3650_v17  ;;  %v3715_v27 = vor.u32 %v3945_v21, %v3714_v19  ;;  %v3399_v28 = vor.u32 %v3864_v22, %v3396_v23  ;;  %v3642_v29 = vld [vmem:[%s4712_s1 + $0x210] sm:$0xf]  ;;  %v3943_v33 = vld [vmem:[%s4712_s1 + $0x294] sm:$0xf0] }
 0x224   : > { %2681 = vmatpush.bf16.msrb.mxu3 %v3503_v30  ;;  %v3927_v30 = vld [vmem:[%s4712_s1 + $0x214] sm:$0xf0]  ;;  %v3706_v31 = vld [vmem:[%s4712_s1 + $0x290] sm:$0xf]  ;;  %v3463_v32 = vor.u32 %v3880_v24, %v3460_v25  ;;  %v3862_v34 = vld [vmem:[%s4712_s1 + $0x14] sm:$0xf] }
 0x225   : > { %2643 = vmatpush.bf16.msrb.mxu0 %v3683_v37  ;;  %v3388_v35 = vld [vmem:[%s4712_s1 + $0x18] sm:$0xf0]  ;;  %v3878_v37 = vld [vmem:[%s4712_s1 + $0x94] sm:$0xf]  ;;  %v3634_v41 = vld [vmem:[%s4712_s1 + $0x200] sm:$0xf]  ;;  %v3707_v43 = vor.u32 %v3943_v33, %v3706_v31 }
 0x226   : > { %2656 = vmatpush.bf16.msrb.mxu1 %v3747_v38  ;;  %v3452_v38 = vld [vmem:[%s4712_s1 + $0x98] sm:$0xf0]  ;;  %v3925_v42 = vld [vmem:[%s4712_s1 + $0x204] sm:$0xf0]  ;;  %v3698_v45 = vld [vmem:[%s4712_s1 + $0x280] sm:$0xf] }
 0x227   : > { %2669 = vmatpush.bf16.msrb.mxu2 %v3431_v39  ;;  %v3643_v39 = vor.u32 %v3927_v30, %v3642_v29  ;;  %v3941_v46 = vld [vmem:[%s4712_s1 + $0x284] sm:$0xf0]  ;;  %v3860_v47 = vld [vmem:[%s4712_s1 + $0x4] sm:$0xf]  ;;  %v3455_v48 = vor.u32 %v3878_v37, %v3452_v38  ;;  %v3380_v49 = vld [vmem:[%s4712_s1 + $0x8] sm:$0xf0]  ;;  %v3635_v55 = vor.u32 %v3925_v42, %v3634_v41 }
 0x228   : > { %2682 = vmatpush.bf16.msrb.mxu3 %v3495_v44  ;;  %v3391_v44 = vor.u32 %v3862_v34, %v3388_v35  ;;  %v3564_v53 = vld [vmem:[%s4712_s1 + $0x178] sm:$0xf0]  ;;  %v3922_v54 = vld [vmem:[%s4712_s1 + $0x1f4] sm:$0xf]  ;;  %v3699_v59 = vor.u32 %v3941_v46, %v3698_v45  ;;  %v3383_v60 = vor.u32 %v3860_v47, %v3380_v49  ;;  %v3904_v3 = vld [vmem:[%s4712_s1 + $0x164] sm:$0xf] }
 0x229   : > { %2644 = vmatpush.bf16.msrb.mxu0 %v3675_v50  ;;  %v3876_v50 = vld [vmem:[%s4712_s1 + $0x84] sm:$0xf]  ;;  %v3938_v57 = vld [vmem:[%s4712_s1 + $0x274] sm:$0xf]  ;;  %v3692_v58 = vld [vmem:[%s4712_s1 + $0x278] sm:$0xf0] }
 0x22a   : > { %2657 = vmatpush.bf16.msrb.mxu1 %v3739_v51  ;;  %v3444_v51 = vld [vmem:[%s4712_s1 + $0x88] sm:$0xf0]  ;;  %v3954_v61 = vld [vmem:[%s4712_s1 + $0x2f4] sm:$0xf]  ;;  %v3695_v2 = vor.u32 %v3938_v57, %v3692_v58  ;;  %v3920_v5 = vld [vmem:[%s4712_s1 + $0x1e4] sm:$0xf] }
 0x22b   : > { %2670 = vmatpush.bf16.msrb.mxu2 %v3423_v52  ;;  %v3906_v52 = vld [vmem:[%s4712_s1 + $0x174] sm:$0xf]  ;;  %v3620_v7 = vld [vmem:[%s4712_s1 + $0x1e8] sm:$0xf0]  ;;  %v3936_v8 = vld [vmem:[%s4712_s1 + $0x264] sm:$0xf] }
 0x22c   : > { %2683 = vmatpush.bf16.msrb.mxu3 %v3487_v56  ;;  %v3628_v56 = vld [vmem:[%s4712_s1 + $0x1f8] sm:$0xf0]  ;;  %v3684_v11 = vld [vmem:[%s4712_s1 + $0x268] sm:$0xf0]  ;;  %v3623_v17 = vor.u32 %v3920_v5, %v3620_v7  ;;  %v3902_v19 = vld [vmem:[%s4712_s1 + $0x154] sm:$0xf] }
 0x22d   : > { %2645 = vmatpush.bf16.msrb.mxu0 %v3667_v62  ;;  %v3756_v62 = vld [vmem:[%s4712_s1 + $0x2f8] sm:$0xf0]  ;;  %v3631_v1 = vor.u32 %v3922_v54, %v3628_v56  ;;  %v3687_v18 = vor.u32 %v3936_v8, %v3684_v11  ;;  %v3918_v21 = vld [vmem:[%s4712_s1 + $0x1d4] sm:$0xf]  ;;  %v3900_v31 = vld [vmem:[%s4712_s1 + $0x144] sm:$0xf] }
 0x22e   : > { %2658 = vmatpush.bf16.msrb.mxu1 %v3731_v63  ;;  %v3447_v63 = vor.u32 %v3876_v50, %v3444_v51  ;;  %v3759_v6 = vor.u32 %v3954_v61, %v3756_v62  ;;  %v3612_v23 = vld [vmem:[%s4712_s1 + $0x1d8] sm:$0xf0]  ;;  %v3934_v24 = vld [vmem:[%s4712_s1 + $0x254] sm:$0xf]  ;;  %v3604_v33 = vld [vmem:[%s4712_s1 + $0x1c8] sm:$0xf0] }
 0x22f   : > { %2671 = vmatpush.bf16.msrb.mxu2 %v3415_v0  ;;  %v3567_v0 = vor.u32 %v3906_v52, %v3564_v53  ;;  %v3676_v25 = vld [vmem:[%s4712_s1 + $0x258] sm:$0xf0]  ;;  %v3615_v29 = vor.u32 %v3918_v21, %v3612_v23  ;;  %v3932_v34 = vld [vmem:[%s4712_s1 + $0x244] sm:$0xf]  ;;  %v3668_v35 = vld [vmem:[%s4712_s1 + $0x248] sm:$0xf0] }
 0x230   : > { %2684 = vmatpush.bf16.msrb.mxu3 %v3479_v4  ;;  %v3556_v4 = vld [vmem:[%s4712_s1 + $0x168] sm:$0xf0]  ;;  %v3679_v30 = vor.u32 %v3934_v24, %v3676_v25  ;;  %v3948_v37 = vld [vmem:[%s4712_s1 + $0x2c4] sm:$0xf]  ;;  %v3671_v42 = vor.u32 %v3932_v34, %v3668_v35  ;;  %v3914_v45 = vld [vmem:[%s4712_s1 + $0x1b4] sm:$0xf] }
 0x231   : > { %2646 = vmatpush.bf16.msrb.mxu0 %v3659_v12  ;;  %v3952_v12 = vld [vmem:[%s4712_s1 + $0x2e4] sm:$0xf]  ;;  %v3732_v38 = vld [vmem:[%s4712_s1 + $0x2c8] sm:$0xf0]  ;;  %v3596_v47 = vld [vmem:[%s4712_s1 + $0x1b8] sm:$0xf0] }
 0x232   : > { %2659 = vmatpush.bf16.msrb.mxu1 %v3723_v13  ;;  %v3748_v13 = vld [vmem:[%s4712_s1 + $0x2e8] sm:$0xf0]  ;;  %v3735_v46 = vor.u32 %v3948_v37, %v3732_v38  ;;  %v3660_v49 = vld [vmem:[%s4712_s1 + $0x238] sm:$0xf0]  ;;  %v3946_v50 = vld [vmem:[%s4712_s1 + $0x2b4] sm:$0xf]  ;;  %v3599_v53 = vor.u32 %v3914_v45, %v3596_v47 }
 0x233   : > { %2672 = vmatpush.bf16.msrb.mxu2 %v3407_v14  ;;  %v3559_v14 = vor.u32 %v3904_v3, %v3556_v4  ;;  %v3751_v22 = vor.u32 %v3952_v12, %v3748_v13  ;;  %v3724_v51 = vld [vmem:[%s4712_s1 + $0x2b8] sm:$0xf0]  ;;  %v3524_v56 = vld [vmem:[%s4712_s1 + $0x128] sm:$0xf0]  ;;  %v3912_v57 = vld [vmem:[%s4712_s1 + $0x1a4] sm:$0xf] }
 0x234   : > { %2685 = vmatpush.bf16.msrb.mxu3 %v3471_v20  ;;  %v3548_v20 = vld [vmem:[%s4712_s1 + $0x158] sm:$0xf0]  ;;  %v3727_v58 = vor.u32 %v3946_v50, %v3724_v51  ;;  %v3652_v61 = vld [vmem:[%s4712_s1 + $0x228] sm:$0xf0]  ;;  %v3944_v62 = vld [vmem:[%s4712_s1 + $0x2a4] sm:$0xf] }
 0x235   : > { %2647 = vmatpush.bf16.msrb.mxu0 %v3651_v26  ;;  %v3950_v26 = vld [vmem:[%s4712_s1 + $0x2d4] sm:$0xf]  ;;  %v3516_v4 = vld [vmem:[%s4712_s1 + $0x118] sm:$0xf0]  ;;  %v3908_v21 = vld [vmem:[%s4712_s1 + $0x184] sm:$0xf] }
 0x236   : > { %2660 = vmatpush.bf16.msrb.mxu1 %v3715_v27  ;;  %v3740_v27 = vld [vmem:[%s4712_s1 + $0x2d8] sm:$0xf0]  ;;  %v3894_v3 = vld [vmem:[%s4712_s1 + $0x114] sm:$0xf]  ;;  %v3572_v23 = vld [vmem:[%s4712_s1 + $0x188] sm:$0xf0] }
 0x237   : > { %2673 = vmatpush.bf16.msrb.mxu2 %v3399_v28  ;;  %v3551_v28 = vor.u32 %v3902_v19, %v3548_v20  ;;  %v3910_v5 = vld [vmem:[%s4712_s1 + $0x194] sm:$0xf]  ;;  %v3580_v7 = vld [vmem:[%s4712_s1 + $0x198] sm:$0xf0]  ;;  %v3892_v19 = vld [vmem:[%s4712_s1 + $0x104] sm:$0xf] }
 0x238   : > { %2686 = vmatpush.bf16.msrb.mxu3 %v3463_v32  ;;  %v3916_v32 = vld [vmem:[%s4712_s1 + $0x1c4] sm:$0xf]  ;;  %v3926_v8 = vld [vmem:[%s4712_s1 + $0x214] sm:$0xf]  ;;  %v3644_v11 = vld [vmem:[%s4712_s1 + $0x218] sm:$0xf0] }
 0x239   : > { %2648 = vmatpush.bf16.msrb.mxu0 %v3643_v39  ;;  %v3607_v41 = vor.u32 %v3916_v32, %v3604_v33  ;;  %v3942_v12 = vld [vmem:[%s4712_s1 + $0x294] sm:$0xf]  ;;  %v3708_v13 = vld [vmem:[%s4712_s1 + $0x298] sm:$0xf0]  ;;  %v3508_v20 = vld [vmem:[%s4712_s1 + $0x108] sm:$0xf0] }
 0x23a   : > { %2661 = vmatpush.bf16.msrb.mxu1 %v3707_v43  ;;  %v3898_v43 = vld [vmem:[%s4712_s1 + $0x134] sm:$0xf]  ;;  %v3924_v24 = vld [vmem:[%s4712_s1 + $0x204] sm:$0xf]  ;;  %v3636_v25 = vld [vmem:[%s4712_s1 + $0x208] sm:$0xf0] }
 0x23b   : > { %2674 = vmatpush.bf16.msrb.mxu2 %v3391_v44  ;;  %v3532_v44 = vld [vmem:[%s4712_s1 + $0x138] sm:$0xf0] }
 0x23c   : > { %2687 = vmatpush.bf16.msrb.mxu3 %v3455_v48  ;;  %v3930_v48 = vld [vmem:[%s4712_s1 + $0x234] sm:$0xf]  ;;  %v3535_v52 = vor.u32 %v3898_v43, %v3532_v44 }
 0x23d   : > { %2649 = vmatpush.bf16.msrb.mxu0 %v3635_v55  ;;  %v3663_v54 = vor.u32 %v3930_v48, %v3660_v49  ;;  %v3896_v55 = vld [vmem:[%s4712_s1 + $0x124] sm:$0xf] }
 0x23e   : > { %2662 = vmatpush.bf16.msrb.mxu1 %v3699_v59  ;;  %v3588_v59 = vld [vmem:[%s4712_s1 + $0x1a8] sm:$0xf0] }
 0x23f   : > { %2675 = vmatpush.bf16.msrb.mxu2 %v3383_v60  ;;  %v3928_v60 = vld [vmem:[%s4712_s1 + $0x224] sm:$0xf] }
 0x240   : > { %2688 = vmatpush.bf16.msrb.mxu3 %v3447_v63  ;;  %2650 = vmatmul.bf16.vlgmr.msrb.gmra.mxu0 %v4872_v36  ;;  %v3716_v63 = vld [vmem:[%s4712_s1 + $0x2a8] sm:$0xf0] }
 0x241   : > { %2694 = vmatpush.bf16.msra.mxu0 %v3567_v0  ;;  %2663 = vmatmul.bf16.vlgmr.msrb.gmra.mxu1 %v4876_v40  ;;  %v3527_v0 = vor.u32 %v3896_v55, %v3524_v56 }
 0x242   : > { %2707 = vmatpush.bf16.msra.mxu1 %v3631_v1  ;;  %2676 = vmatmul.bf16.vlgmr.msrb.gmra.mxu2 %v4805_v9  ;;  %v3540_v9 = vld [vmem:[%s4712_s1 + $0x148] sm:$0xf0]  ;;  %v3591_v1 = vor.u32 %v3912_v57, %v3588_v59 }
 0x243   : > { %2720 = vmatpush.bf16.msra.mxu2 %v3695_v2  ;;  %2689 = vmatmul.bf16.vlgmr.msrb.gmra.mxu3 %v4807_v10  ;;  %v3743_v10 = vor.u32 %v3950_v26, %v3740_v27  ;;  %v3543_v39 = vor.u32 %v3900_v31, %v3540_v9  ;;  %v3655_v2 = vor.u32 %v3928_v60, %v3652_v61  ;;  %v3940_v26 = vld [vmem:[%s4712_s1 + $0x284] sm:$0xf]  ;;  %v3700_v27 = vld [vmem:[%s4712_s1 + $0x288] sm:$0xf0] }
 0x244   : > { %2733 = vmatpush.bf16.msra.mxu3 %v3759_v6  ;;  %v3719_v6 = vor.u32 %v3944_v62, %v3716_v63  ;;  %v3703_v31 = vor.u32 %v3940_v26, %v3700_v27 }
 0x245   : > { %2695 = vmatpush.bf16.msra.mxu0 %v3559_v14  ;;  %v3519_v14 = vor.u32 %v3894_v3, %v3516_v4 }
 0x246   : > { %2708 = vmatpush.bf16.msra.mxu1 %v3623_v17  ;;  %v3583_v17 = vor.u32 %v3910_v5, %v3580_v7 }
 0x247   : > { %2721 = vmatpush.bf16.msra.mxu2 %v3687_v18  ;;  %v3647_v18 = vor.u32 %v3926_v8, %v3644_v11 }
 0x248   : > { %2734 = vmatpush.bf16.msra.mxu3 %v3751_v22  ;;  %v3711_v22 = vor.u32 %v3942_v12, %v3708_v13 }
 0x249   : > { %2696 = vmatpush.bf16.msra.mxu0 %v3551_v28  ;;  %v3511_v28 = vor.u32 %v3892_v19, %v3508_v20 }
 0x24a   : > { %2709 = vmatpush.bf16.msra.mxu1 %v3615_v29  ;;  %v3575_v29 = vor.u32 %v3908_v21, %v3572_v23 }
 0x24b   : > { %2722 = vmatpush.bf16.msra.mxu2 %v3679_v30  ;;  %v3639_v30 = vor.u32 %v3924_v24, %v3636_v25 }
 0x24c   : > { %2735 = vmatpush.bf16.msra.mxu3 %v3743_v10 }
 0x24d   : > { %2697 = vmatpush.bf16.msra.mxu0 %v3543_v39 }
 0x24e   : > { %2710 = vmatpush.bf16.msra.mxu1 %v3607_v41 }
 0x24f   : > { %2723 = vmatpush.bf16.msra.mxu2 %v3671_v42 }
 0x250   : > { %2736 = vmatpush.bf16.msra.mxu3 %v3735_v46 }
 0x251   : > { %2698 = vmatpush.bf16.msra.mxu0 %v3535_v52 }
 0x252   : > { %2711 = vmatpush.bf16.msra.mxu1 %v3599_v53 }
 0x253   : > { %2724 = vmatpush.bf16.msra.mxu2 %v3663_v54 }
 0x254   : > { %2737 = vmatpush.bf16.msra.mxu3 %v3727_v58 }
 0x255   : > { %2699 = vmatpush.bf16.msra.mxu0 %v3527_v0 }
 0x256   : > { %2712 = vmatpush.bf16.msra.mxu1 %v3591_v1 }
 0x257   : > { %2725 = vmatpush.bf16.msra.mxu2 %v3655_v2 }
 0x258   : > { %2738 = vmatpush.bf16.msra.mxu3 %v3719_v6 }
 0x259   : > { %2700 = vmatpush.bf16.msra.mxu0 %v3519_v14 }
 0x25a   : > { %2713 = vmatpush.bf16.msra.mxu1 %v3583_v17 }
 0x25b   : > { %2726 = vmatpush.bf16.msra.mxu2 %v3647_v18 }
 0x25c   : > { %2739 = vmatpush.bf16.msra.mxu3 %v3711_v22 }
 0x25d   : > { %2701 = vmatpush.bf16.msra.mxu0 %v3511_v28 }
 0x25e   : > { %2714 = vmatpush.bf16.msra.mxu1 %v3575_v29 }
 0x25f   : > { %2727 = vmatpush.bf16.msra.mxu2 %v3639_v30 }
 0x260   : > { %2740 = vmatpush.bf16.msra.mxu3 %v3703_v31  ;;  %2702 = vmatmul.bf16.vlgmr.msra.gmra.mxu0 %v4812_v15 }
 0x261   : > { %2715 = vmatmul.bf16.vlgmr.msra.gmra.mxu1 %v4814_v16  ;;  %v2104_v16 = vld [vmem:[%s1214_s9] sm:$0x3] }
 0x262   : > { %2728 = vmatmul.bf16.vlgmr.msra.gmra.mxu2 %v4872_v36  ;;  %v2106_v36 = vperm.slane %v2104_v16, 0  ;;  %v2107_v47 = vperm.slane %v2104_v16, 1 }
 0x263   : > { %2741 = vmatmul.bf16.vlgmr.msra.gmra.mxu3 %v4876_v40 }
 0x29d   : > { %v2599_v9 = vpop.f32.mrf.mxu0 }
 0x29e   : > { %v2612_v32 = vpop.f32.mrf.mxu1  ;;  %v2600_v46 = vadd.f32 %v2599_v9, %v2106_v36 }
 0x2a0   : > { %v2613_v48 = vadd.f32 %v2612_v32, %v2600_v46 }
 0x2a5   : > { %v2625_v10 = vpop.f32.mrf.mxu2  ;;  %v2601_v34 = vpop.f32.mrf.mxu0 }
 0x2a6   : > { %v2638_v33 = vpop.f32.mrf.mxu3  ;;  %v2614_v35 = vpop.f32.mrf.mxu1  ;;  %v2626_v50 = vadd.f32 %v2625_v10, %v2613_v48 }
 0x2a8   : > { %v2639_v54 = vadd.f32 %v2638_v33, %v2626_v50 }
 0x2ad   : > { %v2627_v37 = vpop.f32.mrf.mxu2 }
 0x2ae   : > { %v2640_v38 = vpop.f32.mrf.mxu3 }
 0x2bd   : > { %v2651_v39 = vpop.f32.mrf.mxu0 }
 0x2be   : > { %v2664_v41 = vpop.f32.mrf.mxu1  ;;  %v2652_v56 = vadd.f32 %v2651_v39, %v2639_v54 }
 0x2c0   : > { %v2665_v63 = vadd.f32 %v2664_v41, %v2652_v56 }
 0x2c5   : > { %v2677_v42 = vpop.f32.mrf.mxu2  ;;  %v2653_v15 = vpop.f32.mrf.mxu0 }
 0x2c6   : > { %v2690_v43 = vpop.f32.mrf.mxu3  ;;  %v2666_v44 = vpop.f32.mrf.mxu1  ;;  %v2678_v49 = vadd.f32 %v2677_v42, %v2107_v47 }
 0x2c8   : > { %v2691_v51 = vadd.f32 %v2690_v43, %v2678_v49 }
 0x2cd   : > { %v2679_v40 = vpop.f32.mrf.mxu2 }
 0x2ce   : > { %v2692_v45 = vpop.f32.mrf.mxu3 }
 0x2dd   : > { %v2703_v52 = vpop.f32.mrf.mxu0 }
 0x2de   : > { %v2716_v53 = vpop.f32.mrf.mxu1  ;;  %v2704_v55 = vadd.f32 %v2703_v52, %v2691_v51 }
 0x2e0   : > { %v2717_v57 = vadd.f32 %v2716_v53, %v2704_v55 }
 0x2e5   : > { %v2729_v58 = vpop.f32.mrf.mxu2  ;;  %v2705_v61 = vpop.f32.mrf.mxu0 }
 0x2e6   : > { %v2730_v59 = vadd.f32 %v2729_v58, %v2717_v57  ;;  %v2742_v60 = vpop.f32.mrf.mxu3  ;;  %v2718_v62 = vpop.f32.mrf.mxu1 }
 0x2e8   : > { %v2743_v0 = vadd.f32 %v2742_v60, %v2730_v59 }
 0x2ea   : > { %v2746_v1 = vpack.c.bf16 %v2743_v0, %v2665_v63 }
 0x2ec   : > { %2747 = vst [vmem:[%s4708_s12] sm:$0xff] %v2746_v1 }
 0x2ed   : > { %v2731_v2 = vpop.f32.mrf.mxu2 }
 0x2ee   : > { %v2744_v3 = vpop.f32.mrf.mxu3 }
 0x2ef PF: > { %p3760_p5 = scmp.ne.s32.totalorder %s4114_s25, 2 }
 0x2f1   : > { %2751 = sbr.rel (%p3760_p5) target bundleno = 769 (0x301), region = 128 }
 0x2f6   : > { %v2752_v4 = vld [vmem:[#allocation2] sm:$0xff]  ;;  %v2753_v5 = vld [vmem:[#allocation2 + $0x8] sm:$0xff] }
 0x2f7   : > { %v2754_v6 = vld [vmem:[%s1208_s15] sm:$0x3] }
 0x2f8   : > { %v2756_v7 = vperm.slane %v2754_v6, 0  ;;  %v2757_v8 = vperm.slane %v2754_v6, 1 }
 0x2fa   : > { %v2760_v11 = vadd.f32 %v2756_v7, %v2752_v4  ;;  %v2761_v12 = vadd.f32 %v2757_v8, %v2753_v5 }
 0x2fc   : > { %v2762_v13 = vmax.f32 %v2760_v11, 0.0  ;;  %v2763_v14 = vmax.f32 %v2761_v12, 0.0 }
 0x2fe   : > { %v2764_v17 = vpack.c.bf16 %v2763_v14, %v2762_v13 }
 0x300   : > { %2765 = vst [vmem:[%s4703_s27] sm:$0xff] %v2764_v17 }
 0x301 PF: > { %s17_s7 = sadd.s32 1, %s4138_s7   ;;  %s5212_s23 = sld [smem:[#allocation5_spill]] }
 0x302   : > { %p14_p6 = scmp.ge.s32.totalorder %s17_s7, 14   ;;  %s5213_s24 = sld [smem:[#allocation12_spill]] }
 0x303   : > { %s5214_s25 = sld [smem:[#allocation6_spill]]  ;;  %s5220_s21 = smov %s4102_s22 }
 0x304   : > { %s5215_s26 = sld [smem:[#allocation7_spill]]  ;;  %s5221_s22 = smov %s4265_s19 }
 0x305   : > { %s5216_s27 = sld [smem:[#allocation8_spill]]  ;;  %16 = sbr.rel (!%p14_p6) target bundleno = 9 (0x9), region = 192 }
 0x306   : > { %s5217_s28 = sld [smem:[#allocation9_spill]] }
 0x307   : > { %s5218_s29 = sld [smem:[#allocation10_spill]] }
 0x308   : > { %s5219_s30 = sld [smem:[#allocation11_spill]] }

// kernel: _lambda_.19
= control target key start
LH: loop header
LB: loop body
LE: loop exit
PB: predicated region body
PF: predicated region fallthrough
CT: control target
= control target key end

     0   :  { %s5245_s0 = inlined_call_operand.vmem [shape: bf16[2,3,8,1536], index: 0, kind: input, shape index: {}]   ;;  %s5246_s1 = inlined_call_operand.vmem [shape: bf16[3,1536,512], index: 1, kind: input, shape index: {}]   ;;  %s5247_s2 = inlined_call_operand.vmem [shape: f32[1,512], index: 2, kind: input, shape index: {}]   ;;  %s5248_s3 = inlined_call_operand.vmem [shape: bf16[2,8,512], index: 3, kind: input, shape index: {}]   ;;  %s5249_s4 = inlined_call_operand.hbm [shape: bf16[2,8,512], index: 4, kind: output, shape index: {0}]   ;;  %s5250_s5 = inlined_call_operand.vmem [shape: f32[2,1,512], index: 5, kind: output, shape index: {1}]  }
   0x1   :  { %5260 = sst [smem:[#allocation15_spill]] %s5245_s0 }
   0x2   :  { %5261 = sst [smem:[#allocation16_spill]] %s5246_s1 }
   0x3   :  { %5262 = sst [smem:[#allocation17_spill]] %s5249_s4 }
   0x4   :  { %11 = vsyncpa [#allocation5], 0 }
   0x5   :  { %13 = vsyncpa [#allocation5 + $0x1], 0  ;;  %s4186_s18 = smov 0   ;;  %s4188_s19 = smov 0  }
   0x6   :  { %s4190_s20 = smov 0   ;;  %s4192_s21 = smov 0  }
   0x7   :  { %s4194_s22 = smov 0   ;;  %s4196_s23 = smov 0  }
   0x8   :  { %s4198_s24 = smov 0   ;;  %s4200_s25 = smov 0  }
   0x9   :  { %s4202_s26 = smov 0   ;;  %s4204_s27 = smov 0  }
   0xa   :  { %s4206_s28 = smov 0   ;;  %s4208_s29 = smov 0  }
   0xb LB: > { %5263 = sst [smem:[#allocation7_spill]] %s4125_s22  ;;  %s2935_s30 = sadd.s32 4294967295, %s4153_s29   ;;  %s4153_s29 = sphi %s4208_s29, %s19_s29   ;;  %s4149_s28 = sphi %s4206_s28, %s5285_s28   ;;  %s4145_s27 = sphi %s4204_s27, %s5284_s27   ;;  %s4141_s26 = sphi %s4202_s26, %s5283_s26   ;;  %s4137_s25 = sphi %s4200_s25, %s5282_s25   ;;  %s4133_s24 = sphi %s4198_s24, %s5281_s24   ;;  %s4129_s23 = sphi %s4196_s23, %s5280_s23   ;;  %s4125_s22 = sphi %s4194_s22, %s5279_s22   ;;  %s4121_s21 = sphi %s4192_s21, %s5278_s21   ;;  %s4117_s20 = sphi %s4190_s20, %s5288_s20   ;;  %s4113_s19 = sphi %s4188_s19, %s5287_s19   ;;  %s4109_s18 = sphi %s4186_s18, %s5286_s18  }
   0xc   : > { %5264 = sst [smem:[#allocation8_spill]] %s4141_s26  ;;  %s2936_s6 = sadd.s32 4294967294, %s4153_s29  }
   0xd   : > { %5265 = sst [smem:[#allocation9_spill]] %s4145_s27  ;;  %s31_s7 = sadd.s32 1, %s4141_s26 }
   0xe   : > { %5266 = sst [smem:[#allocation10_spill]] %s4149_s28  ;;  %s34_s8 = sadd.s32 1, %s4145_s27 }
   0xf   : > { %p32_p0 = scmp.ge.s32.totalorder %s31_s7, 3  ;;  %s38_s9 = sadd.s32 1, %s4149_s28 }
  0x10   : > { %s75_s10 = sadd.s32 1, %s4125_s22  ;;  %p82_p1 = scmp.ne.s32.totalorder %s4125_s22, %s4121_s21 }
  0x11   : > { %s5290_s7 = smov (%p32_p0, %s31_s7), 0  ;;  %s5292_s8 = smov (!%p32_p0, %s34_s8), %s4145_s27 }
  0x12   : > { %5267 = sst [smem:[#allocation11_spill]] %s5290_s7  ;;  %s70_s11 = ssub.s32 %s4141_s26, %s5290_s7 }
  0x13   : > { %p83_p2 = scmp.eq.s32.totalorder %s4153_s29, 0  ;;  %p36_p3 = scmp.ge.s32.totalorder %s5292_s8, 2 }
  0x14   : > { %s157_s12 = sadd.s32 1, %s4117_s20  ;;  %p167_p5 = scmp.ne.s32.totalorder %s4117_s20, %s4113_s19 }
  0x15   : > { %p4261_p4 = por %p83_p2, %p82_p1  ;;  %s5294_s8 = smov (%p36_p3, %s5292_s8), 0 }
  0x16   : > { %5269 = sst [smem:[#allocation12_spill]] %s5294_s8  ;;  %s5296_s9 = smov (!%p36_p3, %s38_s9), %s4149_s28 }
  0x17   : > { %s71_s14 = ssub.s32 %s4145_s27, %s5294_s8  ;;  %p168_p6 = scmp.eq.s32.totalorder %s2935_s30, 11 }
  0x18   : > { %p40_p7 = scmp.ge.s32.totalorder %s5296_s9, 2  ;;  %s72_s15 = sor.u32 %s71_s14, %s70_s11 }
  0x19   : > { %p73_p8 = scmp.eq.s32.totalorder %s72_s15, 0  ;;  %p4272_p9 = por %p168_p6, %p167_p5 }
  0x1a   : > { %s5298_s9 = smov (%p40_p7, %s5296_s9), 0  ;;  %p173_p10 = scmp.ne.s32.totalorder %s4113_s19, %s4109_s18 }
  0x1b   : > { %5271 = sst [smem:[#allocation13_spill]] %s5298_s9  ;;  %s152_s7 = ssub.s32 %s4149_s28, %s5298_s9 }
  0x1c   : > { %s4279_s17 = scalar_select %p73_p8, %s4125_s22, %s75_s10  }
  0x1d   : > { %s154_s4 = sor.u32 %s152_s7, %s71_s14  ;;  %p174_p11 = scmp.eq.s32.totalorder %s2936_s6, 11 }
  0x1e   : > { %5272 = sst [smem:[#allocation14_spill]] %s4279_s17  ;;  %p155_p12 = scmp.eq.s32.totalorder %s154_s4, 0 }
  0x1f   : > { %p4285_p13 = por %p174_p11, %p173_p10  ;;  %p2938_p0 = scmp.ge.s32.totalorder %s4153_s29, 12 }
  0x20   : > { %s4290_s30 = scalar_select %p155_p12, %s4117_s20, %s157_s12  }
  0x21   : > { %218 = sbr.rel (%p2938_p0) target bundleno = 240 (0xf0), region = 16 }
  0x26   : > { %233 = sbr.rel (!%p4261_p4) target bundleno = 240 (0xf0), region = 24  ;;  %s235_s10 = sand.u32 (%p4261_p4), 1, %s4125_s22  }
  0x27   : > { %s3918_s11 = smul.u32 (%p4261_p4), 1536, %s235_s10  ;;  %s2939_s7 = sshll.u32 (%p4261_p4), %s4145_s27, 1 }
  0x28   : > { %s3919_s6 = smul.u32 (%p4261_p4), 768, %s4141_s26  ;;  %s5274_s1 = sld [smem:[#allocation16_spill]] (%p4261_p4) }
  0x29   : > { %s4306_s13 = scalar_lea.vmem (%p4261_p4), [#allocation3], %s3918_s11 }
  0x2a   : > { %s240_s4 = sadd.s32 (%p4261_p4), %s3919_s6, %s2939_s7 }
  0x2b   : > { %s2940_s14 = sshll.u32 %s240_s4, 2 }
  0x2e   : > { %s4301_s12 = scalar_lea.vmem %s5274_s1, %s2940_s14 }
  0x2f   : > { %v653_v0 = vld [vmem:[%s4301_s12] sm:$0xff]  ;;  %v655_v1 = vld [vmem:[%s4301_s12 + $0x10] sm:$0xff] }
  0x30   : > { %v657_v2 = vld [vmem:[%s4301_s12 + $0x20] sm:$0xff]  ;;  %654 = vst [vmem:[%s4306_s13] sm:$0xff] %v653_v0  ;;  %v659_v3 = vld [vmem:[%s4301_s12 + $0x30] sm:$0xff] }
  0x31   : > { %656 = vst [vmem:[%s4306_s13 + $0x8] sm:$0xff] %v655_v1  ;;  %v661_v4 = vld [vmem:[%s4301_s12 + $0x40] sm:$0xff]  ;;  %v663_v5 = vld [vmem:[%s4301_s12 + $0x50] sm:$0xff] }
  0x32   : > { %658 = vst [vmem:[%s4306_s13 + $0x10] sm:$0xff] %v657_v2  ;;  %v665_v6 = vld [vmem:[%s4301_s12 + $0x60] sm:$0xff]  ;;  %v667_v7 = vld [vmem:[%s4301_s12 + $0x70] sm:$0xff] }
  0x33   : > { %660 = vst [vmem:[%s4306_s13 + $0x18] sm:$0xff] %v659_v3  ;;  %v669_v8 = vld [vmem:[%s4301_s12 + $0x80] sm:$0xff]  ;;  %v671_v9 = vld [vmem:[%s4301_s12 + $0x90] sm:$0xff] }
  0x34   : > { %662 = vst [vmem:[%s4306_s13 + $0x20] sm:$0xff] %v661_v4  ;;  %v673_v10 = vld [vmem:[%s4301_s12 + $0xa0] sm:$0xff]  ;;  %v675_v11 = vld [vmem:[%s4301_s12 + $0xb0] sm:$0xff] }
  0x35   : > { %664 = vst [vmem:[%s4306_s13 + $0x28] sm:$0xff] %v663_v5  ;;  %v677_v12 = vld [vmem:[%s4301_s12 + $0xc0] sm:$0xff]  ;;  %v679_v13 = vld [vmem:[%s4301_s12 + $0xd0] sm:$0xff] }
  0x36   : > { %666 = vst [vmem:[%s4306_s13 + $0x30] sm:$0xff] %v665_v6  ;;  %v681_v14 = vld [vmem:[%s4301_s12 + $0xe0] sm:$0xff]  ;;  %v683_v15 = vld [vmem:[%s4301_s12 + $0xf0] sm:$0xff] }
  0x37   : > { %668 = vst [vmem:[%s4306_s13 + $0x38] sm:$0xff] %v667_v7  ;;  %v685_v16 = vld [vmem:[%s4301_s12 + $0x100] sm:$0xff]  ;;  %v687_v17 = vld [vmem:[%s4301_s12 + $0x110] sm:$0xff] }
  0x38   : > { %670 = vst [vmem:[%s4306_s13 + $0x40] sm:$0xff] %v669_v8  ;;  %v689_v18 = vld [vmem:[%s4301_s12 + $0x120] sm:$0xff]  ;;  %v691_v19 = vld [vmem:[%s4301_s12 + $0x130] sm:$0xff] }
  0x39   : > { %672 = vst [vmem:[%s4306_s13 + $0x48] sm:$0xff] %v671_v9  ;;  %v693_v20 = vld [vmem:[%s4301_s12 + $0x140] sm:$0xff]  ;;  %v695_v21 = vld [vmem:[%s4301_s12 + $0x150] sm:$0xff] }
  0x3a   : > { %674 = vst [vmem:[%s4306_s13 + $0x50] sm:$0xff] %v673_v10  ;;  %v697_v22 = vld [vmem:[%s4301_s12 + $0x160] sm:$0xff]  ;;  %v699_v23 = vld [vmem:[%s4301_s12 + $0x170] sm:$0xff] }
  0x3b   : > { %676 = vst [vmem:[%s4306_s13 + $0x58] sm:$0xff] %v675_v11  ;;  %v701_v24 = vld [vmem:[%s4301_s12 + $0x180] sm:$0xff]  ;;  %v703_v25 = vld [vmem:[%s4301_s12 + $0x190] sm:$0xff] }
  0x3c   : > { %678 = vst [vmem:[%s4306_s13 + $0x60] sm:$0xff] %v677_v12  ;;  %v705_v26 = vld [vmem:[%s4301_s12 + $0x1a0] sm:$0xff]  ;;  %v707_v27 = vld [vmem:[%s4301_s12 + $0x1b0] sm:$0xff] }
  0x3d   : > { %680 = vst [vmem:[%s4306_s13 + $0x68] sm:$0xff] %v679_v13  ;;  %v709_v28 = vld [vmem:[%s4301_s12 + $0x1c0] sm:$0xff]  ;;  %v711_v29 = vld [vmem:[%s4301_s12 + $0x1d0] sm:$0xff] }
  0x3e   : > { %682 = vst [vmem:[%s4306_s13 + $0x70] sm:$0xff] %v681_v14  ;;  %v713_v30 = vld [vmem:[%s4301_s12 + $0x1e0] sm:$0xff]  ;;  %v715_v31 = vld [vmem:[%s4301_s12 + $0x1f0] sm:$0xff] }
  0x3f   : > { %684 = vst [vmem:[%s4306_s13 + $0x78] sm:$0xff] %v683_v15  ;;  %v717_v32 = vld [vmem:[%s4301_s12 + $0x200] sm:$0xff]  ;;  %v719_v33 = vld [vmem:[%s4301_s12 + $0x210] sm:$0xff] }
  0x40   : > { %686 = vst [vmem:[%s4306_s13 + $0x80] sm:$0xff] %v685_v16  ;;  %v721_v34 = vld [vmem:[%s4301_s12 + $0x220] sm:$0xff]  ;;  %v723_v35 = vld [vmem:[%s4301_s12 + $0x230] sm:$0xff] }
  0x41   : > { %688 = vst [vmem:[%s4306_s13 + $0x88] sm:$0xff] %v687_v17  ;;  %v725_v36 = vld [vmem:[%s4301_s12 + $0x240] sm:$0xff]  ;;  %v727_v37 = vld [vmem:[%s4301_s12 + $0x250] sm:$0xff] }
  0x42   : > { %690 = vst [vmem:[%s4306_s13 + $0x90] sm:$0xff] %v689_v18  ;;  %v729_v38 = vld [vmem:[%s4301_s12 + $0x260] sm:$0xff]  ;;  %v731_v39 = vld [vmem:[%s4301_s12 + $0x270] sm:$0xff] }
  0x43   : > { %692 = vst [vmem:[%s4306_s13 + $0x98] sm:$0xff] %v691_v19  ;;  %v733_v40 = vld [vmem:[%s4301_s12 + $0x280] sm:$0xff]  ;;  %v735_v41 = vld [vmem:[%s4301_s12 + $0x290] sm:$0xff] }
  0x44   : > { %694 = vst [vmem:[%s4306_s13 + $0xa0] sm:$0xff] %v693_v20  ;;  %v737_v42 = vld [vmem:[%s4301_s12 + $0x2a0] sm:$0xff]  ;;  %v739_v43 = vld [vmem:[%s4301_s12 + $0x2b0] sm:$0xff] }
  0x45   : > { %696 = vst [vmem:[%s4306_s13 + $0xa8] sm:$0xff] %v695_v21  ;;  %v741_v44 = vld [vmem:[%s4301_s12 + $0x2c0] sm:$0xff]  ;;  %v743_v45 = vld [vmem:[%s4301_s12 + $0x2d0] sm:$0xff] }
  0x46   : > { %698 = vst [vmem:[%s4306_s13 + $0xb0] sm:$0xff] %v697_v22  ;;  %v745_v46 = vld [vmem:[%s4301_s12 + $0x2e0] sm:$0xff]  ;;  %v747_v47 = vld [vmem:[%s4301_s12 + $0x2f0] sm:$0xff] }
  0x47   : > { %700 = vst [vmem:[%s4306_s13 + $0xb8] sm:$0xff] %v699_v23  ;;  %v749_v48 = vld [vmem:[%s4301_s12 + $0x300] sm:$0xff]  ;;  %v751_v49 = vld [vmem:[%s4301_s12 + $0x310] sm:$0xff] }
  0x48   : > { %702 = vst [vmem:[%s4306_s13 + $0xc0] sm:$0xff] %v701_v24  ;;  %v753_v50 = vld [vmem:[%s4301_s12 + $0x320] sm:$0xff]  ;;  %v755_v51 = vld [vmem:[%s4301_s12 + $0x330] sm:$0xff] }
  0x49   : > { %704 = vst [vmem:[%s4306_s13 + $0xc8] sm:$0xff] %v703_v25  ;;  %v757_v52 = vld [vmem:[%s4301_s12 + $0x340] sm:$0xff]  ;;  %v759_v53 = vld [vmem:[%s4301_s12 + $0x350] sm:$0xff] }
  0x4a   : > { %706 = vst [vmem:[%s4306_s13 + $0xd0] sm:$0xff] %v705_v26  ;;  %v761_v54 = vld [vmem:[%s4301_s12 + $0x360] sm:$0xff]  ;;  %v763_v55 = vld [vmem:[%s4301_s12 + $0x370] sm:$0xff] }
  0x4b   : > { %708 = vst [vmem:[%s4306_s13 + $0xd8] sm:$0xff] %v707_v27  ;;  %v765_v56 = vld [vmem:[%s4301_s12 + $0x380] sm:$0xff]  ;;  %v767_v57 = vld [vmem:[%s4301_s12 + $0x390] sm:$0xff] }
  0x4c   : > { %710 = vst [vmem:[%s4306_s13 + $0xe0] sm:$0xff] %v709_v28  ;;  %v769_v58 = vld [vmem:[%s4301_s12 + $0x3a0] sm:$0xff]  ;;  %v771_v59 = vld [vmem:[%s4301_s12 + $0x3b0] sm:$0xff] }
  0x4d   : > { %712 = vst [vmem:[%s4306_s13 + $0xe8] sm:$0xff] %v711_v29  ;;  %v773_v60 = vld [vmem:[%s4301_s12 + $0x3c0] sm:$0xff]  ;;  %v775_v61 = vld [vmem:[%s4301_s12 + $0x3d0] sm:$0xff] }
  0x4e   : > { %714 = vst [vmem:[%s4306_s13 + $0xf0] sm:$0xff] %v713_v30  ;;  %v777_v62 = vld [vmem:[%s4301_s12 + $0x3e0] sm:$0xff]  ;;  %v779_v63 = vld [vmem:[%s4301_s12 + $0x3f0] sm:$0xff] }
  0x4f   : > { %716 = vst [vmem:[%s4306_s13 + $0xf8] sm:$0xff] %v715_v31  ;;  %v781_v0 = vld [vmem:[%s4301_s12 + $0x400] sm:$0xff]  ;;  %v783_v1 = vld [vmem:[%s4301_s12 + $0x410] sm:$0xff] }
  0x50   : > { %718 = vst [vmem:[%s4306_s13 + $0x100] sm:$0xff] %v717_v32  ;;  %v785_v2 = vld [vmem:[%s4301_s12 + $0x420] sm:$0xff]  ;;  %v787_v3 = vld [vmem:[%s4301_s12 + $0x430] sm:$0xff] }
  0x51   : > { %720 = vst [vmem:[%s4306_s13 + $0x108] sm:$0xff] %v719_v33  ;;  %v789_v4 = vld [vmem:[%s4301_s12 + $0x440] sm:$0xff]  ;;  %v791_v5 = vld [vmem:[%s4301_s12 + $0x450] sm:$0xff] }
  0x52   : > { %722 = vst [vmem:[%s4306_s13 + $0x110] sm:$0xff] %v721_v34  ;;  %v793_v6 = vld [vmem:[%s4301_s12 + $0x460] sm:$0xff]  ;;  %v795_v7 = vld [vmem:[%s4301_s12 + $0x470] sm:$0xff] }
  0x53   : > { %724 = vst [vmem:[%s4306_s13 + $0x118] sm:$0xff] %v723_v35  ;;  %v797_v8 = vld [vmem:[%s4301_s12 + $0x480] sm:$0xff]  ;;  %v799_v9 = vld [vmem:[%s4301_s12 + $0x490] sm:$0xff] }
  0x54   : > { %726 = vst [vmem:[%s4306_s13 + $0x120] sm:$0xff] %v725_v36  ;;  %v801_v10 = vld [vmem:[%s4301_s12 + $0x4a0] sm:$0xff]  ;;  %v803_v11 = vld [vmem:[%s4301_s12 + $0x4b0] sm:$0xff] }
  0x55   : > { %728 = vst [vmem:[%s4306_s13 + $0x128] sm:$0xff] %v727_v37  ;;  %v805_v12 = vld [vmem:[%s4301_s12 + $0x4c0] sm:$0xff]  ;;  %v807_v13 = vld [vmem:[%s4301_s12 + $0x4d0] sm:$0xff] }
  0x56   : > { %730 = vst [vmem:[%s4306_s13 + $0x130] sm:$0xff] %v729_v38  ;;  %v809_v14 = vld [vmem:[%s4301_s12 + $0x4e0] sm:$0xff]  ;;  %v811_v15 = vld [vmem:[%s4301_s12 + $0x4f0] sm:$0xff] }
  0x57   : > { %732 = vst [vmem:[%s4306_s13 + $0x138] sm:$0xff] %v731_v39  ;;  %v813_v16 = vld [vmem:[%s4301_s12 + $0x500] sm:$0xff]  ;;  %v815_v17 = vld [vmem:[%s4301_s12 + $0x510] sm:$0xff] }
  0x58   : > { %734 = vst [vmem:[%s4306_s13 + $0x140] sm:$0xff] %v733_v40  ;;  %v817_v18 = vld [vmem:[%s4301_s12 + $0x520] sm:$0xff]  ;;  %v819_v19 = vld [vmem:[%s4301_s12 + $0x530] sm:$0xff] }
  0x59   : > { %736 = vst [vmem:[%s4306_s13 + $0x148] sm:$0xff] %v735_v41  ;;  %v821_v20 = vld [vmem:[%s4301_s12 + $0x540] sm:$0xff]  ;;  %v823_v21 = vld [vmem:[%s4301_s12 + $0x550] sm:$0xff] }
  0x5a   : > { %738 = vst [vmem:[%s4306_s13 + $0x150] sm:$0xff] %v737_v42  ;;  %v825_v22 = vld [vmem:[%s4301_s12 + $0x560] sm:$0xff]  ;;  %v827_v23 = vld [vmem:[%s4301_s12 + $0x570] sm:$0xff] }
  0x5b   : > { %740 = vst [vmem:[%s4306_s13 + $0x158] sm:$0xff] %v739_v43  ;;  %v829_v24 = vld [vmem:[%s4301_s12 + $0x580] sm:$0xff]  ;;  %v831_v25 = vld [vmem:[%s4301_s12 + $0x590] sm:$0xff] }
  0x5c   : > { %742 = vst [vmem:[%s4306_s13 + $0x160] sm:$0xff] %v741_v44  ;;  %v833_v26 = vld [vmem:[%s4301_s12 + $0x5a0] sm:$0xff]  ;;  %v835_v27 = vld [vmem:[%s4301_s12 + $0x5b0] sm:$0xff] }
  0x5d   : > { %744 = vst [vmem:[%s4306_s13 + $0x168] sm:$0xff] %v743_v45  ;;  %v837_v28 = vld [vmem:[%s4301_s12 + $0x5c0] sm:$0xff]  ;;  %v839_v29 = vld [vmem:[%s4301_s12 + $0x5d0] sm:$0xff] }
  0x5e   : > { %746 = vst [vmem:[%s4306_s13 + $0x170] sm:$0xff] %v745_v46  ;;  %v841_v30 = vld [vmem:[%s4301_s12 + $0x5e0] sm:$0xff]  ;;  %v843_v31 = vld [vmem:[%s4301_s12 + $0x5f0] sm:$0xff] }
  0x5f   : > { %748 = vst [vmem:[%s4306_s13 + $0x178] sm:$0xff] %v747_v47  ;;  %v845_v32 = vld [vmem:[%s4301_s12 + $0x600] sm:$0xff]  ;;  %v847_v33 = vld [vmem:[%s4301_s12 + $0x610] sm:$0xff] }
  0x60   : > { %750 = vst [vmem:[%s4306_s13 + $0x180] sm:$0xff] %v749_v48  ;;  %v849_v34 = vld [vmem:[%s4301_s12 + $0x620] sm:$0xff]  ;;  %v851_v35 = vld [vmem:[%s4301_s12 + $0x630] sm:$0xff] }
  0x61   : > { %752 = vst [vmem:[%s4306_s13 + $0x188] sm:$0xff] %v751_v49  ;;  %v853_v36 = vld [vmem:[%s4301_s12 + $0x640] sm:$0xff]  ;;  %v855_v37 = vld [vmem:[%s4301_s12 + $0x650] sm:$0xff] }
  0x62   : > { %754 = vst [vmem:[%s4306_s13 + $0x190] sm:$0xff] %v753_v50  ;;  %v857_v38 = vld [vmem:[%s4301_s12 + $0x660] sm:$0xff]  ;;  %v859_v39 = vld [vmem:[%s4301_s12 + $0x670] sm:$0xff] }
  0x63   : > { %756 = vst [vmem:[%s4306_s13 + $0x198] sm:$0xff] %v755_v51  ;;  %v861_v40 = vld [vmem:[%s4301_s12 + $0x680] sm:$0xff]  ;;  %v863_v41 = vld [vmem:[%s4301_s12 + $0x690] sm:$0xff] }
  0x64   : > { %758 = vst [vmem:[%s4306_s13 + $0x1a0] sm:$0xff] %v757_v52  ;;  %v865_v42 = vld [vmem:[%s4301_s12 + $0x6a0] sm:$0xff]  ;;  %v867_v43 = vld [vmem:[%s4301_s12 + $0x6b0] sm:$0xff] }
  0x65   : > { %760 = vst [vmem:[%s4306_s13 + $0x1a8] sm:$0xff] %v759_v53  ;;  %v869_v44 = vld [vmem:[%s4301_s12 + $0x6c0] sm:$0xff]  ;;  %v871_v45 = vld [vmem:[%s4301_s12 + $0x6d0] sm:$0xff] }
  0x66   : > { %762 = vst [vmem:[%s4306_s13 + $0x1b0] sm:$0xff] %v761_v54  ;;  %v873_v46 = vld [vmem:[%s4301_s12 + $0x6e0] sm:$0xff]  ;;  %v875_v47 = vld [vmem:[%s4301_s12 + $0x6f0] sm:$0xff] }
  0x67   : > { %764 = vst [vmem:[%s4306_s13 + $0x1b8] sm:$0xff] %v763_v55  ;;  %v877_v48 = vld [vmem:[%s4301_s12 + $0x700] sm:$0xff]  ;;  %v879_v49 = vld [vmem:[%s4301_s12 + $0x710] sm:$0xff] }
  0x68   : > { %766 = vst [vmem:[%s4306_s13 + $0x1c0] sm:$0xff] %v765_v56  ;;  %v881_v50 = vld [vmem:[%s4301_s12 + $0x720] sm:$0xff]  ;;  %v883_v51 = vld [vmem:[%s4301_s12 + $0x730] sm:$0xff] }
  0x69   : > { %768 = vst [vmem:[%s4306_s13 + $0x1c8] sm:$0xff] %v767_v57  ;;  %v885_v52 = vld [vmem:[%s4301_s12 + $0x740] sm:$0xff]  ;;  %v887_v53 = vld [vmem:[%s4301_s12 + $0x750] sm:$0xff] }
  0x6a   : > { %770 = vst [vmem:[%s4306_s13 + $0x1d0] sm:$0xff] %v769_v58  ;;  %v889_v54 = vld [vmem:[%s4301_s12 + $0x760] sm:$0xff]  ;;  %v891_v55 = vld [vmem:[%s4301_s12 + $0x770] sm:$0xff] }
  0x6b   : > { %772 = vst [vmem:[%s4306_s13 + $0x1d8] sm:$0xff] %v771_v59  ;;  %v893_v56 = vld [vmem:[%s4301_s12 + $0x780] sm:$0xff]  ;;  %v895_v57 = vld [vmem:[%s4301_s12 + $0x790] sm:$0xff] }
  0x6c   : > { %774 = vst [vmem:[%s4306_s13 + $0x1e0] sm:$0xff] %v773_v60  ;;  %v897_v58 = vld [vmem:[%s4301_s12 + $0x7a0] sm:$0xff]  ;;  %v899_v59 = vld [vmem:[%s4301_s12 + $0x7b0] sm:$0xff] }
  0x6d   : > { %776 = vst [vmem:[%s4306_s13 + $0x1e8] sm:$0xff] %v775_v61  ;;  %v901_v60 = vld [vmem:[%s4301_s12 + $0x7c0] sm:$0xff]  ;;  %v903_v61 = vld [vmem:[%s4301_s12 + $0x7d0] sm:$0xff] }
  0x6e   : > { %778 = vst [vmem:[%s4306_s13 + $0x1f0] sm:$0xff] %v777_v62  ;;  %v905_v62 = vld [vmem:[%s4301_s12 + $0x7e0] sm:$0xff] }
  0x6f   : > { %780 = vst [vmem:[%s4306_s13 + $0x1f8] sm:$0xff] %v779_v63  ;;  %v907_v63 = vld [vmem:[%s4301_s12 + $0x7f0] sm:$0xff] }
  0x70   : > { %782 = vst [vmem:[%s4306_s13 + $0x200] sm:$0xff] %v781_v0  ;;  %v909_v0 = vld [vmem:[%s4301_s12 + $0x800] sm:$0xff] }
  0x71   : > { %784 = vst [vmem:[%s4306_s13 + $0x208] sm:$0xff] %v783_v1  ;;  %v911_v1 = vld [vmem:[%s4301_s12 + $0x810] sm:$0xff] }
  0x72   : > { %786 = vst [vmem:[%s4306_s13 + $0x210] sm:$0xff] %v785_v2  ;;  %v913_v2 = vld [vmem:[%s4301_s12 + $0x820] sm:$0xff] }
  0x73   : > { %788 = vst [vmem:[%s4306_s13 + $0x218] sm:$0xff] %v787_v3  ;;  %v915_v3 = vld [vmem:[%s4301_s12 + $0x830] sm:$0xff] }
  0x74   : > { %790 = vst [vmem:[%s4306_s13 + $0x220] sm:$0xff] %v789_v4  ;;  %v917_v4 = vld [vmem:[%s4301_s12 + $0x840] sm:$0xff] }
  0x75   : > { %792 = vst [vmem:[%s4306_s13 + $0x228] sm:$0xff] %v791_v5  ;;  %v919_v5 = vld [vmem:[%s4301_s12 + $0x850] sm:$0xff] }
  0x76   : > { %794 = vst [vmem:[%s4306_s13 + $0x230] sm:$0xff] %v793_v6  ;;  %v921_v6 = vld [vmem:[%s4301_s12 + $0x860] sm:$0xff] }
  0x77   : > { %796 = vst [vmem:[%s4306_s13 + $0x238] sm:$0xff] %v795_v7  ;;  %v923_v7 = vld [vmem:[%s4301_s12 + $0x870] sm:$0xff] }
  0x78   : > { %798 = vst [vmem:[%s4306_s13 + $0x240] sm:$0xff] %v797_v8  ;;  %v925_v8 = vld [vmem:[%s4301_s12 + $0x880] sm:$0xff] }
  0x79   : > { %800 = vst [vmem:[%s4306_s13 + $0x248] sm:$0xff] %v799_v9  ;;  %v927_v9 = vld [vmem:[%s4301_s12 + $0x890] sm:$0xff] }
  0x7a   : > { %802 = vst [vmem:[%s4306_s13 + $0x250] sm:$0xff] %v801_v10  ;;  %v929_v10 = vld [vmem:[%s4301_s12 + $0x8a0] sm:$0xff] }
  0x7b   : > { %804 = vst [vmem:[%s4306_s13 + $0x258] sm:$0xff] %v803_v11  ;;  %v931_v11 = vld [vmem:[%s4301_s12 + $0x8b0] sm:$0xff] }
  0x7c   : > { %806 = vst [vmem:[%s4306_s13 + $0x260] sm:$0xff] %v805_v12  ;;  %v933_v12 = vld [vmem:[%s4301_s12 + $0x8c0] sm:$0xff] }
  0x7d   : > { %808 = vst [vmem:[%s4306_s13 + $0x268] sm:$0xff] %v807_v13  ;;  %v935_v13 = vld [vmem:[%s4301_s12 + $0x8d0] sm:$0xff] }
  0x7e   : > { %810 = vst [vmem:[%s4306_s13 + $0x270] sm:$0xff] %v809_v14  ;;  %v937_v14 = vld [vmem:[%s4301_s12 + $0x8e0] sm:$0xff] }
  0x7f   : > { %812 = vst [vmem:[%s4306_s13 + $0x278] sm:$0xff] %v811_v15  ;;  %v939_v15 = vld [vmem:[%s4301_s12 + $0x8f0] sm:$0xff] }
  0x80   : > { %814 = vst [vmem:[%s4306_s13 + $0x280] sm:$0xff] %v813_v16  ;;  %v941_v16 = vld [vmem:[%s4301_s12 + $0x900] sm:$0xff] }
  0x81   : > { %816 = vst [vmem:[%s4306_s13 + $0x288] sm:$0xff] %v815_v17  ;;  %v943_v17 = vld [vmem:[%s4301_s12 + $0x910] sm:$0xff] }
  0x82   : > { %818 = vst [vmem:[%s4306_s13 + $0x290] sm:$0xff] %v817_v18  ;;  %v945_v18 = vld [vmem:[%s4301_s12 + $0x920] sm:$0xff] }
  0x83   : > { %820 = vst [vmem:[%s4306_s13 + $0x298] sm:$0xff] %v819_v19  ;;  %v947_v19 = vld [vmem:[%s4301_s12 + $0x930] sm:$0xff] }
  0x84   : > { %822 = vst [vmem:[%s4306_s13 + $0x2a0] sm:$0xff] %v821_v20  ;;  %v949_v20 = vld [vmem:[%s4301_s12 + $0x940] sm:$0xff] }
  0x85   : > { %824 = vst [vmem:[%s4306_s13 + $0x2a8] sm:$0xff] %v823_v21  ;;  %v951_v21 = vld [vmem:[%s4301_s12 + $0x950] sm:$0xff] }
  0x86   : > { %826 = vst [vmem:[%s4306_s13 + $0x2b0] sm:$0xff] %v825_v22  ;;  %v953_v22 = vld [vmem:[%s4301_s12 + $0x960] sm:$0xff] }
  0x87   : > { %828 = vst [vmem:[%s4306_s13 + $0x2b8] sm:$0xff] %v827_v23  ;;  %v955_v23 = vld [vmem:[%s4301_s12 + $0x970] sm:$0xff] }
  0x88   : > { %830 = vst [vmem:[%s4306_s13 + $0x2c0] sm:$0xff] %v829_v24  ;;  %v957_v24 = vld [vmem:[%s4301_s12 + $0x980] sm:$0xff] }
  0x89   : > { %832 = vst [vmem:[%s4306_s13 + $0x2c8] sm:$0xff] %v831_v25  ;;  %v959_v25 = vld [vmem:[%s4301_s12 + $0x990] sm:$0xff] }
  0x8a   : > { %834 = vst [vmem:[%s4306_s13 + $0x2d0] sm:$0xff] %v833_v26  ;;  %v961_v26 = vld [vmem:[%s4301_s12 + $0x9a0] sm:$0xff] }
  0x8b   : > { %836 = vst [vmem:[%s4306_s13 + $0x2d8] sm:$0xff] %v835_v27  ;;  %v963_v27 = vld [vmem:[%s4301_s12 + $0x9b0] sm:$0xff] }
  0x8c   : > { %838 = vst [vmem:[%s4306_s13 + $0x2e0] sm:$0xff] %v837_v28  ;;  %v965_v28 = vld [vmem:[%s4301_s12 + $0x9c0] sm:$0xff] }
  0x8d   : > { %840 = vst [vmem:[%s4306_s13 + $0x2e8] sm:$0xff] %v839_v29  ;;  %v967_v29 = vld [vmem:[%s4301_s12 + $0x9d0] sm:$0xff] }
  0x8e   : > { %842 = vst [vmem:[%s4306_s13 + $0x2f0] sm:$0xff] %v841_v30  ;;  %v969_v30 = vld [vmem:[%s4301_s12 + $0x9e0] sm:$0xff] }
  0x8f   : > { %844 = vst [vmem:[%s4306_s13 + $0x2f8] sm:$0xff] %v843_v31  ;;  %v971_v31 = vld [vmem:[%s4301_s12 + $0x9f0] sm:$0xff] }
  0x90   : > { %846 = vst [vmem:[%s4306_s13 + $0x300] sm:$0xff] %v845_v32  ;;  %v973_v32 = vld [vmem:[%s4301_s12 + $0xa00] sm:$0xff] }
  0x91   : > { %848 = vst [vmem:[%s4306_s13 + $0x308] sm:$0xff] %v847_v33  ;;  %v975_v33 = vld [vmem:[%s4301_s12 + $0xa10] sm:$0xff] }
  0x92   : > { %850 = vst [vmem:[%s4306_s13 + $0x310] sm:$0xff] %v849_v34  ;;  %v977_v34 = vld [vmem:[%s4301_s12 + $0xa20] sm:$0xff] }
  0x93   : > { %852 = vst [vmem:[%s4306_s13 + $0x318] sm:$0xff] %v851_v35  ;;  %v979_v35 = vld [vmem:[%s4301_s12 + $0xa30] sm:$0xff] }
  0x94   : > { %854 = vst [vmem:[%s4306_s13 + $0x320] sm:$0xff] %v853_v36  ;;  %v981_v36 = vld [vmem:[%s4301_s12 + $0xa40] sm:$0xff] }
  0x95   : > { %856 = vst [vmem:[%s4306_s13 + $0x328] sm:$0xff] %v855_v37  ;;  %v983_v37 = vld [vmem:[%s4301_s12 + $0xa50] sm:$0xff] }
  0x96   : > { %858 = vst [vmem:[%s4306_s13 + $0x330] sm:$0xff] %v857_v38  ;;  %v985_v38 = vld [vmem:[%s4301_s12 + $0xa60] sm:$0xff] }
  0x97   : > { %860 = vst [vmem:[%s4306_s13 + $0x338] sm:$0xff] %v859_v39  ;;  %v987_v39 = vld [vmem:[%s4301_s12 + $0xa70] sm:$0xff] }
  0x98   : > { %862 = vst [vmem:[%s4306_s13 + $0x340] sm:$0xff] %v861_v40  ;;  %v989_v40 = vld [vmem:[%s4301_s12 + $0xa80] sm:$0xff] }
  0x99   : > { %864 = vst [vmem:[%s4306_s13 + $0x348] sm:$0xff] %v863_v41  ;;  %v991_v41 = vld [vmem:[%s4301_s12 + $0xa90] sm:$0xff] }
  0x9a   : > { %866 = vst [vmem:[%s4306_s13 + $0x350] sm:$0xff] %v865_v42  ;;  %v993_v42 = vld [vmem:[%s4301_s12 + $0xaa0] sm:$0xff] }
  0x9b   : > { %868 = vst [vmem:[%s4306_s13 + $0x358] sm:$0xff] %v867_v43  ;;  %v995_v43 = vld [vmem:[%s4301_s12 + $0xab0] sm:$0xff] }
  0x9c   : > { %870 = vst [vmem:[%s4306_s13 + $0x360] sm:$0xff] %v869_v44  ;;  %v997_v44 = vld [vmem:[%s4301_s12 + $0xac0] sm:$0xff] }
  0x9d   : > { %872 = vst [vmem:[%s4306_s13 + $0x368] sm:$0xff] %v871_v45  ;;  %v999_v45 = vld [vmem:[%s4301_s12 + $0xad0] sm:$0xff] }
  0x9e   : > { %874 = vst [vmem:[%s4306_s13 + $0x370] sm:$0xff] %v873_v46  ;;  %v1001_v46 = vld [vmem:[%s4301_s12 + $0xae0] sm:$0xff] }
  0x9f   : > { %876 = vst [vmem:[%s4306_s13 + $0x378] sm:$0xff] %v875_v47  ;;  %v1003_v47 = vld [vmem:[%s4301_s12 + $0xaf0] sm:$0xff] }
  0xa0   : > { %878 = vst [vmem:[%s4306_s13 + $0x380] sm:$0xff] %v877_v48  ;;  %v1005_v48 = vld [vmem:[%s4301_s12 + $0xb00] sm:$0xff] }
  0xa1   : > { %880 = vst [vmem:[%s4306_s13 + $0x388] sm:$0xff] %v879_v49  ;;  %v1007_v49 = vld [vmem:[%s4301_s12 + $0xb10] sm:$0xff] }
  0xa2   : > { %882 = vst [vmem:[%s4306_s13 + $0x390] sm:$0xff] %v881_v50  ;;  %v1009_v50 = vld [vmem:[%s4301_s12 + $0xb20] sm:$0xff] }
  0xa3   : > { %884 = vst [vmem:[%s4306_s13 + $0x398] sm:$0xff] %v883_v51  ;;  %v1011_v51 = vld [vmem:[%s4301_s12 + $0xb30] sm:$0xff] }
  0xa4   : > { %886 = vst [vmem:[%s4306_s13 + $0x3a0] sm:$0xff] %v885_v52  ;;  %v1013_v52 = vld [vmem:[%s4301_s12 + $0xb40] sm:$0xff] }
  0xa5   : > { %888 = vst [vmem:[%s4306_s13 + $0x3a8] sm:$0xff] %v887_v53  ;;  %v1015_v53 = vld [vmem:[%s4301_s12 + $0xb50] sm:$0xff] }
  0xa6   : > { %890 = vst [vmem:[%s4306_s13 + $0x3b0] sm:$0xff] %v889_v54  ;;  %v1017_v54 = vld [vmem:[%s4301_s12 + $0xb60] sm:$0xff] }
  0xa7   : > { %892 = vst [vmem:[%s4306_s13 + $0x3b8] sm:$0xff] %v891_v55  ;;  %v1019_v55 = vld [vmem:[%s4301_s12 + $0xb70] sm:$0xff] }
  0xa8   : > { %894 = vst [vmem:[%s4306_s13 + $0x3c0] sm:$0xff] %v893_v56  ;;  %v1021_v56 = vld [vmem:[%s4301_s12 + $0xb80] sm:$0xff] }
  0xa9   : > { %896 = vst [vmem:[%s4306_s13 + $0x3c8] sm:$0xff] %v895_v57  ;;  %v1023_v57 = vld [vmem:[%s4301_s12 + $0xb90] sm:$0xff] }
  0xaa   : > { %898 = vst [vmem:[%s4306_s13 + $0x3d0] sm:$0xff] %v897_v58  ;;  %v1025_v58 = vld [vmem:[%s4301_s12 + $0xba0] sm:$0xff] }
  0xab   : > { %900 = vst [vmem:[%s4306_s13 + $0x3d8] sm:$0xff] %v899_v59  ;;  %v1027_v59 = vld [vmem:[%s4301_s12 + $0xbb0] sm:$0xff] }
  0xac   : > { %902 = vst [vmem:[%s4306_s13 + $0x3e0] sm:$0xff] %v901_v60  ;;  %v1029_v60 = vld [vmem:[%s4301_s12 + $0xbc0] sm:$0xff] }
  0xad   : > { %904 = vst [vmem:[%s4306_s13 + $0x3e8] sm:$0xff] %v903_v61  ;;  %v1031_v61 = vld [vmem:[%s4301_s12 + $0xbd0] sm:$0xff] }
  0xae   : > { %906 = vst [vmem:[%s4306_s13 + $0x3f0] sm:$0xff] %v905_v62  ;;  %v1033_v62 = vld [vmem:[%s4301_s12 + $0xbe0] sm:$0xff] }
  0xaf   : > { %908 = vst [vmem:[%s4306_s13 + $0x3f8] sm:$0xff] %v907_v63  ;;  %v1035_v63 = vld [vmem:[%s4301_s12 + $0xbf0] sm:$0xff] }
  0xb0   : > { %910 = vst [vmem:[%s4306_s13 + $0x400] sm:$0xff] %v909_v0 }
  0xb1   : > { %912 = vst [vmem:[%s4306_s13 + $0x408] sm:$0xff] %v911_v1 }
  0xb2   : > { %914 = vst [vmem:[%s4306_s13 + $0x410] sm:$0xff] %v913_v2 }
  0xb3   : > { %916 = vst [vmem:[%s4306_s13 + $0x418] sm:$0xff] %v915_v3 }
  0xb4   : > { %918 = vst [vmem:[%s4306_s13 + $0x420] sm:$0xff] %v917_v4 }
  0xb5   : > { %920 = vst [vmem:[%s4306_s13 + $0x428] sm:$0xff] %v919_v5 }
  0xb6   : > { %922 = vst [vmem:[%s4306_s13 + $0x430] sm:$0xff] %v921_v6 }
  0xb7   : > { %924 = vst [vmem:[%s4306_s13 + $0x438] sm:$0xff] %v923_v7 }
  0xb8   : > { %926 = vst [vmem:[%s4306_s13 + $0x440] sm:$0xff] %v925_v8 }
  0xb9   : > { %928 = vst [vmem:[%s4306_s13 + $0x448] sm:$0xff] %v927_v9 }
  0xba   : > { %930 = vst [vmem:[%s4306_s13 + $0x450] sm:$0xff] %v929_v10 }
  0xbb   : > { %932 = vst [vmem:[%s4306_s13 + $0x458] sm:$0xff] %v931_v11 }
  0xbc   : > { %934 = vst [vmem:[%s4306_s13 + $0x460] sm:$0xff] %v933_v12 }
  0xbd   : > { %936 = vst [vmem:[%s4306_s13 + $0x468] sm:$0xff] %v935_v13 }
  0xbe   : > { %938 = vst [vmem:[%s4306_s13 + $0x470] sm:$0xff] %v937_v14 }
  0xbf   : > { %940 = vst [vmem:[%s4306_s13 + $0x478] sm:$0xff] %v939_v15 }
  0xc0   : > { %942 = vst [vmem:[%s4306_s13 + $0x480] sm:$0xff] %v941_v16 }
  0xc1   : > { %944 = vst [vmem:[%s4306_s13 + $0x488] sm:$0xff] %v943_v17 }
  0xc2   : > { %946 = vst [vmem:[%s4306_s13 + $0x490] sm:$0xff] %v945_v18 }
  0xc3   : > { %948 = vst [vmem:[%s4306_s13 + $0x498] sm:$0xff] %v947_v19 }
  0xc4   : > { %950 = vst [vmem:[%s4306_s13 + $0x4a0] sm:$0xff] %v949_v20 }
  0xc5   : > { %952 = vst [vmem:[%s4306_s13 + $0x4a8] sm:$0xff] %v951_v21 }
  0xc6   : > { %954 = vst [vmem:[%s4306_s13 + $0x4b0] sm:$0xff] %v953_v22 }
  0xc7   : > { %956 = vst [vmem:[%s4306_s13 + $0x4b8] sm:$0xff] %v955_v23 }
  0xc8   : > { %958 = vst [vmem:[%s4306_s13 + $0x4c0] sm:$0xff] %v957_v24 }
  0xc9   : > { %960 = vst [vmem:[%s4306_s13 + $0x4c8] sm:$0xff] %v959_v25 }
  0xca   : > { %962 = vst [vmem:[%s4306_s13 + $0x4d0] sm:$0xff] %v961_v26 }
  0xcb   : > { %964 = vst [vmem:[%s4306_s13 + $0x4d8] sm:$0xff] %v963_v27 }
  0xcc   : > { %966 = vst [vmem:[%s4306_s13 + $0x4e0] sm:$0xff] %v965_v28 }
  0xcd   : > { %968 = vst [vmem:[%s4306_s13 + $0x4e8] sm:$0xff] %v967_v29 }
  0xce   : > { %970 = vst [vmem:[%s4306_s13 + $0x4f0] sm:$0xff] %v969_v30 }
  0xcf   : > { %972 = vst [vmem:[%s4306_s13 + $0x4f8] sm:$0xff] %v971_v31 }
  0xd0   : > { %974 = vst [vmem:[%s4306_s13 + $0x500] sm:$0xff] %v973_v32 }
  0xd1   : > { %976 = vst [vmem:[%s4306_s13 + $0x508] sm:$0xff] %v975_v33 }
  0xd2   : > { %978 = vst [vmem:[%s4306_s13 + $0x510] sm:$0xff] %v977_v34 }
  0xd3   : > { %980 = vst [vmem:[%s4306_s13 + $0x518] sm:$0xff] %v979_v35 }
  0xd4   : > { %982 = vst [vmem:[%s4306_s13 + $0x520] sm:$0xff] %v981_v36 }
  0xd5   : > { %984 = vst [vmem:[%s4306_s13 + $0x528] sm:$0xff] %v983_v37 }
  0xd6   : > { %986 = vst [vmem:[%s4306_s13 + $0x530] sm:$0xff] %v985_v38 }
  0xd7   : > { %988 = vst [vmem:[%s4306_s13 + $0x538] sm:$0xff] %v987_v39 }
  0xd8   : > { %990 = vst [vmem:[%s4306_s13 + $0x540] sm:$0xff] %v989_v40 }
  0xd9   : > { %992 = vst [vmem:[%s4306_s13 + $0x548] sm:$0xff] %v991_v41 }
  0xda   : > { %994 = vst [vmem:[%s4306_s13 + $0x550] sm:$0xff] %v993_v42 }
  0xdb   : > { %996 = vst [vmem:[%s4306_s13 + $0x558] sm:$0xff] %v995_v43 }
  0xdc   : > { %998 = vst [vmem:[%s4306_s13 + $0x560] sm:$0xff] %v997_v44 }
  0xdd   : > { %1000 = vst [vmem:[%s4306_s13 + $0x568] sm:$0xff] %v999_v45 }
  0xde   : > { %1002 = vst [vmem:[%s4306_s13 + $0x570] sm:$0xff] %v1001_v46 }
  0xdf   : > { %1004 = vst [vmem:[%s4306_s13 + $0x578] sm:$0xff] %v1003_v47 }
  0xe0   : > { %1006 = vst [vmem:[%s4306_s13 + $0x580] sm:$0xff] %v1005_v48 }
  0xe1   : > { %1008 = vst [vmem:[%s4306_s13 + $0x588] sm:$0xff] %v1007_v49 }
  0xe2   : > { %1010 = vst [vmem:[%s4306_s13 + $0x590] sm:$0xff] %v1009_v50 }
  0xe3   : > { %1012 = vst [vmem:[%s4306_s13 + $0x598] sm:$0xff] %v1011_v51 }
  0xe4   : > { %1014 = vst [vmem:[%s4306_s13 + $0x5a0] sm:$0xff] %v1013_v52 }
  0xe5   : > { %1016 = vst [vmem:[%s4306_s13 + $0x5a8] sm:$0xff] %v1015_v53 }
  0xe6   : > { %1018 = vst [vmem:[%s4306_s13 + $0x5b0] sm:$0xff] %v1017_v54 }
  0xe7   : > { %1020 = vst [vmem:[%s4306_s13 + $0x5b8] sm:$0xff] %v1019_v55 }
  0xe8   : > { %1022 = vst [vmem:[%s4306_s13 + $0x5c0] sm:$0xff] %v1021_v56 }
  0xe9   : > { %1024 = vst [vmem:[%s4306_s13 + $0x5c8] sm:$0xff] %v1023_v57 }
  0xea   : > { %1026 = vst [vmem:[%s4306_s13 + $0x5d0] sm:$0xff] %v1025_v58 }
  0xeb   : > { %1028 = vst [vmem:[%s4306_s13 + $0x5d8] sm:$0xff] %v1027_v59 }
  0xec   : > { %1030 = vst [vmem:[%s4306_s13 + $0x5e0] sm:$0xff] %v1029_v60 }
  0xed   : > { %1032 = vst [vmem:[%s4306_s13 + $0x5e8] sm:$0xff] %v1031_v61 }
  0xee   : > { %1034 = vst [vmem:[%s4306_s13 + $0x5f0] sm:$0xff] %v1033_v62 }
  0xef   : > { %1036 = vst [vmem:[%s4306_s13 + $0x5f8] sm:$0xff] %v1035_v63 }
  0xf0 PF: > { %p2941_p1 = scmp.ge.s32.totalorder %s4153_s29, 1  ;;  %p1062_p2 = scmp.lt.s32.totalorder %s4153_s29, 13 }
  0xf2   : > { %p1063_p3 = pnand %p2941_p1, %p1062_p2 }
  0xf3   : > { %s1069_s9 = sand.u32 (!%p1063_p3), 1, %s4121_s21   ;;  %s5256_s10 = sand.u32 (!%p1063_p3), 1, %s4113_s19  }
  0xf4   : > { %1066 = sbr.rel (%p1063_p3) target bundleno = 648 (0x288), region = 70  ;;  %s4695_s7 = sshll.u32 (!%p1063_p3), %s5256_s10, 3 }
  0xf5   : > { %s3920_s11 = smul.u32 (!%p1063_p3), 1536, %s1069_s9  ;;  %p1126_p4 = scmp.lt.s32.totalorder (!%p1063_p3), %s4137_s25, 1 }
  0xf6   : > { %p1128_p5 = scmp.lt.s32.totalorder (!%p1063_p3), %s4129_s23, 2  ;;  %s4702_s15 = sshll.u32 (!%p1063_p3), %s4133_s24, 1 }
  0xf7   : > { %p1137_p6 = scmp.lt.s32.totalorder (!%p1063_p3), %s4702_s15, 3  ;;  %s5275_s0 = sld [smem:[#allocation15_spill]] (!%p1063_p3) }
  0xf8   : > { %s4730_s21 = scalar_lea.vmem (!%p1063_p3), [#allocation3], %s3920_s11  ;;  %p2950_p7 = scmp.ne.s32.totalorder (!%p1063_p3), %s4129_s23, 0 }
  0xf9   : > { %s1127_s6 = scalar_select %p1126_p4, %s4137_s25, 1 }
  0xfa   : > { %s1129_s4 = scalar_select %p1128_p5, %s4129_s23, 2 }
  0xfb   : > { %s3922_s14 = smul.u32 36, %s1127_s6  ;;  %s2946_s10 = sshll.u32 %s1127_s6, 2 }
  0xfc   : > { %s3921_s12 = smul.u32 12, %s1129_s4 }
  0xfd   : > { %s4711_s27 = scalar_select %p1137_p6, %s4702_s15, 3 }
  0xfe   : > { %s1132_s13 = sadd.s32 %s3922_s14, %s3921_s12  ;;  %1164 = sbr.rel (%p2950_p7) target bundleno = 262 (0x106), region = 78 }
  0xff   : > { %s2943_s1 = sshll.u32 %s1132_s13, 2  ;;  %s1139_s24 = scalar_lea.vmem %s5247_s2, %s4711_s27 }
 0x100   : > { %s4708_s9 = scalar_lea.vmem %s5275_s0, %s2943_s1  ;;  %s4718_s22 = sadd.s32 %s2946_s10, %s4711_s27 }
 0x101   : > { %s2947_s4 = sshll.u32 %s4718_s22, 2  ;;  %s1159_s28 = scalar_lea.vmem %s5250_s5, %s4718_s22 }
 0x102   : > { %s4728_s6 = scalar_lea.vmem %s5248_s3, %s2947_s4  ;;  %s1115_s0 = scalar_lea.vmem [#allocation4], %s4695_s7 }
 0x103   : > { %v4155_v0 = vmov 0.0  }
 0x104   : > { %1165 = vst [vmem:[#allocation2] sm:$0xff] %v4155_v0 }
 0x105   : > { %1166 = vst [vmem:[#allocation2 + $0x8] sm:$0xff] %v4155_v0 }
 0x106 PF: > { %v3009_v1 = vld [vmem:[%s4730_s21 + $0x70] sm:$0xf]  ;;  %v3741_v2 = vld [vmem:[%s4730_s21 + $0x74] sm:$0xf0]  ;;  %v3001_v12 = vld [vmem:[%s4730_s21 + $0x60] sm:$0xf] }
 0x107   : > { %v3073_v3 = vld [vmem:[%s4730_s21 + $0xf0] sm:$0xf]  ;;  %v3010_v4 = vor.u32 %v3741_v2, %v3009_v1  ;;  %v3757_v5 = vld [vmem:[%s4730_s21 + $0xf4] sm:$0xf0]  ;;  %v3739_v14 = vld [vmem:[%s4730_s21 + $0x64] sm:$0xf0] }
 0x108   : > { %v3137_v6 = vld [vmem:[%s4730_s21 + $0x170] sm:$0xf]  ;;  %v3773_v7 = vld [vmem:[%s4730_s21 + $0x174] sm:$0xf0]  ;;  %v3074_v8 = vor.u32 %v3757_v5, %v3073_v3  ;;  %v3065_v15 = vld [vmem:[%s4730_s21 + $0xe0] sm:$0xf]  ;;  %v3002_v17 = vor.u32 %v3739_v14, %v3001_v12 }
 0x109   : > { %v3138_v9 = vor.u32 %v3773_v7, %v3137_v6  ;;  %v3201_v10 = vld [vmem:[%s4730_s21 + $0x1f0] sm:$0xf]  ;;  %v3789_v11 = vld [vmem:[%s4730_s21 + $0x1f4] sm:$0xf0]  ;;  %2369 = vmatpush.bf16.msra.mxu0 %v3010_v4  ;;  %v3755_v16 = vld [vmem:[%s4730_s21 + $0xe4] sm:$0xf0] }
 0x10a   : > { %v3202_v13 = vor.u32 %v3789_v11, %v3201_v10  ;;  %2382 = vmatpush.bf16.msra.mxu1 %v3074_v8  ;;  %v3066_v18 = vor.u32 %v3755_v16, %v3065_v15  ;;  %v3129_v19 = vld [vmem:[%s4730_s21 + $0x160] sm:$0xf]  ;;  %v3771_v20 = vld [vmem:[%s4730_s21 + $0x164] sm:$0xf0]  ;;  %v2993_v24 = vld [vmem:[%s4730_s21 + $0x50] sm:$0xf] }
 0x10b   : > { %2395 = vmatpush.bf16.msra.mxu2 %v3138_v9  ;;  %v3193_v21 = vld [vmem:[%s4730_s21 + $0x1e0] sm:$0xf]  ;;  %v3130_v22 = vor.u32 %v3771_v20, %v3129_v19  ;;  %v3787_v23 = vld [vmem:[%s4730_s21 + $0x1e4] sm:$0xf0]  ;;  %v3737_v25 = vld [vmem:[%s4730_s21 + $0x54] sm:$0xf0] }
 0x10c   : > { %2408 = vmatpush.bf16.msra.mxu3 %v3202_v13  ;;  %v3194_v26 = vor.u32 %v3787_v23, %v3193_v21  ;;  %v3057_v27 = vld [vmem:[%s4730_s21 + $0xd0] sm:$0xf]  ;;  %v3753_v28 = vld [vmem:[%s4730_s21 + $0xd4] sm:$0xf0]  ;;  %v2994_v30 = vor.u32 %v3737_v25, %v2993_v24  ;;  %v2985_v36 = vld [vmem:[%s4730_s21 + $0x40] sm:$0xf] }
 0x10d   : > { %v3121_v29 = vld [vmem:[%s4730_s21 + $0x150] sm:$0xf]  ;;  %2370 = vmatpush.bf16.msra.mxu0 %v3002_v17  ;;  %v3769_v31 = vld [vmem:[%s4730_s21 + $0x154] sm:$0xf0]  ;;  %v3058_v34 = vor.u32 %v3753_v28, %v3057_v27  ;;  %v3735_v37 = vld [vmem:[%s4730_s21 + $0x44] sm:$0xf0] }
 0x10e   : > { %v3185_v32 = vld [vmem:[%s4730_s21 + $0x1d0] sm:$0xf]  ;;  %v3785_v33 = vld [vmem:[%s4730_s21 + $0x1d4] sm:$0xf0]  ;;  %2383 = vmatpush.bf16.msra.mxu1 %v3066_v18  ;;  %v3122_v35 = vor.u32 %v3769_v31, %v3121_v29  ;;  %v3049_v38 = vld [vmem:[%s4730_s21 + $0xc0] sm:$0xf]  ;;  %v2986_v45 = vor.u32 %v3735_v37, %v2985_v36 }
 0x10f   : > { %2396 = vmatpush.bf16.msra.mxu2 %v3130_v22  ;;  %v3186_v39 = vor.u32 %v3785_v33, %v3185_v32  ;;  %v3751_v40 = vld [vmem:[%s4730_s21 + $0xc4] sm:$0xf0]  ;;  %v3113_v41 = vld [vmem:[%s4730_s21 + $0x140] sm:$0xf]  ;;  %v2977_v48 = vld [vmem:[%s4730_s21 + $0x30] sm:$0xf] }
 0x110   : > { %2409 = vmatpush.bf16.msra.mxu3 %v3194_v26  ;;  %v3767_v42 = vld [vmem:[%s4730_s21 + $0x144] sm:$0xf0]  ;;  %v3177_v43 = vld [vmem:[%s4730_s21 + $0x1c0] sm:$0xf]  ;;  %v3050_v46 = vor.u32 %v3751_v40, %v3049_v38  ;;  %v3733_v49 = vld [vmem:[%s4730_s21 + $0x34] sm:$0xf0] }
 0x111   : > { %v3783_v44 = vld [vmem:[%s4730_s21 + $0x1c4] sm:$0xf0]  ;;  %2371 = vmatpush.bf16.msra.mxu0 %v2994_v30  ;;  %v3114_v47 = vor.u32 %v3767_v42, %v3113_v41  ;;  %v3041_v50 = vld [vmem:[%s4730_s21 + $0xb0] sm:$0xf]  ;;  %v3749_v52 = vld [vmem:[%s4730_s21 + $0xb4] sm:$0xf0]  ;;  %v2978_v57 = vor.u32 %v3733_v49, %v2977_v48 }
 0x112   : > { %2384 = vmatpush.bf16.msra.mxu1 %v3058_v34  ;;  %v3178_v51 = vor.u32 %v3783_v44, %v3177_v43  ;;  %v3105_v53 = vld [vmem:[%s4730_s21 + $0x130] sm:$0xf]  ;;  %v3765_v54 = vld [vmem:[%s4730_s21 + $0x134] sm:$0xf0]  ;;  %v3042_v58 = vor.u32 %v3749_v52, %v3041_v50  ;;  %v2969_v60 = vld [vmem:[%s4730_s21 + $0x20] sm:$0xf] }
 0x113   : > { %2397 = vmatpush.bf16.msra.mxu2 %v3122_v35  ;;  %v3169_v55 = vld [vmem:[%s4730_s21 + $0x1b0] sm:$0xf]  ;;  %v3781_v56 = vld [vmem:[%s4730_s21 + $0x1b4] sm:$0xf0]  ;;  %v3106_v59 = vor.u32 %v3765_v54, %v3105_v53  ;;  %v3731_v61 = vld [vmem:[%s4730_s21 + $0x24] sm:$0xf0] }
 0x114   : > { %2410 = vmatpush.bf16.msra.mxu3 %v3186_v39  ;;  %v3033_v62 = vld [vmem:[%s4730_s21 + $0xa0] sm:$0xf]  ;;  %v3170_v63 = vor.u32 %v3781_v56, %v3169_v55  ;;  %v3747_v0 = vld [vmem:[%s4730_s21 + $0xa4] sm:$0xf0]  ;;  %v2970_v5 = vor.u32 %v3731_v61, %v2969_v60  ;;  %v2961_v8 = vld [vmem:[%s4730_s21 + $0x10] sm:$0xf] }
 0x115   : > { %2372 = vmatpush.bf16.msra.mxu0 %v2986_v45  ;;  %v3097_v1 = vld [vmem:[%s4730_s21 + $0x120] sm:$0xf]  ;;  %v3763_v2 = vld [vmem:[%s4730_s21 + $0x124] sm:$0xf0]  ;;  %v3034_v6 = vor.u32 %v3747_v0, %v3033_v62  ;;  %v3729_v9 = vld [vmem:[%s4730_s21 + $0x14] sm:$0xf0] }
 0x116   : > { %2385 = vmatpush.bf16.msra.mxu1 %v3050_v46  ;;  %v3161_v3 = vld [vmem:[%s4730_s21 + $0x1a0] sm:$0xf]  ;;  %v3779_v4 = vld [vmem:[%s4730_s21 + $0x1a4] sm:$0xf0]  ;;  %v3098_v7 = vor.u32 %v3763_v2, %v3097_v1  ;;  %v3025_v10 = vld [vmem:[%s4730_s21 + $0x90] sm:$0xf]  ;;  %v2962_v17 = vor.u32 %v3729_v9, %v2961_v8 }
 0x117   : > { %2398 = vmatpush.bf16.msra.mxu2 %v3114_v47  ;;  %v3162_v11 = vor.u32 %v3779_v4, %v3161_v3  ;;  %v3745_v12 = vld [vmem:[%s4730_s21 + $0x94] sm:$0xf0]  ;;  %v3089_v13 = vld [vmem:[%s4730_s21 + $0x110] sm:$0xf]  ;;  %v2953_v18 = vld [vmem:[%s4730_s21] sm:$0xf] }
 0x118   : > { %2411 = vmatpush.bf16.msra.mxu3 %v3178_v51  ;;  %v3761_v14 = vld [vmem:[%s4730_s21 + $0x114] sm:$0xf0]  ;;  %v3153_v15 = vld [vmem:[%s4730_s21 + $0x190] sm:$0xf]  ;;  %v3727_v19 = vld [vmem:[%s4730_s21 + $0x4] sm:$0xf0]  ;;  %v3026_v20 = vor.u32 %v3745_v12, %v3025_v10 }
 0x119   : > { %2373 = vmatpush.bf16.msra.mxu0 %v2978_v57  ;;  %v3777_v16 = vld [vmem:[%s4730_s21 + $0x194] sm:$0xf0]  ;;  %v3090_v21 = vor.u32 %v3761_v14, %v3089_v13  ;;  %v3017_v22 = vld [vmem:[%s4730_s21 + $0x80] sm:$0xf]  ;;  %v3743_v23 = vld [vmem:[%s4730_s21 + $0x84] sm:$0xf0]  ;;  %v2954_v32 = vor.u32 %v3727_v19, %v2953_v18 }
 0x11a   : > { %2386 = vmatpush.bf16.msra.mxu1 %v3042_v58  ;;  %v3081_v24 = vld [vmem:[%s4730_s21 + $0x100] sm:$0xf]  ;;  %v3154_v25 = vor.u32 %v3777_v16, %v3153_v15  ;;  %v3759_v26 = vld [vmem:[%s4730_s21 + $0x104] sm:$0xf0]  ;;  %v3265_v29 = vld [vmem:[%s4730_s21 + $0x270] sm:$0xf]  ;;  %v3018_v36 = vor.u32 %v3743_v23, %v3017_v22 }
 0x11b   : > { %2399 = vmatpush.bf16.msra.mxu2 %v3106_v59  ;;  %v3145_v27 = vld [vmem:[%s4730_s21 + $0x180] sm:$0xf]  ;;  %v3775_v28 = vld [vmem:[%s4730_s21 + $0x184] sm:$0xf0]  ;;  %v3805_v30 = vld [vmem:[%s4730_s21 + $0x274] sm:$0xf0]  ;;  %v3082_v37 = vor.u32 %v3759_v26, %v3081_v24 }
 0x11c   : > { %2412 = vmatpush.bf16.msra.mxu3 %v3170_v63  ;;  %v3329_v31 = vld [vmem:[%s4730_s21 + $0x2f0] sm:$0xf]  ;;  %v3821_v33 = vld [vmem:[%s4730_s21 + $0x2f4] sm:$0xf0]  ;;  %v3146_v40 = vor.u32 %v3775_v28, %v3145_v27  ;;  %v3266_v41 = vor.u32 %v3805_v30, %v3265_v29  ;;  %v3257_v44 = vld [vmem:[%s4730_s21 + $0x260] sm:$0xf] }
 0x11d   : > { %2374 = vmatpush.bf16.msra.mxu0 %v2970_v5  ;;  %v3393_v34 = vld [vmem:[%s4730_s21 + $0x370] sm:$0xf]  ;;  %v3837_v35 = vld [vmem:[%s4730_s21 + $0x374] sm:$0xf0]  ;;  %v3330_v42 = vor.u32 %v3821_v33, %v3329_v31  ;;  %v3803_v45 = vld [vmem:[%s4730_s21 + $0x264] sm:$0xf0] }
 0x11e   : > { %2387 = vmatpush.bf16.msra.mxu1 %v3034_v6  ;;  %v3457_v38 = vld [vmem:[%s4730_s21 + $0x3f0] sm:$0xf]  ;;  %v3853_v39 = vld [vmem:[%s4730_s21 + $0x3f4] sm:$0xf0]  ;;  %v3394_v43 = vor.u32 %v3837_v35, %v3393_v34  ;;  %v3321_v46 = vld [vmem:[%s4730_s21 + $0x2e0] sm:$0xf]  ;;  %v3258_v53 = vor.u32 %v3803_v45, %v3257_v44 }
 0x11f   : > { %2400 = vmatpush.bf16.msra.mxu2 %v3098_v7  ;;  %v3458_v47 = vor.u32 %v3853_v39, %v3457_v38  ;;  %v3819_v48 = vld [vmem:[%s4730_s21 + $0x2e4] sm:$0xf0]  ;;  %v3385_v49 = vld [vmem:[%s4730_s21 + $0x360] sm:$0xf]  ;;  %v3249_v54 = vld [vmem:[%s4730_s21 + $0x250] sm:$0xf] }
 0x120   : > { %2413 = vmatpush.bf16.msra.mxu3 %v3162_v11  ;;  %v3835_v50 = vld [vmem:[%s4730_s21 + $0x364] sm:$0xf0]  ;;  %v3449_v51 = vld [vmem:[%s4730_s21 + $0x3e0] sm:$0xf]  ;;  %v3322_v55 = vor.u32 %v3819_v48, %v3321_v46  ;;  %v3801_v57 = vld [vmem:[%s4730_s21 + $0x254] sm:$0xf0] }
 0x121   : > { %2375 = vmatpush.bf16.msra.mxu0 %v2962_v17  ;;  %v3851_v52 = vld [vmem:[%s4730_s21 + $0x3e4] sm:$0xf0]  ;;  %v3386_v56 = vor.u32 %v3835_v50, %v3385_v49  ;;  %v3313_v58 = vld [vmem:[%s4730_s21 + $0x2d0] sm:$0xf]  ;;  %v1168_v59 = vld [vmem:[%s4708_s9 + $0x8] sm:$0xff]  ;;  %v3250_v4 = vor.u32 %v3801_v57, %v3249_v54  ;;  %p3719_p8 = scmp.ne.s32.totalorder %s4129_s23, 2 }
 0x122   : > { %2388 = vmatpush.bf16.msra.mxu1 %v3026_v20  ;;  %v3450_v60 = vor.u32 %v3851_v52, %v3449_v51  ;;  %v3817_v61 = vld [vmem:[%s4730_s21 + $0x2d4] sm:$0xf0]  ;;  %v3377_v62 = vld [vmem:[%s4730_s21 + $0x350] sm:$0xf]  ;;  %v1375_v0 = vunpack.c.l.b16 %v1168_v59  ;;  %v1376_v1 = vunpack.c.h.b16 %v1168_v59  ;;  %v3241_v10 = vld [vmem:[%s4730_s21 + $0x240] sm:$0xf] }
 0x123   : > { %2401 = vmatpush.bf16.msra.mxu2 %v3090_v21  ;;  %v3833_v63 = vld [vmem:[%s4730_s21 + $0x354] sm:$0xf0]  ;;  %v3441_v2 = vld [vmem:[%s4730_s21 + $0x3d0] sm:$0xf]  ;;  %v3314_v8 = vor.u32 %v3817_v61, %v3313_v58  ;;  %v3799_v11 = vld [vmem:[%s4730_s21 + $0x244] sm:$0xf0] }
 0x124   : > { %2414 = vmatpush.bf16.msra.mxu3 %v3154_v25  ;;  %v3849_v3 = vld [vmem:[%s4730_s21 + $0x3d4] sm:$0xf0]  ;;  %v4823_v5 = vpack.c.b16 %v1375_v0, %v1375_v0  ;;  %v1167_v6 = vld [vmem:[%s4708_s9] sm:$0xff]  ;;  %v4826_v7 = vpack.c.b16 %v1376_v1, %v1376_v1  ;;  %v3378_v9 = vor.u32 %v3833_v63, %v3377_v62  ;;  %v3305_v12 = vld [vmem:[%s4730_s21 + $0x2c0] sm:$0xf]  ;;  %v3242_v23 = vor.u32 %v3799_v11, %v3241_v10 }
 0x125   : > { %2376 = vmatpush.bf16.msra.mxu0 %v2954_v32  ;;  %v1373_v13 = vunpack.c.l.b16 %v1167_v6  ;;  %v1374_v14 = vunpack.c.h.b16 %v1167_v6  ;;  %v3442_v15 = vor.u32 %v3849_v3, %v3441_v2  ;;  %v3815_v16 = vld [vmem:[%s4730_s21 + $0x2c4] sm:$0xf0]  ;;  %v3369_v17 = vld [vmem:[%s4730_s21 + $0x340] sm:$0xf]  ;;  %v3233_v26 = vld [vmem:[%s4730_s21 + $0x230] sm:$0xf] }
 0x126   : > { %2389 = vmatpush.bf16.msra.mxu1 %v3018_v36  ;;  %v3831_v18 = vld [vmem:[%s4730_s21 + $0x344] sm:$0xf0]  ;;  %v3433_v19 = vld [vmem:[%s4730_s21 + $0x3c0] sm:$0xf]  ;;  %v3306_v24 = vor.u32 %v3815_v16, %v3305_v12  ;;  %v3797_v27 = vld [vmem:[%s4730_s21 + $0x234] sm:$0xf0] }
 0x127   : > { %2402 = vmatpush.bf16.msra.mxu2 %v3082_v37  ;;  %v3847_v20 = vld [vmem:[%s4730_s21 + $0x3c4] sm:$0xf0]  ;;  %v4837_v21 = vpack.c.b16 %v1373_v13, %v1373_v13  ;;  %v4840_v22 = vpack.c.b16 %v1374_v14, %v1374_v14  ;;  %v3370_v25 = vor.u32 %v3831_v18, %v3369_v17  ;;  %v3297_v28 = vld [vmem:[%s4730_s21 + $0x2b0] sm:$0xf]  ;;  %v3813_v30 = vld [vmem:[%s4730_s21 + $0x2b4] sm:$0xf0]  ;;  %v3234_v35 = vor.u32 %v3797_v27, %v3233_v26 }
 0x128   : > { %2415 = vmatpush.bf16.msra.mxu3 %v3146_v40  ;;  %v3434_v29 = vor.u32 %v3847_v20, %v3433_v19  ;;  %v3361_v31 = vld [vmem:[%s4730_s21 + $0x330] sm:$0xf]  ;;  %v3829_v32 = vld [vmem:[%s4730_s21 + $0x334] sm:$0xf0]  ;;  %v3298_v36 = vor.u32 %v3813_v30, %v3297_v28  ;;  %v3225_v38 = vld [vmem:[%s4730_s21 + $0x220] sm:$0xf] }
 0x129   : > { %2421 = vmatpush.bf16.msrb.mxu0 %v3266_v41  ;;  %v3425_v33 = vld [vmem:[%s4730_s21 + $0x3b0] sm:$0xf]  ;;  %v3845_v34 = vld [vmem:[%s4730_s21 + $0x3b4] sm:$0xf0]  ;;  %2390 = vmatmul.bf16.vlgmr.msra.gmra.mxu1 %v4840_v22  ;;  %v3362_v37 = vor.u32 %v3829_v32, %v3361_v31  ;;  %v3795_v39 = vld [vmem:[%s4730_s21 + $0x224] sm:$0xf0] }
 0x12a   : > { %2434 = vmatpush.bf16.msrb.mxu1 %v3330_v42  ;;  %2403 = vmatmul.bf16.vlgmr.msra.gmra.mxu2 %v4823_v5  ;;  %v3289_v40 = vld [vmem:[%s4730_s21 + $0x2a0] sm:$0xf]  ;;  %v3426_v41 = vor.u32 %v3845_v34, %v3425_v33  ;;  %v3811_v42 = vld [vmem:[%s4730_s21 + $0x2a4] sm:$0xf0]  ;;  %v3217_v50 = vld [vmem:[%s4730_s21 + $0x210] sm:$0xf] }
 0x12b   : > { %2447 = vmatpush.bf16.msrb.mxu2 %v3394_v43  ;;  %2416 = vmatmul.bf16.vlgmr.msra.gmra.mxu3 %v4826_v7  ;;  %v3353_v43 = vld [vmem:[%s4730_s21 + $0x320] sm:$0xf]  ;;  %v3827_v44 = vld [vmem:[%s4730_s21 + $0x324] sm:$0xf0]  ;;  %v3290_v48 = vor.u32 %v3811_v42, %v3289_v40  ;;  %v3793_v51 = vld [vmem:[%s4730_s21 + $0x214] sm:$0xf0] }
 0x12c   : > { %2460 = vmatpush.bf16.msrb.mxu3 %v3458_v47  ;;  %2377 = vmatmul.bf16.vlgmr.msra.gmra.mxu0 %v4837_v21  ;;  %v3417_v45 = vld [vmem:[%s4730_s21 + $0x3a0] sm:$0xf]  ;;  %v3843_v46 = vld [vmem:[%s4730_s21 + $0x3a4] sm:$0xf0]  ;;  %v3226_v47 = vor.u32 %v3795_v39, %v3225_v38  ;;  %v3354_v49 = vor.u32 %v3827_v44, %v3353_v43  ;;  %v3281_v52 = vld [vmem:[%s4730_s21 + $0x290] sm:$0xf] }
 0x12d   : > { %2422 = vmatpush.bf16.msrb.mxu0 %v3258_v53  ;;  %v3418_v53 = vor.u32 %v3843_v46, %v3417_v45  ;;  %v3809_v54 = vld [vmem:[%s4730_s21 + $0x294] sm:$0xf0]  ;;  %v3409_v57 = vld [vmem:[%s4730_s21 + $0x390] sm:$0xf]  ;;  %v3209_v59 = vld [vmem:[%s4730_s21 + $0x200] sm:$0xf] }
 0x12e   : > { %2435 = vmatpush.bf16.msrb.mxu1 %v3322_v55  ;;  %v3345_v55 = vld [vmem:[%s4730_s21 + $0x310] sm:$0xf]  ;;  %v3841_v58 = vld [vmem:[%s4730_s21 + $0x394] sm:$0xf0]  ;;  %v3791_v61 = vld [vmem:[%s4730_s21 + $0x204] sm:$0xf0]  ;;  %v3282_v0 = vor.u32 %v3809_v54, %v3281_v52 }
 0x12f   : > { %2448 = vmatpush.bf16.msrb.mxu2 %v3386_v56  ;;  %v3825_v56 = vld [vmem:[%s4730_s21 + $0x314] sm:$0xf0]  ;;  %v3273_v62 = vld [vmem:[%s4730_s21 + $0x280] sm:$0xf]  ;;  %v3807_v63 = vld [vmem:[%s4730_s21 + $0x284] sm:$0xf0]  ;;  %v3410_v6 = vor.u32 %v3841_v58, %v3409_v57  ;;  %v3210_v14 = vor.u32 %v3791_v61, %v3209_v59 }
 0x130   : > { %2461 = vmatpush.bf16.msrb.mxu3 %v3450_v60  ;;  %v3218_v60 = vor.u32 %v3793_v51, %v3217_v50  ;;  %v3346_v1 = vor.u32 %v3825_v56, %v3345_v55  ;;  %v3337_v2 = vld [vmem:[%s4730_s21 + $0x300] sm:$0xf]  ;;  %v3823_v3 = vld [vmem:[%s4730_s21 + $0x304] sm:$0xf0]  ;;  %v3521_v11 = vld [vmem:[%s4730_s21 + $0x470] sm:$0xf]  ;;  %v3274_v19 = vor.u32 %v3807_v63, %v3273_v62 }
 0x131   : > { %2423 = vmatpush.bf16.msrb.mxu0 %v3250_v4  ;;  %v1170_v4 = vld [vmem:[%s4708_s9 + $0x18] sm:$0xff]  ;;  %v1169_v10 = vld [vmem:[%s4708_s9 + $0x10] sm:$0xff]  ;;  %v3869_v12 = vld [vmem:[%s4730_s21 + $0x474] sm:$0xf0]  ;;  %v3338_v20 = vor.u32 %v3823_v3, %v3337_v2 }
 0x132   : > { %2436 = vmatpush.bf16.msrb.mxu1 %v3314_v8  ;;  %v3401_v8 = vld [vmem:[%s4730_s21 + $0x380] sm:$0xf]  ;;  %v3585_v13 = vld [vmem:[%s4730_s21 + $0x4f0] sm:$0xf]  ;;  %v3901_v17 = vld [vmem:[%s4730_s21 + $0x574] sm:$0xf0]  ;;  %v1379_v18 = vunpack.c.l.b16 %v1170_v4  ;;  %v1380_v26 = vunpack.c.h.b16 %v1170_v4  ;;  %v3522_v28 = vor.u32 %v3869_v12, %v3521_v11 }
 0x133   : > { %2449 = vmatpush.bf16.msrb.mxu2 %v3378_v9  ;;  %v3839_v9 = vld [vmem:[%s4730_s21 + $0x384] sm:$0xf0]  ;;  %v3649_v16 = vld [vmem:[%s4730_s21 + $0x570] sm:$0xf]  ;;  %v3513_v32 = vld [vmem:[%s4730_s21 + $0x460] sm:$0xf] }
 0x134   : > { %2462 = vmatpush.bf16.msrb.mxu3 %v3442_v15  ;;  %v3885_v15 = vld [vmem:[%s4730_s21 + $0x4f4] sm:$0xf0]  ;;  %v3402_v27 = vor.u32 %v3839_v9, %v3401_v8  ;;  %v3650_v31 = vor.u32 %v3901_v17, %v3649_v16  ;;  %v3867_v33 = vld [vmem:[%s4730_s21 + $0x464] sm:$0xf0]  ;;  %v3577_v34 = vld [vmem:[%s4730_s21 + $0x4e0] sm:$0xf]  ;;  %v4892_v39 = vpack.c.b16 %v1379_v18, %v1379_v18  ;;  %v4898_v43 = vpack.c.b16 %v1380_v26, %v1380_v26 }
 0x135   : > { %2424 = vmatpush.bf16.msrb.mxu0 %v3242_v23  ;;  %v3713_v23 = vld [vmem:[%s4730_s21 + $0x5f0] sm:$0xf]  ;;  %v3586_v30 = vor.u32 %v3885_v15, %v3585_v13  ;;  %v3899_v38 = vld [vmem:[%s4730_s21 + $0x564] sm:$0xf0]  ;;  %v3705_v40 = vld [vmem:[%s4730_s21 + $0x5e0] sm:$0xf]  ;;  %v3514_v44 = vor.u32 %v3867_v33, %v3513_v32 }
 0x136   : > { %2437 = vmatpush.bf16.msrb.mxu1 %v3306_v24  ;;  %v3917_v24 = vld [vmem:[%s4730_s21 + $0x5f4] sm:$0xf0]  ;;  %v3569_v50 = vld [vmem:[%s4730_s21 + $0x4d0] sm:$0xf]  ;;  %v3863_v61 = vld [vmem:[%s4730_s21 + $0x444] sm:$0xf0] }
 0x137   : > { %2450 = vmatpush.bf16.msrb.mxu2 %v3370_v25  ;;  %v1377_v25 = vunpack.c.l.b16 %v1169_v10  ;;  %v3881_v52 = vld [vmem:[%s4730_s21 + $0x4d4] sm:$0xf0]  ;;  %v3697_v55 = vld [vmem:[%s4730_s21 + $0x5d0] sm:$0xf]  ;;  %v3561_v62 = vld [vmem:[%s4730_s21 + $0x4c0] sm:$0xf] }
 0x138   : > { %2463 = vmatpush.bf16.msrb.mxu3 %v3434_v29  ;;  %v1378_v29 = vunpack.c.h.b16 %v1169_v10  ;;  %v3897_v54 = vld [vmem:[%s4730_s21 + $0x554] sm:$0xf0]  ;;  %v3570_v58 = vor.u32 %v3881_v52, %v3569_v50  ;;  %v3895_v2 = vld [vmem:[%s4730_s21 + $0x544] sm:$0xf0]  ;;  %v3689_v3 = vld [vmem:[%s4730_s21 + $0x5c0] sm:$0xf] }
 0x139   : > { %2425 = vmatpush.bf16.msrb.mxu0 %v3234_v35  ;;  %v3714_v35 = vor.u32 %v3917_v24, %v3713_v23  ;;  %v4896_v42 = vpack.c.b16 %v1377_v25, %v1377_v25  ;;  %v3913_v56 = vld [vmem:[%s4730_s21 + $0x5d4] sm:$0xf0]  ;;  %v3911_v4 = vld [vmem:[%s4730_s21 + $0x5c4] sm:$0xf0]  ;;  %v3489_v10 = vld [vmem:[%s4730_s21 + $0x430] sm:$0xf] }
 0x13a   : > { %2438 = vmatpush.bf16.msrb.mxu1 %v3298_v36  ;;  %v3883_v36 = vld [vmem:[%s4730_s21 + $0x4e4] sm:$0xf0]  ;;  %v4900_v45 = vpack.c.b16 %v1378_v29, %v1378_v29  ;;  %v3698_v63 = vor.u32 %v3913_v56, %v3697_v55  ;;  %v3861_v11 = vld [vmem:[%s4730_s21 + $0x434] sm:$0xf0]  ;;  %v3553_v12 = vld [vmem:[%s4730_s21 + $0x4b0] sm:$0xf]  ;;  %v3690_v13 = vor.u32 %v3911_v4, %v3689_v3 }
 0x13b   : > { %2451 = vmatpush.bf16.msrb.mxu2 %v3362_v37  ;;  %v3641_v37 = vld [vmem:[%s4730_s21 + $0x560] sm:$0xf]  ;;  %v3578_v46 = vor.u32 %v3883_v36, %v3577_v34  ;;  %v3617_v15 = vld [vmem:[%s4730_s21 + $0x530] sm:$0xf]  ;;  %v3893_v16 = vld [vmem:[%s4730_s21 + $0x534] sm:$0xf0] }
 0x13c   : > { %2464 = vmatpush.bf16.msrb.mxu3 %v3426_v41  ;;  %v3915_v41 = vld [vmem:[%s4730_s21 + $0x5e4] sm:$0xf0]  ;;  %v3681_v17 = vld [vmem:[%s4730_s21 + $0x5b0] sm:$0xf]  ;;  %v3909_v18 = vld [vmem:[%s4730_s21 + $0x5b4] sm:$0xf0]  ;;  %v3618_v23 = vor.u32 %v3893_v16, %v3617_v15 }
 0x13d   : > { %2426 = vmatpush.bf16.msrb.mxu0 %v3226_v47  ;;  %v3642_v47 = vor.u32 %v3899_v38, %v3641_v37  ;;  %v3706_v51 = vor.u32 %v3915_v41, %v3705_v40  ;;  %v3481_v24 = vld [vmem:[%s4730_s21 + $0x420] sm:$0xf]  ;;  %v3859_v25 = vld [vmem:[%s4730_s21 + $0x424] sm:$0xf0]  ;;  %v3473_v36 = vld [vmem:[%s4730_s21 + $0x410] sm:$0xf] }
 0x13e   : > { %2439 = vmatpush.bf16.msrb.mxu1 %v3290_v48  ;;  %v3505_v48 = vld [vmem:[%s4730_s21 + $0x450] sm:$0xf]  ;;  %v3545_v26 = vld [vmem:[%s4730_s21 + $0x4a0] sm:$0xf]  ;;  %v3907_v32 = vld [vmem:[%s4730_s21 + $0x5a4] sm:$0xf0]  ;;  %v3482_v33 = vor.u32 %v3859_v25, %v3481_v24 }
 0x13f   : > { %2452 = vmatpush.bf16.msrb.mxu2 %v3354_v49  ;;  %v3865_v49 = vld [vmem:[%s4730_s21 + $0x454] sm:$0xf0]  ;;  %v3609_v29 = vld [vmem:[%s4730_s21 + $0x520] sm:$0xf]  ;;  %v3537_v38 = vld [vmem:[%s4730_s21 + $0x490] sm:$0xf] }
 0x140   : > { %2465 = vmatpush.bf16.msrb.mxu3 %v3418_v53  ;;  %v3633_v53 = vld [vmem:[%s4730_s21 + $0x550] sm:$0xf]  ;;  %v3506_v57 = vor.u32 %v3865_v49, %v3505_v48  ;;  %v3857_v37 = vld [vmem:[%s4730_s21 + $0x414] sm:$0xf0]  ;;  %v3465_v49 = vld [vmem:[%s4730_s21 + $0x400] sm:$0xf] }
 0x141   : > { %2427 = vmatpush.bf16.msrb.mxu0 %v3218_v60  ;;  %v3634_v59 = vor.u32 %v3897_v54, %v3633_v53  ;;  %v3497_v60 = vld [vmem:[%s4730_s21 + $0x440] sm:$0xf]  ;;  %v3873_v41 = vld [vmem:[%s4730_s21 + $0x494] sm:$0xf0]  ;;  %v3474_v50 = vor.u32 %v3857_v37, %v3473_v36  ;;  %v3871_v53 = vld [vmem:[%s4730_s21 + $0x484] sm:$0xf0] }
 0x142   : > { %2440 = vmatpush.bf16.msrb.mxu1 %v3282_v0  ;;  %v3879_v0 = vld [vmem:[%s4730_s21 + $0x4c4] sm:$0xf0]  ;;  %v3905_v48 = vld [vmem:[%s4730_s21 + $0x594] sm:$0xf0]  ;;  %v3529_v52 = vld [vmem:[%s4730_s21 + $0x480] sm:$0xf]  ;;  %v3538_v54 = vor.u32 %v3873_v41, %v3537_v38 }
 0x143   : > { %2453 = vmatpush.bf16.msrb.mxu2 %v3346_v1  ;;  %v3625_v1 = vld [vmem:[%s4730_s21 + $0x540] sm:$0xf]  ;;  %v3562_v8 = vor.u32 %v3879_v0, %v3561_v62  ;;  %v1172_v62 = vld [vmem:[%s4708_s9 + $0x28] sm:$0xff]  ;;  %v3772_v4 = vld [vmem:[%s4730_s21 + $0x174] sm:$0xf] }
 0x144   : > { %2466 = vmatpush.bf16.msrb.mxu3 %v3410_v6  ;;  %v3498_v6 = vor.u32 %v3863_v61, %v3497_v60  ;;  %v3626_v9 = vor.u32 %v3895_v2, %v3625_v1  ;;  %v3593_v56 = vld [vmem:[%s4730_s21 + $0x500] sm:$0xf]  ;;  %v3903_v61 = vld [vmem:[%s4730_s21 + $0x584] sm:$0xf0]  ;;  %v3011_v0 = vld [vmem:[%s4730_s21 + $0x78] sm:$0xf0] }
 0x145   : > { %2428 = vmatpush.bf16.msrb.mxu0 %v3210_v14  ;;  %v3877_v14 = vld [vmem:[%s4730_s21 + $0x4b4] sm:$0xf0]  ;;  %v3657_v60 = vld [vmem:[%s4730_s21 + $0x580] sm:$0xf]  ;;  %v3756_v1 = vld [vmem:[%s4730_s21 + $0xf4] sm:$0xf] }
 0x146   : > { %2441 = vmatpush.bf16.msrb.mxu1 %v3274_v19  ;;  %v3490_v19 = vor.u32 %v3861_v11, %v3489_v10  ;;  %v3075_v3 = vld [vmem:[%s4730_s21 + $0xf8] sm:$0xf0]  ;;  %v3788_v11 = vld [vmem:[%s4730_s21 + $0x1f4] sm:$0xf]  ;;  %v3658_v15 = vor.u32 %v3903_v61, %v3657_v60  ;;  %v3754_v24 = vld [vmem:[%s4730_s21 + $0xe4] sm:$0xf] }
 0x147   : > { %2454 = vmatpush.bf16.msrb.mxu2 %v3338_v20  ;;  %v3554_v20 = vor.u32 %v3877_v14, %v3553_v12  ;;  %v3203_v12 = vld [vmem:[%s4730_s21 + $0x1f8] sm:$0xf0]  ;;  %v3736_v38 = vld [vmem:[%s4730_s21 + $0x54] sm:$0xf]  ;;  %v3115_v60 = vld [vmem:[%s4730_s21 + $0x148] sm:$0xf0] }
 0x148   : > { %2467 = vmatpush.bf16.msrb.mxu3 %v3402_v27  ;;  %2429 = vmatmul.bf16.vlgmr.msrb.gmra.mxu0 %v4896_v42  ;;  %v3682_v27 = vor.u32 %v3909_v18, %v3681_v17  ;;  %v1384_v17 = vunpack.c.h.b16 %v1172_v62  ;;  %v3078_v18 = vor.u32 %v3756_v1, %v3075_v3  ;;  %v3206_v25 = vor.u32 %v3788_v11, %v3203_v12  ;;  %v3752_v41 = vld [vmem:[%s4730_s21 + $0xd4] sm:$0xf]  ;;  %v3782_v61 = vld [vmem:[%s4730_s21 + $0x1c4] sm:$0xf]  ;;  %v2979_v3 = vld [vmem:[%s4730_s21 + $0x38] sm:$0xf0] }
 0x149   : > { %2473 = vmatpush.bf16.msra.mxu0 %v3522_v28  ;;  %2442 = vmatmul.bf16.vlgmr.msrb.gmra.mxu1 %v4900_v45  ;;  %v3875_v28 = vld [vmem:[%s4730_s21 + $0x4a4] sm:$0xf0]  ;;  %v3780_v11 = vld [vmem:[%s4730_s21 + $0x1b4] sm:$0xf]  ;;  %v3171_v12 = vld [vmem:[%s4730_s21 + $0x1b8] sm:$0xf0] }
 0x14a   : > { %2486 = vmatpush.bf16.msra.mxu1 %v3586_v30  ;;  %2455 = vmatmul.bf16.vlgmr.msrb.gmra.mxu2 %v4892_v39  ;;  %v3891_v30 = vld [vmem:[%s4730_s21 + $0x524] sm:$0xf0]  ;;  %v3546_v34 = vor.u32 %v3875_v28, %v3545_v26  ;;  %v3770_v28 = vld [vmem:[%s4730_s21 + $0x164] sm:$0xf] }
 0x14b   : > { %2499 = vmatpush.bf16.msra.mxu2 %v3650_v31  ;;  %2468 = vmatmul.bf16.vlgmr.msrb.gmra.mxu3 %v4898_v43  ;;  %v3673_v31 = vld [vmem:[%s4730_s21 + $0x5a0] sm:$0xf] }
 0x14c   : > { %2512 = vmatpush.bf16.msra.mxu3 %v3714_v35  ;;  %v3610_v35 = vor.u32 %v3891_v30, %v3609_v29  ;;  %v3674_v40 = vor.u32 %v3907_v32, %v3673_v31  ;;  %v3131_v29 = vld [vmem:[%s4730_s21 + $0x168] sm:$0xf0]  ;;  %v3786_v32 = vld [vmem:[%s4730_s21 + $0x1e4] sm:$0xf] }
 0x14d   : > { %2474 = vmatpush.bf16.msra.mxu0 %v3514_v44  ;;  %v3601_v44 = vld [vmem:[%s4730_s21 + $0x510] sm:$0xf]  ;;  %v3134_v37 = vor.u32 %v3770_v28, %v3131_v29 }
 0x14e   : > { %2487 = vmatpush.bf16.msra.mxu1 %v3578_v46  ;;  %v3889_v46 = vld [vmem:[%s4730_s21 + $0x514] sm:$0xf0] }
 0x14f   : > { %2500 = vmatpush.bf16.msra.mxu2 %v3642_v47  ;;  %v3665_v47 = vld [vmem:[%s4730_s21 + $0x590] sm:$0xf]  ;;  %v3602_v55 = vor.u32 %v3889_v46, %v3601_v44  ;;  %v3059_v46 = vld [vmem:[%s4730_s21 + $0xd8] sm:$0xf0] }
 0x150   : > { %2513 = vmatpush.bf16.msra.mxu3 %v3706_v51  ;;  %v3855_v51 = vld [vmem:[%s4730_s21 + $0x404] sm:$0xf0] }
 0x151   : > { %2475 = vmatpush.bf16.msra.mxu0 %v3506_v57  ;;  %v3887_v57 = vld [vmem:[%s4730_s21 + $0x504] sm:$0xf0]  ;;  %v3466_v2 = vor.u32 %v3855_v51, %v3465_v49  ;;  %v3784_v49 = vld [vmem:[%s4730_s21 + $0x1d4] sm:$0xf] }
 0x152   : > { %2488 = vmatpush.bf16.msra.mxu1 %v3570_v58  ;;  %v1171_v58 = vld [vmem:[%s4708_s9 + $0x20] sm:$0xff]  ;;  %v3594_v10 = vor.u32 %v3887_v57, %v3593_v56  ;;  %v3750_v56 = vld [vmem:[%s4730_s21 + $0xc4] sm:$0xf] }
 0x153   : > { %2501 = vmatpush.bf16.msra.mxu2 %v3634_v59  ;;  %v3666_v59 = vor.u32 %v3905_v48, %v3665_v47  ;;  %v1382_v14 = vunpack.c.h.b16 %v1171_v58  ;;  %v3768_v47 = vld [vmem:[%s4730_s21 + $0x154] sm:$0xf]  ;;  %v3123_v48 = vld [vmem:[%s4730_s21 + $0x158] sm:$0xf0] }
 0x154   : > { %2514 = vmatpush.bf16.msra.mxu3 %v3698_v63  ;;  %v3740_v63 = vld [vmem:[%s4730_s21 + $0x74] sm:$0xf] }
 0x155   : > { %2476 = vmatpush.bf16.msra.mxu0 %v3498_v6  ;;  %v3139_v6 = vld [vmem:[%s4730_s21 + $0x178] sm:$0xf0]  ;;  %v3014_v16 = vor.u32 %v3740_v63, %v3011_v0  ;;  %v4974_v31 = vpack.c.b16 %v1382_v14, %v1382_v14 }
 0x156   : > { %2489 = vmatpush.bf16.msra.mxu1 %v3562_v8  ;;  %v1381_v8 = vunpack.c.l.b16 %v1171_v58  ;;  %v3051_v58 = vld [vmem:[%s4730_s21 + $0xc8] sm:$0xf0] }
 0x157   : > { %2502 = vmatpush.bf16.msra.mxu2 %v3626_v9  ;;  %v3530_v9 = vor.u32 %v3871_v53, %v3529_v52  ;;  %v3062_v52 = vor.u32 %v3752_v41, %v3059_v46  ;;  %v3126_v53 = vor.u32 %v3768_v47, %v3123_v48  ;;  %v3054_v0 = vor.u32 %v3750_v56, %v3051_v58  ;;  %v3091_v41 = vld [vmem:[%s4730_s21 + $0x118] sm:$0xf0]  ;;  %v3726_v48 = vld [vmem:[%s4730_s21 + $0x4] sm:$0xf]  ;;  %v3083_v56 = vld [vmem:[%s4730_s21 + $0x108] sm:$0xf0] }
 0x158   : > { %2515 = vmatpush.bf16.msra.mxu3 %v3690_v13  ;;  %v1383_v13 = vunpack.c.l.b16 %v1172_v62  ;;  %v4967_v26 = vpack.c.b16 %v1381_v8, %v1381_v8  ;;  %v3179_v62 = vld [vmem:[%s4730_s21 + $0x1c8] sm:$0xf0]  ;;  %v3043_v8 = vld [vmem:[%s4730_s21 + $0xb8] sm:$0xf0] }
 0x159   : > { %2477 = vmatpush.bf16.msra.mxu0 %v3490_v19  ;;  %v3142_v19 = vor.u32 %v3772_v4, %v3139_v6  ;;  %v3748_v4 = vld [vmem:[%s4730_s21 + $0xb4] sm:$0xf]  ;;  %v3182_v6 = vor.u32 %v3782_v61, %v3179_v62  ;;  %v3155_v46 = vld [vmem:[%s4730_s21 + $0x198] sm:$0xf0]  ;;  %v3147_v58 = vld [vmem:[%s4730_s21 + $0x188] sm:$0xf0] }
 0x15a   : > { %2490 = vmatpush.bf16.msra.mxu1 %v3554_v20  ;;  %v3738_v20 = vld [vmem:[%s4730_s21 + $0x64] sm:$0xf]  ;;  %v4972_v30 = vpack.c.b16 %v1383_v13, %v1383_v13  ;;  %v3046_v14 = vor.u32 %v3748_v4, %v3043_v8  ;;  %v3820_v61 = vld [vmem:[%s4730_s21 + $0x2f4] sm:$0xf] }
 0x15b   : > { %2503 = vmatpush.bf16.msra.mxu2 %v3618_v23  ;;  %v3003_v23 = vld [vmem:[%s4730_s21 + $0x68] sm:$0xf0]  ;;  %v3852_v4 = vld [vmem:[%s4730_s21 + $0x3f4] sm:$0xf] }
 0x15c   : > { %2516 = vmatpush.bf16.msra.mxu3 %v3682_v27  ;;  %v3067_v27 = vld [vmem:[%s4730_s21 + $0xe8] sm:$0xf0] }
 0x15d   : > { %2478 = vmatpush.bf16.msra.mxu0 %v3482_v33  ;;  %v3195_v33 = vld [vmem:[%s4730_s21 + $0x1e8] sm:$0xf0]  ;;  %v3070_v36 = vor.u32 %v3754_v24, %v3067_v27 }
 0x15e   : > { %2491 = vmatpush.bf16.msra.mxu1 %v3546_v34  ;;  %v4978_v34 = vpack.c.b16 %v1384_v17, %v1384_v17  ;;  %v3198_v44 = vor.u32 %v3786_v32, %v3195_v33  ;;  %v2971_v17 = vld [vmem:[%s4730_s21 + $0x28] sm:$0xf0]  ;;  %v3728_v33 = vld [vmem:[%s4730_s21 + $0x14] sm:$0xf] }
 0x15f   : > { %2504 = vmatpush.bf16.msra.mxu2 %v3610_v35  ;;  %v3006_v35 = vor.u32 %v3738_v20, %v3003_v23  ;;  %v3035_v20 = vld [vmem:[%s4730_s21 + $0xa8] sm:$0xf0]  ;;  %v3762_v23 = vld [vmem:[%s4730_s21 + $0x124] sm:$0xf] }
 0x160   : > { %2517 = vmatpush.bf16.msra.mxu3 %v3674_v40  ;;  %v2995_v40 = vld [vmem:[%s4730_s21 + $0x58] sm:$0xf0]  ;;  %v3099_v24 = vld [vmem:[%s4730_s21 + $0x128] sm:$0xf0] }
 0x161   : > { %2479 = vmatpush.bf16.msra.mxu0 %v3474_v50  ;;  %v3187_v50 = vld [vmem:[%s4730_s21 + $0x1d8] sm:$0xf0]  ;;  %v2998_v51 = vor.u32 %v3736_v38, %v2995_v40  ;;  %v3163_v27 = vld [vmem:[%s4730_s21 + $0x1a8] sm:$0xf0]  ;;  %v3102_v32 = vor.u32 %v3762_v23, %v3099_v24  ;;  %v3760_v40 = vld [vmem:[%s4730_s21 + $0x114] sm:$0xf] }
 0x162   : > { %2492 = vmatpush.bf16.msra.mxu1 %v3538_v54  ;;  %v3734_v54 = vld [vmem:[%s4730_s21 + $0x44] sm:$0xf]  ;;  %v3190_v57 = vor.u32 %v3784_v49, %v3187_v50  ;;  %v3027_v38 = vld [vmem:[%s4730_s21 + $0x98] sm:$0xf0]  ;;  %v2955_v49 = vld [vmem:[%s4730_s21 + $0x8] sm:$0xf0] }
 0x163   : > { %2505 = vmatpush.bf16.msra.mxu2 %v3602_v55  ;;  %v2987_v55 = vld [vmem:[%s4730_s21 + $0x48] sm:$0xf0]  ;;  %v2958_v62 = vor.u32 %v3726_v48, %v2955_v49 }
 0x164   : > { %2518 = vmatpush.bf16.msra.mxu3 %v3666_v59  ;;  %v3766_v59 = vld [vmem:[%s4730_s21 + $0x144] sm:$0xf]  ;;  %v2990_v63 = vor.u32 %v3734_v54, %v2987_v55  ;;  %v3307_v48 = vld [vmem:[%s4730_s21 + $0x2c8] sm:$0xf0] }
 0x165   : > { %2480 = vmatpush.bf16.msra.mxu0 %v3466_v2  ;;  %v3118_v1 = vor.u32 %v3766_v59, %v3115_v60  ;;  %v3732_v2 = vld [vmem:[%s4730_s21 + $0x34] sm:$0xf]  ;;  %v3758_v54 = vld [vmem:[%s4730_s21 + $0x104] sm:$0xf]  ;;  %v3267_v60 = vld [vmem:[%s4730_s21 + $0x278] sm:$0xf0] }
 0x166   : > { %2493 = vmatpush.bf16.msra.mxu1 %v3530_v9  ;;  %v3764_v9 = vld [vmem:[%s4730_s21 + $0x134] sm:$0xf]  ;;  %v2982_v13 = vor.u32 %v3732_v2, %v2979_v3  ;;  %v3086_v3 = vor.u32 %v3758_v54, %v3083_v56  ;;  %v3371_v49 = vld [vmem:[%s4730_s21 + $0x348] sm:$0xf0] }
 0x167   : > { %2506 = vmatpush.bf16.msra.mxu2 %v3594_v10  ;;  %v3107_v10 = vld [vmem:[%s4730_s21 + $0x138] sm:$0xf0]  ;;  %v3804_v59 = vld [vmem:[%s4730_s21 + $0x274] sm:$0xf] }
 0x168   : > { %2519 = vmatpush.bf16.msra.mxu3 %v3658_v15  ;;  %2481 = vmatmul.bf16.vlgmr.msra.gmra.mxu0 %v4967_v26  ;;  %v3110_v15 = vor.u32 %v3764_v9, %v3107_v10  ;;  %v3270_v9 = vor.u32 %v3804_v59, %v3267_v60  ;;  %v3796_v54 = vld [vmem:[%s4730_s21 + $0x234] sm:$0xf]  ;;  %v3363_v60 = vld [vmem:[%s4730_s21 + $0x338] sm:$0xf0] }
 0x169   : > { %2525 = vmatpush.bf16.msrb.mxu0 %v3014_v16  ;;  %2494 = vmatmul.bf16.vlgmr.msra.gmra.mxu1 %v4974_v31  ;;  %v3730_v16 = vld [vmem:[%s4730_s21 + $0x24] sm:$0xf]  ;;  %v3812_v56 = vld [vmem:[%s4730_s21 + $0x2b4] sm:$0xf] }
 0x16a   : > { %2538 = vmatpush.bf16.msrb.mxu1 %v3078_v18  ;;  %2507 = vmatmul.bf16.vlgmr.msra.gmra.mxu2 %v4972_v30  ;;  %v3746_v18 = vld [vmem:[%s4730_s21 + $0xa4] sm:$0xf]  ;;  %v2974_v28 = vor.u32 %v3730_v16, %v2971_v17  ;;  %v3323_v16 = vld [vmem:[%s4730_s21 + $0x2e8] sm:$0xf0]  ;;  %v3828_v59 = vld [vmem:[%s4730_s21 + $0x334] sm:$0xf] }
 0x16b   : > { %2551 = vmatpush.bf16.msrb.mxu2 %v3142_v19  ;;  %2520 = vmatmul.bf16.vlgmr.msra.gmra.mxu3 %v4978_v34  ;;  %v3174_v19 = vor.u32 %v3780_v11, %v3171_v12  ;;  %v3038_v29 = vor.u32 %v3746_v18, %v3035_v20  ;;  %v3802_v12 = vld [vmem:[%s4730_s21 + $0x264] sm:$0xf]  ;;  %v3387_v18 = vld [vmem:[%s4730_s21 + $0x368] sm:$0xf0] }
 0x16c   : > { %2564 = vmatpush.bf16.msrb.mxu3 %v3206_v25  ;;  %v3778_v25 = vld [vmem:[%s4730_s21 + $0x1a4] sm:$0xf]  ;;  %v3451_v20 = vld [vmem:[%s4730_s21 + $0x3e8] sm:$0xf0] }
 0x16d   : > { %2526 = vmatpush.bf16.msrb.mxu0 %v3006_v35  ;;  %v2963_v35 = vld [vmem:[%s4730_s21 + $0x18] sm:$0xf0]  ;;  %v3834_v17 = vld [vmem:[%s4730_s21 + $0x364] sm:$0xf] }
 0x16e   : > { %2539 = vmatpush.bf16.msrb.mxu1 %v3070_v36  ;;  %v3744_v36 = vld [vmem:[%s4730_s21 + $0x94] sm:$0xf]  ;;  %v2966_v47 = vor.u32 %v3728_v33, %v2963_v35  ;;  %v3315_v33 = vld [vmem:[%s4730_s21 + $0x2d8] sm:$0xf0] }
 0x16f   : > { %2552 = vmatpush.bf16.msrb.mxu2 %v3134_v37  ;;  %v3166_v37 = vor.u32 %v3778_v25, %v3163_v27  ;;  %v3030_v50 = vor.u32 %v3744_v36, %v3027_v38  ;;  %v3390_v25 = vor.u32 %v3834_v17, %v3387_v18  ;;  %v3800_v27 = vld [vmem:[%s4730_s21 + $0x254] sm:$0xf]  ;;  %v3379_v36 = vld [vmem:[%s4730_s21 + $0x358] sm:$0xf0] }
 0x170   : > { %2565 = vmatpush.bf16.msrb.mxu3 %v3198_v44  ;;  %v3776_v44 = vld [vmem:[%s4730_s21 + $0x194] sm:$0xf]  ;;  %v3443_v38 = vld [vmem:[%s4730_s21 + $0x3d8] sm:$0xf0] }
 0x171   : > { %2527 = vmatpush.bf16.msrb.mxu0 %v2998_v51  ;;  %v3094_v51 = vor.u32 %v3760_v40, %v3091_v41  ;;  %v3158_v55 = vor.u32 %v3776_v44, %v3155_v46  ;;  %v3832_v35 = vld [vmem:[%s4730_s21 + $0x354] sm:$0xf]  ;;  %v3243_v46 = vld [vmem:[%s4730_s21 + $0x248] sm:$0xf0]  ;;  %v3219_v17 = vld [vmem:[%s4730_s21 + $0x218] sm:$0xf0] }
 0x172   : > { %2540 = vmatpush.bf16.msrb.mxu1 %v3062_v52  ;;  %v3742_v52 = vld [vmem:[%s4730_s21 + $0x84] sm:$0xf]  ;;  %v3382_v44 = vor.u32 %v3832_v35, %v3379_v36  ;;  %v3808_v18 = vld [vmem:[%s4730_s21 + $0x294] sm:$0xf] }
 0x173   : > { %2553 = vmatpush.bf16.msrb.mxu2 %v3126_v53  ;;  %v3019_v53 = vld [vmem:[%s4730_s21 + $0x88] sm:$0xf0]  ;;  %v3806_v36 = vld [vmem:[%s4730_s21 + $0x284] sm:$0xf] }
 0x174   : > { %2566 = vmatpush.bf16.msrb.mxu3 %v3190_v57  ;;  %v3774_v57 = vld [vmem:[%s4730_s21 + $0x184] sm:$0xf]  ;;  %v3022_v2 = vor.u32 %v3742_v52, %v3019_v53 }
 0x175   : > { %2528 = vmatpush.bf16.msrb.mxu0 %v2990_v63  ;;  %v3331_v63 = vld [vmem:[%s4730_s21 + $0x2f8] sm:$0xf0]  ;;  %v3150_v8 = vor.u32 %v3774_v57, %v3147_v58 }
 0x176   : > { %2541 = vmatpush.bf16.msrb.mxu1 %v3054_v0  ;;  %v3836_v0 = vld [vmem:[%s4730_s21 + $0x374] sm:$0xf]  ;;  %v3334_v10 = vor.u32 %v3820_v61, %v3331_v63  ;;  %v3299_v58 = vld [vmem:[%s4730_s21 + $0x2b8] sm:$0xf0] }
 0x177   : > { %2554 = vmatpush.bf16.msrb.mxu2 %v3118_v1  ;;  %v3395_v1 = vld [vmem:[%s4730_s21 + $0x378] sm:$0xf0]  ;;  %v3844_v61 = vld [vmem:[%s4730_s21 + $0x3b4] sm:$0xf] }
 0x178   : > { %2567 = vmatpush.bf16.msrb.mxu3 %v3182_v6  ;;  %v3459_v6 = vld [vmem:[%s4730_s21 + $0x3f8] sm:$0xf0]  ;;  %v3398_v11 = vor.u32 %v3836_v0, %v3395_v1  ;;  %v3302_v0 = vor.u32 %v3812_v56, %v3299_v58  ;;  %v3366_v1 = vor.u32 %v3828_v59, %v3363_v60  ;;  %v3866_v58 = vld [vmem:[%s4730_s21 + $0x464] sm:$0xf]  ;;  %v3515_v59 = vld [vmem:[%s4730_s21 + $0x468] sm:$0xf0] }
 0x179   : > { %2529 = vmatpush.bf16.msrb.mxu0 %v2982_v13  ;;  %v3259_v13 = vld [vmem:[%s4730_s21 + $0x268] sm:$0xf0]  ;;  %v3882_v60 = vld [vmem:[%s4730_s21 + $0x4e4] sm:$0xf] }
 0x17a   : > { %2542 = vmatpush.bf16.msrb.mxu1 %v3046_v14  ;;  %v3818_v14 = vld [vmem:[%s4730_s21 + $0x2e4] sm:$0xf]  ;;  %v3262_v23 = vor.u32 %v3802_v12, %v3259_v13  ;;  %v3419_v12 = vld [vmem:[%s4730_s21 + $0x3a8] sm:$0xf0] }
 0x17b   : > { %2555 = vmatpush.bf16.msrb.mxu2 %v3110_v15  ;;  %v3462_v15 = vor.u32 %v3852_v4, %v3459_v6  ;;  %v3326_v24 = vor.u32 %v3818_v14, %v3323_v16  ;;  %v3810_v4 = vld [vmem:[%s4730_s21 + $0x2a4] sm:$0xf]  ;;  %v3792_v16 = vld [vmem:[%s4730_s21 + $0x214] sm:$0xf] }
 0x17c   : > { %2568 = vmatpush.bf16.msrb.mxu3 %v3174_v19  ;;  %v3850_v19 = vld [vmem:[%s4730_s21 + $0x3e4] sm:$0xf] }
 0x17d   : > { %2530 = vmatpush.bf16.msrb.mxu0 %v2974_v28  ;;  %v3251_v28 = vld [vmem:[%s4730_s21 + $0x258] sm:$0xf0] }
 0x17e   : > { %2543 = vmatpush.bf16.msrb.mxu1 %v3038_v29  ;;  %v3816_v29 = vld [vmem:[%s4730_s21 + $0x2d4] sm:$0xf]  ;;  %v3254_v40 = vor.u32 %v3800_v27, %v3251_v28  ;;  %v3411_v27 = vld [vmem:[%s4730_s21 + $0x398] sm:$0xf0]  ;;  %v3222_v28 = vor.u32 %v3792_v16, %v3219_v17 }
 0x17f   : > { %2556 = vmatpush.bf16.msrb.mxu2 %v3102_v32  ;;  %v3454_v32 = vor.u32 %v3850_v19, %v3451_v20  ;;  %v3318_v41 = vor.u32 %v3816_v29, %v3315_v33  ;;  %v3283_v20 = vld [vmem:[%s4730_s21 + $0x298] sm:$0xf0]  ;;  %v3790_v29 = vld [vmem:[%s4730_s21 + $0x204] sm:$0xf] }
 0x180   : > { %2569 = vmatpush.bf16.msrb.mxu3 %v3166_v37  ;;  %v3848_v37 = vld [vmem:[%s4730_s21 + $0x3d4] sm:$0xf]  ;;  %v3286_v33 = vor.u32 %v3808_v18, %v3283_v20  ;;  %v3699_v16 = vld [vmem:[%s4730_s21 + $0x5d8] sm:$0xf0]  ;;  %v3878_v20 = vld [vmem:[%s4730_s21 + $0x4c4] sm:$0xf] }
 0x181   : > { %2531 = vmatpush.bf16.msrb.mxu0 %v2966_v47  ;;  %v3814_v47 = vld [vmem:[%s4730_s21 + $0x2c4] sm:$0xf] }
 0x182   : > { %2544 = vmatpush.bf16.msrb.mxu1 %v3030_v50  ;;  %v3846_v50 = vld [vmem:[%s4730_s21 + $0x3c4] sm:$0xf]  ;;  %v3310_v52 = vor.u32 %v3814_v47, %v3307_v48  ;;  %v3523_v47 = vld [vmem:[%s4730_s21 + $0x478] sm:$0xf0] }
 0x183   : > { %2557 = vmatpush.bf16.msrb.mxu2 %v3094_v51 }
 0x184   : > { %2570 = vmatpush.bf16.msrb.mxu3 %v3158_v55  ;;  %v3235_v55 = vld [vmem:[%s4730_s21 + $0x238] sm:$0xf0] }
 0x185   : > { %2532 = vmatpush.bf16.msrb.mxu0 %v2958_v62  ;;  %v3427_v62 = vld [vmem:[%s4730_s21 + $0x3b8] sm:$0xf0]  ;;  %v3238_v63 = vor.u32 %v3796_v54, %v3235_v55 }
 0x186   : > { %2545 = vmatpush.bf16.msrb.mxu1 %v3022_v2  ;;  %v3794_v2 = vld [vmem:[%s4730_s21 + $0x224] sm:$0xf]  ;;  %v3430_v6 = vor.u32 %v3844_v61, %v3427_v62  ;;  %v3579_v62 = vld [vmem:[%s4730_s21 + $0x4e8] sm:$0xf0] }
 0x187   : > { %2558 = vmatpush.bf16.msrb.mxu2 %v3086_v3  ;;  %v3227_v3 = vld [vmem:[%s4730_s21 + $0x228] sm:$0xf0] }
 0x188   : > { %2571 = vmatpush.bf16.msrb.mxu3 %v3150_v8  ;;  %2533 = vmatmul.bf16.vlgmr.msrb.gmra.mxu0 %v4837_v21  ;;  %v3446_v21 = vor.u32 %v3848_v37, %v3443_v38  ;;  %v3291_v8 = vld [vmem:[%s4730_s21 + $0x2a8] sm:$0xf0]  ;;  %v3230_v13 = vor.u32 %v3794_v2, %v3227_v3  ;;  %v3822_v38 = vld [vmem:[%s4730_s21 + $0x304] sm:$0xf]  ;;  %v3518_v3 = vor.u32 %v3866_v58, %v3515_v59 }
 0x189   : > { %2577 = vmatpush.bf16.msra.mxu0 %v3270_v9  ;;  %2546 = vmatmul.bf16.vlgmr.msrb.gmra.mxu1 %v4840_v22  ;;  %v3435_v22 = vld [vmem:[%s4730_s21 + $0x3c8] sm:$0xf0]  ;;  %v3826_v9 = vld [vmem:[%s4730_s21 + $0x324] sm:$0xf]  ;;  %v3294_v14 = vor.u32 %v3810_v4, %v3291_v8  ;;  %v3582_v4 = vor.u32 %v3882_v60, %v3579_v62  ;;  %v3864_v8 = vld [vmem:[%s4730_s21 + $0x454] sm:$0xf] }
 0x18a   : > { %2590 = vmatpush.bf16.msra.mxu1 %v3334_v10  ;;  %2559 = vmatmul.bf16.vlgmr.msrb.gmra.mxu2 %v4823_v5  ;;  %v3798_v5 = vld [vmem:[%s4730_s21 + $0x244] sm:$0xf]  ;;  %v3438_v57 = vor.u32 %v3846_v50, %v3435_v22  ;;  %v3355_v10 = vld [vmem:[%s4730_s21 + $0x328] sm:$0xf0]  ;;  %v3651_v50 = vld [vmem:[%s4730_s21 + $0x578] sm:$0xf0] }
 0x18b   : > { %2603 = vmatpush.bf16.msra.mxu2 %v3398_v11  ;;  %2572 = vmatmul.bf16.vlgmr.msrb.gmra.mxu3 %v4826_v7  ;;  %v3830_v7 = vld [vmem:[%s4730_s21 + $0x344] sm:$0xf]  ;;  %v3246_v51 = vor.u32 %v3798_v5, %v3243_v46  ;;  %v3275_v37 = vld [vmem:[%s4730_s21 + $0x288] sm:$0xf0]  ;;  %v3868_v46 = vld [vmem:[%s4730_s21 + $0x474] sm:$0xf] }
 0x18c   : > { %2616 = vmatpush.bf16.msra.mxu3 %v3462_v15  ;;  %v3374_v53 = vor.u32 %v3830_v7, %v3371_v49  ;;  %v3842_v11 = vld [vmem:[%s4730_s21 + $0x3a4] sm:$0xf]  ;;  %v3358_v15 = vor.u32 %v3826_v9, %v3355_v10  ;;  %v3403_v5 = vld [vmem:[%s4730_s21 + $0x388] sm:$0xf0]  ;;  %v3587_v7 = vld [vmem:[%s4730_s21 + $0x4f8] sm:$0xf0]  ;;  %v3278_v22 = vor.u32 %v3806_v36, %v3275_v37  ;;  %v3526_v55 = vor.u32 %v3868_v46, %v3523_v47 }
 0x18d   : > { %2578 = vmatpush.bf16.msra.mxu0 %v3262_v23  ;;  %v3422_v19 = vor.u32 %v3842_v11, %v3419_v12  ;;  %v3824_v23 = vld [vmem:[%s4730_s21 + $0x314] sm:$0xf]  ;;  %v3707_v2 = vld [vmem:[%s4730_s21 + $0x5e8] sm:$0xf0]  ;;  %v3507_v9 = vld [vmem:[%s4730_s21 + $0x458] sm:$0xf0] }
 0x18e   : > { %2591 = vmatpush.bf16.msra.mxu1 %v3326_v24  ;;  %v3347_v24 = vld [vmem:[%s4730_s21 + $0x318] sm:$0xf0]  ;;  %v3900_v49 = vld [vmem:[%s4730_s21 + $0x574] sm:$0xf]  ;;  %v3510_v17 = vor.u32 %v3864_v8, %v3507_v9 }
 0x18f   : > { %2604 = vmatpush.bf16.msra.mxu2 %v3390_v25  ;;  %v3840_v25 = vld [vmem:[%s4730_s21 + $0x394] sm:$0xf]  ;;  %v3350_v35 = vor.u32 %v3824_v23, %v3347_v24  ;;  %v3571_v12 = vld [vmem:[%s4730_s21 + $0x4d8] sm:$0xf0]  ;;  %v3563_v23 = vld [vmem:[%s4730_s21 + $0x4c8] sm:$0xf0] }
 0x190   : > { %2617 = vmatpush.bf16.msra.mxu3 %v3454_v32  ;;  %v3211_v32 = vld [vmem:[%s4730_s21 + $0x208] sm:$0xf0]  ;;  %v3880_v10 = vld [vmem:[%s4730_s21 + $0x4d4] sm:$0xf]  ;;  %v3894_v24 = vld [vmem:[%s4730_s21 + $0x544] sm:$0xf] }
 0x191   : > { %2579 = vmatpush.bf16.msra.mxu0 %v3254_v40  ;;  %v3414_v40 = vor.u32 %v3840_v25, %v3411_v27  ;;  %v3214_v48 = vor.u32 %v3790_v29, %v3211_v32  ;;  %v3627_v25 = vld [vmem:[%s4730_s21 + $0x548] sm:$0xf0]  ;;  %v3910_v27 = vld [vmem:[%s4730_s21 + $0x5c4] sm:$0xf]  ;;  %v3566_v29 = vor.u32 %v3878_v20, %v3563_v23  ;;  %v3876_v36 = vld [vmem:[%s4730_s21 + $0x4b4] sm:$0xf] }
 0x192   : > { %2592 = vmatpush.bf16.msra.mxu1 %v3318_v41  ;;  %v3339_v41 = vld [vmem:[%s4730_s21 + $0x308] sm:$0xf0]  ;;  %v3630_v32 = vor.u32 %v3894_v24, %v3627_v25  ;;  %v3856_v60 = vld [vmem:[%s4730_s21 + $0x414] sm:$0xf]  ;;  %v3667_v8 = vld [vmem:[%s4730_s21 + $0x598] sm:$0xf0] }
 0x193   : > { %2605 = vmatpush.bf16.msra.mxu2 %v3382_v44  ;;  %v3838_v44 = vld [vmem:[%s4730_s21 + $0x384] sm:$0xf]  ;;  %v3872_v62 = vld [vmem:[%s4730_s21 + $0x494] sm:$0xf] }
 0x194   : > { %2618 = vmatpush.bf16.msra.mxu3 %v3446_v21  ;;  %v3884_v21 = vld [vmem:[%s4730_s21 + $0x4f4] sm:$0xf]  ;;  %v3406_v54 = vor.u32 %v3838_v44, %v3403_v5  ;;  %v3683_v5 = vld [vmem:[%s4730_s21 + $0x5b8] sm:$0xf0] }
 0x195   : > { %2580 = vmatpush.bf16.msra.mxu0 %v3246_v51  ;;  %v3342_v51 = vor.u32 %v3822_v38, %v3339_v41  ;;  %v3590_v56 = vor.u32 %v3884_v21, %v3587_v7  ;;  %v3555_v38 = vld [vmem:[%s4730_s21 + $0x4b8] sm:$0xf0]  ;;  %v3908_v44 = vld [vmem:[%s4730_s21 + $0x5b4] sm:$0xf]  ;;  %v3483_v7 = vld [vmem:[%s4730_s21 + $0x428] sm:$0xf0] }
 0x196   : > { %2593 = vmatpush.bf16.msra.mxu1 %v3310_v52  ;;  %v3916_v52 = vld [vmem:[%s4730_s21 + $0x5f4] sm:$0xf]  ;;  %v3619_v41 = vld [vmem:[%s4730_s21 + $0x538] sm:$0xf0]  ;;  %v3558_v47 = vor.u32 %v3876_v36, %v3555_v38 }
 0x197   : > { %2606 = vmatpush.bf16.msra.mxu2 %v3374_v53  ;;  %v3715_v53 = vld [vmem:[%s4730_s21 + $0x5f8] sm:$0xf0] }
 0x198   : > { %2619 = vmatpush.bf16.msra.mxu3 %v3438_v57  ;;  %v3654_v57 = vor.u32 %v3900_v49, %v3651_v50  ;;  %v3718_v61 = vor.u32 %v3916_v52, %v3715_v53  ;;  %v3874_v49 = vld [vmem:[%s4730_s21 + $0x4a4] sm:$0xf]  ;;  %v3686_v50 = vor.u32 %v3908_v44, %v3683_v5  ;;  %v3611_v52 = vld [vmem:[%s4730_s21 + $0x528] sm:$0xf0] }
 0x199   : > { %2581 = vmatpush.bf16.msra.mxu0 %v3238_v63  ;;  %v3898_v63 = vld [vmem:[%s4730_s21 + $0x564] sm:$0xf] }
 0x19a   : > { %2594 = vmatpush.bf16.msra.mxu1 %v3302_v0  ;;  %v3643_v0 = vld [vmem:[%s4730_s21 + $0x568] sm:$0xf0]  ;;  %v3906_v53 = vld [vmem:[%s4730_s21 + $0x5a4] sm:$0xf] }
 0x19b   : > { %2607 = vmatpush.bf16.msra.mxu2 %v3366_v1  ;;  %v3914_v1 = vld [vmem:[%s4730_s21 + $0x5e4] sm:$0xf] }
 0x19c   : > { %2620 = vmatpush.bf16.msra.mxu3 %v3430_v6  ;;  %v3646_v6 = vor.u32 %v3898_v63, %v3643_v0  ;;  %v3710_v11 = vor.u32 %v3914_v1, %v3707_v2  ;;  %v3539_v1 = vld [vmem:[%s4730_s21 + $0x498] sm:$0xf0]  ;;  %v3888_v2 = vld [vmem:[%s4730_s21 + $0x514] sm:$0xf] }
 0x19d   : > { %2582 = vmatpush.bf16.msra.mxu0 %v3230_v13  ;;  %v3896_v13 = vld [vmem:[%s4730_s21 + $0x554] sm:$0xf] }
 0x19e   : > { %2595 = vmatpush.bf16.msra.mxu1 %v3294_v14  ;;  %v3635_v14 = vld [vmem:[%s4730_s21 + $0x558] sm:$0xf0] }
 0x19f   : > { %2608 = vmatpush.bf16.msra.mxu2 %v3358_v15  ;;  %v3912_v15 = vld [vmem:[%s4730_s21 + $0x5d4] sm:$0xf]  ;;  %v3638_v18 = vor.u32 %v3896_v13, %v3635_v14  ;;  %v3467_v13 = vld [vmem:[%s4730_s21 + $0x408] sm:$0xf0]  ;;  %v3870_v14 = vld [vmem:[%s4730_s21 + $0x484] sm:$0xf] }
 0x1a0   : > { %2621 = vmatpush.bf16.msra.mxu3 %v3422_v19  ;;  %v3862_v19 = vld [vmem:[%s4730_s21 + $0x444] sm:$0xf] }
 0x1a1   : > { %2583 = vmatpush.bf16.msra.mxu0 %v3222_v28 }
 0x1a2   : > { %2596 = vmatpush.bf16.msra.mxu1 %v3286_v33  ;;  %v3860_v33 = vld [vmem:[%s4730_s21 + $0x434] sm:$0xf] }
 0x1a3   : > { %2609 = vmatpush.bf16.msra.mxu2 %v3350_v35  ;;  %v3491_v35 = vld [vmem:[%s4730_s21 + $0x438] sm:$0xf0] }
 0x1a4   : > { %2622 = vmatpush.bf16.msra.mxu3 %v3414_v40  ;;  %v3892_v40 = vld [vmem:[%s4730_s21 + $0x534] sm:$0xf]  ;;  %v3494_v46 = vor.u32 %v3860_v33, %v3491_v35 }
 0x1a5   : > { %2584 = vmatpush.bf16.msra.mxu0 %v3214_v48  ;;  %v3622_v21 = vor.u32 %v3892_v40, %v3619_v41  ;;  %v3858_v48 = vld [vmem:[%s4730_s21 + $0x424] sm:$0xf] }
 0x1a6   : > { %2597 = vmatpush.bf16.msra.mxu1 %v3278_v22  ;;  %v3547_v22 = vld [vmem:[%s4730_s21 + $0x4a8] sm:$0xf0] }
 0x1a7   : > { %2610 = vmatpush.bf16.msra.mxu2 %v3342_v51  ;;  %v3890_v51 = vld [vmem:[%s4730_s21 + $0x524] sm:$0xf]  ;;  %v3550_v58 = vor.u32 %v3874_v49, %v3547_v22  ;;  %v1173_v22 = vld [vmem:[#allocation2] sm:$0xff] }
 0x1a8   : > { %2623 = vmatpush.bf16.msra.mxu3 %v3406_v54  ;;  %2585 = vmatmul.bf16.vlgmr.msra.gmra.mxu0 %v4896_v42  ;;  %v3499_v42 = vld [vmem:[%s4730_s21 + $0x448] sm:$0xf0]  ;;  %v3614_v59 = vor.u32 %v3890_v51, %v3611_v52 }
 0x1a9   : > { %2629 = vmatpush.bf16.msrb.mxu0 %v3526_v55  ;;  %2598 = vmatmul.bf16.vlgmr.msra.gmra.mxu1 %v4900_v45  ;;  %v3691_v45 = vld [vmem:[%s4730_s21 + $0x5c8] sm:$0xf0]  ;;  %v3502_v28 = vor.u32 %v3862_v19, %v3499_v42  ;;  %v2378_v55 = vpop.f32.mrf.mxu0 }
 0x1aa   : > { %2642 = vmatpush.bf16.msrb.mxu1 %v3590_v56  ;;  %2611 = vmatmul.bf16.vlgmr.msra.gmra.mxu2 %v4892_v39  ;;  %v3574_v39 = vor.u32 %v3880_v10, %v3571_v12  ;;  %v3694_v37 = vor.u32 %v3910_v27, %v3691_v45  ;;  %v3675_v54 = vld [vmem:[%s4730_s21 + $0x5a8] sm:$0xf0]  ;;  %v3486_v56 = vor.u32 %v3858_v48, %v3483_v7  ;;  %v3854_v12 = vld [vmem:[%s4730_s21 + $0x404] sm:$0xf] }
 0x1ab   : > { %2655 = vmatpush.bf16.msrb.mxu2 %v3654_v57  ;;  %2624 = vmatmul.bf16.vlgmr.msra.gmra.mxu3 %v4898_v43  ;;  %v3702_v43 = vor.u32 %v3912_v15, %v3699_v16  ;;  %v2391_v57 = vpop.f32.mrf.mxu1  ;;  %v3678_v0 = vor.u32 %v3906_v53, %v3675_v54  ;;  %v3542_v10 = vor.u32 %v3872_v62, %v3539_v1  ;;  %v3531_v16 = vld [vmem:[%s4730_s21 + $0x488] sm:$0xf0] }
 0x1ac   : > { %2668 = vmatpush.bf16.msrb.mxu3 %v3718_v61  ;;  %v3475_v61 = vld [vmem:[%s4730_s21 + $0x418] sm:$0xf0]  ;;  %v3659_v19 = vld [vmem:[%s4730_s21 + $0x588] sm:$0xf0]  ;;  %v3470_v20 = vor.u32 %v3854_v12, %v3467_v13  ;;  %v3534_v23 = vor.u32 %v3870_v14, %v3531_v16 }
 0x1ad   : > { %2630 = vmatpush.bf16.msrb.mxu0 %v3518_v3  ;;  %v2404_v63 = vpop.f32.mrf.mxu2  ;;  %v3603_v3 = vld [vmem:[%s4730_s21 + $0x518] sm:$0xf0]  ;;  %v3478_v9 = vor.u32 %v3856_v60, %v3475_v61 }
 0x1ae   : > { %2643 = vmatpush.bf16.msrb.mxu1 %v3582_v4  ;;  %v2417_v4 = vpop.f32.mrf.mxu3 }
 0x1af   : > { %2656 = vmatpush.bf16.msrb.mxu2 %v3646_v6  ;;  %v3904_v6 = vld [vmem:[%s4730_s21 + $0x594] sm:$0xf] }
 0x1b0   : > { %2669 = vmatpush.bf16.msrb.mxu3 %v3710_v11  ;;  %v3606_v11 = vor.u32 %v3888_v2, %v3603_v3  ;;  %v3670_v15 = vor.u32 %v3904_v6, %v3667_v8 }
 0x1b1   : > { %2631 = vmatpush.bf16.msrb.mxu0 %v3510_v17  ;;  %v3886_v17 = vld [vmem:[%s4730_s21 + $0x504] sm:$0xf]  ;;  %v2380_v42 = vpop.f32.mrf.mxu0 }
 0x1b2   : > { %2644 = vmatpush.bf16.msrb.mxu1 %v3574_v39  ;;  %v3595_v39 = vld [vmem:[%s4730_s21 + $0x508] sm:$0xf0] }
 0x1b3   : > { %2657 = vmatpush.bf16.msrb.mxu2 %v3638_v18  ;;  %v3902_v18 = vld [vmem:[%s4730_s21 + $0x584] sm:$0xf]  ;;  %v3598_v24 = vor.u32 %v3886_v17, %v3595_v39 }
 0x1b4   : > { %2670 = vmatpush.bf16.msrb.mxu3 %v3702_v43  ;;  %v2393_v43 = vpop.f32.mrf.mxu1  ;;  %v3662_v27 = vor.u32 %v3902_v18, %v3659_v19 }
 0x1b5   : > { %2632 = vmatpush.bf16.msrb.mxu0 %v3502_v28  ;;  %v2406_v25 = vpop.f32.mrf.mxu2 }
 0x1b6   : > { %2645 = vmatpush.bf16.msrb.mxu1 %v3566_v29  ;;  %v2419_v45 = vpop.f32.mrf.mxu3 }
 0x1b7   : > { %2658 = vmatpush.bf16.msrb.mxu2 %v3630_v32  ;;  %v2392_v32 = vadd.f32 %v2391_v57, %v2378_v55 }
 0x1b8   : > { %2671 = vmatpush.bf16.msrb.mxu3 %v3694_v37 }
 0x1b9   : > { %2633 = vmatpush.bf16.msrb.mxu0 %v3494_v46  ;;  %v2405_v37 = vadd.f32 %v2404_v63, %v2392_v32 }
 0x1ba   : > { %2646 = vmatpush.bf16.msrb.mxu1 %v3558_v47 }
 0x1bb   : > { %2659 = vmatpush.bf16.msrb.mxu2 %v3622_v21  ;;  %v2418_v40 = vadd.f32 %v2417_v4, %v2405_v37 }
 0x1bc   : > { %2672 = vmatpush.bf16.msrb.mxu3 %v3686_v50 }
 0x1bd   : > { %2634 = vmatpush.bf16.msrb.mxu0 %v3486_v56 }
 0x1be   : > { %2647 = vmatpush.bf16.msrb.mxu1 %v3550_v58 }
 0x1bf   : > { %2660 = vmatpush.bf16.msrb.mxu2 %v3614_v59 }
 0x1c0   : > { %2673 = vmatpush.bf16.msrb.mxu3 %v3678_v0 }
 0x1c1   : > { %2635 = vmatpush.bf16.msrb.mxu0 %v3478_v9 }
 0x1c2   : > { %2648 = vmatpush.bf16.msrb.mxu1 %v3542_v10 }
 0x1c3   : > { %2661 = vmatpush.bf16.msrb.mxu2 %v3606_v11 }
 0x1c4   : > { %2674 = vmatpush.bf16.msrb.mxu3 %v3670_v15 }
 0x1c5   : > { %2636 = vmatpush.bf16.msrb.mxu0 %v3470_v20  ;;  %v2430_v28 = vpop.f32.mrf.mxu0 }
 0x1c6   : > { %2649 = vmatpush.bf16.msrb.mxu1 %v3534_v23  ;;  %v2443_v29 = vpop.f32.mrf.mxu1  ;;  %v2431_v5 = vadd.f32 %v2430_v28, %v2418_v40 }
 0x1c7   : > { %2662 = vmatpush.bf16.msrb.mxu2 %v3598_v24  ;;  %v1174_v24 = vld [vmem:[#allocation2 + $0x8] sm:$0xff] }
 0x1c8   : > { %2675 = vmatpush.bf16.msrb.mxu3 %v3662_v27  ;;  %2637 = vmatmul.bf16.vlgmr.msrb.gmra.mxu0 %v4967_v26  ;;  %v2444_v46 = vadd.f32 %v2443_v29, %v2431_v5 }
 0x1c9   : > { %2650 = vmatmul.bf16.vlgmr.msrb.gmra.mxu1 %v4974_v31 }
 0x1ca   : > { %2663 = vmatmul.bf16.vlgmr.msrb.gmra.mxu2 %v4972_v30 }
 0x1cb   : > { %2676 = vmatmul.bf16.vlgmr.msrb.gmra.mxu3 %v4978_v34 }
 0x1cd   : > { %v2456_v33 = vpop.f32.mrf.mxu2  ;;  %v2432_v36 = vpop.f32.mrf.mxu0 }
 0x1ce   : > { %v2469_v35 = vpop.f32.mrf.mxu3  ;;  %v2445_v38 = vpop.f32.mrf.mxu1  ;;  %v2457_v26 = vadd.f32 %v2456_v33, %v2444_v46 }
 0x1d0   : > { %v2470_v47 = vadd.f32 %v2469_v35, %v2457_v26 }
 0x1d5   : > { %v2458_v41 = vpop.f32.mrf.mxu2 }
 0x1d6   : > { %v2471_v44 = vpop.f32.mrf.mxu3 }
 0x1e5   : > { %v2482_v31 = vpop.f32.mrf.mxu0 }
 0x1e6   : > { %v2495_v21 = vpop.f32.mrf.mxu1  ;;  %v2483_v30 = vadd.f32 %v2482_v31, %v2470_v47 }
 0x1e8   : > { %v2496_v48 = vadd.f32 %v2495_v21, %v2483_v30 }
 0x1ed   : > { %v2508_v34 = vpop.f32.mrf.mxu2  ;;  %v2484_v50 = vpop.f32.mrf.mxu0 }
 0x1ee   : > { %v2509_v7 = vadd.f32 %v2508_v34, %v2496_v48  ;;  %v2521_v49 = vpop.f32.mrf.mxu3  ;;  %v2497_v51 = vpop.f32.mrf.mxu1 }
 0x1f0   : > { %v2522_v52 = vadd.f32 %v2521_v49, %v2509_v7 }
 0x1f2   : > { %v2681_v53 = vadd.f32 %v2522_v52, %v1173_v22 }
 0x1f4   : > { %2683 = vst [vmem:[#allocation2] sm:$0xff] %v2681_v53 }
 0x1f5   : > { %v2510_v54 = vpop.f32.mrf.mxu2 }
 0x1f6   : > { %v2523_v55 = vpop.f32.mrf.mxu3 }
 0x205   : > { %v2534_v56 = vpop.f32.mrf.mxu0 }
 0x206   : > { %v2547_v57 = vpop.f32.mrf.mxu1 }
 0x207   : > { %v2548_v2 = vadd.f32 %v2547_v57, %v2534_v56 }
 0x20d   : > { %v2560_v58 = vpop.f32.mrf.mxu2  ;;  %v2536_v60 = vpop.f32.mrf.mxu0 }
 0x20e   : > { %v2573_v59 = vpop.f32.mrf.mxu3  ;;  %v2549_v61 = vpop.f32.mrf.mxu1  ;;  %v2561_v6 = vadd.f32 %v2560_v58, %v2548_v2 }
 0x210   : > { %v2574_v10 = vadd.f32 %v2573_v59, %v2561_v6 }
 0x215   : > { %v2562_v62 = vpop.f32.mrf.mxu2 }
 0x216   : > { %v2575_v63 = vpop.f32.mrf.mxu3 }
 0x225   : > { %v2586_v0 = vpop.f32.mrf.mxu0 }
 0x226   : > { %v2599_v1 = vpop.f32.mrf.mxu1  ;;  %v2587_v13 = vadd.f32 %v2586_v0, %v2574_v10 }
 0x228   : > { %v2600_v14 = vadd.f32 %v2599_v1, %v2587_v13 }
 0x22d   : > { %v2612_v3 = vpop.f32.mrf.mxu2  ;;  %v2588_v8 = vpop.f32.mrf.mxu0 }
 0x22e   : > { %v2625_v4 = vpop.f32.mrf.mxu3  ;;  %v2601_v9 = vpop.f32.mrf.mxu1  ;;  %v2613_v15 = vadd.f32 %v2612_v3, %v2600_v14 }
 0x230   : > { %v2626_v16 = vadd.f32 %v2625_v4, %v2613_v15 }
 0x235   : > { %v2614_v11 = vpop.f32.mrf.mxu2 }
 0x236   : > { %v2627_v12 = vpop.f32.mrf.mxu3 }
 0x245   : > { %v2638_v17 = vpop.f32.mrf.mxu0 }
 0x246   : > { %v2651_v39 = vpop.f32.mrf.mxu1  ;;  %v2639_v18 = vadd.f32 %v2638_v17, %v2626_v16 }
 0x248   : > { %v2652_v19 = vadd.f32 %v2651_v39, %v2639_v18 }
 0x24d   : > { %v2664_v42 = vpop.f32.mrf.mxu2  ;;  %v2640_v23 = vpop.f32.mrf.mxu0 }
 0x24e   : > { %v2665_v20 = vadd.f32 %v2664_v42, %v2652_v19  ;;  %v2677_v43 = vpop.f32.mrf.mxu3  ;;  %v2653_v25 = vpop.f32.mrf.mxu1 }
 0x250   : > { %v2678_v27 = vadd.f32 %v2677_v43, %v2665_v20 }
 0x252   : > { %v2682_v45 = vadd.f32 %v2678_v27, %v1174_v24  ;;  %2688 = sbr.rel (%p3719_p8) target bundleno = 627 (0x273), region = 82 }
 0x254   : > { %2684 = vst [vmem:[#allocation2 + $0x8] sm:$0xff] %v2682_v45 }
 0x255   : > { %v2666_v28 = vpop.f32.mrf.mxu2 }
 0x256   : > { %v2679_v29 = vpop.f32.mrf.mxu3 }
 0x257   : > { %v2689_v32 = vld [vmem:[#allocation2] sm:$0xff]  ;;  %v2708_v36 = vlaneseq  ;;  %vm2728_vm1 = vcmask 1040384  }
 0x258   : > { %v2691_v35 = vld [vmem:[%s1139_s24] sm:$0x3] }
 0x259   : > { %v2693_v37 = vperm.slane %v2691_v35, 0  ;;  %v2694_v38 = vperm.slane %v2691_v35, 1  ;;  %v2699_v40 = vld [vmem:[%s4728_s6] sm:$0xff]  ;;  %v2709_v5 = vshrl.u32 %v2708_v36, 7  ;;  %vm2733_vm2 = vcmp.lt.s32.totalorder %v2708_v36, 256 }
 0x25a   : > { %v2700_v41 = vunpack.c.l.bf16 %v2699_v40  ;;  %v2701_v44 = vunpack.c.h.bf16 %v2699_v40 }
 0x25b   : > { %v2690_v33 = vld [vmem:[#allocation2 + $0x8] sm:$0xff]  ;;  %v2697_v46 = vadd.f32 %v2693_v37, %v2689_v32  ;;  %vm2710_vm0 = vcmp.lt.s32.totalorder %v2709_v5, 1 }
 0x25c   : > { %v2698_v26 = vadd.f32 %v2694_v38, %v2690_v33 }
 0x25d   : > { %v2702_v47 = vadd.f32 %v2700_v41, %v2697_v46 }
 0x25e   : > { %v2703_v31 = vadd.f32 %v2701_v44, %v2698_v26 }
 0x25f   : > { %v2704_v21 = vmax.f32 %v2702_v47, 0.0 }
 0x260   : > { %v2705_v30 = vmax.f32 %v2703_v31, 0.0 }
 0x261   : > { %v2711_v34 = vsel %vm2710_vm0, %v2704_v21, 0.0 }
 0x262   : > { %v2706_v48 = vpack.c.bf16 %v2705_v30, %v2704_v21  ;;  %v2712_v7 = vsel %vm2710_vm0, %v2705_v30, 0.0  ;;  %v2713_v49 = vrot.slane %v2711_v34, 4 }
 0x263   : > { %v2719_v50 = vrot.slane %v2712_v7, 4 }
 0x264   : > { %2707 = vst [vmem:[%s1115_s0] sm:$0xff] %v2706_v48  ;;  %v2714_v22 = vadd.f32 %v2713_v49, %v2711_v34 }
 0x265   : > { %v2720_v51 = vadd.f32 %v2719_v50, %v2712_v7 }
 0x266   : > { %v2715_v52 = vrot.slane %v2714_v22, 2 }
 0x267   : > { %v2721_v53 = vrot.slane %v2720_v51, 2 }
 0x268   : > { %v2716_v54 = vadd.f32 %v2715_v52, %v2714_v22 }
 0x269   : > { %v2722_v55 = vadd.f32 %v2721_v53, %v2720_v51 }
 0x26a   : > { %v2717_v56 = vrot.slane %v2716_v54, 1 }
 0x26b   : > { %v2723_v57 = vrot.slane %v2722_v55, 1 }
 0x26c   : > { %v2718_v58 = vadd.f32 %v2717_v56, %v2716_v54 }
 0x26d   : > { %v2724_v59 = vadd.f32 %v2723_v57, %v2722_v55 }
 0x26f   : > { %v2727_v60 = vrot.slane %v2724_v59, 7 }
 0x271   : > { %v2729_v61 = vsel %vm2728_vm1, %v2718_v58, %v2727_v60 }
 0x272   : > { %2735 = vst.msk [vmem:[%s1159_s28] sm:$0x3] %vm2733_vm2, %v2729_v61 }
 0x273 PF: > { %s3722_s10 = sshll.u32 %s4137_s25, 2  ;;  %s2760_s9 = sshll.u32 %s1115_s0, 4  ;;  %s2761_s9 = int_to_ptr.vmem [resolvable:$true] %s2760_s9 }
 0x274   : > { %s2756_s11 = sadd.s32 %s3722_s10, %s4702_s15  ;;  %s5276_s12 = sld [smem:[#allocation17_spill]] }
 0x275   : > { %s3723_s24 = sshll.u32 %s2756_s11, 2  ;;  %s5277_s22 = sand.u32 1, %s4113_s19  }
 0x276   : > { %s2737_s28 = scalar_lea.sflag [#allocation5], %s5277_s22 }
 0x27a   : > { %s2758_s1 = scalar_lea.hbm %s5276_s12, %s3723_s24  ;;  %s4047_s0 = scalar_lea.hbm %s5276_s12, 32 }
 0x27b   : > { %s2762_s13 = sshll.u32 %s2758_s1, 4  ;;  %s2763_s13 = int_to_ptr.hbm [resolvable:$true] %s2762_s13 }
 0x27c   : > { %s4041_s6 = sshra.s32 %s2763_s13, 4  ;;  %s4042_s6 = int_to_ptr.hbm [resolvable:$true] %s4041_s6 }
 0x27d   : > { %s4043_s21 = scalar_lea.hbm %s4042_s6, 8  ;;  %p4048_p0 = scmp.lt.s32.totalorder %s4042_s6, %s5276_s12 }
 0x27e   : > { %p4044_p10 = scmp.ne.s32.totalorder %s4042_s6, %s4043_s21  ;;  %p4049_p1 = scmp.lt.s32.totalorder %s4047_s0, %s4043_s21 }
 0x280   : > { %p4045_p11 = pnand %p4044_p10, %p4272_p9  ;;  %p4050_p2 = por %p4049_p1, %p4048_p0 }
 0x282   : > { %p4046_p12 = pneg %p4045_p11 }
 0x284   : > { %p4051_p3 = pnand %p4050_p2, %p4046_p12 }
 0x286   : > { %4054 = shalt.err (!%p4051_p3)
}
 0x287   : > { %3923 = dma.vmem_to_hbm [thread:$0]  (%p4272_p9), %s2761_s9, 128, %s2763_s13, %s2737_s28  }
 0x288 PF: > { %p3929_p4 = scmp.ge.s32.totalorder %s4153_s29, 2  ;;  %s2778_s17 = sand.u32 1, %s4109_s18  }
 0x289   : > { %s2779_s23 = scalar_lea.sflag [#allocation5], %s2778_s17 }
 0x28a   : > { %p3926_p5 = pnand %p3929_p4, %p4285_p13 }
 0x28c   : > { %p3927_p6 = pneg %p3926_p5 }
 0x28e   : > { %4104 = dma.done.wait (%p3927_p6), %s2779_s23, 128  }
 0x28f   : > { %4106 = vsyncadd (%p3927_p6), %s2779_s23, 4294967168  ;;  %s19_s29 = sadd.s32 1, %s4153_s29   ;;  %s5278_s21 = sld [smem:[#allocation7_spill]] }
 0x290   : > { %p16_p7 = scmp.ge.s32.totalorder %s19_s29, 14   ;;  %s5279_s22 = sld [smem:[#allocation14_spill]] }
 0x291   : > { %s5280_s23 = sld [smem:[#allocation8_spill]]  ;;  %s5286_s18 = smov %s4113_s19 }
 0x292   : > { %s5281_s24 = sld [smem:[#allocation9_spill]]  ;;  %s5287_s19 = smov %s4117_s20 }
 0x293   : > { %s5282_s25 = sld [smem:[#allocation10_spill]]  ;;  %s5288_s20 = smov %s4290_s30 }
 0x294   : > { %s5283_s26 = sld [smem:[#allocation11_spill]]  ;;  %18 = sbr.rel (!%p16_p7) target bundleno = 11 (0xb), region = 143 }
 0x295   : > { %s5284_s27 = sld [smem:[#allocation12_spill]] }
 0x296   : > { %s5285_s28 = sld [smem:[#allocation13_spill]] }
 0x299   :  { %2796 = vsyncpa [#allocation5], 1 }
 0x29a   :  { %2798 = vsyncpa [#allocation5 + $0x1], 1 }

</bundles_post_ra>
